<compile_context>
chip_gen: v5e
topology: v5e:2x2
jax: 0.10.0
libtpu: 0.0.40
codegen_flags: <defaults>
</compile_context>

<pallas_src>
import math
import jax
import jax.numpy as jnp
from jax.experimental import pallas as pl
from jax.experimental.pallas import tpu as pltpu

# ----------------------------- small config ---------------------------------
SPEC_CHANNELS = 64
SEGMENT_SIZE = 4
INTER_CHANNELS = 32
HIDDEN_CHANNELS = 32
FILTER_CHANNELS = 64
N_HEADS = 2
N_LAYERS = 2
KERNEL_SIZE = 3
RESBLOCK_KERNEL_SIZES = (3,)
RESBLOCK_DILATION_SIZES = ((1, 3),)
UPSAMPLE_RATES = (2, 2)
UPSAMPLE_INITIAL_CHANNEL = 32
UPSAMPLE_KERNEL_SIZES = (4, 4)
SPK_EMBED_DIM = 4
GIN_CHANNELS = 16
INPUT_DIM = 64
LRELU_SLOPE = 0.1
ENC_Q_WN_LAYERS = 16   # PosteriorEncoder hard-codes 16 WN layers, kernel 5
FLOW_WN_LAYERS = 3     # ResidualCouplingBlock hard-codes 3 WN layers, kernel 5
N_FLOWS = 4

_BF16 = jnp.bfloat16
_F32 = jnp.float32


def _default_vmem_limit():
    # v5e/v6e: 128 MiB physical -> 96 MiB cap; v7x: 64 MiB physical -> 48 MiB.
    try:
        cap = pltpu.get_tpu_info().vmem_capacity_bytes
        return int(min(96 * 1024 * 1024, cap * 3 // 4))
    except Exception:
        return 64 * 1024 * 1024


_VMEM_LIMIT = _default_vmem_limit()


def _cp(*sems):
    return pltpu.CompilerParams(dimension_semantics=sems,
                                vmem_limit_bytes=_VMEM_LIMIT)


# ------------------------- shared in-kernel helpers --------------------------


def _fill_slab(slab_ref, x, *, k_taps, dilation, pad_l, t_out):
    """Pack K shifted copies of x (C, T_in) into slab_ref (K*C, t_out).

    Row block k holds x[:, t + k*dilation - pad_l] (zero where the source index
    is out of range), so a single (Cout, K*C) @ (K*C, t_out) matmul computes the
    whole convolution with contraction depth K*C (fills the MXU, pad fused in).
    """
    c, t_in = x.shape
    for k in range(k_taps):
        off = k * dilation - pad_l
        t0 = max(0, min(t_out, -off))
        t1 = max(t0, min(t_out, t_in - off))
        rows = slice(k * c, (k + 1) * c)
        if t0 > 0:
            slab_ref[rows, :t0] = jnp.zeros((c, t0), slab_ref.dtype)
        if t1 < t_out:
            slab_ref[rows, t1:] = jnp.zeros((c, t_out - t1), slab_ref.dtype)
        if t1 > t0:
            slab_ref[rows, t0:t1] = x[:, t0 + off:t1 + off].astype(slab_ref.dtype)


def _ln_channels(xv, gamma, beta):
    """LayerNorm over the channel (sublane) axis of a (C, T) tile."""
    mean = jnp.mean(xv, axis=0, keepdims=True)
    var = jnp.mean(jnp.square(xv - mean), axis=0, keepdims=True)
    return (xv - mean) * jax.lax.rsqrt(var + 1e-5) * gamma + beta


# ----------------------------- fused Conv1d kernel ---------------------------


def conv1d_fused(x, w, b=None, *, dilation=1, pad_l=0, pad_r=None,
                 mask=None, residual=None, in_lrelu=None, out_lrelu=None,
                 out_scale=None, out_tanh=False):
    """PyTorch-semantics Conv1d on NCW, fully fused in one Pallas kernel.

    One tap-stacked matmul: out = post(W2 @ slab(x) + b), where W2 is
    (Cout, K*Cin) bf16 and slab(x) is built in VMEM scratch (padding included).
    post = [*out_scale] -> [lrelu_out] -> [*mask] -> [+residual] -> [tanh].
    """
    if pad_r is None:
        pad_r = pad_l
    B, Cin, T = x.shape
    Cout, _, K = w.shape
    T_out = T + pad_l + pad_r - dilation * (K - 1)

    # (Cout, Cin, K) -> (Cout, K, Cin) -> (Cout, K*Cin), bf16 (f32 accumulate)
    w2 = jnp.transpose(w, (0, 2, 1)).reshape(Cout, K * Cin).astype(_BF16)

    has_bias = b is not None
    has_mask = mask is not None
    has_res = residual is not None
    use_slab = (K > 1) or pad_l > 0 or pad_r > 0
    if not use_slab:
        assert T_out == T

    operands = [x.astype(_F32), w2]
    in_specs = [pl.BlockSpec((1, Cin, T), lambda i: (i, 0, 0)),
                pl.BlockSpec((Cout, K * Cin), lambda i: (0, 0))]
    if has_bias:
        operands.append(b.reshape(Cout, 1).astype(_F32))
        in_specs.append(pl.BlockSpec((Cout, 1), lambda i: (0, 0)))
    if has_mask:
        operands.append(mask.astype(_F32))
        in_specs.append(pl.BlockSpec((1, 1, T_out), lambda i: (i, 0, 0)))
    if has_res:
        operands.append(residual.astype(_F32))
        in_specs.append(pl.BlockSpec((1, Cout, T_out), lambda i: (i, 0, 0)))

    def kernel(*refs):
        x_ref, w_ref = refs[0], refs[1]
        pos = 2
        b_ref = m_ref = r_ref = None
        if has_bias:
            b_ref = refs[pos]; pos += 1
        if has_mask:
            m_ref = refs[pos]; pos += 1
        if has_res:
            r_ref = refs[pos]; pos += 1
        o_ref = refs[pos]; pos += 1
        slab = refs[pos] if use_slab else None

        xv = x_ref[0]                                          # (Cin, T)
        if in_lrelu is not None:
            xv = jnp.where(xv >= 0, xv, in_lrelu * xv)
        if use_slab:
            _fill_slab(slab, xv, k_taps=K, dilation=dilation,
                       pad_l=pad_l, t_out=T_out)
            rhs = slab[...].astype(_BF16)
        else:
            rhs = xv.astype(_BF16)
        acc = jnp.dot(w_ref[...], rhs, preferred_element_type=_F32)
        if has_bias:
            acc = acc + b_ref[...]
        if out_scale is not None:
            acc = acc * out_scale
        if out_lrelu is not None:
            acc = jnp.where(acc >= 0, acc, out_lrelu * acc)
        if has_mask:
            acc = acc * m_ref[0]
        if has_res:
            acc = acc + r_ref[0]
        if out_tanh:
            acc = jnp.tanh(acc)
        o_ref[0] = acc

    scratch = [pltpu.VMEM((K * Cin, T_out), _F32)] if use_slab else []
    return pl.pallas_call(
        kernel,
        out_shape=jax.ShapeDtypeStruct((B, Cout, T_out), _F32),
        grid=(B,),
        in_specs=in_specs,
        out_specs=pl.BlockSpec((1, Cout, T_out), lambda i: (i, 0, 0)),
        scratch_shapes=scratch,
        compiler_params=_cp("parallel"),
    )(*operands)


def conv_transpose1d_fused(x, w, b, *, stride, padding, in_lrelu=None):
    """PyTorch ConvTranspose1d via polyphase decomposition (no zero insertion).

    x: (B, Cin, T); w: (Cin, Cout, K); b: (Cout,).  Phases are computed as one
    fused conv with stride*Cout output channels, then interleaved.
    """
    B, Cin, T = x.shape
    _, Cout, K = w.shape
    s, p = stride, padding
    T_out = (T - 1) * s - 2 * p + K
    assert T_out % s == 0, "polyphase path assumes stride-divisible output"
    Tm = T_out // s

    entries = []
    for r in range(s):
        for k in range(K):
            if (k - p - r) % s == 0:
                entries.append((r, k, (k - p - r) // s))
    d_vals = [d for _, _, d in entries]
    d_max, d_min = max(d_vals), min(d_vals)
    Kc = d_max - d_min + 1
    pad_l = d_max
    pad_r = Tm - T - d_min
    assert pad_l >= 0 and pad_r >= 0

    wc = jnp.zeros((Cout * s, Cin, Kc), _F32)
    for (r, k, d) in entries:
        wc = wc.at[r * Cout:(r + 1) * Cout, :, d_max - d].set(
            jnp.transpose(w[:, :, k]))
    bc = jnp.tile(b, s) if b is not None else None

    out = conv1d_fused(x, wc, bc, pad_l=pad_l, pad_r=pad_r, in_lrelu=in_lrelu)
    # TODO(synk): interleave the phases in-kernel (strided lane store) instead
    # of this tiny XLA transpose of the (B, s, Cout, Tm) phase block.
    out = out.reshape(B, s, Cout, Tm).transpose(0, 2, 3, 1).reshape(B, Cout, T_out)
    return out


# --------------------------- fused WaveNet (WN) stack ------------------------


def _conv1x1_xla(x, w, b):
    """Tiny 1x1 conv (T == 1 conditioning path) computed in plain XLA."""
    y = jnp.einsum('oc,bct->bot', w[:, :, 0], x)
    if b is not None:
        y = y + b[None, :, None]
    return y


def _wn_cond_bias(g, wn_p, n_layers, hidden):
    """cond_layer(g) reshaped per-layer with the in-conv bias folded in."""
    g_all = _conv1x1_xla(g, wn_p['cond_w'], wn_p['cond_b'])   # (B, 2H*L, 1)
    in_b = jnp.stack(wn_p['in_b'], axis=0)                    # (L, 2H)
    return (g_all.reshape(-1, n_layers, 2 * hidden, 1)
            + in_b[None, :, :, None]).astype(_F32)


def wn_fused(x, x_mask, gb, wn_p, *, n_layers, hidden, kernel_size):
    """Full WN stack as ONE pallas_call, grid=(B, n_layers).

    Batch axis is 'parallel' (splits across v7x cores); the layer axis is a
    serial accumulation with x and the skip accumulator resident in VMEM.  All
    per-layer weights are VMEM-resident bf16 and indexed by the layer id in
    kernel, so there is no per-layer weight DMA.  gb = cond(g)+in_bias, shaped
    (B, L, 2H, 1).
    """
    B, _, T = x.shape
    K = kernel_size
    pad = (K - 1) // 2
    H = hidden
    H2 = 2 * hidden
    L = n_layers

    inw = jnp.stack([jnp.transpose(w, (0, 2, 1)).reshape(H2, K * H)
                     for w in wn_p['in_w']], axis=0).astype(_BF16)  # (L,2H,K*H)
    rsw_l, rsb_l = [], []
    for i in range(L):
        wi = wn_p['rs_w'][i][:, :, 0]
        bi = wn_p['rs_b'][i]
        if wi.shape[0] == H:       # last layer: skip-only -> pad res half with 0
            wi = jnp.concatenate([jnp.zeros((H, H), _F32), wi], axis=0)
            bi = jnp.concatenate([jnp.zeros((H,), _F32), bi], axis=0)
        rsw_l.append(wi)
        rsb_l.append(bi)
    rsw = jnp.stack(rsw_l, axis=0).astype(_BF16)              # (L, 2H, H)
    rsb = jnp.stack(rsb_l, axis=0).reshape(L, H2, 1).astype(_F32)

    def kernel(x_ref, m_ref, gb_ref, inw_ref, rsw_ref, rsb_ref, o_ref,
               x_scr, acc, slab):
        l = pl.program_id(1)
        mask = m_ref[0]                                       # (1, T)

        @pl.when(l == 0)
        def _init():
            x_scr[...] = x_ref[0]
            acc[...] = jnp.zeros_like(acc)

        xc = x_scr[...]                                       # (H, T)
        _fill_slab(slab, xc, k_taps=K, dilation=1, pad_l=pad, t_out=T)
        acts = jnp.dot(inw_ref[l], slab[...].astype(_BF16),
                       preferred_element_type=_F32) + gb_ref[0, l]
        z = jnp.tanh(acts[:H]) * jax.nn.sigmoid(acts[H:])
        rs = jnp.dot(rsw_ref[l], z.astype(_BF16),
                     preferred_element_type=_F32) + rsb_ref[l]
        x_scr[...] = (xc + rs[:H]) * mask
        acc[...] = acc[...] + rs[H:]

        @pl.when(l == L - 1)
        def _fin():
            o_ref[0] = acc[...] * mask

    return pl.pallas_call(
        kernel,
        out_shape=jax.ShapeDtypeStruct((B, H, T), _F32),
        grid=(B, L),
        in_specs=[
            pl.BlockSpec((1, H, T), lambda b, l: (b, 0, 0)),
            pl.BlockSpec((1, 1, T), lambda b, l: (b, 0, 0)),
            pl.BlockSpec((1, L, H2, 1), lambda b, l: (b, 0, 0, 0)),
            pl.BlockSpec((L, H2, K * H), lambda b, l: (0, 0, 0)),
            pl.BlockSpec((L, H2, H), lambda b, l: (0, 0, 0)),
            pl.BlockSpec((L, H2, 1), lambda b, l: (0, 0, 0)),
        ],
        out_specs=pl.BlockSpec((1, H, T), lambda b, l: (b, 0, 0)),
        scratch_shapes=[pltpu.VMEM((H, T), _F32),
                        pltpu.VMEM((H, T), _F32),
                        pltpu.VMEM((K * H, T), _F32)],
        compiler_params=_cp("parallel", "arbitrary"),
    )(x.astype(_F32), x_mask.astype(_F32), gb, inw, rsw, rsb)


# ----------------------- fully fused attention encoder -----------------------


def sequence_mask(lengths, max_len):
    return (jnp.arange(max_len)[None, :] < lengths[:, None]).astype(_F32)


def text_encoder_fused(phone, phone_lengths, p):
    """TextEncoder (emb_phone + N_LAYERS x (MHA + FFN) + proj) as ONE kernel.

    Channel-major (channels on sublanes, time on lanes): every projection /
    conv matmul is lane-dense, and the per-layer activations never leave VMEM.
    grid=(B, N_LAYERS): batch 'parallel', layers 'arbitrary'.
    """
    # TODO(synk): window_size=10 relative positional attention terms omitted.
    # TODO(synk): for production sequence lengths, tile over T (flash-style
    # score blocks) to stay within v7x's 64 MiB VMEM.
    B, T, D = phone.shape
    H = HIDDEN_CHANNELS
    F = FILTER_CHANNELS
    K = KERNEL_SIZE
    L = N_LAYERS
    IC2 = 2 * INTER_CHANNELS
    dk = H // N_HEADS
    att_scale = 1.0 / math.sqrt(dk)
    emb_scale = math.sqrt(H)
    pad = (K - 1) // 2

    mask_cm = sequence_mask(phone_lengths, T)[:, None, :]     # (B, 1, T)
    mask_tm = jnp.transpose(mask_cm, (0, 2, 1))               # (B, T, 1)

    lps = p['layers']
    emb_w = jnp.transpose(p['emb_phone_w']).astype(_BF16)     # (H, D)
    emb_b = p['emb_phone_b'].reshape(H, 1).astype(_F32)
    wqkv = jnp.stack([jnp.concatenate(
        [lp['q_w'][:, :, 0], lp['k_w'][:, :, 0], lp['v_w'][:, :, 0]], axis=0)
        for lp in lps], axis=0).astype(_BF16)                 # (L, 3H, H)
    bqkv = jnp.stack([jnp.concatenate([lp['q_b'], lp['k_b'], lp['v_b']])
                      for lp in lps], axis=0).reshape(L, 3 * H, 1).astype(_F32)
    wo = jnp.stack([lp['o_w'][:, :, 0] for lp in lps], 0).astype(_BF16)
    bo = jnp.stack([lp['o_b'] for lp in lps], 0).reshape(L, H, 1).astype(_F32)
    ln1 = jnp.stack([jnp.stack([lp['n1_g'], lp['n1_b']], 0) for lp in lps],
                    0).reshape(L, 2, H, 1).astype(_F32)
    w1 = jnp.stack([jnp.transpose(lp['c1_w'], (0, 2, 1)).reshape(F, K * H)
                    for lp in lps], 0).astype(_BF16)          # (L, F, K*H)
    b1 = jnp.stack([lp['c1_b'] for lp in lps], 0).reshape(L, F, 1).astype(_F32)
    w2 = jnp.stack([jnp.transpose(lp['c2_w'], (0, 2, 1)).reshape(H, K * F)
                    for lp in lps], 0).astype(_BF16)          # (L, H, K*F)
    b2 = jnp.stack([lp['c2_b'] for lp in lps], 0).reshape(L, H, 1).astype(_F32)
    ln2 = jnp.stack([jnp.stack([lp['n2_g'], lp['n2_b']], 0) for lp in lps],
                    0).reshape(L, 2, H, 1).astype(_F32)
    pw = p['proj_w'][:, :, 0].astype(_BF16)                   # (2IC, H)
    pb = p['proj_b'].reshape(IC2, 1).astype(_F32)

    def kernel(ph_ref, mr_ref, mc_ref, embw_ref, embb_ref,
               wqkv_ref, bqkv_ref, wo_ref, bo_ref, ln1_ref,
               w1_ref, b1_ref, w2_ref, b2_ref, ln2_ref, pw_ref, pb_ref,
               o_ref, x_scr, slab1, slab2):
        l = pl.program_id(1)
        m_row = mr_ref[0]                                     # (1, T)
        m_col = mc_ref[0]                                     # (T, 1)

        @pl.when(l == 0)
        def _init():
            # emb_phone (Linear) + *sqrt(H) + leaky_relu + mask, channel-major.
            ph = ph_ref[0].astype(_BF16)                      # (T, D)
            x0 = jnp.einsum('hd,td->ht', embw_ref[...], ph,
                            preferred_element_type=_F32) + embb_ref[...]
            x0 = x0 * emb_scale
            x0 = jnp.where(x0 >= 0, x0, LRELU_SLOPE * x0)
            x_scr[...] = x0 * m_row

        xc = x_scr[...]                                       # (H, T)
        xb = xc.astype(_BF16)

        # ---- multi-head self-attention (QKV fused into one matmul) ---------
        qkv = jnp.dot(wqkv_ref[l], xb,
                      preferred_element_type=_F32) + bqkv_ref[l]   # (3H, T)
        valid = (m_col * m_row) > 0.0                         # (T, T)
        heads = []
        for h in range(N_HEADS):
            q = qkv[h * dk:(h + 1) * dk]                      # (dk, T)
            kmat = qkv[H + h * dk:H + (h + 1) * dk]
            v = qkv[2 * H + h * dk:2 * H + (h + 1) * dk]
            s = jnp.einsum('dt,ds->ts', q.astype(_BF16), kmat.astype(_BF16),
                           preferred_element_type=_F32) * att_scale
            s = jnp.where(valid, s, jnp.float32(-1e4))
            pattn = jax.nn.softmax(s, axis=-1)
            heads.append(jnp.einsum('ds,ts->dt', v.astype(_BF16),
                                    pattn.astype(_BF16),
                                    preferred_element_type=_F32))
        ho = jnp.concatenate(heads, axis=0)                   # (H, T)
        y = jnp.dot(wo_ref[l], ho.astype(_BF16),
                    preferred_element_type=_F32) + bo_ref[l]
        x1 = _ln_channels(xc + y, ln1_ref[l, 0], ln1_ref[l, 1])

        # ---- FFN: conv(k=3) -> relu -> conv(k=3), masked, +res, LayerNorm --
        _fill_slab(slab1, x1 * m_row, k_taps=K, dilation=1, pad_l=pad, t_out=T)
        hmid = jnp.dot(w1_ref[l], slab1[...].astype(_BF16),
                       preferred_element_type=_F32) + b1_ref[l]    # (F, T)
        hmid = jnp.maximum(hmid, 0.0) * m_row
        _fill_slab(slab2, hmid, k_taps=K, dilation=1, pad_l=pad, t_out=T)
        y2 = (jnp.dot(w2_ref[l], slab2[...].astype(_BF16),
                      preferred_element_type=_F32) + b2_ref[l]) * m_row
        x2 = _ln_channels(x1 + y2, ln2_ref[l, 0], ln2_ref[l, 1])
        x_scr[...] = x2

        @pl.when(l == L - 1)
        def _fin():
            xm = (x2 * m_row).astype(_BF16)
            st = jnp.dot(pw_ref[...], xm,
                         preferred_element_type=_F32) + pb_ref[...]
            o_ref[0] = st * m_row

    cb3 = lambda b, l: (b, 0, 0)
    c2 = lambda b, l: (0, 0)
    c3 = lambda b, l: (0, 0, 0)
    c4 = lambda b, l: (0, 0, 0, 0)
    stats = pl.pallas_call(
        kernel,
        out_shape=jax.ShapeDtypeStruct((B, IC2, T), _F32),
        grid=(B, L),
        in_specs=[
            pl.BlockSpec((1, T, D), cb3),
            pl.BlockSpec((1, 1, T), cb3),
            pl.BlockSpec((1, T, 1), cb3),
            pl.BlockSpec((H, D), c2),
            pl.BlockSpec((H, 1), c2),
            pl.BlockSpec((L, 3 * H, H), c3),
            pl.BlockSpec((L, 3 * H, 1), c3),
            pl.BlockSpec((L, H, H), c3),
            pl.BlockSpec((L, H, 1), c3),
            pl.BlockSpec((L, 2, H, 1), c4),
            pl.BlockSpec((L, F, K * H), c3),
            pl.BlockSpec((L, F, 1), c3),
            pl.BlockSpec((L, H, K * F), c3),
            pl.BlockSpec((L, H, 1), c3),
            pl.BlockSpec((L, 2, H, 1), c4),
            pl.BlockSpec((IC2, H), c2),
            pl.BlockSpec((IC2, 1), c2),
        ],
        out_specs=pl.BlockSpec((1, IC2, T), cb3),
        scratch_shapes=[pltpu.VMEM((H, T), _F32),
                        pltpu.VMEM((K * H, T), _F32),
                        pltpu.VMEM((K * F, T), _F32)],
        compiler_params=_cp("parallel", "arbitrary"),
    )(phone.astype(_F32), mask_cm, mask_tm, emb_w, emb_b, wqkv, bqkv, wo, bo,
      ln1, w1, b1, w2, b2, ln2, pw, pb)

    m = stats[:, :INTER_CHANNELS, :]
    logs = stats[:, INTER_CHANNELS:, :]
    return m, logs, mask_cm


# ------------------------------ fused ResBlock -------------------------------


def resblock_fused(x, rp, ksize, dilations):
    """All conv pairs of one HiFiGAN ResBlock fused into a single kernel."""
    B, C, T = x.shape
    K = ksize
    ND = len(dilations)
    c1w = jnp.stack([jnp.transpose(w, (0, 2, 1)).reshape(C, K * C)
                     for w in rp['c1_w']], 0).astype(_BF16)
    c1b = jnp.stack(rp['c1_b'], 0).reshape(ND, C, 1).astype(_F32)
    c2w = jnp.stack([jnp.transpose(w, (0, 2, 1)).reshape(C, K * C)
                     for w in rp['c2_w']], 0).astype(_BF16)
    c2b = jnp.stack(rp['c2_b'], 0).reshape(ND, C, 1).astype(_F32)

    def kernel_fn(x_ref, w1_ref, b1_ref, w2_ref, b2_ref, o_ref, slab):
        xv = x_ref[0]                                          # (C, T)
        for idx, d in enumerate(dilations):
            xt = jnp.where(xv >= 0, xv, LRELU_SLOPE * xv)
            _fill_slab(slab, xt, k_taps=K, dilation=d,
                       pad_l=(K * d - d) // 2, t_out=T)
            xt = jnp.dot(w1_ref[idx], slab[...].astype(_BF16),
                         preferred_element_type=_F32) + b1_ref[idx]
            xt = jnp.where(xt >= 0, xt, LRELU_SLOPE * xt)
            _fill_slab(slab, xt, k_taps=K, dilation=1,
                       pad_l=(K - 1) // 2, t_out=T)
            xt = jnp.dot(w2_ref[idx], slab[...].astype(_BF16),
                         preferred_element_type=_F32) + b2_ref[idx]
            xv = xv + xt
        o_ref[0] = xv

    return pl.pallas_call(
        kernel_fn,
        out_shape=jax.ShapeDtypeStruct((B, C, T), _F32),
        grid=(B,),
        in_specs=[pl.BlockSpec((1, C, T), lambda i: (i, 0, 0)),
                  pl.BlockSpec((ND, C, K * C), lambda i: (0, 0, 0)),
                  pl.BlockSpec((ND, C, 1), lambda i: (0, 0, 0)),
                  pl.BlockSpec((ND, C, K * C), lambda i: (0, 0, 0)),
                  pl.BlockSpec((ND, C, 1), lambda i: (0, 0, 0))],
        out_specs=pl.BlockSpec((1, C, T), lambda i: (i, 0, 0)),
        scratch_shapes=[pltpu.VMEM((K * C, T), _F32)],
        compiler_params=_cp("parallel"),
    )(x.astype(_F32), c1w, c1b, c2w, c2b)


# ----------------------------- sub-modules -----------------------------------


def posterior_encoder(y, y_lengths, g, p, noise_key):
    B, _, T = y.shape
    x_mask = sequence_mask(y_lengths, T)[:, None, :]
    x = conv1d_fused(y, p['pre_w'], p['pre_b'], mask=x_mask)
    gb = _wn_cond_bias(g, p['wn'], ENC_Q_WN_LAYERS, HIDDEN_CHANNELS)
    x = wn_fused(x, x_mask, gb, p['wn'], n_layers=ENC_Q_WN_LAYERS,
                 hidden=HIDDEN_CHANNELS, kernel_size=5)
    stats = conv1d_fused(x, p['proj_w'], p['proj_b'], mask=x_mask)
    m, logs = stats[:, :INTER_CHANNELS, :], stats[:, INTER_CHANNELS:, :]
    noise = jax.random.normal(noise_key, m.shape, _F32)
    z = (m + noise * jnp.exp(logs)) * x_mask
    return z, m, logs, x_mask


def residual_coupling_layer(x, x_mask, g, p):
    half = x.shape[1] // 2
    x0, x1 = x[:, :half, :], x[:, half:, :]
    h = conv1d_fused(x0, p['pre_w'], p['pre_b'], mask=x_mask)
    gb = _wn_cond_bias(g, p['wn'], FLOW_WN_LAYERS, HIDDEN_CHANNELS)
    h = wn_fused(h, x_mask, gb, p['wn'], n_layers=FLOW_WN_LAYERS,
                 hidden=HIDDEN_CHANNELS, kernel_size=5)
    x1_new = conv1d_fused(h, p['post_w'], p['post_b'], mask=x_mask,
                          residual=x1 * x_mask)          # mean_only, logs = 0
    return jnp.concatenate([x0, x1_new], axis=1)


def flow_forward(x, x_mask, g, flow_params):
    for p in flow_params:
        x = residual_coupling_layer(x, x_mask, g, p)
        x = jnp.flip(x, axis=1)                          # Flip module
    return x


def generator(x, g, p):
    x = conv1d_fused(x, p['pre_w'], p['pre_b'], pad_l=3)
    x = x + _conv1x1_xla(g, p['cond_w'], p['cond_b'])    # (B, C, 1) broadcast
    num_kernels = len(RESBLOCK_KERNEL_SIZES)
    for i, (u, k) in enumerate(zip(UPSAMPLE_RATES, UPSAMPLE_KERNEL_SIZES)):
        x = conv_transpose1d_fused(x, p['up_w'][i], p['up_b'][i],
                                   stride=u, padding=(k - u) // 2,
                                   in_lrelu=LRELU_SLOPE)
        xs = None
        for j, (kk, dil) in enumerate(zip(RESBLOCK_KERNEL_SIZES,
                                          RESBLOCK_DILATION_SIZES)):
            r = resblock_fused(x, p['res'][i][j], kk, dil)
            xs = r if xs is None else xs + r
        x = xs / num_kernels
    x = conv1d_fused(x, p['post_w'], None, pad_l=3,
                     in_lrelu=0.01, out_tanh=True)       # default lrelu slope
    return x


def rand_slice_segments(x, x_lengths, segment_size, key):
    b, d, t = x.shape
    ids_str_max = jnp.maximum(x_lengths - segment_size + 1, 1).astype(_F32)
    ids_str = (jax.random.uniform(key, (b,)) * ids_str_max).astype(jnp.int32)
    ids_str = jnp.clip(ids_str, 0, t - segment_size)

    def take(xi, s):
        return jax.lax.dynamic_slice_in_dim(xi, s, segment_size, axis=1)

    return jax.vmap(take)(x, ids_str), ids_str


# ----------------------------- full forward ----------------------------------


def synthesizer_forward(params, phone, phone_lengths, y, y_lengths, ds, rng):
    k_noise, k_slice = jax.random.split(rng)
    g = params['emb_g'][ds][:, :, None]                  # (B, gin, 1)
    m_p, logs_p, x_mask = text_encoder_fused(phone, phone_lengths,
                                             params['enc_p'])
    z, m_q, logs_q, y_mask = posterior_encoder(y, y_lengths, g,
                                               params['enc_q'], k_noise)
    z_p = flow_forward(z, y_mask, g, params['flow'])
    z_slice, ids_slice = rand_slice_segments(z, y_lengths, SEGMENT_SIZE, k_slice)
    o = generator(z_slice, g, params['dec'])
    return o, ids_slice, x_mask, y_mask, (z, z_p, m_p, logs_p, m_q, logs_q)


# ----------------------------- parameter init --------------------------------


def init_params(key):
    key_iter = iter(jax.random.split(key, 2048))

    def w(*shape, scale=0.1):
        return (scale * jax.random.normal(next(key_iter), shape)).astype(_F32)

    def make_wn(n_layers, hidden, kernel):
        return {
            'in_w': [w(2 * hidden, hidden, kernel) for _ in range(n_layers)],
            'in_b': [w(2 * hidden) for _ in range(n_layers)],
            'rs_w': [w(2 * hidden if i < n_layers - 1 else hidden, hidden, 1)
                     for i in range(n_layers)],
            'rs_b': [w(2 * hidden if i < n_layers - 1 else hidden)
                     for i in range(n_layers)],
            'cond_w': w(2 * hidden * n_layers, GIN_CHANNELS, 1),
            'cond_b': w(2 * hidden * n_layers),
        }

    params = {'emb_g': w(SPK_EMBED_DIM, GIN_CHANNELS)}

    enc_p = {
        'emb_phone_w': w(INPUT_DIM, HIDDEN_CHANNELS),
        'emb_phone_b': w(HIDDEN_CHANNELS),
        'proj_w': w(2 * INTER_CHANNELS, HIDDEN_CHANNELS, 1),
        'proj_b': w(2 * INTER_CHANNELS),
        'layers': [],
    }
    for _ in range(N_LAYERS):
        enc_p['layers'].append({
            'q_w': w(HIDDEN_CHANNELS, HIDDEN_CHANNELS, 1), 'q_b': w(HIDDEN_CHANNELS),
            'k_w': w(HIDDEN_CHANNELS, HIDDEN_CHANNELS, 1), 'k_b': w(HIDDEN_CHANNELS),
            'v_w': w(HIDDEN_CHANNELS, HIDDEN_CHANNELS, 1), 'v_b': w(HIDDEN_CHANNELS),
            'o_w': w(HIDDEN_CHANNELS, HIDDEN_CHANNELS, 1), 'o_b': w(HIDDEN_CHANNELS),
            'n1_g': jnp.ones((HIDDEN_CHANNELS,), _F32),
            'n1_b': jnp.zeros((HIDDEN_CHANNELS,), _F32),
            'c1_w': w(FILTER_CHANNELS, HIDDEN_CHANNELS, KERNEL_SIZE),
            'c1_b': w(FILTER_CHANNELS),
            'c2_w': w(HIDDEN_CHANNELS, FILTER_CHANNELS, KERNEL_SIZE),
            'c2_b': w(HIDDEN_CHANNELS),
            'n2_g': jnp.ones((HIDDEN_CHANNELS,), _F32),
            'n2_b': jnp.zeros((HIDDEN_CHANNELS,), _F32),
        })
    params['enc_p'] = enc_p

    params['enc_q'] = {
        'pre_w': w(HIDDEN_CHANNELS, SPEC_CHANNELS, 1), 'pre_b': w(HIDDEN_CHANNELS),
        'wn': make_wn(ENC_Q_WN_LAYERS, HIDDEN_CHANNELS, 5),
        'proj_w': w(2 * INTER_CHANNELS, HIDDEN_CHANNELS, 1),
        'proj_b': w(2 * INTER_CHANNELS),
    }

    half = INTER_CHANNELS // 2
    params['flow'] = [{
        'pre_w': w(HIDDEN_CHANNELS, half, 1), 'pre_b': w(HIDDEN_CHANNELS),
        'wn': make_wn(FLOW_WN_LAYERS, HIDDEN_CHANNELS, 5),
        # PyTorch RVC zero-inits the coupling post conv (identity at init).
        'post_w': jnp.zeros((half, HIDDEN_CHANNELS, 1), _F32),
        'post_b': jnp.zeros((half,), _F32),
    } for _ in range(N_FLOWS)]

    dec = {
        'pre_w': w(UPSAMPLE_INITIAL_CHANNEL, INTER_CHANNELS, 7),
        'pre_b': w(UPSAMPLE_INITIAL_CHANNEL),
        'cond_w': w(UPSAMPLE_INITIAL_CHANNEL, GIN_CHANNELS, 1),
        'cond_b': w(UPSAMPLE_INITIAL_CHANNEL),
        'up_w': [], 'up_b': [], 'res': [],
    }
    ch = UPSAMPLE_INITIAL_CHANNEL
    for i, (u, k) in enumerate(zip(UPSAMPLE_RATES, UPSAMPLE_KERNEL_SIZES)):
        ch_out = UPSAMPLE_INITIAL_CHANNEL // (2 ** (i + 1))
        dec['up_w'].append(w(ch, ch_out, k))             # ConvTranspose1d (Cin,Cout,K)
        dec['up_b'].append(w(ch_out))
        blocks = []
        for kk, dil in zip(RESBLOCK_KERNEL_SIZES, RESBLOCK_DILATION_SIZES):
            blocks.append({
                'c1_w': [w(ch_out, ch_out, kk) for _ in dil],
                'c1_b': [w(ch_out) for _ in dil],
                'c2_w': [w(ch_out, ch_out, kk) for _ in dil],
                'c2_b': [w(ch_out) for _ in dil],
            })
        dec['res'].append(blocks)
        ch = ch_out
    dec['post_w'] = w(1, ch, 7)                          # bias=False
    params['dec'] = dec
    return params


# ----------------------------------- main -------------------------------------

if __name__ == "__main__":
    key = jax.random.PRNGKey(0)
    k_par, k_phone, k_y, k_fwd = jax.random.split(key, 4)
    params = init_params(k_par)

    B, T_PH, T_Y = 2, 8, 16
    phone = jax.random.normal(k_phone, (B, T_PH, INPUT_DIM), _F32)
    phone_lengths = jnp.array([8, 6], jnp.int32)
    y = jax.random.normal(k_y, (B, SPEC_CHANNELS, T_Y), _F32)
    y_lengths = jnp.array([16, 12], jnp.int32)
    ds = jnp.array([0, 3], jnp.int32)

    fwd = jax.jit(synthesizer_forward)
    out = fwd(params, phone, phone_lengths, y, y_lengths, ds, k_fwd)
    out = jax.block_until_ready(out)

    o, ids_slice, x_mask, y_mask, (z, z_p, m_p, logs_p, m_q, logs_q) = out
    up_total = 1
    for u in UPSAMPLE_RATES:
        up_total *= u
    assert o.shape == (B, 1, SEGMENT_SIZE * up_total)
    assert x_mask.shape == (B, 1, T_PH) and y_mask.shape == (B, 1, T_Y)
    assert z.shape == z_p.shape == (B, INTER_CHANNELS, T_Y)
    assert m_p.shape == logs_p.shape == (B, INTER_CHANNELS, T_PH)
    assert m_q.shape == logs_q.shape == (B, INTER_CHANNELS, T_Y)
    assert jnp.all(jnp.isfinite(o))
    print("KERNEL_OK")
</pallas_src>

<mosaic_0001>
module attributes {stable_mosaic.version = 11 : i64} {
  func.func @kernel(%arg0: i32, %arg1: memref<1x64x16xf32, #tpu.memory_space<vmem>>, %arg2: memref<32x64xbf16, #tpu.memory_space<vmem>>, %arg3: memref<32x1xf32, #tpu.memory_space<vmem>>, %arg4: memref<1x1x16xf32, #tpu.memory_space<vmem>>, %arg5: memref<1x32x16xf32, #tpu.memory_space<vmem>>) attributes {dimension_semantics = [#tpu.dimension_semantics<parallel>], iteration_bounds = array<i64: 2>, scalar_prefetch = 0 : i64, scratch_operands = 0 : i64, tpu.core_type = #tpu.core_type<tc>, window_params = [{transform_indices = @transform_0, window_bounds = array<i64: 1, 64, 16>}, {pipeline_mode = #tpu.pipeline_mode<synchronous>, transform_indices = @transform_1, window_bounds = array<i64: 32, 64>}, {pipeline_mode = #tpu.pipeline_mode<synchronous>, transform_indices = @transform_2, window_bounds = array<i64: 32, 1>}, {transform_indices = @transform_3, window_bounds = array<i64: 1, 1, 16>}, {transform_indices = @transform_4, window_bounds = array<i64: 1, 32, 16>}]} {
    %c0 = arith.constant 0 : index
    %c0_0 = arith.constant 0 : index
    %c0_1 = arith.constant 0 : index
    %0 = vector.load %arg1[%c0, %c0_0, %c0_1] : memref<1x64x16xf32, #tpu.memory_space<vmem>>, vector<1x64x16xf32>
    %1 = vector.shape_cast %0 : vector<1x64x16xf32> to vector<64x16xf32>
    %2 = arith.truncf %1 : vector<64x16xf32> to vector<64x16xbf16>
    %c0_2 = arith.constant 0 : index
    %c0_3 = arith.constant 0 : index
    %3 = vector.load %arg2[%c0_2, %c0_3] : memref<32x64xbf16, #tpu.memory_space<vmem>>, vector<32x64xbf16>
    %cst = arith.constant dense<0.000000e+00> : vector<32x16xf32>
    %4 = tpu.matmul %3, %2, %cst {dimension_numbers = #tpu.dot_dimension_numbers<[1], [0], [0], [1], [0, 0, 1, 1], [], []>} : vector<32x64xbf16>, vector<64x16xbf16>, vector<32x16xf32> -> vector<32x16xf32>
    %c0_4 = arith.constant 0 : index
    %c0_5 = arith.constant 0 : index
    %5 = vector.load %arg3[%c0_4, %c0_5] : memref<32x1xf32, #tpu.memory_space<vmem>>, vector<32x1xf32>
    %6 = vector.broadcast %5 : vector<32x1xf32> to vector<32x16xf32>
    %7 = arith.addf %4, %6 : vector<32x16xf32>
    %c0_6 = arith.constant 0 : index
    %c0_7 = arith.constant 0 : index
    %c0_8 = arith.constant 0 : index
    %8 = vector.load %arg4[%c0_6, %c0_7, %c0_8] : memref<1x1x16xf32, #tpu.memory_space<vmem>>, vector<1x1x16xf32>
    %9 = vector.shape_cast %8 : vector<1x1x16xf32> to vector<1x16xf32>
    %10 = vector.broadcast %9 : vector<1x16xf32> to vector<32x16xf32>
    %11 = arith.mulf %7, %10 : vector<32x16xf32>
    %c0_9 = arith.constant 0 : index
    %c0_10 = arith.constant 0 : index
    %c0_11 = arith.constant 0 : index
    %12 = vector.load %arg5[%c0_9, %c0_10, %c0_11] : memref<1x32x16xf32, #tpu.memory_space<vmem>>, vector<1x32x16xf32>
    %13 = vector.shape_cast %12 : vector<1x32x16xf32> to vector<32x16xf32>
    %14 = vector.shape_cast %11 : vector<32x16xf32> to vector<1x32x16xf32>
    tpu.vector_store %arg5[%c0_9, %c0_10, %c0_11], %14 {strides = array<i32>} : memref<1x32x16xf32, #tpu.memory_space<vmem>>, vector<1x32x16xf32>,
    return
  }
  func.func @transform_0(%arg0: i32) -> (i32, i32, i32) {
    %c0_i32 = arith.constant 0 : i32
    %c0_i32_0 = arith.constant 0 : i32
    %c0_i32_1 = arith.constant 0 : i32
    return %arg0, %c0_i32, %c0_i32_0 : i32, i32, i32
  }
  func.func @transform_1(%arg0: i32) -> (i32, i32) {
    %c0_i32 = arith.constant 0 : i32
    %c0_i32_0 = arith.constant 0 : i32
    %c0_i32_1 = arith.constant 0 : i32
    return %c0_i32, %c0_i32_0 : i32, i32
  }
  func.func @transform_2(%arg0: i32) -> (i32, i32) {
    %c0_i32 = arith.constant 0 : i32
    %c0_i32_0 = arith.constant 0 : i32
    %c0_i32_1 = arith.constant 0 : i32
    return %c0_i32, %c0_i32_0 : i32, i32
  }
  func.func @transform_3(%arg0: i32) -> (i32, i32, i32) {
    %c0_i32 = arith.constant 0 : i32
    %c0_i32_0 = arith.constant 0 : i32
    %c0_i32_1 = arith.constant 0 : i32
    return %arg0, %c0_i32, %c0_i32_0 : i32, i32, i32
  }
  func.func @transform_4(%arg0: i32) -> (i32, i32, i32) {
    %c0_i32 = arith.constant 0 : i32
    %c0_i32_0 = arith.constant 0 : i32
    %c0_i32_1 = arith.constant 0 : i32
    return %arg0, %c0_i32, %c0_i32_0 : i32, i32, i32
  }
}

module attributes {stable_mosaic.version = 11 : i64} {
  func.func @kernel(%arg0: i32, %arg1: i32, %arg2: memref<1x32x16xf32, #tpu.memory_space<vmem>>, %arg3: memref<1x1x16xf32, #tpu.memory_space<vmem>>, %arg4: memref<1x16x64x1xf32, #tpu.memory_space<vmem>>, %arg5: memref<16x64x160xbf16, #tpu.memory_space<vmem>>, %arg6: memref<16x64x32xbf16, #tpu.memory_space<vmem>>, %arg7: memref<16x64x1xf32, #tpu.memory_space<vmem>>, %arg8: memref<1x32x16xf32, #tpu.memory_space<vmem>>, %arg9: memref<32x16xf32, #tpu.memory_space<vmem>>, %arg10: memref<32x16xf32, #tpu.memory_space<vmem>>, %arg11: memref<160x16xf32, #tpu.memory_space<vmem>>) attributes {dimension_semantics = [#tpu.dimension_semantics<parallel>, #tpu.dimension_semantics<arbitrary>], iteration_bounds = array<i64: 2, 16>, scalar_prefetch = 0 : i64, scratch_operands = 3 : i64, tpu.core_type = #tpu.core_type<tc>, window_params = [{transform_indices = @transform_0, window_bounds = array<i64: 1, 32, 16>}, {transform_indices = @transform_1, window_bounds = array<i64: 1, 1, 16>}, {transform_indices = @transform_2, window_bounds = array<i64: 1, 16, 64, 1>}, {pipeline_mode = #tpu.pipeline_mode<synchronous>, transform_indices = @transform_3, window_bounds = array<i64: 16, 64, 160>}, {pipeline_mode = #tpu.pipeline_mode<synchronous>, transform_indices = @transform_4, window_bounds = array<i64: 16, 64, 32>}, {pipeline_mode = #tpu.pipeline_mode<synchronous>, transform_indices = @transform_5, window_bounds = array<i64: 16, 64, 1>}, {transform_indices = @transform_6, window_bounds = array<i64: 1, 32, 16>}]} {
    %c0 = arith.constant 0 : index
    %c0_0 = arith.constant 0 : index
    %c0_1 = arith.constant 0 : index
    %0 = vector.load %arg3[%c0, %c0_0, %c0_1] : memref<1x1x16xf32, #tpu.memory_space<vmem>>, vector<1x1x16xf32>
    %1 = vector.shape_cast %0 : vector<1x1x16xf32> to vector<1x16xf32>
    %c0_i32 = arith.constant 0 : i32
    %2 = arith.cmpi eq, %arg1, %c0_i32 : i32
    %3 = arith.extui %2 : i1 to i32
    %c0_i32_2 = arith.constant 0 : i32
    %4 = arith.cmpi ne, %3, %c0_i32_2 : i32
    scf.if %4 {
      %c0_39 = arith.constant 0 : index
      %c0_40 = arith.constant 0 : index
      %c0_41 = arith.constant 0 : index
      %65 = vector.load %arg2[%c0_39, %c0_40, %c0_41] : memref<1x32x16xf32, #tpu.memory_space<vmem>>, vector<1x32x16xf32>
      %66 = vector.shape_cast %65 : vector<1x32x16xf32> to vector<32x16xf32>
      %c0_42 = arith.constant 0 : index
      %c0_43 = arith.constant 0 : index
      %67 = vector.load %arg9[%c0_42, %c0_43] : memref<32x16xf32, #tpu.memory_space<vmem>>, vector<32x16xf32>
      tpu.vector_store %arg9[%c0_42, %c0_43], %66 {strides = array<i32>} : memref<32x16xf32, #tpu.memory_space<vmem>>, vector<32x16xf32>,
      %cst_44 = arith.constant 0.000000e+00 : f32
      %68 = vector.broadcast %cst_44 : f32 to vector<32x16xf32>
      %c0_45 = arith.constant 0 : index
      %c0_46 = arith.constant 0 : index
      %69 = vector.load %arg10[%c0_45, %c0_46] : memref<32x16xf32, #tpu.memory_space<vmem>>, vector<32x16xf32>
      tpu.vector_store %arg10[%c0_45, %c0_46], %68 {strides = array<i32>} : memref<32x16xf32, #tpu.memory_space<vmem>>, vector<32x16xf32>,
    } else {
    }
    %c0_3 = arith.constant 0 : index
    %c0_4 = arith.constant 0 : index
    %5 = vector.load %arg9[%c0_3, %c0_4] : memref<32x16xf32, #tpu.memory_space<vmem>>, vector<32x16xf32>
    %cst = arith.constant 0.000000e+00 : f32
    %6 = vector.broadcast %cst : f32 to vector<32x2xf32>
    %c0_5 = arith.constant 0 : index
    %c0_6 = arith.constant 0 : index
    %7 = vector.load %arg11[%c0_5, %c0_6] : memref<160x16xf32, #tpu.memory_space<vmem>>, vector<32x2xf32>
    tpu.vector_store %arg11[%c0_5, %c0_6], %6 {strides = array<i32>} : memref<160x16xf32, #tpu.memory_space<vmem>>, vector<32x2xf32>,
    %8 = vector.extract_strided_slice %5 {offsets = [0, 0], sizes = [32, 14], strides = [1, 1]} : vector<32x16xf32> to vector<32x14xf32>
    %c0_7 = arith.constant 0 : index
    %c2 = arith.constant 2 : index
    %9 = vector.load %arg11[%c0_7, %c2] : memref<160x16xf32, #tpu.memory_space<vmem>>, vector<32x14xf32>
    tpu.vector_store %arg11[%c0_7, %c2], %8 {strides = array<i32>} : memref<160x16xf32, #tpu.memory_space<vmem>>, vector<32x14xf32>,
    %cst_8 = arith.constant 0.000000e+00 : f32
    %10 = vector.broadcast %cst_8 : f32 to vector<32x1xf32>
    %c32 = arith.constant 32 : index
    %c0_9 = arith.constant 0 : index
    %11 = vector.load %arg11[%c32, %c0_9] : memref<160x16xf32, #tpu.memory_space<vmem>>, vector<32x1xf32>
    tpu.vector_store %arg11[%c32, %c0_9], %10 {strides = array<i32>} : memref<160x16xf32, #tpu.memory_space<vmem>>, vector<32x1xf32>,
    %12 = vector.extract_strided_slice %5 {offsets = [0, 0], sizes = [32, 15], strides = [1, 1]} : vector<32x16xf32> to vector<32x15xf32>
    %c32_10 = arith.constant 32 : index
    %c1 = arith.constant 1 : index
    %13 = vector.load %arg11[%c32_10, %c1] : memref<160x16xf32, #tpu.memory_space<vmem>>, vector<32x15xf32>
    tpu.vector_store %arg11[%c32_10, %c1], %12 {strides = array<i32>} : memref<160x16xf32, #tpu.memory_space<vmem>>, vector<32x15xf32>,
    %c64 = arith.constant 64 : index
    %c0_11 = arith.constant 0 : index
    %14 = vector.load %arg11[%c64, %c0_11] : memref<160x16xf32, #tpu.memory_space<vmem>>, vector<32x16xf32>
    tpu.vector_store %arg11[%c64, %c0_11], %5 {strides = array<i32>} : memref<160x16xf32, #tpu.memory_space<vmem>>, vector<32x16xf32>,
    %cst_12 = arith.constant 0.000000e+00 : f32
    %15 = vector.broadcast %cst_12 : f32 to vector<32x1xf32>
    %c96 = arith.constant 96 : index
    %c15 = arith.constant 15 : index
    %16 = vector.load %arg11[%c96, %c15] : memref<160x16xf32, #tpu.memory_space<vmem>>, vector<32x1xf32>
    tpu.vector_store %arg11[%c96, %c15], %15 {strides = array<i32>} : memref<160x16xf32, #tpu.memory_space<vmem>>, vector<32x1xf32>,
    %17 = vector.extract_strided_slice %5 {offsets = [0, 1], sizes = [32, 15], strides = [1, 1]} : vector<32x16xf32> to vector<32x15xf32>
    %c96_13 = arith.constant 96 : index
    %c0_14 = arith.constant 0 : index
    %18 = vector.load %arg11[%c96_13, %c0_14] : memref<160x16xf32, #tpu.memory_space<vmem>>, vector<32x15xf32>
    tpu.vector_store %arg11[%c96_13, %c0_14], %17 {strides = array<i32>} : memref<160x16xf32, #tpu.memory_space<vmem>>, vector<32x15xf32>,
    %cst_15 = arith.constant 0.000000e+00 : f32
    %19 = vector.broadcast %cst_15 : f32 to vector<32x2xf32>
    %c128 = arith.constant 128 : index
    %c14 = arith.constant 14 : index
    %20 = vector.load %arg11[%c128, %c14] : memref<160x16xf32, #tpu.memory_space<vmem>>, vector<32x2xf32>
    tpu.vector_store %arg11[%c128, %c14], %19 {strides = array<i32>} : memref<160x16xf32, #tpu.memory_space<vmem>>, vector<32x2xf32>,
    %21 = vector.extract_strided_slice %5 {offsets = [0, 2], sizes = [32, 14], strides = [1, 1]} : vector<32x16xf32> to vector<32x14xf32>
    %c128_16 = arith.constant 128 : index
    %c0_17 = arith.constant 0 : index
    %22 = vector.load %arg11[%c128_16, %c0_17] : memref<160x16xf32, #tpu.memory_space<vmem>>, vector<32x14xf32>
    tpu.vector_store %arg11[%c128_16, %c0_17], %21 {strides = array<i32>} : memref<160x16xf32, #tpu.memory_space<vmem>>, vector<32x14xf32>,
    %23 = arith.index_cast %arg1 : i32 to index
    %c0_18 = arith.constant 0 : index
    %c0_19 = arith.constant 0 : index
    %24 = vector.load %arg5[%23, %c0_18, %c0_19] : memref<16x64x160xbf16, #tpu.memory_space<vmem>>, vector<1x64x160xbf16>
    %25 = vector.shape_cast %24 : vector<1x64x160xbf16> to vector<64x160xbf16>
    %c0_20 = arith.constant 0 : index
    %c0_21 = arith.constant 0 : index
    %26 = vector.load %arg11[%c0_20, %c0_21] : memref<160x16xf32, #tpu.memory_space<vmem>>, vector<160x16xf32>
    %27 = arith.truncf %26 : vector<160x16xf32> to vector<160x16xbf16>
    %cst_22 = arith.constant dense<0.000000e+00> : vector<64x16xf32>
    %28 = tpu.matmul %25, %27, %cst_22 {dimension_numbers = #tpu.dot_dimension_numbers<[1], [0], [0], [1], [0, 0, 1, 1], [], []>} : vector<64x160xbf16>, vector<160x16xbf16>, vector<64x16xf32> -> vector<64x16xf32>
    %c0_23 = arith.constant 0 : index
    %29 = arith.index_cast %arg1 : i32 to index
    %c0_24 = arith.constant 0 : index
    %c0_25 = arith.constant 0 : index
    %30 = vector.load %arg4[%c0_23, %29, %c0_24, %c0_25] : memref<1x16x64x1xf32, #tpu.memory_space<vmem>>, vector<1x1x64x1xf32>
    %31 = vector.shape_cast %30 : vector<1x1x64x1xf32> to vector<64x1xf32>
    %32 = vector.broadcast %31 : vector<64x1xf32> to vector<64x16xf32>
    %33 = arith.addf %28, %32 : vector<64x16xf32>
    %34 = vector.extract_strided_slice %33 {offsets = [0, 0], sizes = [32, 16], strides = [1, 1]} : vector<64x16xf32> to vector<32x16xf32>
    %35 = math.tanh %34 : vector<32x16xf32>
    %36 = vector.extract_strided_slice %33 {offsets = [32, 0], sizes = [32, 16], strides = [1, 1]} : vector<64x16xf32> to vector<32x16xf32>
    %37 = arith.negf %36 : vector<32x16xf32>
    %38 = math.exp %37 : vector<32x16xf32>
    %cst_26 = arith.constant 1.000000e+00 : f32
    %39 = vector.broadcast %cst_26 : f32 to vector<32x16xf32>
    %40 = arith.addf %39, %38 : vector<32x16xf32>
    %41 = arith.divf %39, %40 : vector<32x16xf32>
    %42 = arith.mulf %35, %41 : vector<32x16xf32>
    %43 = arith.index_cast %arg1 : i32 to index
    %c0_27 = arith.constant 0 : index
    %c0_28 = arith.constant 0 : index
    %44 = vector.load %arg6[%43, %c0_27, %c0_28] : memref<16x64x32xbf16, #tpu.memory_space<vmem>>, vector<1x64x32xbf16>
    %45 = vector.shape_cast %44 : vector<1x64x32xbf16> to vector<64x32xbf16>
    %46 = arith.truncf %42 : vector<32x16xf32> to vector<32x16xbf16>
    %cst_29 = arith.constant dense<0.000000e+00> : vector<64x16xf32>
    %47 = tpu.matmul %45, %46, %cst_29 {dimension_numbers = #tpu.dot_dimension_numbers<[1], [0], [0], [1], [0, 0, 1, 1], [], []>} : vector<64x32xbf16>, vector<32x16xbf16>, vector<64x16xf32> -> vector<64x16xf32>
    %48 = arith.index_cast %arg1 : i32 to index
    %c0_30 = arith.constant 0 : index
    %c0_31 = arith.constant 0 : index
    %49 = vector.load %arg7[%48, %c0_30, %c0_31] : memref<16x64x1xf32, #tpu.memory_space<vmem>>, vector<1x64x1xf32>
    %50 = vector.shape_cast %49 : vector<1x64x1xf32> to vector<64x1xf32>
    %51 = vector.broadcast %50 : vector<64x1xf32> to vector<64x16xf32>
    %52 = arith.addf %47, %51 : vector<64x16xf32>
    %53 = vector.extract_strided_slice %52 {offsets = [0, 0], sizes = [32, 16], strides = [1, 1]} : vector<64x16xf32> to vector<32x16xf32>
    %54 = arith.addf %5, %53 : vector<32x16xf32>
    %55 = vector.broadcast %1 : vector<1x16xf32> to vector<32x16xf32>
    %56 = arith.mulf %54, %55 : vector<32x16xf32>
    %c0_32 = arith.constant 0 : index
    %c0_33 = arith.constant 0 : index
    %57 = vector.load %arg9[%c0_32, %c0_33] : memref<32x16xf32, #tpu.memory_space<vmem>>, vector<32x16xf32>
    tpu.vector_store %arg9[%c0_32, %c0_33], %56 {strides = array<i32>} : memref<32x16xf32, #tpu.memory_space<vmem>>, vector<32x16xf32>,
    %c0_34 = arith.constant 0 : index
    %c0_35 = arith.constant 0 : index
    %58 = vector.load %arg10[%c0_34, %c0_35] : memref<32x16xf32, #tpu.memory_space<vmem>>, vector<32x16xf32>
    %59 = vector.extract_strided_slice %52 {offsets = [32, 0], sizes = [32, 16], strides = [1, 1]} : vector<64x16xf32> to vector<32x16xf32>
    %60 = arith.addf %58, %59 : vector<32x16xf32>
    %c0_36 = arith.constant 0 : index
    %c0_37 = arith.constant 0 : index
    %61 = vector.load %arg10[%c0_36, %c0_37] : memref<32x16xf32, #tpu.memory_space<vmem>>, vector<32x16xf32>
    tpu.vector_store %arg10[%c0_36, %c0_37], %60 {strides = array<i32>} : memref<32x16xf32, #tpu.memory_space<vmem>>, vector<32x16xf32>,
    %c15_i32 = arith.constant 15 : i32
    %62 = arith.cmpi eq, %arg1, %c15_i32 : i32
    %63 = arith.extui %62 : i1 to i32
    %c0_i32_38 = arith.constant 0 : i32
    %64 = arith.cmpi ne, %63, %c0_i32_38 : i32
    scf.if %64 {
      %c0_39 = arith.constant 0 : index
      %c0_40 = arith.constant 0 : index
      %65 = vector.load %arg10[%c0_39, %c0_40] : memref<32x16xf32, #tpu.memory_space<vmem>>, vector<32x16xf32>
      %66 = vector.broadcast %1 : vector<1x16xf32> to vector<32x16xf32>
      %67 = arith.mulf %65, %66 : vector<32x16xf32>
      %c0_41 = arith.constant 0 : index
      %c0_42 = arith.constant 0 : index
      %c0_43 = arith.constant 0 : index
      %68 = vector.load %arg8[%c0_41, %c0_42, %c0_43] : memref<1x32x16xf32, #tpu.memory_space<vmem>>, vector<1x32x16xf32>
      %69 = vector.shape_cast %68 : vector<1x32x16xf32> to vector<32x16xf32>
      %70 = vector.shape_cast %67 : vector<32x16xf32> to vector<1x32x16xf32>
      tpu.vector_store %arg8[%c0_41, %c0_42, %c0_43], %70 {strides = array<i32>} : memref<1x32x16xf32, #tpu.memory_space<vmem>>, vector<1x32x16xf32>,
    } else {
    }
    return
  }
  func.func @transform_0(%arg0: i32, %arg1: i32) -> (i32, i32, i32) {
    %c0_i32 = arith.constant 0 : i32
    %c0_i32_0 = arith.constant 0 : i32
    %c0_i32_1 = arith.constant 0 : i32
    return %arg0, %c0_i32, %c0_i32_0 : i32, i32, i32
  }
  func.func @transform_1(%arg0: i32, %arg1: i32) -> (i32, i32, i32) {
    %c0_i32 = arith.constant 0 : i32
    %c0_i32_0 = arith.constant 0 : i32
    %c0_i32_1 = arith.constant 0 : i32
    return %arg0, %c0_i32, %c0_i32_0 : i32, i32, i32
  }
  func.func @transform_2(%arg0: i32, %arg1: i32) -> (i32, i32, i32, i32) {
    %c0_i32 = arith.constant 0 : i32
    %c0_i32_0 = arith.constant 0 : i32
    %c0_i32_1 = arith.constant 0 : i32
    %c0_i32_2 = arith.constant 0 : i32
    return %arg0, %c0_i32, %c0_i32_0, %c0_i32_1 : i32, i32, i32, i32
  }
  func.func @transform_3(%arg0: i32, %arg1: i32) -> (i32, i32, i32) {
    %c0_i32 = arith.constant 0 : i32
    %c0_i32_0 = arith.constant 0 : i32
    %c0_i32_1 = arith.constant 0 : i32
    %c0_i32_2 = arith.constant 0 : i32
    return %c0_i32, %c0_i32_0, %c0_i32_1 : i32, i32, i32
  }
  func.func @transform_4(%arg0: i32, %arg1: i32) -> (i32, i32, i32) {
    %c0_i32 = arith.constant 0 : i32
    %c0_i32_0 = arith.constant 0 : i32
    %c0_i32_1 = arith.constant 0 : i32
    %c0_i32_2 = arith.constant 0 : i32
    return %c0_i32, %c0_i32_0, %c0_i32_1 : i32, i32, i32
  }
  func.func @transform_5(%arg0: i32, %arg1: i32) -> (i32, i32, i32) {
    %c0_i32 = arith.constant 0 : i32
    %c0_i32_0 = arith.constant 0 : i32
    %c0_i32_1 = arith.constant 0 : i32
    %c0_i32_2 = arith.constant 0 : i32
    return %c0_i32, %c0_i32_0, %c0_i32_1 : i32, i32, i32
  }
  func.func @transform_6(%arg0: i32, %arg1: i32) -> (i32, i32, i32) {
    %c0_i32 = arith.constant 0 : i32
    %c0_i32_0 = arith.constant 0 : i32
    %c0_i32_1 = arith.constant 0 : i32
    return %arg0, %c0_i32, %c0_i32_0 : i32, i32, i32
  }
}

module attributes {stable_mosaic.version = 11 : i64} {
  func.func @kernel(%arg0: i32, %arg1: memref<1x32x16xf32, #tpu.memory_space<vmem>>, %arg2: memref<64x32xbf16, #tpu.memory_space<vmem>>, %arg3: memref<64x1xf32, #tpu.memory_space<vmem>>, %arg4: memref<1x1x16xf32, #tpu.memory_space<vmem>>, %arg5: memref<1x64x16xf32, #tpu.memory_space<vmem>>) attributes {dimension_semantics = [#tpu.dimension_semantics<parallel>], iteration_bounds = array<i64: 2>, scalar_prefetch = 0 : i64, scratch_operands = 0 : i64, tpu.core_type = #tpu.core_type<tc>, window_params = [{transform_indices = @transform_0, window_bounds = array<i64: 1, 32, 16>}, {pipeline_mode = #tpu.pipeline_mode<synchronous>, transform_indices = @transform_1, window_bounds = array<i64: 64, 32>}, {pipeline_mode = #tpu.pipeline_mode<synchronous>, transform_indices = @transform_2, window_bounds = array<i64: 64, 1>}, {transform_indices = @transform_3, window_bounds = array<i64: 1, 1, 16>}, {transform_indices = @transform_4, window_bounds = array<i64: 1, 64, 16>}]} {
    %c0 = arith.constant 0 : index
    %c0_0 = arith.constant 0 : index
    %c0_1 = arith.constant 0 : index
    %0 = vector.load %arg1[%c0, %c0_0, %c0_1] : memref<1x32x16xf32, #tpu.memory_space<vmem>>, vector<1x32x16xf32>
    %1 = vector.shape_cast %0 : vector<1x32x16xf32> to vector<32x16xf32>
    %2 = arith.truncf %1 : vector<32x16xf32> to vector<32x16xbf16>
    %c0_2 = arith.constant 0 : index
    %c0_3 = arith.constant 0 : index
    %3 = vector.load %arg2[%c0_2, %c0_3] : memref<64x32xbf16, #tpu.memory_space<vmem>>, vector<64x32xbf16>
    %cst = arith.constant dense<0.000000e+00> : vector<64x16xf32>
    %4 = tpu.matmul %3, %2, %cst {dimension_numbers = #tpu.dot_dimension_numbers<[1], [0], [0], [1], [0, 0, 1, 1], [], []>} : vector<64x32xbf16>, vector<32x16xbf16>, vector<64x16xf32> -> vector<64x16xf32>
    %c0_4 = arith.constant 0 : index
    %c0_5 = arith.constant 0 : index
    %5 = vector.load %arg3[%c0_4, %c0_5] : memref<64x1xf32, #tpu.memory_space<vmem>>, vector<64x1xf32>
    %6 = vector.broadcast %5 : vector<64x1xf32> to vector<64x16xf32>
    %7 = arith.addf %4, %6 : vector<64x16xf32>
    %c0_6 = arith.constant 0 : index
    %c0_7 = arith.constant 0 : index
    %c0_8 = arith.constant 0 : index
    %8 = vector.load %arg4[%c0_6, %c0_7, %c0_8] : memref<1x1x16xf32, #tpu.memory_space<vmem>>, vector<1x1x16xf32>
    %9 = vector.shape_cast %8 : vector<1x1x16xf32> to vector<1x16xf32>
    %10 = vector.broadcast %9 : vector<1x16xf32> to vector<64x16xf32>
    %11 = arith.mulf %7, %10 : vector<64x16xf32>
    %c0_9 = arith.constant 0 : index
    %c0_10 = arith.constant 0 : index
    %c0_11 = arith.constant 0 : index
    %12 = vector.load %arg5[%c0_9, %c0_10, %c0_11] : memref<1x64x16xf32, #tpu.memory_space<vmem>>, vector<1x64x16xf32>
    %13 = vector.shape_cast %12 : vector<1x64x16xf32> to vector<64x16xf32>
    %14 = vector.shape_cast %11 : vector<64x16xf32> to vector<1x64x16xf32>
    tpu.vector_store %arg5[%c0_9, %c0_10, %c0_11], %14 {strides = array<i32>} : memref<1x64x16xf32, #tpu.memory_space<vmem>>, vector<1x64x16xf32>,
    return
  }
  func.func @transform_0(%arg0: i32) -> (i32, i32, i32) {
    %c0_i32 = arith.constant 0 : i32
    %c0_i32_0 = arith.constant 0 : i32
    %c0_i32_1 = arith.constant 0 : i32
    return %arg0, %c0_i32, %c0_i32_0 : i32, i32, i32
  }
  func.func @transform_1(%arg0: i32) -> (i32, i32) {
    %c0_i32 = arith.constant 0 : i32
    %c0_i32_0 = arith.constant 0 : i32
    %c0_i32_1 = arith.constant 0 : i32
    return %c0_i32, %c0_i32_0 : i32, i32
  }
  func.func @transform_2(%arg0: i32) -> (i32, i32) {
    %c0_i32 = arith.constant 0 : i32
    %c0_i32_0 = arith.constant 0 : i32
    %c0_i32_1 = arith.constant 0 : i32
    return %c0_i32, %c0_i32_0 : i32, i32
  }
  func.func @transform_3(%arg0: i32) -> (i32, i32, i32) {
    %c0_i32 = arith.constant 0 : i32
    %c0_i32_0 = arith.constant 0 : i32
    %c0_i32_1 = arith.constant 0 : i32
    return %arg0, %c0_i32, %c0_i32_0 : i32, i32, i32
  }
  func.func @transform_4(%arg0: i32) -> (i32, i32, i32) {
    %c0_i32 = arith.constant 0 : i32
    %c0_i32_0 = arith.constant 0 : i32
    %c0_i32_1 = arith.constant 0 : i32
    return %arg0, %c0_i32, %c0_i32_0 : i32, i32, i32
  }
}

module attributes {stable_mosaic.version = 11 : i64} {
  func.func @kernel(%arg0: i32, %arg1: memref<1x32x4xf32, #tpu.memory_space<vmem>>, %arg2: memref<32x224xbf16, #tpu.memory_space<vmem>>, %arg3: memref<32x1xf32, #tpu.memory_space<vmem>>, %arg4: memref<1x32x4xf32, #tpu.memory_space<vmem>>, %arg5: memref<224x4xf32, #tpu.memory_space<vmem>>) attributes {dimension_semantics = [#tpu.dimension_semantics<parallel>], iteration_bounds = array<i64: 2>, scalar_prefetch = 0 : i64, scratch_operands = 1 : i64, tpu.core_type = #tpu.core_type<tc>, window_params = [{transform_indices = @transform_0, window_bounds = array<i64: 1, 32, 4>}, {pipeline_mode = #tpu.pipeline_mode<synchronous>, transform_indices = @transform_1, window_bounds = array<i64: 32, 224>}, {pipeline_mode = #tpu.pipeline_mode<synchronous>, transform_indices = @transform_2, window_bounds = array<i64: 32, 1>}, {transform_indices = @transform_3, window_bounds = array<i64: 1, 32, 4>}]} {
    %c0 = arith.constant 0 : index
    %c0_0 = arith.constant 0 : index
    %c0_1 = arith.constant 0 : index
    %0 = vector.load %arg1[%c0, %c0_0, %c0_1] : memref<1x32x4xf32, #tpu.memory_space<vmem>>, vector<1x32x4xf32>
    %1 = vector.shape_cast %0 : vector<1x32x4xf32> to vector<32x4xf32>
    %cst = arith.constant 0.000000e+00 : f32
    %2 = vector.broadcast %cst : f32 to vector<32x3xf32>
    %c0_2 = arith.constant 0 : index
    %c0_3 = arith.constant 0 : index
    %3 = vector.load %arg5[%c0_2, %c0_3] : memref<224x4xf32, #tpu.memory_space<vmem>>, vector<32x3xf32>
    tpu.vector_store %arg5[%c0_2, %c0_3], %2 {strides = array<i32>} : memref<224x4xf32, #tpu.memory_space<vmem>>, vector<32x3xf32>,
    %4 = vector.extract_strided_slice %1 {offsets = [0, 0], sizes = [32, 1], strides = [1, 1]} : vector<32x4xf32> to vector<32x1xf32>
    %c0_4 = arith.constant 0 : index
    %c3 = arith.constant 3 : index
    %5 = vector.load %arg5[%c0_4, %c3] : memref<224x4xf32, #tpu.memory_space<vmem>>, vector<32x1xf32>
    tpu.vector_store %arg5[%c0_4, %c3], %4 {strides = array<i32>} : memref<224x4xf32, #tpu.memory_space<vmem>>, vector<32x1xf32>,
    %cst_5 = arith.constant 0.000000e+00 : f32
    %6 = vector.broadcast %cst_5 : f32 to vector<32x2xf32>
    %c32 = arith.constant 32 : index
    %c0_6 = arith.constant 0 : index
    %7 = vector.load %arg5[%c32, %c0_6] : memref<224x4xf32, #tpu.memory_space<vmem>>, vector<32x2xf32>
    tpu.vector_store %arg5[%c32, %c0_6], %6 {strides = array<i32>} : memref<224x4xf32, #tpu.memory_space<vmem>>, vector<32x2xf32>,
    %8 = vector.extract_strided_slice %1 {offsets = [0, 0], sizes = [32, 2], strides = [1, 1]} : vector<32x4xf32> to vector<32x2xf32>
    %c32_7 = arith.constant 32 : index
    %c2 = arith.constant 2 : index
    %9 = vector.load %arg5[%c32_7, %c2] : memref<224x4xf32, #tpu.memory_space<vmem>>, vector<32x2xf32>
    tpu.vector_store %arg5[%c32_7, %c2], %8 {strides = array<i32>} : memref<224x4xf32, #tpu.memory_space<vmem>>, vector<32x2xf32>,
    %cst_8 = arith.constant 0.000000e+00 : f32
    %10 = vector.broadcast %cst_8 : f32 to vector<32x1xf32>
    %c64 = arith.constant 64 : index
    %c0_9 = arith.constant 0 : index
    %11 = vector.load %arg5[%c64, %c0_9] : memref<224x4xf32, #tpu.memory_space<vmem>>, vector<32x1xf32>
    tpu.vector_store %arg5[%c64, %c0_9], %10 {strides = array<i32>} : memref<224x4xf32, #tpu.memory_space<vmem>>, vector<32x1xf32>,
    %12 = vector.extract_strided_slice %1 {offsets = [0, 0], sizes = [32, 3], strides = [1, 1]} : vector<32x4xf32> to vector<32x3xf32>
    %c64_10 = arith.constant 64 : index
    %c1 = arith.constant 1 : index
    %13 = vector.load %arg5[%c64_10, %c1] : memref<224x4xf32, #tpu.memory_space<vmem>>, vector<32x3xf32>
    tpu.vector_store %arg5[%c64_10, %c1], %12 {strides = array<i32>} : memref<224x4xf32, #tpu.memory_space<vmem>>, vector<32x3xf32>,
    %c96 = arith.constant 96 : index
    %c0_11 = arith.constant 0 : index
    %14 = vector.load %arg5[%c96, %c0_11] : memref<224x4xf32, #tpu.memory_space<vmem>>, vector<32x4xf32>
    tpu.vector_store %arg5[%c96, %c0_11], %1 {strides = array<i32>} : memref<224x4xf32, #tpu.memory_space<vmem>>, vector<32x4xf32>,
    %cst_12 = arith.constant 0.000000e+00 : f32
    %15 = vector.broadcast %cst_12 : f32 to vector<32x1xf32>
    %c128 = arith.constant 128 : index
    %c3_13 = arith.constant 3 : index
    %16 = vector.load %arg5[%c128, %c3_13] : memref<224x4xf32, #tpu.memory_space<vmem>>, vector<32x1xf32>
    tpu.vector_store %arg5[%c128, %c3_13], %15 {strides = array<i32>} : memref<224x4xf32, #tpu.memory_space<vmem>>, vector<32x1xf32>,
    %17 = vector.extract_strided_slice %1 {offsets = [0, 1], sizes = [32, 3], strides = [1, 1]} : vector<32x4xf32> to vector<32x3xf32>
    %c128_14 = arith.constant 128 : index
    %c0_15 = arith.constant 0 : index
    %18 = vector.load %arg5[%c128_14, %c0_15] : memref<224x4xf32, #tpu.memory_space<vmem>>, vector<32x3xf32>
    tpu.vector_store %arg5[%c128_14, %c0_15], %17 {strides = array<i32>} : memref<224x4xf32, #tpu.memory_space<vmem>>, vector<32x3xf32>,
    %cst_16 = arith.constant 0.000000e+00 : f32
    %19 = vector.broadcast %cst_16 : f32 to vector<32x2xf32>
    %c160 = arith.constant 160 : index
    %c2_17 = arith.constant 2 : index
    %20 = vector.load %arg5[%c160, %c2_17] : memref<224x4xf32, #tpu.memory_space<vmem>>, vector<32x2xf32>
    tpu.vector_store %arg5[%c160, %c2_17], %19 {strides = array<i32>} : memref<224x4xf32, #tpu.memory_space<vmem>>, vector<32x2xf32>,
    %21 = vector.extract_strided_slice %1 {offsets = [0, 2], sizes = [32, 2], strides = [1, 1]} : vector<32x4xf32> to vector<32x2xf32>
    %c160_18 = arith.constant 160 : index
    %c0_19 = arith.constant 0 : index
    %22 = vector.load %arg5[%c160_18, %c0_19] : memref<224x4xf32, #tpu.memory_space<vmem>>, vector<32x2xf32>
    tpu.vector_store %arg5[%c160_18, %c0_19], %21 {strides = array<i32>} : memref<224x4xf32, #tpu.memory_space<vmem>>, vector<32x2xf32>,
    %cst_20 = arith.constant 0.000000e+00 : f32
    %23 = vector.broadcast %cst_20 : f32 to vector<32x3xf32>
    %c192 = arith.constant 192 : index
    %c1_21 = arith.constant 1 : index
    %24 = vector.load %arg5[%c192, %c1_21] : memref<224x4xf32, #tpu.memory_space<vmem>>, vector<32x3xf32>
    tpu.vector_store %arg5[%c192, %c1_21], %23 {strides = array<i32>} : memref<224x4xf32, #tpu.memory_space<vmem>>, vector<32x3xf32>,
    %25 = vector.extract_strided_slice %1 {offsets = [0, 3], sizes = [32, 1], strides = [1, 1]} : vector<32x4xf32> to vector<32x1xf32>
    %c192_22 = arith.constant 192 : index
    %c0_23 = arith.constant 0 : index
    %26 = vector.load %arg5[%c192_22, %c0_23] : memref<224x4xf32, #tpu.memory_space<vmem>>, vector<32x1xf32>
    tpu.vector_store %arg5[%c192_22, %c0_23], %25 {strides = array<i32>} : memref<224x4xf32, #tpu.memory_space<vmem>>, vector<32x1xf32>,
    %c0_24 = arith.constant 0 : index
    %c0_25 = arith.constant 0 : index
    %27 = vector.load %arg5[%c0_24, %c0_25] : memref<224x4xf32, #tpu.memory_space<vmem>>, vector<224x4xf32>
    %28 = arith.truncf %27 : vector<224x4xf32> to vector<224x4xbf16>
    %c0_26 = arith.constant 0 : index
    %c0_27 = arith.constant 0 : index
    %29 = vector.load %arg2[%c0_26, %c0_27] : memref<32x224xbf16, #tpu.memory_space<vmem>>, vector<32x224xbf16>
    %cst_28 = arith.constant dense<0.000000e+00> : vector<32x4xf32>
    %30 = tpu.matmul %29, %28, %cst_28 {dimension_numbers = #tpu.dot_dimension_numbers<[1], [0], [0], [1], [0, 0, 1, 1], [], []>} : vector<32x224xbf16>, vector<224x4xbf16>, vector<32x4xf32> -> vector<32x4xf32>
    %c0_29 = arith.constant 0 : index
    %c0_30 = arith.constant 0 : index
    %31 = vector.load %arg3[%c0_29, %c0_30] : memref<32x1xf32, #tpu.memory_space<vmem>>, vector<32x1xf32>
    %32 = vector.broadcast %31 : vector<32x1xf32> to vector<32x4xf32>
    %33 = arith.addf %30, %32 : vector<32x4xf32>
    %c0_31 = arith.constant 0 : index
    %c0_32 = arith.constant 0 : index
    %c0_33 = arith.constant 0 : index
    %34 = vector.load %arg4[%c0_31, %c0_32, %c0_33] : memref<1x32x4xf32, #tpu.memory_space<vmem>>, vector<1x32x4xf32>
    %35 = vector.shape_cast %34 : vector<1x32x4xf32> to vector<32x4xf32>
    %36 = vector.shape_cast %33 : vector<32x4xf32> to vector<1x32x4xf32>
    tpu.vector_store %arg4[%c0_31, %c0_32, %c0_33], %36 {strides = array<i32>} : memref<1x32x4xf32, #tpu.memory_space<vmem>>, vector<1x32x4xf32>,
    return
  }
  func.func @transform_0(%arg0: i32) -> (i32, i32, i32) {
    %c0_i32 = arith.constant 0 : i32
    %c0_i32_0 = arith.constant 0 : i32
    %c0_i32_1 = arith.constant 0 : i32
    return %arg0, %c0_i32, %c0_i32_0 : i32, i32, i32
  }
  func.func @transform_1(%arg0: i32) -> (i32, i32) {
    %c0_i32 = arith.constant 0 : i32
    %c0_i32_0 = arith.constant 0 : i32
    %c0_i32_1 = arith.constant 0 : i32
    return %c0_i32, %c0_i32_0 : i32, i32
  }
  func.func @transform_2(%arg0: i32) -> (i32, i32) {
    %c0_i32 = arith.constant 0 : i32
    %c0_i32_0 = arith.constant 0 : i32
    %c0_i32_1 = arith.constant 0 : i32
    return %c0_i32, %c0_i32_0 : i32, i32
  }
  func.func @transform_3(%arg0: i32) -> (i32, i32, i32) {
    %c0_i32 = arith.constant 0 : i32
    %c0_i32_0 = arith.constant 0 : i32
    %c0_i32_1 = arith.constant 0 : i32
    return %arg0, %c0_i32, %c0_i32_0 : i32, i32, i32
  }
}

module attributes {stable_mosaic.version = 11 : i64} {
  func.func @kernel(%arg0: i32, %arg1: memref<1x32x4xf32, #tpu.memory_space<vmem>>, %arg2: memref<32x96xbf16, #tpu.memory_space<vmem>>, %arg3: memref<32x1xf32, #tpu.memory_space<vmem>>, %arg4: memref<1x32x4xf32, #tpu.memory_space<vmem>>, %arg5: memref<96x4xf32, #tpu.memory_space<vmem>>) attributes {dimension_semantics = [#tpu.dimension_semantics<parallel>], iteration_bounds = array<i64: 2>, scalar_prefetch = 0 : i64, scratch_operands = 1 : i64, tpu.core_type = #tpu.core_type<tc>, window_params = [{transform_indices = @transform_0, window_bounds = array<i64: 1, 32, 4>}, {pipeline_mode = #tpu.pipeline_mode<synchronous>, transform_indices = @transform_1, window_bounds = array<i64: 32, 96>}, {pipeline_mode = #tpu.pipeline_mode<synchronous>, transform_indices = @transform_2, window_bounds = array<i64: 32, 1>}, {transform_indices = @transform_3, window_bounds = array<i64: 1, 32, 4>}]} {
    %c0 = arith.constant 0 : index
    %c0_0 = arith.constant 0 : index
    %c0_1 = arith.constant 0 : index
    %0 = vector.load %arg1[%c0, %c0_0, %c0_1] : memref<1x32x4xf32, #tpu.memory_space<vmem>>, vector<1x32x4xf32>
    %1 = vector.shape_cast %0 : vector<1x32x4xf32> to vector<32x4xf32>
    %cst = arith.constant 0.000000e+00 : f32
    %2 = vector.broadcast %cst : f32 to vector<32x4xf32>
    %3 = arith.cmpf oge, %1, %2 : vector<32x4xf32>
    %cst_2 = arith.constant 1.000000e-01 : f32
    %4 = vector.broadcast %cst_2 : f32 to vector<32x4xf32>
    %5 = arith.mulf %4, %1 : vector<32x4xf32>
    %6 = arith.select %3, %1, %5 : vector<32x4xi1>, vector<32x4xf32>
    %cst_3 = arith.constant 0.000000e+00 : f32
    %7 = vector.broadcast %cst_3 : f32 to vector<32x1xf32>
    %c0_4 = arith.constant 0 : index
    %c0_5 = arith.constant 0 : index
    %8 = vector.load %arg5[%c0_4, %c0_5] : memref<96x4xf32, #tpu.memory_space<vmem>>, vector<32x1xf32>
    tpu.vector_store %arg5[%c0_4, %c0_5], %7 {strides = array<i32>} : memref<96x4xf32, #tpu.memory_space<vmem>>, vector<32x1xf32>,
    %9 = vector.extract_strided_slice %6 {offsets = [0, 0], sizes = [32, 3], strides = [1, 1]} : vector<32x4xf32> to vector<32x3xf32>
    %c0_6 = arith.constant 0 : index
    %c1 = arith.constant 1 : index
    %10 = vector.load %arg5[%c0_6, %c1] : memref<96x4xf32, #tpu.memory_space<vmem>>, vector<32x3xf32>
    tpu.vector_store %arg5[%c0_6, %c1], %9 {strides = array<i32>} : memref<96x4xf32, #tpu.memory_space<vmem>>, vector<32x3xf32>,
    %c32 = arith.constant 32 : index
    %c0_7 = arith.constant 0 : index
    %11 = vector.load %arg5[%c32, %c0_7] : memref<96x4xf32, #tpu.memory_space<vmem>>, vector<32x4xf32>
    tpu.vector_store %arg5[%c32, %c0_7], %6 {strides = array<i32>} : memref<96x4xf32, #tpu.memory_space<vmem>>, vector<32x4xf32>,
    %cst_8 = arith.constant 0.000000e+00 : f32
    %12 = vector.broadcast %cst_8 : f32 to vector<32x1xf32>
    %c64 = arith.constant 64 : index
    %c3 = arith.constant 3 : index
    %13 = vector.load %arg5[%c64, %c3] : memref<96x4xf32, #tpu.memory_space<vmem>>, vector<32x1xf32>
    tpu.vector_store %arg5[%c64, %c3], %12 {strides = array<i32>} : memref<96x4xf32, #tpu.memory_space<vmem>>, vector<32x1xf32>,
    %14 = vector.extract_strided_slice %6 {offsets = [0, 1], sizes = [32, 3], strides = [1, 1]} : vector<32x4xf32> to vector<32x3xf32>
    %c64_9 = arith.constant 64 : index
    %c0_10 = arith.constant 0 : index
    %15 = vector.load %arg5[%c64_9, %c0_10] : memref<96x4xf32, #tpu.memory_space<vmem>>, vector<32x3xf32>
    tpu.vector_store %arg5[%c64_9, %c0_10], %14 {strides = array<i32>} : memref<96x4xf32, #tpu.memory_space<vmem>>, vector<32x3xf32>,
    %c0_11 = arith.constant 0 : index
    %c0_12 = arith.constant 0 : index
    %16 = vector.load %arg5[%c0_11, %c0_12] : memref<96x4xf32, #tpu.memory_space<vmem>>, vector<96x4xf32>
    %17 = arith.truncf %16 : vector<96x4xf32> to vector<96x4xbf16>
    %c0_13 = arith.constant 0 : index
    %c0_14 = arith.constant 0 : index
    %18 = vector.load %arg2[%c0_13, %c0_14] : memref<32x96xbf16, #tpu.memory_space<vmem>>, vector<32x96xbf16>
    %cst_15 = arith.constant dense<0.000000e+00> : vector<32x4xf32>
    %19 = tpu.matmul %18, %17, %cst_15 {dimension_numbers = #tpu.dot_dimension_numbers<[1], [0], [0], [1], [0, 0, 1, 1], [], []>} : vector<32x96xbf16>, vector<96x4xbf16>, vector<32x4xf32> -> vector<32x4xf32>
    %c0_16 = arith.constant 0 : index
    %c0_17 = arith.constant 0 : index
    %20 = vector.load %arg3[%c0_16, %c0_17] : memref<32x1xf32, #tpu.memory_space<vmem>>, vector<32x1xf32>
    %21 = vector.broadcast %20 : vector<32x1xf32> to vector<32x4xf32>
    %22 = arith.addf %19, %21 : vector<32x4xf32>
    %c0_18 = arith.constant 0 : index
    %c0_19 = arith.constant 0 : index
    %c0_20 = arith.constant 0 : index
    %23 = vector.load %arg4[%c0_18, %c0_19, %c0_20] : memref<1x32x4xf32, #tpu.memory_space<vmem>>, vector<1x32x4xf32>
    %24 = vector.shape_cast %23 : vector<1x32x4xf32> to vector<32x4xf32>
    %25 = vector.shape_cast %22 : vector<32x4xf32> to vector<1x32x4xf32>
    tpu.vector_store %arg4[%c0_18, %c0_19, %c0_20], %25 {strides = array<i32>} : memref<1x32x4xf32, #tpu.memory_space<vmem>>, vector<1x32x4xf32>,
    return
  }
  func.func @transform_0(%arg0: i32) -> (i32, i32, i32) {
    %c0_i32 = arith.constant 0 : i32
    %c0_i32_0 = arith.constant 0 : i32
    %c0_i32_1 = arith.constant 0 : i32
    return %arg0, %c0_i32, %c0_i32_0 : i32, i32, i32
  }
  func.func @transform_1(%arg0: i32) -> (i32, i32) {
    %c0_i32 = arith.constant 0 : i32
    %c0_i32_0 = arith.constant 0 : i32
    %c0_i32_1 = arith.constant 0 : i32
    return %c0_i32, %c0_i32_0 : i32, i32
  }
  func.func @transform_2(%arg0: i32) -> (i32, i32) {
    %c0_i32 = arith.constant 0 : i32
    %c0_i32_0 = arith.constant 0 : i32
    %c0_i32_1 = arith.constant 0 : i32
    return %c0_i32, %c0_i32_0 : i32, i32
  }
  func.func @transform_3(%arg0: i32) -> (i32, i32, i32) {
    %c0_i32 = arith.constant 0 : i32
    %c0_i32_0 = arith.constant 0 : i32
    %c0_i32_1 = arith.constant 0 : i32
    return %arg0, %c0_i32, %c0_i32_0 : i32, i32, i32
  }
}

module attributes {stable_mosaic.version = 11 : i64} {
  func.func @kernel_fn(%arg0: i32, %arg1: memref<1x16x8xf32, #tpu.memory_space<vmem>>, %arg2: memref<2x16x48xbf16, #tpu.memory_space<vmem>>, %arg3: memref<2x16x1xf32, #tpu.memory_space<vmem>>, %arg4: memref<2x16x48xbf16, #tpu.memory_space<vmem>>, %arg5: memref<2x16x1xf32, #tpu.memory_space<vmem>>, %arg6: memref<1x16x8xf32, #tpu.memory_space<vmem>>, %arg7: memref<48x8xf32, #tpu.memory_space<vmem>>) attributes {dimension_semantics = [#tpu.dimension_semantics<parallel>], iteration_bounds = array<i64: 2>, scalar_prefetch = 0 : i64, scratch_operands = 1 : i64, tpu.core_type = #tpu.core_type<tc>, window_params = [{transform_indices = @transform_0, window_bounds = array<i64: 1, 16, 8>}, {pipeline_mode = #tpu.pipeline_mode<synchronous>, transform_indices = @transform_1, window_bounds = array<i64: 2, 16, 48>}, {pipeline_mode = #tpu.pipeline_mode<synchronous>, transform_indices = @transform_2, window_bounds = array<i64: 2, 16, 1>}, {pipeline_mode = #tpu.pipeline_mode<synchronous>, transform_indices = @transform_3, window_bounds = array<i64: 2, 16, 48>}, {pipeline_mode = #tpu.pipeline_mode<synchronous>, transform_indices = @transform_4, window_bounds = array<i64: 2, 16, 1>}, {transform_indices = @transform_5, window_bounds = array<i64: 1, 16, 8>}]} {
    %c0 = arith.constant 0 : index
    %c0_0 = arith.constant 0 : index
    %c0_1 = arith.constant 0 : index
    %0 = vector.load %arg1[%c0, %c0_0, %c0_1] : memref<1x16x8xf32, #tpu.memory_space<vmem>>, vector<1x16x8xf32>
    %1 = vector.shape_cast %0 : vector<1x16x8xf32> to vector<16x8xf32>
    %cst = arith.constant 0.000000e+00 : f32
    %2 = vector.broadcast %cst : f32 to vector<16x8xf32>
    %3 = arith.cmpf oge, %1, %2 : vector<16x8xf32>
    %cst_2 = arith.constant 1.000000e-01 : f32
    %4 = vector.broadcast %cst_2 : f32 to vector<16x8xf32>
    %5 = arith.mulf %4, %1 : vector<16x8xf32>
    %6 = arith.select %3, %1, %5 : vector<16x8xi1>, vector<16x8xf32>
    %cst_3 = arith.constant 0.000000e+00 : f32
    %7 = vector.broadcast %cst_3 : f32 to vector<16x1xf32>
    %c0_4 = arith.constant 0 : index
    %c0_5 = arith.constant 0 : index
    %8 = vector.load %arg7[%c0_4, %c0_5] : memref<48x8xf32, #tpu.memory_space<vmem>>, vector<16x1xf32>
    tpu.vector_store %arg7[%c0_4, %c0_5], %7 {strides = array<i32>} : memref<48x8xf32, #tpu.memory_space<vmem>>, vector<16x1xf32>,
    %9 = vector.extract_strided_slice %6 {offsets = [0, 0], sizes = [16, 7], strides = [1, 1]} : vector<16x8xf32> to vector<16x7xf32>
    %c0_6 = arith.constant 0 : index
    %c1 = arith.constant 1 : index
    %10 = vector.load %arg7[%c0_6, %c1] : memref<48x8xf32, #tpu.memory_space<vmem>>, vector<16x7xf32>
    tpu.vector_store %arg7[%c0_6, %c1], %9 {strides = array<i32>} : memref<48x8xf32, #tpu.memory_space<vmem>>, vector<16x7xf32>,
    %c16 = arith.constant 16 : index
    %c0_7 = arith.constant 0 : index
    %11 = vector.load %arg7[%c16, %c0_7] : memref<48x8xf32, #tpu.memory_space<vmem>>, vector<16x8xf32>
    tpu.vector_store %arg7[%c16, %c0_7], %6 {strides = array<i32>} : memref<48x8xf32, #tpu.memory_space<vmem>>, vector<16x8xf32>,
    %cst_8 = arith.constant 0.000000e+00 : f32
    %12 = vector.broadcast %cst_8 : f32 to vector<16x1xf32>
    %c32 = arith.constant 32 : index
    %c7 = arith.constant 7 : index
    %13 = vector.load %arg7[%c32, %c7] : memref<48x8xf32, #tpu.memory_space<vmem>>, vector<16x1xf32>
    tpu.vector_store %arg7[%c32, %c7], %12 {strides = array<i32>} : memref<48x8xf32, #tpu.memory_space<vmem>>, vector<16x1xf32>,
    %14 = vector.extract_strided_slice %6 {offsets = [0, 1], sizes = [16, 7], strides = [1, 1]} : vector<16x8xf32> to vector<16x7xf32>
    %c32_9 = arith.constant 32 : index
    %c0_10 = arith.constant 0 : index
    %15 = vector.load %arg7[%c32_9, %c0_10] : memref<48x8xf32, #tpu.memory_space<vmem>>, vector<16x7xf32>
    tpu.vector_store %arg7[%c32_9, %c0_10], %14 {strides = array<i32>} : memref<48x8xf32, #tpu.memory_space<vmem>>, vector<16x7xf32>,
    %c0_11 = arith.constant 0 : index
    %c0_12 = arith.constant 0 : index
    %c0_13 = arith.constant 0 : index
    %16 = vector.load %arg2[%c0_11, %c0_12, %c0_13] : memref<2x16x48xbf16, #tpu.memory_space<vmem>>, vector<1x16x48xbf16>
    %17 = vector.shape_cast %16 : vector<1x16x48xbf16> to vector<16x48xbf16>
    %c0_14 = arith.constant 0 : index
    %c0_15 = arith.constant 0 : index
    %18 = vector.load %arg7[%c0_14, %c0_15] : memref<48x8xf32, #tpu.memory_space<vmem>>, vector<48x8xf32>
    %19 = arith.truncf %18 : vector<48x8xf32> to vector<48x8xbf16>
    %cst_16 = arith.constant dense<0.000000e+00> : vector<16x8xf32>
    %20 = tpu.matmul %17, %19, %cst_16 {dimension_numbers = #tpu.dot_dimension_numbers<[1], [0], [0], [1], [0, 0, 1, 1], [], []>} : vector<16x48xbf16>, vector<48x8xbf16>, vector<16x8xf32> -> vector<16x8xf32>
    %c0_17 = arith.constant 0 : index
    %c0_18 = arith.constant 0 : index
    %c0_19 = arith.constant 0 : index
    %21 = vector.load %arg3[%c0_17, %c0_18, %c0_19] : memref<2x16x1xf32, #tpu.memory_space<vmem>>, vector<1x16x1xf32>
    %22 = vector.shape_cast %21 : vector<1x16x1xf32> to vector<16x1xf32>
    %23 = vector.broadcast %22 : vector<16x1xf32> to vector<16x8xf32>
    %24 = arith.addf %20, %23 : vector<16x8xf32>
    %cst_20 = arith.constant 0.000000e+00 : f32
    %25 = vector.broadcast %cst_20 : f32 to vector<16x8xf32>
    %26 = arith.cmpf oge, %24, %25 : vector<16x8xf32>
    %cst_21 = arith.constant 1.000000e-01 : f32
    %27 = vector.broadcast %cst_21 : f32 to vector<16x8xf32>
    %28 = arith.mulf %27, %24 : vector<16x8xf32>
    %29 = arith.select %26, %24, %28 : vector<16x8xi1>, vector<16x8xf32>
    %cst_22 = arith.constant 0.000000e+00 : f32
    %30 = vector.broadcast %cst_22 : f32 to vector<16x1xf32>
    %c0_23 = arith.constant 0 : index
    %c0_24 = arith.constant 0 : index
    %31 = vector.load %arg7[%c0_23, %c0_24] : memref<48x8xf32, #tpu.memory_space<vmem>>, vector<16x1xf32>
    tpu.vector_store %arg7[%c0_23, %c0_24], %30 {strides = array<i32>} : memref<48x8xf32, #tpu.memory_space<vmem>>, vector<16x1xf32>,
    %32 = vector.extract_strided_slice %29 {offsets = [0, 0], sizes = [16, 7], strides = [1, 1]} : vector<16x8xf32> to vector<16x7xf32>
    %c0_25 = arith.constant 0 : index
    %c1_26 = arith.constant 1 : index
    %33 = vector.load %arg7[%c0_25, %c1_26] : memref<48x8xf32, #tpu.memory_space<vmem>>, vector<16x7xf32>
    tpu.vector_store %arg7[%c0_25, %c1_26], %32 {strides = array<i32>} : memref<48x8xf32, #tpu.memory_space<vmem>>, vector<16x7xf32>,
    %c16_27 = arith.constant 16 : index
    %c0_28 = arith.constant 0 : index
    %34 = vector.load %arg7[%c16_27, %c0_28] : memref<48x8xf32, #tpu.memory_space<vmem>>, vector<16x8xf32>
    tpu.vector_store %arg7[%c16_27, %c0_28], %29 {strides = array<i32>} : memref<48x8xf32, #tpu.memory_space<vmem>>, vector<16x8xf32>,
    %cst_29 = arith.constant 0.000000e+00 : f32
    %35 = vector.broadcast %cst_29 : f32 to vector<16x1xf32>
    %c32_30 = arith.constant 32 : index
    %c7_31 = arith.constant 7 : index
    %36 = vector.load %arg7[%c32_30, %c7_31] : memref<48x8xf32, #tpu.memory_space<vmem>>, vector<16x1xf32>
    tpu.vector_store %arg7[%c32_30, %c7_31], %35 {strides = array<i32>} : memref<48x8xf32, #tpu.memory_space<vmem>>, vector<16x1xf32>,
    %37 = vector.extract_strided_slice %29 {offsets = [0, 1], sizes = [16, 7], strides = [1, 1]} : vector<16x8xf32> to vector<16x7xf32>
    %c32_32 = arith.constant 32 : index
    %c0_33 = arith.constant 0 : index
    %38 = vector.load %arg7[%c32_32, %c0_33] : memref<48x8xf32, #tpu.memory_space<vmem>>, vector<16x7xf32>
    tpu.vector_store %arg7[%c32_32, %c0_33], %37 {strides = array<i32>} : memref<48x8xf32, #tpu.memory_space<vmem>>, vector<16x7xf32>,
    %c0_34 = arith.constant 0 : index
    %c0_35 = arith.constant 0 : index
    %c0_36 = arith.constant 0 : index
    %39 = vector.load %arg4[%c0_34, %c0_35, %c0_36] : memref<2x16x48xbf16, #tpu.memory_space<vmem>>, vector<1x16x48xbf16>
    %40 = vector.shape_cast %39 : vector<1x16x48xbf16> to vector<16x48xbf16>
    %c0_37 = arith.constant 0 : index
    %c0_38 = arith.constant 0 : index
    %41 = vector.load %arg7[%c0_37, %c0_38] : memref<48x8xf32, #tpu.memory_space<vmem>>, vector<48x8xf32>
    %42 = arith.truncf %41 : vector<48x8xf32> to vector<48x8xbf16>
    %cst_39 = arith.constant dense<0.000000e+00> : vector<16x8xf32>
    %43 = tpu.matmul %40, %42, %cst_39 {dimension_numbers = #tpu.dot_dimension_numbers<[1], [0], [0], [1], [0, 0, 1, 1], [], []>} : vector<16x48xbf16>, vector<48x8xbf16>, vector<16x8xf32> -> vector<16x8xf32>
    %c0_40 = arith.constant 0 : index
    %c0_41 = arith.constant 0 : index
    %c0_42 = arith.constant 0 : index
    %44 = vector.load %arg5[%c0_40, %c0_41, %c0_42] : memref<2x16x1xf32, #tpu.memory_space<vmem>>, vector<1x16x1xf32>
    %45 = vector.shape_cast %44 : vector<1x16x1xf32> to vector<16x1xf32>
    %46 = vector.broadcast %45 : vector<16x1xf32> to vector<16x8xf32>
    %47 = arith.addf %43, %46 : vector<16x8xf32>
    %48 = arith.addf %1, %47 : vector<16x8xf32>
    %cst_43 = arith.constant 0.000000e+00 : f32
    %49 = vector.broadcast %cst_43 : f32 to vector<16x8xf32>
    %50 = arith.cmpf oge, %48, %49 : vector<16x8xf32>
    %cst_44 = arith.constant 1.000000e-01 : f32
    %51 = vector.broadcast %cst_44 : f32 to vector<16x8xf32>
    %52 = arith.mulf %51, %48 : vector<16x8xf32>
    %53 = arith.select %50, %48, %52 : vector<16x8xi1>, vector<16x8xf32>
    %cst_45 = arith.constant 0.000000e+00 : f32
    %54 = vector.broadcast %cst_45 : f32 to vector<16x3xf32>
    %c0_46 = arith.constant 0 : index
    %c0_47 = arith.constant 0 : index
    %55 = vector.load %arg7[%c0_46, %c0_47] : memref<48x8xf32, #tpu.memory_space<vmem>>, vector<16x3xf32>
    tpu.vector_store %arg7[%c0_46, %c0_47], %54 {strides = array<i32>} : memref<48x8xf32, #tpu.memory_space<vmem>>, vector<16x3xf32>,
    %56 = vector.extract_strided_slice %53 {offsets = [0, 0], sizes = [16, 5], strides = [1, 1]} : vector<16x8xf32> to vector<16x5xf32>
    %c0_48 = arith.constant 0 : index
    %c3 = arith.constant 3 : index
    %57 = vector.load %arg7[%c0_48, %c3] : memref<48x8xf32, #tpu.memory_space<vmem>>, vector<16x5xf32>
    tpu.vector_store %arg7[%c0_48, %c3], %56 {strides = array<i32>} : memref<48x8xf32, #tpu.memory_space<vmem>>, vector<16x5xf32>,
    %c16_49 = arith.constant 16 : index
    %c0_50 = arith.constant 0 : index
    %58 = vector.load %arg7[%c16_49, %c0_50] : memref<48x8xf32, #tpu.memory_space<vmem>>, vector<16x8xf32>
    tpu.vector_store %arg7[%c16_49, %c0_50], %53 {strides = array<i32>} : memref<48x8xf32, #tpu.memory_space<vmem>>, vector<16x8xf32>,
    %cst_51 = arith.constant 0.000000e+00 : f32
    %59 = vector.broadcast %cst_51 : f32 to vector<16x3xf32>
    %c32_52 = arith.constant 32 : index
    %c5 = arith.constant 5 : index
    %60 = vector.load %arg7[%c32_52, %c5] : memref<48x8xf32, #tpu.memory_space<vmem>>, vector<16x3xf32>
    tpu.vector_store %arg7[%c32_52, %c5], %59 {strides = array<i32>} : memref<48x8xf32, #tpu.memory_space<vmem>>, vector<16x3xf32>,
    %61 = vector.extract_strided_slice %53 {offsets = [0, 3], sizes = [16, 5], strides = [1, 1]} : vector<16x8xf32> to vector<16x5xf32>
    %c32_53 = arith.constant 32 : index
    %c0_54 = arith.constant 0 : index
    %62 = vector.load %arg7[%c32_53, %c0_54] : memref<48x8xf32, #tpu.memory_space<vmem>>, vector<16x5xf32>
    tpu.vector_store %arg7[%c32_53, %c0_54], %61 {strides = array<i32>} : memref<48x8xf32, #tpu.memory_space<vmem>>, vector<16x5xf32>,
    %c1_55 = arith.constant 1 : index
    %c0_56 = arith.constant 0 : index
    %c0_57 = arith.constant 0 : index
    %63 = vector.load %arg2[%c1_55, %c0_56, %c0_57] : memref<2x16x48xbf16, #tpu.memory_space<vmem>>, vector<1x16x48xbf16>
    %64 = vector.shape_cast %63 : vector<1x16x48xbf16> to vector<16x48xbf16>
    %c0_58 = arith.constant 0 : index
    %c0_59 = arith.constant 0 : index
    %65 = vector.load %arg7[%c0_58, %c0_59] : memref<48x8xf32, #tpu.memory_space<vmem>>, vector<48x8xf32>
    %66 = arith.truncf %65 : vector<48x8xf32> to vector<48x8xbf16>
    %cst_60 = arith.constant dense<0.000000e+00> : vector<16x8xf32>
    %67 = tpu.matmul %64, %66, %cst_60 {dimension_numbers = #tpu.dot_dimension_numbers<[1], [0], [0], [1], [0, 0, 1, 1], [], []>} : vector<16x48xbf16>, vector<48x8xbf16>, vector<16x8xf32> -> vector<16x8xf32>
    %c1_61 = arith.constant 1 : index
    %c0_62 = arith.constant 0 : index
    %c0_63 = arith.constant 0 : index
    %68 = vector.load %arg3[%c1_61, %c0_62, %c0_63] : memref<2x16x1xf32, #tpu.memory_space<vmem>>, vector<1x16x1xf32>
    %69 = vector.shape_cast %68 : vector<1x16x1xf32> to vector<16x1xf32>
    %70 = vector.broadcast %69 : vector<16x1xf32> to vector<16x8xf32>
    %71 = arith.addf %67, %70 : vector<16x8xf32>
    %cst_64 = arith.constant 0.000000e+00 : f32
    %72 = vector.broadcast %cst_64 : f32 to vector<16x8xf32>
    %73 = arith.cmpf oge, %71, %72 : vector<16x8xf32>
    %cst_65 = arith.constant 1.000000e-01 : f32
    %74 = vector.broadcast %cst_65 : f32 to vector<16x8xf32>
    %75 = arith.mulf %74, %71 : vector<16x8xf32>
    %76 = arith.select %73, %71, %75 : vector<16x8xi1>, vector<16x8xf32>
    %cst_66 = arith.constant 0.000000e+00 : f32
    %77 = vector.broadcast %cst_66 : f32 to vector<16x1xf32>
    %c0_67 = arith.constant 0 : index
    %c0_68 = arith.constant 0 : index
    %78 = vector.load %arg7[%c0_67, %c0_68] : memref<48x8xf32, #tpu.memory_space<vmem>>, vector<16x1xf32>
    tpu.vector_store %arg7[%c0_67, %c0_68], %77 {strides = array<i32>} : memref<48x8xf32, #tpu.memory_space<vmem>>, vector<16x1xf32>,
    %79 = vector.extract_strided_slice %76 {offsets = [0, 0], sizes = [16, 7], strides = [1, 1]} : vector<16x8xf32> to vector<16x7xf32>
    %c0_69 = arith.constant 0 : index
    %c1_70 = arith.constant 1 : index
    %80 = vector.load %arg7[%c0_69, %c1_70] : memref<48x8xf32, #tpu.memory_space<vmem>>, vector<16x7xf32>
    tpu.vector_store %arg7[%c0_69, %c1_70], %79 {strides = array<i32>} : memref<48x8xf32, #tpu.memory_space<vmem>>, vector<16x7xf32>,
    %c16_71 = arith.constant 16 : index
    %c0_72 = arith.constant 0 : index
    %81 = vector.load %arg7[%c16_71, %c0_72] : memref<48x8xf32, #tpu.memory_space<vmem>>, vector<16x8xf32>
    tpu.vector_store %arg7[%c16_71, %c0_72], %76 {strides = array<i32>} : memref<48x8xf32, #tpu.memory_space<vmem>>, vector<16x8xf32>,
    %cst_73 = arith.constant 0.000000e+00 : f32
    %82 = vector.broadcast %cst_73 : f32 to vector<16x1xf32>
    %c32_74 = arith.constant 32 : index
    %c7_75 = arith.constant 7 : index
    %83 = vector.load %arg7[%c32_74, %c7_75] : memref<48x8xf32, #tpu.memory_space<vmem>>, vector<16x1xf32>
    tpu.vector_store %arg7[%c32_74, %c7_75], %82 {strides = array<i32>} : memref<48x8xf32, #tpu.memory_space<vmem>>, vector<16x1xf32>,
    %84 = vector.extract_strided_slice %76 {offsets = [0, 1], sizes = [16, 7], strides = [1, 1]} : vector<16x8xf32> to vector<16x7xf32>
    %c32_76 = arith.constant 32 : index
    %c0_77 = arith.constant 0 : index
    %85 = vector.load %arg7[%c32_76, %c0_77] : memref<48x8xf32, #tpu.memory_space<vmem>>, vector<16x7xf32>
    tpu.vector_store %arg7[%c32_76, %c0_77], %84 {strides = array<i32>} : memref<48x8xf32, #tpu.memory_space<vmem>>, vector<16x7xf32>,
    %c1_78 = arith.constant 1 : index
    %c0_79 = arith.constant 0 : index
    %c0_80 = arith.constant 0 : index
    %86 = vector.load %arg4[%c1_78, %c0_79, %c0_80] : memref<2x16x48xbf16, #tpu.memory_space<vmem>>, vector<1x16x48xbf16>
    %87 = vector.shape_cast %86 : vector<1x16x48xbf16> to vector<16x48xbf16>
    %c0_81 = arith.constant 0 : index
    %c0_82 = arith.constant 0 : index
    %88 = vector.load %arg7[%c0_81, %c0_82] : memref<48x8xf32, #tpu.memory_space<vmem>>, vector<48x8xf32>
    %89 = arith.truncf %88 : vector<48x8xf32> to vector<48x8xbf16>
    %cst_83 = arith.constant dense<0.000000e+00> : vector<16x8xf32>
    %90 = tpu.matmul %87, %89, %cst_83 {dimension_numbers = #tpu.dot_dimension_numbers<[1], [0], [0], [1], [0, 0, 1, 1], [], []>} : vector<16x48xbf16>, vector<48x8xbf16>, vector<16x8xf32> -> vector<16x8xf32>
    %c1_84 = arith.constant 1 : index
    %c0_85 = arith.constant 0 : index
    %c0_86 = arith.constant 0 : index
    %91 = vector.load %arg5[%c1_84, %c0_85, %c0_86] : memref<2x16x1xf32, #tpu.memory_space<vmem>>, vector<1x16x1xf32>
    %92 = vector.shape_cast %91 : vector<1x16x1xf32> to vector<16x1xf32>
    %93 = vector.broadcast %92 : vector<16x1xf32> to vector<16x8xf32>
    %94 = arith.addf %90, %93 : vector<16x8xf32>
    %95 = arith.addf %48, %94 : vector<16x8xf32>
    %c0_87 = arith.constant 0 : index
    %c0_88 = arith.constant 0 : index
    %c0_89 = arith.constant 0 : index
    %96 = vector.load %arg6[%c0_87, %c0_88, %c0_89] : memref<1x16x8xf32, #tpu.memory_space<vmem>>, vector<1x16x8xf32>
    %97 = vector.shape_cast %96 : vector<1x16x8xf32> to vector<16x8xf32>
    %98 = vector.shape_cast %95 : vector<16x8xf32> to vector<1x16x8xf32>
    tpu.vector_store %arg6[%c0_87, %c0_88, %c0_89], %98 {strides = array<i32>} : memref<1x16x8xf32, #tpu.memory_space<vmem>>, vector<1x16x8xf32>,
    return
  }
  func.func @transform_0(%arg0: i32) -> (i32, i32, i32) {
    %c0_i32 = arith.constant 0 : i32
    %c0_i32_0 = arith.constant 0 : i32
    %c0_i32_1 = arith.constant 0 : i32
    return %arg0, %c0_i32, %c0_i32_0 : i32, i32, i32
  }
  func.func @transform_1(%arg0: i32) -> (i32, i32, i32) {
    %c0_i32 = arith.constant 0 : i32
    %c0_i32_0 = arith.constant 0 : i32
    %c0_i32_1 = arith.constant 0 : i32
    %c0_i32_2 = arith.constant 0 : i32
    return %c0_i32, %c0_i32_0, %c0_i32_1 : i32, i32, i32
  }
  func.func @transform_2(%arg0: i32) -> (i32, i32, i32) {
    %c0_i32 = arith.constant 0 : i32
    %c0_i32_0 = arith.constant 0 : i32
    %c0_i32_1 = arith.constant 0 : i32
    %c0_i32_2 = arith.constant 0 : i32
    return %c0_i32, %c0_i32_0, %c0_i32_1 : i32, i32, i32
  }
  func.func @transform_3(%arg0: i32) -> (i32, i32, i32) {
    %c0_i32 = arith.constant 0 : i32
    %c0_i32_0 = arith.constant 0 : i32
    %c0_i32_1 = arith.constant 0 : i32
    %c0_i32_2 = arith.constant 0 : i32
    return %c0_i32, %c0_i32_0, %c0_i32_1 : i32, i32, i32
  }
  func.func @transform_4(%arg0: i32) -> (i32, i32, i32) {
    %c0_i32 = arith.constant 0 : i32
    %c0_i32_0 = arith.constant 0 : i32
    %c0_i32_1 = arith.constant 0 : i32
    %c0_i32_2 = arith.constant 0 : i32
    return %c0_i32, %c0_i32_0, %c0_i32_1 : i32, i32, i32
  }
  func.func @transform_5(%arg0: i32) -> (i32, i32, i32) {
    %c0_i32 = arith.constant 0 : i32
    %c0_i32_0 = arith.constant 0 : i32
    %c0_i32_1 = arith.constant 0 : i32
    return %arg0, %c0_i32, %c0_i32_0 : i32, i32, i32
  }
}

module attributes {stable_mosaic.version = 11 : i64} {
  func.func @kernel(%arg0: i32, %arg1: memref<1x16x8xf32, #tpu.memory_space<vmem>>, %arg2: memref<16x48xbf16, #tpu.memory_space<vmem>>, %arg3: memref<16x1xf32, #tpu.memory_space<vmem>>, %arg4: memref<1x16x8xf32, #tpu.memory_space<vmem>>, %arg5: memref<48x8xf32, #tpu.memory_space<vmem>>) attributes {dimension_semantics = [#tpu.dimension_semantics<parallel>], iteration_bounds = array<i64: 2>, scalar_prefetch = 0 : i64, scratch_operands = 1 : i64, tpu.core_type = #tpu.core_type<tc>, window_params = [{transform_indices = @transform_0, window_bounds = array<i64: 1, 16, 8>}, {pipeline_mode = #tpu.pipeline_mode<synchronous>, transform_indices = @transform_1, window_bounds = array<i64: 16, 48>}, {pipeline_mode = #tpu.pipeline_mode<synchronous>, transform_indices = @transform_2, window_bounds = array<i64: 16, 1>}, {transform_indices = @transform_3, window_bounds = array<i64: 1, 16, 8>}]} {
    %c0 = arith.constant 0 : index
    %c0_0 = arith.constant 0 : index
    %c0_1 = arith.constant 0 : index
    %0 = vector.load %arg1[%c0, %c0_0, %c0_1] : memref<1x16x8xf32, #tpu.memory_space<vmem>>, vector<1x16x8xf32>
    %1 = vector.shape_cast %0 : vector<1x16x8xf32> to vector<16x8xf32>
    %cst = arith.constant 0.000000e+00 : f32
    %2 = vector.broadcast %cst : f32 to vector<16x8xf32>
    %3 = arith.cmpf oge, %1, %2 : vector<16x8xf32>
    %cst_2 = arith.constant 1.000000e-01 : f32
    %4 = vector.broadcast %cst_2 : f32 to vector<16x8xf32>
    %5 = arith.mulf %4, %1 : vector<16x8xf32>
    %6 = arith.select %3, %1, %5 : vector<16x8xi1>, vector<16x8xf32>
    %cst_3 = arith.constant 0.000000e+00 : f32
    %7 = vector.broadcast %cst_3 : f32 to vector<16x1xf32>
    %c0_4 = arith.constant 0 : index
    %c0_5 = arith.constant 0 : index
    %8 = vector.load %arg5[%c0_4, %c0_5] : memref<48x8xf32, #tpu.memory_space<vmem>>, vector<16x1xf32>
    tpu.vector_store %arg5[%c0_4, %c0_5], %7 {strides = array<i32>} : memref<48x8xf32, #tpu.memory_space<vmem>>, vector<16x1xf32>,
    %9 = vector.extract_strided_slice %6 {offsets = [0, 0], sizes = [16, 7], strides = [1, 1]} : vector<16x8xf32> to vector<16x7xf32>
    %c0_6 = arith.constant 0 : index
    %c1 = arith.constant 1 : index
    %10 = vector.load %arg5[%c0_6, %c1] : memref<48x8xf32, #tpu.memory_space<vmem>>, vector<16x7xf32>
    tpu.vector_store %arg5[%c0_6, %c1], %9 {strides = array<i32>} : memref<48x8xf32, #tpu.memory_space<vmem>>, vector<16x7xf32>,
    %c16 = arith.constant 16 : index
    %c0_7 = arith.constant 0 : index
    %11 = vector.load %arg5[%c16, %c0_7] : memref<48x8xf32, #tpu.memory_space<vmem>>, vector<16x8xf32>
    tpu.vector_store %arg5[%c16, %c0_7], %6 {strides = array<i32>} : memref<48x8xf32, #tpu.memory_space<vmem>>, vector<16x8xf32>,
    %cst_8 = arith.constant 0.000000e+00 : f32
    %12 = vector.broadcast %cst_8 : f32 to vector<16x1xf32>
    %c32 = arith.constant 32 : index
    %c7 = arith.constant 7 : index
    %13 = vector.load %arg5[%c32, %c7] : memref<48x8xf32, #tpu.memory_space<vmem>>, vector<16x1xf32>
    tpu.vector_store %arg5[%c32, %c7], %12 {strides = array<i32>} : memref<48x8xf32, #tpu.memory_space<vmem>>, vector<16x1xf32>,
    %14 = vector.extract_strided_slice %6 {offsets = [0, 1], sizes = [16, 7], strides = [1, 1]} : vector<16x8xf32> to vector<16x7xf32>
    %c32_9 = arith.constant 32 : index
    %c0_10 = arith.constant 0 : index
    %15 = vector.load %arg5[%c32_9, %c0_10] : memref<48x8xf32, #tpu.memory_space<vmem>>, vector<16x7xf32>
    tpu.vector_store %arg5[%c32_9, %c0_10], %14 {strides = array<i32>} : memref<48x8xf32, #tpu.memory_space<vmem>>, vector<16x7xf32>,
    %c0_11 = arith.constant 0 : index
    %c0_12 = arith.constant 0 : index
    %16 = vector.load %arg5[%c0_11, %c0_12] : memref<48x8xf32, #tpu.memory_space<vmem>>, vector<48x8xf32>
    %17 = arith.truncf %16 : vector<48x8xf32> to vector<48x8xbf16>
    %c0_13 = arith.constant 0 : index
    %c0_14 = arith.constant 0 : index
    %18 = vector.load %arg2[%c0_13, %c0_14] : memref<16x48xbf16, #tpu.memory_space<vmem>>, vector<16x48xbf16>
    %cst_15 = arith.constant dense<0.000000e+00> : vector<16x8xf32>
    %19 = tpu.matmul %18, %17, %cst_15 {dimension_numbers = #tpu.dot_dimension_numbers<[1], [0], [0], [1], [0, 0, 1, 1], [], []>} : vector<16x48xbf16>, vector<48x8xbf16>, vector<16x8xf32> -> vector<16x8xf32>
    %c0_16 = arith.constant 0 : index
    %c0_17 = arith.constant 0 : index
    %20 = vector.load %arg3[%c0_16, %c0_17] : memref<16x1xf32, #tpu.memory_space<vmem>>, vector<16x1xf32>
    %21 = vector.broadcast %20 : vector<16x1xf32> to vector<16x8xf32>
    %22 = arith.addf %19, %21 : vector<16x8xf32>
    %c0_18 = arith.constant 0 : index
    %c0_19 = arith.constant 0 : index
    %c0_20 = arith.constant 0 : index
    %23 = vector.load %arg4[%c0_18, %c0_19, %c0_20] : memref<1x16x8xf32, #tpu.memory_space<vmem>>, vector<1x16x8xf32>
    %24 = vector.shape_cast %23 : vector<1x16x8xf32> to vector<16x8xf32>
    %25 = vector.shape_cast %22 : vector<16x8xf32> to vector<1x16x8xf32>
    tpu.vector_store %arg4[%c0_18, %c0_19, %c0_20], %25 {strides = array<i32>} : memref<1x16x8xf32, #tpu.memory_space<vmem>>, vector<1x16x8xf32>,
    return
  }
  func.func @transform_0(%arg0: i32) -> (i32, i32, i32) {
    %c0_i32 = arith.constant 0 : i32
    %c0_i32_0 = arith.constant 0 : i32
    %c0_i32_1 = arith.constant 0 : i32
    return %arg0, %c0_i32, %c0_i32_0 : i32, i32, i32
  }
  func.func @transform_1(%arg0: i32) -> (i32, i32) {
    %c0_i32 = arith.constant 0 : i32
    %c0_i32_0 = arith.constant 0 : i32
    %c0_i32_1 = arith.constant 0 : i32
    return %c0_i32, %c0_i32_0 : i32, i32
  }
  func.func @transform_2(%arg0: i32) -> (i32, i32) {
    %c0_i32 = arith.constant 0 : i32
    %c0_i32_0 = arith.constant 0 : i32
    %c0_i32_1 = arith.constant 0 : i32
    return %c0_i32, %c0_i32_0 : i32, i32
  }
  func.func @transform_3(%arg0: i32) -> (i32, i32, i32) {
    %c0_i32 = arith.constant 0 : i32
    %c0_i32_0 = arith.constant 0 : i32
    %c0_i32_1 = arith.constant 0 : i32
    return %arg0, %c0_i32, %c0_i32_0 : i32, i32, i32
  }
}

module attributes {stable_mosaic.version = 11 : i64} {
  func.func @kernel_fn(%arg0: i32, %arg1: memref<1x8x16xf32, #tpu.memory_space<vmem>>, %arg2: memref<2x8x24xbf16, #tpu.memory_space<vmem>>, %arg3: memref<2x8x1xf32, #tpu.memory_space<vmem>>, %arg4: memref<2x8x24xbf16, #tpu.memory_space<vmem>>, %arg5: memref<2x8x1xf32, #tpu.memory_space<vmem>>, %arg6: memref<1x8x16xf32, #tpu.memory_space<vmem>>, %arg7: memref<24x16xf32, #tpu.memory_space<vmem>>) attributes {dimension_semantics = [#tpu.dimension_semantics<parallel>], iteration_bounds = array<i64: 2>, scalar_prefetch = 0 : i64, scratch_operands = 1 : i64, tpu.core_type = #tpu.core_type<tc>, window_params = [{transform_indices = @transform_0, window_bounds = array<i64: 1, 8, 16>}, {pipeline_mode = #tpu.pipeline_mode<synchronous>, transform_indices = @transform_1, window_bounds = array<i64: 2, 8, 24>}, {pipeline_mode = #tpu.pipeline_mode<synchronous>, transform_indices = @transform_2, window_bounds = array<i64: 2, 8, 1>}, {pipeline_mode = #tpu.pipeline_mode<synchronous>, transform_indices = @transform_3, window_bounds = array<i64: 2, 8, 24>}, {pipeline_mode = #tpu.pipeline_mode<synchronous>, transform_indices = @transform_4, window_bounds = array<i64: 2, 8, 1>}, {transform_indices = @transform_5, window_bounds = array<i64: 1, 8, 16>}]} {
    %c0 = arith.constant 0 : index
    %c0_0 = arith.constant 0 : index
    %c0_1 = arith.constant 0 : index
    %0 = vector.load %arg1[%c0, %c0_0, %c0_1] : memref<1x8x16xf32, #tpu.memory_space<vmem>>, vector<1x8x16xf32>
    %1 = vector.shape_cast %0 : vector<1x8x16xf32> to vector<8x16xf32>
    %cst = arith.constant 0.000000e+00 : f32
    %2 = vector.broadcast %cst : f32 to vector<8x16xf32>
    %3 = arith.cmpf oge, %1, %2 : vector<8x16xf32>
    %cst_2 = arith.constant 1.000000e-01 : f32
    %4 = vector.broadcast %cst_2 : f32 to vector<8x16xf32>
    %5 = arith.mulf %4, %1 : vector<8x16xf32>
    %6 = arith.select %3, %1, %5 : vector<8x16xi1>, vector<8x16xf32>
    %cst_3 = arith.constant 0.000000e+00 : f32
    %7 = vector.broadcast %cst_3 : f32 to vector<8x1xf32>
    %c0_4 = arith.constant 0 : index
    %c0_5 = arith.constant 0 : index
    %8 = vector.load %arg7[%c0_4, %c0_5] : memref<24x16xf32, #tpu.memory_space<vmem>>, vector<8x1xf32>
    tpu.vector_store %arg7[%c0_4, %c0_5], %7 {strides = array<i32>} : memref<24x16xf32, #tpu.memory_space<vmem>>, vector<8x1xf32>,
    %9 = vector.extract_strided_slice %6 {offsets = [0, 0], sizes = [8, 15], strides = [1, 1]} : vector<8x16xf32> to vector<8x15xf32>
    %c0_6 = arith.constant 0 : index
    %c1 = arith.constant 1 : index
    %10 = vector.load %arg7[%c0_6, %c1] : memref<24x16xf32, #tpu.memory_space<vmem>>, vector<8x15xf32>
    tpu.vector_store %arg7[%c0_6, %c1], %9 {strides = array<i32>} : memref<24x16xf32, #tpu.memory_space<vmem>>, vector<8x15xf32>,
    %c8 = arith.constant 8 : index
    %c0_7 = arith.constant 0 : index
    %11 = vector.load %arg7[%c8, %c0_7] : memref<24x16xf32, #tpu.memory_space<vmem>>, vector<8x16xf32>
    tpu.vector_store %arg7[%c8, %c0_7], %6 {strides = array<i32>} : memref<24x16xf32, #tpu.memory_space<vmem>>, vector<8x16xf32>,
    %cst_8 = arith.constant 0.000000e+00 : f32
    %12 = vector.broadcast %cst_8 : f32 to vector<8x1xf32>
    %c16 = arith.constant 16 : index
    %c15 = arith.constant 15 : index
    %13 = vector.load %arg7[%c16, %c15] : memref<24x16xf32, #tpu.memory_space<vmem>>, vector<8x1xf32>
    tpu.vector_store %arg7[%c16, %c15], %12 {strides = array<i32>} : memref<24x16xf32, #tpu.memory_space<vmem>>, vector<8x1xf32>,
    %14 = vector.extract_strided_slice %6 {offsets = [0, 1], sizes = [8, 15], strides = [1, 1]} : vector<8x16xf32> to vector<8x15xf32>
    %c16_9 = arith.constant 16 : index
    %c0_10 = arith.constant 0 : index
    %15 = vector.load %arg7[%c16_9, %c0_10] : memref<24x16xf32, #tpu.memory_space<vmem>>, vector<8x15xf32>
    tpu.vector_store %arg7[%c16_9, %c0_10], %14 {strides = array<i32>} : memref<24x16xf32, #tpu.memory_space<vmem>>, vector<8x15xf32>,
    %c0_11 = arith.constant 0 : index
    %c0_12 = arith.constant 0 : index
    %c0_13 = arith.constant 0 : index
    %16 = vector.load %arg2[%c0_11, %c0_12, %c0_13] : memref<2x8x24xbf16, #tpu.memory_space<vmem>>, vector<1x8x24xbf16>
    %17 = vector.shape_cast %16 : vector<1x8x24xbf16> to vector<8x24xbf16>
    %c0_14 = arith.constant 0 : index
    %c0_15 = arith.constant 0 : index
    %18 = vector.load %arg7[%c0_14, %c0_15] : memref<24x16xf32, #tpu.memory_space<vmem>>, vector<24x16xf32>
    %19 = arith.truncf %18 : vector<24x16xf32> to vector<24x16xbf16>
    %cst_16 = arith.constant dense<0.000000e+00> : vector<8x16xf32>
    %20 = tpu.matmul %17, %19, %cst_16 {dimension_numbers = #tpu.dot_dimension_numbers<[1], [0], [0], [1], [0, 0, 1, 1], [], []>} : vector<8x24xbf16>, vector<24x16xbf16>, vector<8x16xf32> -> vector<8x16xf32>
    %c0_17 = arith.constant 0 : index
    %c0_18 = arith.constant 0 : index
    %c0_19 = arith.constant 0 : index
    %21 = vector.load %arg3[%c0_17, %c0_18, %c0_19] : memref<2x8x1xf32, #tpu.memory_space<vmem>>, vector<1x8x1xf32>
    %22 = vector.shape_cast %21 : vector<1x8x1xf32> to vector<8x1xf32>
    %23 = vector.broadcast %22 : vector<8x1xf32> to vector<8x16xf32>
    %24 = arith.addf %20, %23 : vector<8x16xf32>
    %cst_20 = arith.constant 0.000000e+00 : f32
    %25 = vector.broadcast %cst_20 : f32 to vector<8x16xf32>
    %26 = arith.cmpf oge, %24, %25 : vector<8x16xf32>
    %cst_21 = arith.constant 1.000000e-01 : f32
    %27 = vector.broadcast %cst_21 : f32 to vector<8x16xf32>
    %28 = arith.mulf %27, %24 : vector<8x16xf32>
    %29 = arith.select %26, %24, %28 : vector<8x16xi1>, vector<8x16xf32>
    %cst_22 = arith.constant 0.000000e+00 : f32
    %30 = vector.broadcast %cst_22 : f32 to vector<8x1xf32>
    %c0_23 = arith.constant 0 : index
    %c0_24 = arith.constant 0 : index
    %31 = vector.load %arg7[%c0_23, %c0_24] : memref<24x16xf32, #tpu.memory_space<vmem>>, vector<8x1xf32>
    tpu.vector_store %arg7[%c0_23, %c0_24], %30 {strides = array<i32>} : memref<24x16xf32, #tpu.memory_space<vmem>>, vector<8x1xf32>,
    %32 = vector.extract_strided_slice %29 {offsets = [0, 0], sizes = [8, 15], strides = [1, 1]} : vector<8x16xf32> to vector<8x15xf32>
    %c0_25 = arith.constant 0 : index
    %c1_26 = arith.constant 1 : index
    %33 = vector.load %arg7[%c0_25, %c1_26] : memref<24x16xf32, #tpu.memory_space<vmem>>, vector<8x15xf32>
    tpu.vector_store %arg7[%c0_25, %c1_26], %32 {strides = array<i32>} : memref<24x16xf32, #tpu.memory_space<vmem>>, vector<8x15xf32>,
    %c8_27 = arith.constant 8 : index
    %c0_28 = arith.constant 0 : index
    %34 = vector.load %arg7[%c8_27, %c0_28] : memref<24x16xf32, #tpu.memory_space<vmem>>, vector<8x16xf32>
    tpu.vector_store %arg7[%c8_27, %c0_28], %29 {strides = array<i32>} : memref<24x16xf32, #tpu.memory_space<vmem>>, vector<8x16xf32>,
    %cst_29 = arith.constant 0.000000e+00 : f32
    %35 = vector.broadcast %cst_29 : f32 to vector<8x1xf32>
    %c16_30 = arith.constant 16 : index
    %c15_31 = arith.constant 15 : index
    %36 = vector.load %arg7[%c16_30, %c15_31] : memref<24x16xf32, #tpu.memory_space<vmem>>, vector<8x1xf32>
    tpu.vector_store %arg7[%c16_30, %c15_31], %35 {strides = array<i32>} : memref<24x16xf32, #tpu.memory_space<vmem>>, vector<8x1xf32>,
    %37 = vector.extract_strided_slice %29 {offsets = [0, 1], sizes = [8, 15], strides = [1, 1]} : vector<8x16xf32> to vector<8x15xf32>
    %c16_32 = arith.constant 16 : index
    %c0_33 = arith.constant 0 : index
    %38 = vector.load %arg7[%c16_32, %c0_33] : memref<24x16xf32, #tpu.memory_space<vmem>>, vector<8x15xf32>
    tpu.vector_store %arg7[%c16_32, %c0_33], %37 {strides = array<i32>} : memref<24x16xf32, #tpu.memory_space<vmem>>, vector<8x15xf32>,
    %c0_34 = arith.constant 0 : index
    %c0_35 = arith.constant 0 : index
    %c0_36 = arith.constant 0 : index
    %39 = vector.load %arg4[%c0_34, %c0_35, %c0_36] : memref<2x8x24xbf16, #tpu.memory_space<vmem>>, vector<1x8x24xbf16>
    %40 = vector.shape_cast %39 : vector<1x8x24xbf16> to vector<8x24xbf16>
    %c0_37 = arith.constant 0 : index
    %c0_38 = arith.constant 0 : index
    %41 = vector.load %arg7[%c0_37, %c0_38] : memref<24x16xf32, #tpu.memory_space<vmem>>, vector<24x16xf32>
    %42 = arith.truncf %41 : vector<24x16xf32> to vector<24x16xbf16>
    %cst_39 = arith.constant dense<0.000000e+00> : vector<8x16xf32>
    %43 = tpu.matmul %40, %42, %cst_39 {dimension_numbers = #tpu.dot_dimension_numbers<[1], [0], [0], [1], [0, 0, 1, 1], [], []>} : vector<8x24xbf16>, vector<24x16xbf16>, vector<8x16xf32> -> vector<8x16xf32>
    %c0_40 = arith.constant 0 : index
    %c0_41 = arith.constant 0 : index
    %c0_42 = arith.constant 0 : index
    %44 = vector.load %arg5[%c0_40, %c0_41, %c0_42] : memref<2x8x1xf32, #tpu.memory_space<vmem>>, vector<1x8x1xf32>
    %45 = vector.shape_cast %44 : vector<1x8x1xf32> to vector<8x1xf32>
    %46 = vector.broadcast %45 : vector<8x1xf32> to vector<8x16xf32>
    %47 = arith.addf %43, %46 : vector<8x16xf32>
    %48 = arith.addf %1, %47 : vector<8x16xf32>
    %cst_43 = arith.constant 0.000000e+00 : f32
    %49 = vector.broadcast %cst_43 : f32 to vector<8x16xf32>
    %50 = arith.cmpf oge, %48, %49 : vector<8x16xf32>
    %cst_44 = arith.constant 1.000000e-01 : f32
    %51 = vector.broadcast %cst_44 : f32 to vector<8x16xf32>
    %52 = arith.mulf %51, %48 : vector<8x16xf32>
    %53 = arith.select %50, %48, %52 : vector<8x16xi1>, vector<8x16xf32>
    %cst_45 = arith.constant 0.000000e+00 : f32
    %54 = vector.broadcast %cst_45 : f32 to vector<8x3xf32>
    %c0_46 = arith.constant 0 : index
    %c0_47 = arith.constant 0 : index
    %55 = vector.load %arg7[%c0_46, %c0_47] : memref<24x16xf32, #tpu.memory_space<vmem>>, vector<8x3xf32>
    tpu.vector_store %arg7[%c0_46, %c0_47], %54 {strides = array<i32>} : memref<24x16xf32, #tpu.memory_space<vmem>>, vector<8x3xf32>,
    %56 = vector.extract_strided_slice %53 {offsets = [0, 0], sizes = [8, 13], strides = [1, 1]} : vector<8x16xf32> to vector<8x13xf32>
    %c0_48 = arith.constant 0 : index
    %c3 = arith.constant 3 : index
    %57 = vector.load %arg7[%c0_48, %c3] : memref<24x16xf32, #tpu.memory_space<vmem>>, vector<8x13xf32>
    tpu.vector_store %arg7[%c0_48, %c3], %56 {strides = array<i32>} : memref<24x16xf32, #tpu.memory_space<vmem>>, vector<8x13xf32>,
    %c8_49 = arith.constant 8 : index
    %c0_50 = arith.constant 0 : index
    %58 = vector.load %arg7[%c8_49, %c0_50] : memref<24x16xf32, #tpu.memory_space<vmem>>, vector<8x16xf32>
    tpu.vector_store %arg7[%c8_49, %c0_50], %53 {strides = array<i32>} : memref<24x16xf32, #tpu.memory_space<vmem>>, vector<8x16xf32>,
    %cst_51 = arith.constant 0.000000e+00 : f32
    %59 = vector.broadcast %cst_51 : f32 to vector<8x3xf32>
    %c16_52 = arith.constant 16 : index
    %c13 = arith.constant 13 : index
    %60 = vector.load %arg7[%c16_52, %c13] : memref<24x16xf32, #tpu.memory_space<vmem>>, vector<8x3xf32>
    tpu.vector_store %arg7[%c16_52, %c13], %59 {strides = array<i32>} : memref<24x16xf32, #tpu.memory_space<vmem>>, vector<8x3xf32>,
    %61 = vector.extract_strided_slice %53 {offsets = [0, 3], sizes = [8, 13], strides = [1, 1]} : vector<8x16xf32> to vector<8x13xf32>
    %c16_53 = arith.constant 16 : index
    %c0_54 = arith.constant 0 : index
    %62 = vector.load %arg7[%c16_53, %c0_54] : memref<24x16xf32, #tpu.memory_space<vmem>>, vector<8x13xf32>
    tpu.vector_store %arg7[%c16_53, %c0_54], %61 {strides = array<i32>} : memref<24x16xf32, #tpu.memory_space<vmem>>, vector<8x13xf32>,
    %c1_55 = arith.constant 1 : index
    %c0_56 = arith.constant 0 : index
    %c0_57 = arith.constant 0 : index
    %63 = vector.load %arg2[%c1_55, %c0_56, %c0_57] : memref<2x8x24xbf16, #tpu.memory_space<vmem>>, vector<1x8x24xbf16>
    %64 = vector.shape_cast %63 : vector<1x8x24xbf16> to vector<8x24xbf16>
    %c0_58 = arith.constant 0 : index
    %c0_59 = arith.constant 0 : index
    %65 = vector.load %arg7[%c0_58, %c0_59] : memref<24x16xf32, #tpu.memory_space<vmem>>, vector<24x16xf32>
    %66 = arith.truncf %65 : vector<24x16xf32> to vector<24x16xbf16>
    %cst_60 = arith.constant dense<0.000000e+00> : vector<8x16xf32>
    %67 = tpu.matmul %64, %66, %cst_60 {dimension_numbers = #tpu.dot_dimension_numbers<[1], [0], [0], [1], [0, 0, 1, 1], [], []>} : vector<8x24xbf16>, vector<24x16xbf16>, vector<8x16xf32> -> vector<8x16xf32>
    %c1_61 = arith.constant 1 : index
    %c0_62 = arith.constant 0 : index
    %c0_63 = arith.constant 0 : index
    %68 = vector.load %arg3[%c1_61, %c0_62, %c0_63] : memref<2x8x1xf32, #tpu.memory_space<vmem>>, vector<1x8x1xf32>
    %69 = vector.shape_cast %68 : vector<1x8x1xf32> to vector<8x1xf32>
    %70 = vector.broadcast %69 : vector<8x1xf32> to vector<8x16xf32>
    %71 = arith.addf %67, %70 : vector<8x16xf32>
    %cst_64 = arith.constant 0.000000e+00 : f32
    %72 = vector.broadcast %cst_64 : f32 to vector<8x16xf32>
    %73 = arith.cmpf oge, %71, %72 : vector<8x16xf32>
    %cst_65 = arith.constant 1.000000e-01 : f32
    %74 = vector.broadcast %cst_65 : f32 to vector<8x16xf32>
    %75 = arith.mulf %74, %71 : vector<8x16xf32>
    %76 = arith.select %73, %71, %75 : vector<8x16xi1>, vector<8x16xf32>
    %cst_66 = arith.constant 0.000000e+00 : f32
    %77 = vector.broadcast %cst_66 : f32 to vector<8x1xf32>
    %c0_67 = arith.constant 0 : index
    %c0_68 = arith.constant 0 : index
    %78 = vector.load %arg7[%c0_67, %c0_68] : memref<24x16xf32, #tpu.memory_space<vmem>>, vector<8x1xf32>
    tpu.vector_store %arg7[%c0_67, %c0_68], %77 {strides = array<i32>} : memref<24x16xf32, #tpu.memory_space<vmem>>, vector<8x1xf32>,
    %79 = vector.extract_strided_slice %76 {offsets = [0, 0], sizes = [8, 15], strides = [1, 1]} : vector<8x16xf32> to vector<8x15xf32>
    %c0_69 = arith.constant 0 : index
    %c1_70 = arith.constant 1 : index
    %80 = vector.load %arg7[%c0_69, %c1_70] : memref<24x16xf32, #tpu.memory_space<vmem>>, vector<8x15xf32>
    tpu.vector_store %arg7[%c0_69, %c1_70], %79 {strides = array<i32>} : memref<24x16xf32, #tpu.memory_space<vmem>>, vector<8x15xf32>,
    %c8_71 = arith.constant 8 : index
    %c0_72 = arith.constant 0 : index
    %81 = vector.load %arg7[%c8_71, %c0_72] : memref<24x16xf32, #tpu.memory_space<vmem>>, vector<8x16xf32>
    tpu.vector_store %arg7[%c8_71, %c0_72], %76 {strides = array<i32>} : memref<24x16xf32, #tpu.memory_space<vmem>>, vector<8x16xf32>,
    %cst_73 = arith.constant 0.000000e+00 : f32
    %82 = vector.broadcast %cst_73 : f32 to vector<8x1xf32>
    %c16_74 = arith.constant 16 : index
    %c15_75 = arith.constant 15 : index
    %83 = vector.load %arg7[%c16_74, %c15_75] : memref<24x16xf32, #tpu.memory_space<vmem>>, vector<8x1xf32>
    tpu.vector_store %arg7[%c16_74, %c15_75], %82 {strides = array<i32>} : memref<24x16xf32, #tpu.memory_space<vmem>>, vector<8x1xf32>,
    %84 = vector.extract_strided_slice %76 {offsets = [0, 1], sizes = [8, 15], strides = [1, 1]} : vector<8x16xf32> to vector<8x15xf32>
    %c16_76 = arith.constant 16 : index
    %c0_77 = arith.constant 0 : index
    %85 = vector.load %arg7[%c16_76, %c0_77] : memref<24x16xf32, #tpu.memory_space<vmem>>, vector<8x15xf32>
    tpu.vector_store %arg7[%c16_76, %c0_77], %84 {strides = array<i32>} : memref<24x16xf32, #tpu.memory_space<vmem>>, vector<8x15xf32>,
    %c1_78 = arith.constant 1 : index
    %c0_79 = arith.constant 0 : index
    %c0_80 = arith.constant 0 : index
    %86 = vector.load %arg4[%c1_78, %c0_79, %c0_80] : memref<2x8x24xbf16, #tpu.memory_space<vmem>>, vector<1x8x24xbf16>
    %87 = vector.shape_cast %86 : vector<1x8x24xbf16> to vector<8x24xbf16>
    %c0_81 = arith.constant 0 : index
    %c0_82 = arith.constant 0 : index
    %88 = vector.load %arg7[%c0_81, %c0_82] : memref<24x16xf32, #tpu.memory_space<vmem>>, vector<24x16xf32>
    %89 = arith.truncf %88 : vector<24x16xf32> to vector<24x16xbf16>
    %cst_83 = arith.constant dense<0.000000e+00> : vector<8x16xf32>
    %90 = tpu.matmul %87, %89, %cst_83 {dimension_numbers = #tpu.dot_dimension_numbers<[1], [0], [0], [1], [0, 0, 1, 1], [], []>} : vector<8x24xbf16>, vector<24x16xbf16>, vector<8x16xf32> -> vector<8x16xf32>
    %c1_84 = arith.constant 1 : index
    %c0_85 = arith.constant 0 : index
    %c0_86 = arith.constant 0 : index
    %91 = vector.load %arg5[%c1_84, %c0_85, %c0_86] : memref<2x8x1xf32, #tpu.memory_space<vmem>>, vector<1x8x1xf32>
    %92 = vector.shape_cast %91 : vector<1x8x1xf32> to vector<8x1xf32>
    %93 = vector.broadcast %92 : vector<8x1xf32> to vector<8x16xf32>
    %94 = arith.addf %90, %93 : vector<8x16xf32>
    %95 = arith.addf %48, %94 : vector<8x16xf32>
    %c0_87 = arith.constant 0 : index
    %c0_88 = arith.constant 0 : index
    %c0_89 = arith.constant 0 : index
    %96 = vector.load %arg6[%c0_87, %c0_88, %c0_89] : memref<1x8x16xf32, #tpu.memory_space<vmem>>, vector<1x8x16xf32>
    %97 = vector.shape_cast %96 : vector<1x8x16xf32> to vector<8x16xf32>
    %98 = vector.shape_cast %95 : vector<8x16xf32> to vector<1x8x16xf32>
    tpu.vector_store %arg6[%c0_87, %c0_88, %c0_89], %98 {strides = array<i32>} : memref<1x8x16xf32, #tpu.memory_space<vmem>>, vector<1x8x16xf32>,
    return
  }
  func.func @transform_0(%arg0: i32) -> (i32, i32, i32) {
    %c0_i32 = arith.constant 0 : i32
    %c0_i32_0 = arith.constant 0 : i32
    %c0_i32_1 = arith.constant 0 : i32
    return %arg0, %c0_i32, %c0_i32_0 : i32, i32, i32
  }
  func.func @transform_1(%arg0: i32) -> (i32, i32, i32) {
    %c0_i32 = arith.constant 0 : i32
    %c0_i32_0 = arith.constant 0 : i32
    %c0_i32_1 = arith.constant 0 : i32
    %c0_i32_2 = arith.constant 0 : i32
    return %c0_i32, %c0_i32_0, %c0_i32_1 : i32, i32, i32
  }
  func.func @transform_2(%arg0: i32) -> (i32, i32, i32) {
    %c0_i32 = arith.constant 0 : i32
    %c0_i32_0 = arith.constant 0 : i32
    %c0_i32_1 = arith.constant 0 : i32
    %c0_i32_2 = arith.constant 0 : i32
    return %c0_i32, %c0_i32_0, %c0_i32_1 : i32, i32, i32
  }
  func.func @transform_3(%arg0: i32) -> (i32, i32, i32) {
    %c0_i32 = arith.constant 0 : i32
    %c0_i32_0 = arith.constant 0 : i32
    %c0_i32_1 = arith.constant 0 : i32
    %c0_i32_2 = arith.constant 0 : i32
    return %c0_i32, %c0_i32_0, %c0_i32_1 : i32, i32, i32
  }
  func.func @transform_4(%arg0: i32) -> (i32, i32, i32) {
    %c0_i32 = arith.constant 0 : i32
    %c0_i32_0 = arith.constant 0 : i32
    %c0_i32_1 = arith.constant 0 : i32
    %c0_i32_2 = arith.constant 0 : i32
    return %c0_i32, %c0_i32_0, %c0_i32_1 : i32, i32, i32
  }
  func.func @transform_5(%arg0: i32) -> (i32, i32, i32) {
    %c0_i32 = arith.constant 0 : i32
    %c0_i32_0 = arith.constant 0 : i32
    %c0_i32_1 = arith.constant 0 : i32
    return %arg0, %c0_i32, %c0_i32_0 : i32, i32, i32
  }
}

module attributes {stable_mosaic.version = 11 : i64} {
  func.func @kernel(%arg0: i32, %arg1: memref<1x8x16xf32, #tpu.memory_space<vmem>>, %arg2: memref<1x56xbf16, #tpu.memory_space<vmem>>, %arg3: memref<1x1x16xf32, #tpu.memory_space<vmem>>, %arg4: memref<56x16xf32, #tpu.memory_space<vmem>>) attributes {dimension_semantics = [#tpu.dimension_semantics<parallel>], iteration_bounds = array<i64: 2>, scalar_prefetch = 0 : i64, scratch_operands = 1 : i64, tpu.core_type = #tpu.core_type<tc>, window_params = [{transform_indices = @transform_0, window_bounds = array<i64: 1, 8, 16>}, {pipeline_mode = #tpu.pipeline_mode<synchronous>, transform_indices = @transform_1, window_bounds = array<i64: 1, 56>}, {transform_indices = @transform_2, window_bounds = array<i64: 1, 1, 16>}]} {
    %c0 = arith.constant 0 : index
    %c0_0 = arith.constant 0 : index
    %c0_1 = arith.constant 0 : index
    %0 = vector.load %arg1[%c0, %c0_0, %c0_1] : memref<1x8x16xf32, #tpu.memory_space<vmem>>, vector<1x8x16xf32>
    %1 = vector.shape_cast %0 : vector<1x8x16xf32> to vector<8x16xf32>
    %cst = arith.constant 0.000000e+00 : f32
    %2 = vector.broadcast %cst : f32 to vector<8x16xf32>
    %3 = arith.cmpf oge, %1, %2 : vector<8x16xf32>
    %cst_2 = arith.constant 0.00999999977 : f32
    %4 = vector.broadcast %cst_2 : f32 to vector<8x16xf32>
    %5 = arith.mulf %4, %1 : vector<8x16xf32>
    %6 = arith.select %3, %1, %5 : vector<8x16xi1>, vector<8x16xf32>
    %cst_3 = arith.constant 0.000000e+00 : f32
    %7 = vector.broadcast %cst_3 : f32 to vector<8x3xf32>
    %c0_4 = arith.constant 0 : index
    %c0_5 = arith.constant 0 : index
    %8 = vector.load %arg4[%c0_4, %c0_5] : memref<56x16xf32, #tpu.memory_space<vmem>>, vector<8x3xf32>
    tpu.vector_store %arg4[%c0_4, %c0_5], %7 {strides = array<i32>} : memref<56x16xf32, #tpu.memory_space<vmem>>, vector<8x3xf32>,
    %9 = vector.extract_strided_slice %6 {offsets = [0, 0], sizes = [8, 13], strides = [1, 1]} : vector<8x16xf32> to vector<8x13xf32>
    %c0_6 = arith.constant 0 : index
    %c3 = arith.constant 3 : index
    %10 = vector.load %arg4[%c0_6, %c3] : memref<56x16xf32, #tpu.memory_space<vmem>>, vector<8x13xf32>
    tpu.vector_store %arg4[%c0_6, %c3], %9 {strides = array<i32>} : memref<56x16xf32, #tpu.memory_space<vmem>>, vector<8x13xf32>,
    %cst_7 = arith.constant 0.000000e+00 : f32
    %11 = vector.broadcast %cst_7 : f32 to vector<8x2xf32>
    %c8 = arith.constant 8 : index
    %c0_8 = arith.constant 0 : index
    %12 = vector.load %arg4[%c8, %c0_8] : memref<56x16xf32, #tpu.memory_space<vmem>>, vector<8x2xf32>
    tpu.vector_store %arg4[%c8, %c0_8], %11 {strides = array<i32>} : memref<56x16xf32, #tpu.memory_space<vmem>>, vector<8x2xf32>,
    %13 = vector.extract_strided_slice %6 {offsets = [0, 0], sizes = [8, 14], strides = [1, 1]} : vector<8x16xf32> to vector<8x14xf32>
    %c8_9 = arith.constant 8 : index
    %c2 = arith.constant 2 : index
    %14 = vector.load %arg4[%c8_9, %c2] : memref<56x16xf32, #tpu.memory_space<vmem>>, vector<8x14xf32>
    tpu.vector_store %arg4[%c8_9, %c2], %13 {strides = array<i32>} : memref<56x16xf32, #tpu.memory_space<vmem>>, vector<8x14xf32>,
    %cst_10 = arith.constant 0.000000e+00 : f32
    %15 = vector.broadcast %cst_10 : f32 to vector<8x1xf32>
    %c16 = arith.constant 16 : index
    %c0_11 = arith.constant 0 : index
    %16 = vector.load %arg4[%c16, %c0_11] : memref<56x16xf32, #tpu.memory_space<vmem>>, vector<8x1xf32>
    tpu.vector_store %arg4[%c16, %c0_11], %15 {strides = array<i32>} : memref<56x16xf32, #tpu.memory_space<vmem>>, vector<8x1xf32>,
    %17 = vector.extract_strided_slice %6 {offsets = [0, 0], sizes = [8, 15], strides = [1, 1]} : vector<8x16xf32> to vector<8x15xf32>
    %c16_12 = arith.constant 16 : index
    %c1 = arith.constant 1 : index
    %18 = vector.load %arg4[%c16_12, %c1] : memref<56x16xf32, #tpu.memory_space<vmem>>, vector<8x15xf32>
    tpu.vector_store %arg4[%c16_12, %c1], %17 {strides = array<i32>} : memref<56x16xf32, #tpu.memory_space<vmem>>, vector<8x15xf32>,
    %c24 = arith.constant 24 : index
    %c0_13 = arith.constant 0 : index
    %19 = vector.load %arg4[%c24, %c0_13] : memref<56x16xf32, #tpu.memory_space<vmem>>, vector<8x16xf32>
    tpu.vector_store %arg4[%c24, %c0_13], %6 {strides = array<i32>} : memref<56x16xf32, #tpu.memory_space<vmem>>, vector<8x16xf32>,
    %cst_14 = arith.constant 0.000000e+00 : f32
    %20 = vector.broadcast %cst_14 : f32 to vector<8x1xf32>
    %c32 = arith.constant 32 : index
    %c15 = arith.constant 15 : index
    %21 = vector.load %arg4[%c32, %c15] : memref<56x16xf32, #tpu.memory_space<vmem>>, vector<8x1xf32>
    tpu.vector_store %arg4[%c32, %c15], %20 {strides = array<i32>} : memref<56x16xf32, #tpu.memory_space<vmem>>, vector<8x1xf32>,
    %22 = vector.extract_strided_slice %6 {offsets = [0, 1], sizes = [8, 15], strides = [1, 1]} : vector<8x16xf32> to vector<8x15xf32>
    %c32_15 = arith.constant 32 : index
    %c0_16 = arith.constant 0 : index
    %23 = vector.load %arg4[%c32_15, %c0_16] : memref<56x16xf32, #tpu.memory_space<vmem>>, vector<8x15xf32>
    tpu.vector_store %arg4[%c32_15, %c0_16], %22 {strides = array<i32>} : memref<56x16xf32, #tpu.memory_space<vmem>>, vector<8x15xf32>,
    %cst_17 = arith.constant 0.000000e+00 : f32
    %24 = vector.broadcast %cst_17 : f32 to vector<8x2xf32>
    %c40 = arith.constant 40 : index
    %c14 = arith.constant 14 : index
    %25 = vector.load %arg4[%c40, %c14] : memref<56x16xf32, #tpu.memory_space<vmem>>, vector<8x2xf32>
    tpu.vector_store %arg4[%c40, %c14], %24 {strides = array<i32>} : memref<56x16xf32, #tpu.memory_space<vmem>>, vector<8x2xf32>,
    %26 = vector.extract_strided_slice %6 {offsets = [0, 2], sizes = [8, 14], strides = [1, 1]} : vector<8x16xf32> to vector<8x14xf32>
    %c40_18 = arith.constant 40 : index
    %c0_19 = arith.constant 0 : index
    %27 = vector.load %arg4[%c40_18, %c0_19] : memref<56x16xf32, #tpu.memory_space<vmem>>, vector<8x14xf32>
    tpu.vector_store %arg4[%c40_18, %c0_19], %26 {strides = array<i32>} : memref<56x16xf32, #tpu.memory_space<vmem>>, vector<8x14xf32>,
    %cst_20 = arith.constant 0.000000e+00 : f32
    %28 = vector.broadcast %cst_20 : f32 to vector<8x3xf32>
    %c48 = arith.constant 48 : index
    %c13 = arith.constant 13 : index
    %29 = vector.load %arg4[%c48, %c13] : memref<56x16xf32, #tpu.memory_space<vmem>>, vector<8x3xf32>
    tpu.vector_store %arg4[%c48, %c13], %28 {strides = array<i32>} : memref<56x16xf32, #tpu.memory_space<vmem>>, vector<8x3xf32>,
    %30 = vector.extract_strided_slice %6 {offsets = [0, 3], sizes = [8, 13], strides = [1, 1]} : vector<8x16xf32> to vector<8x13xf32>
    %c48_21 = arith.constant 48 : index
    %c0_22 = arith.constant 0 : index
    %31 = vector.load %arg4[%c48_21, %c0_22] : memref<56x16xf32, #tpu.memory_space<vmem>>, vector<8x13xf32>
    tpu.vector_store %arg4[%c48_21, %c0_22], %30 {strides = array<i32>} : memref<56x16xf32, #tpu.memory_space<vmem>>, vector<8x13xf32>,
    %c0_23 = arith.constant 0 : index
    %c0_24 = arith.constant 0 : index
    %32 = vector.load %arg4[%c0_23, %c0_24] : memref<56x16xf32, #tpu.memory_space<vmem>>, vector<56x16xf32>
    %33 = arith.truncf %32 : vector<56x16xf32> to vector<56x16xbf16>
    %c0_25 = arith.constant 0 : index
    %c0_26 = arith.constant 0 : index
    %34 = vector.load %arg2[%c0_25, %c0_26] : memref<1x56xbf16, #tpu.memory_space<vmem>>, vector<1x56xbf16>
    %cst_27 = arith.constant dense<0.000000e+00> : vector<1x16xf32>
    %35 = tpu.matmul %34, %33, %cst_27 {dimension_numbers = #tpu.dot_dimension_numbers<[1], [0], [0], [1], [0, 0, 1, 1], [], []>} : vector<1x56xbf16>, vector<56x16xbf16>, vector<1x16xf32> -> vector<1x16xf32>
    %36 = math.tanh %35 : vector<1x16xf32>
    %c0_28 = arith.constant 0 : index
    %c0_29 = arith.constant 0 : index
    %c0_30 = arith.constant 0 : index
    %37 = vector.load %arg3[%c0_28, %c0_29, %c0_30] : memref<1x1x16xf32, #tpu.memory_space<vmem>>, vector<1x1x16xf32>
    %38 = vector.shape_cast %37 : vector<1x1x16xf32> to vector<1x16xf32>
    %39 = vector.shape_cast %36 : vector<1x16xf32> to vector<1x1x16xf32>
    tpu.vector_store %arg3[%c0_28, %c0_29, %c0_30], %39 {strides = array<i32>} : memref<1x1x16xf32, #tpu.memory_space<vmem>>, vector<1x1x16xf32>,
    return
  }
  func.func @transform_0(%arg0: i32) -> (i32, i32, i32) {
    %c0_i32 = arith.constant 0 : i32
    %c0_i32_0 = arith.constant 0 : i32
    %c0_i32_1 = arith.constant 0 : i32
    return %arg0, %c0_i32, %c0_i32_0 : i32, i32, i32
  }
  func.func @transform_1(%arg0: i32) -> (i32, i32) {
    %c0_i32 = arith.constant 0 : i32
    %c0_i32_0 = arith.constant 0 : i32
    %c0_i32_1 = arith.constant 0 : i32
    return %c0_i32, %c0_i32_0 : i32, i32
  }
  func.func @transform_2(%arg0: i32) -> (i32, i32, i32) {
    %c0_i32 = arith.constant 0 : i32
    %c0_i32_0 = arith.constant 0 : i32
    %c0_i32_1 = arith.constant 0 : i32
    return %arg0, %c0_i32, %c0_i32_0 : i32, i32, i32
  }
}

module attributes {stable_mosaic.version = 11 : i64} {
  func.func @kernel(%arg0: i32, %arg1: memref<1x16x16xf32, #tpu.memory_space<vmem>>, %arg2: memref<32x16xbf16, #tpu.memory_space<vmem>>, %arg3: memref<32x1xf32, #tpu.memory_space<vmem>>, %arg4: memref<1x1x16xf32, #tpu.memory_space<vmem>>, %arg5: memref<1x32x16xf32, #tpu.memory_space<vmem>>) attributes {dimension_semantics = [#tpu.dimension_semantics<parallel>], iteration_bounds = array<i64: 2>, scalar_prefetch = 0 : i64, scratch_operands = 0 : i64, tpu.core_type = #tpu.core_type<tc>, window_params = [{transform_indices = @transform_0, window_bounds = array<i64: 1, 16, 16>}, {pipeline_mode = #tpu.pipeline_mode<synchronous>, transform_indices = @transform_1, window_bounds = array<i64: 32, 16>}, {pipeline_mode = #tpu.pipeline_mode<synchronous>, transform_indices = @transform_2, window_bounds = array<i64: 32, 1>}, {transform_indices = @transform_3, window_bounds = array<i64: 1, 1, 16>}, {transform_indices = @transform_4, window_bounds = array<i64: 1, 32, 16>}]} {
    %c0 = arith.constant 0 : index
    %c0_0 = arith.constant 0 : index
    %c0_1 = arith.constant 0 : index
    %0 = vector.load %arg1[%c0, %c0_0, %c0_1] : memref<1x16x16xf32, #tpu.memory_space<vmem>>, vector<1x16x16xf32>
    %1 = vector.shape_cast %0 : vector<1x16x16xf32> to vector<16x16xf32>
    %2 = arith.truncf %1 : vector<16x16xf32> to vector<16x16xbf16>
    %c0_2 = arith.constant 0 : index
    %c0_3 = arith.constant 0 : index
    %3 = vector.load %arg2[%c0_2, %c0_3] : memref<32x16xbf16, #tpu.memory_space<vmem>>, vector<32x16xbf16>
    %cst = arith.constant dense<0.000000e+00> : vector<32x16xf32>
    %4 = tpu.matmul %3, %2, %cst {dimension_numbers = #tpu.dot_dimension_numbers<[1], [0], [0], [1], [0, 0, 1, 1], [], []>} : vector<32x16xbf16>, vector<16x16xbf16>, vector<32x16xf32> -> vector<32x16xf32>
    %c0_4 = arith.constant 0 : index
    %c0_5 = arith.constant 0 : index
    %5 = vector.load %arg3[%c0_4, %c0_5] : memref<32x1xf32, #tpu.memory_space<vmem>>, vector<32x1xf32>
    %6 = vector.broadcast %5 : vector<32x1xf32> to vector<32x16xf32>
    %7 = arith.addf %4, %6 : vector<32x16xf32>
    %c0_6 = arith.constant 0 : index
    %c0_7 = arith.constant 0 : index
    %c0_8 = arith.constant 0 : index
    %8 = vector.load %arg4[%c0_6, %c0_7, %c0_8] : memref<1x1x16xf32, #tpu.memory_space<vmem>>, vector<1x1x16xf32>
    %9 = vector.shape_cast %8 : vector<1x1x16xf32> to vector<1x16xf32>
    %10 = vector.broadcast %9 : vector<1x16xf32> to vector<32x16xf32>
    %11 = arith.mulf %7, %10 : vector<32x16xf32>
    %c0_9 = arith.constant 0 : index
    %c0_10 = arith.constant 0 : index
    %c0_11 = arith.constant 0 : index
    %12 = vector.load %arg5[%c0_9, %c0_10, %c0_11] : memref<1x32x16xf32, #tpu.memory_space<vmem>>, vector<1x32x16xf32>
    %13 = vector.shape_cast %12 : vector<1x32x16xf32> to vector<32x16xf32>
    %14 = vector.shape_cast %11 : vector<32x16xf32> to vector<1x32x16xf32>
    tpu.vector_store %arg5[%c0_9, %c0_10, %c0_11], %14 {strides = array<i32>} : memref<1x32x16xf32, #tpu.memory_space<vmem>>, vector<1x32x16xf32>,
    return
  }
  func.func @transform_0(%arg0: i32) -> (i32, i32, i32) {
    %c0_i32 = arith.constant 0 : i32
    %c0_i32_0 = arith.constant 0 : i32
    %c0_i32_1 = arith.constant 0 : i32
    return %arg0, %c0_i32, %c0_i32_0 : i32, i32, i32
  }
  func.func @transform_1(%arg0: i32) -> (i32, i32) {
    %c0_i32 = arith.constant 0 : i32
    %c0_i32_0 = arith.constant 0 : i32
    %c0_i32_1 = arith.constant 0 : i32
    return %c0_i32, %c0_i32_0 : i32, i32
  }
  func.func @transform_2(%arg0: i32) -> (i32, i32) {
    %c0_i32 = arith.constant 0 : i32
    %c0_i32_0 = arith.constant 0 : i32
    %c0_i32_1 = arith.constant 0 : i32
    return %c0_i32, %c0_i32_0 : i32, i32
  }
  func.func @transform_3(%arg0: i32) -> (i32, i32, i32) {
    %c0_i32 = arith.constant 0 : i32
    %c0_i32_0 = arith.constant 0 : i32
    %c0_i32_1 = arith.constant 0 : i32
    return %arg0, %c0_i32, %c0_i32_0 : i32, i32, i32
  }
  func.func @transform_4(%arg0: i32) -> (i32, i32, i32) {
    %c0_i32 = arith.constant 0 : i32
    %c0_i32_0 = arith.constant 0 : i32
    %c0_i32_1 = arith.constant 0 : i32
    return %arg0, %c0_i32, %c0_i32_0 : i32, i32, i32
  }
}

module attributes {stable_mosaic.version = 11 : i64} {
  func.func @kernel(%arg0: i32, %arg1: memref<1x32x16xf32, #tpu.memory_space<vmem>>, %arg2: memref<16x32xbf16, #tpu.memory_space<vmem>>, %arg3: memref<16x1xf32, #tpu.memory_space<vmem>>, %arg4: memref<1x1x16xf32, #tpu.memory_space<vmem>>, %arg5: memref<1x16x16xf32, #tpu.memory_space<vmem>>, %arg6: memref<1x16x16xf32, #tpu.memory_space<vmem>>) attributes {dimension_semantics = [#tpu.dimension_semantics<parallel>], iteration_bounds = array<i64: 2>, scalar_prefetch = 0 : i64, scratch_operands = 0 : i64, tpu.core_type = #tpu.core_type<tc>, window_params = [{transform_indices = @transform_0, window_bounds = array<i64: 1, 32, 16>}, {pipeline_mode = #tpu.pipeline_mode<synchronous>, transform_indices = @transform_1, window_bounds = array<i64: 16, 32>}, {pipeline_mode = #tpu.pipeline_mode<synchronous>, transform_indices = @transform_2, window_bounds = array<i64: 16, 1>}, {transform_indices = @transform_3, window_bounds = array<i64: 1, 1, 16>}, {transform_indices = @transform_4, window_bounds = array<i64: 1, 16, 16>}, {transform_indices = @transform_5, window_bounds = array<i64: 1, 16, 16>}]} {
    %c0 = arith.constant 0 : index
    %c0_0 = arith.constant 0 : index
    %c0_1 = arith.constant 0 : index
    %0 = vector.load %arg1[%c0, %c0_0, %c0_1] : memref<1x32x16xf32, #tpu.memory_space<vmem>>, vector<1x32x16xf32>
    %1 = vector.shape_cast %0 : vector<1x32x16xf32> to vector<32x16xf32>
    %2 = arith.truncf %1 : vector<32x16xf32> to vector<32x16xbf16>
    %c0_2 = arith.constant 0 : index
    %c0_3 = arith.constant 0 : index
    %3 = vector.load %arg2[%c0_2, %c0_3] : memref<16x32xbf16, #tpu.memory_space<vmem>>, vector<16x32xbf16>
    %cst = arith.constant dense<0.000000e+00> : vector<16x16xf32>
    %4 = tpu.matmul %3, %2, %cst {dimension_numbers = #tpu.dot_dimension_numbers<[1], [0], [0], [1], [0, 0, 1, 1], [], []>} : vector<16x32xbf16>, vector<32x16xbf16>, vector<16x16xf32> -> vector<16x16xf32>
    %c0_4 = arith.constant 0 : index
    %c0_5 = arith.constant 0 : index
    %5 = vector.load %arg3[%c0_4, %c0_5] : memref<16x1xf32, #tpu.memory_space<vmem>>, vector<16x1xf32>
    %6 = vector.broadcast %5 : vector<16x1xf32> to vector<16x16xf32>
    %7 = arith.addf %4, %6 : vector<16x16xf32>
    %c0_6 = arith.constant 0 : index
    %c0_7 = arith.constant 0 : index
    %c0_8 = arith.constant 0 : index
    %8 = vector.load %arg4[%c0_6, %c0_7, %c0_8] : memref<1x1x16xf32, #tpu.memory_space<vmem>>, vector<1x1x16xf32>
    %9 = vector.shape_cast %8 : vector<1x1x16xf32> to vector<1x16xf32>
    %10 = vector.broadcast %9 : vector<1x16xf32> to vector<16x16xf32>
    %11 = arith.mulf %7, %10 : vector<16x16xf32>
    %c0_9 = arith.constant 0 : index
    %c0_10 = arith.constant 0 : index
    %c0_11 = arith.constant 0 : index
    %12 = vector.load %arg5[%c0_9, %c0_10, %c0_11] : memref<1x16x16xf32, #tpu.memory_space<vmem>>, vector<1x16x16xf32>
    %13 = vector.shape_cast %12 : vector<1x16x16xf32> to vector<16x16xf32>
    %14 = arith.addf %11, %13 : vector<16x16xf32>
    %c0_12 = arith.constant 0 : index
    %c0_13 = arith.constant 0 : index
    %c0_14 = arith.constant 0 : index
    %15 = vector.load %arg6[%c0_12, %c0_13, %c0_14] : memref<1x16x16xf32, #tpu.memory_space<vmem>>, vector<1x16x16xf32>
    %16 = vector.shape_cast %15 : vector<1x16x16xf32> to vector<16x16xf32>
    %17 = vector.shape_cast %14 : vector<16x16xf32> to vector<1x16x16xf32>
    tpu.vector_store %arg6[%c0_12, %c0_13, %c0_14], %17 {strides = array<i32>} : memref<1x16x16xf32, #tpu.memory_space<vmem>>, vector<1x16x16xf32>,
    return
  }
  func.func @transform_0(%arg0: i32) -> (i32, i32, i32) {
    %c0_i32 = arith.constant 0 : i32
    %c0_i32_0 = arith.constant 0 : i32
    %c0_i32_1 = arith.constant 0 : i32
    return %arg0, %c0_i32, %c0_i32_0 : i32, i32, i32
  }
  func.func @transform_1(%arg0: i32) -> (i32, i32) {
    %c0_i32 = arith.constant 0 : i32
    %c0_i32_0 = arith.constant 0 : i32
    %c0_i32_1 = arith.constant 0 : i32
    return %c0_i32, %c0_i32_0 : i32, i32
  }
  func.func @transform_2(%arg0: i32) -> (i32, i32) {
    %c0_i32 = arith.constant 0 : i32
    %c0_i32_0 = arith.constant 0 : i32
    %c0_i32_1 = arith.constant 0 : i32
    return %c0_i32, %c0_i32_0 : i32, i32
  }
  func.func @transform_3(%arg0: i32) -> (i32, i32, i32) {
    %c0_i32 = arith.constant 0 : i32
    %c0_i32_0 = arith.constant 0 : i32
    %c0_i32_1 = arith.constant 0 : i32
    return %arg0, %c0_i32, %c0_i32_0 : i32, i32, i32
  }
  func.func @transform_4(%arg0: i32) -> (i32, i32, i32) {
    %c0_i32 = arith.constant 0 : i32
    %c0_i32_0 = arith.constant 0 : i32
    %c0_i32_1 = arith.constant 0 : i32
    return %arg0, %c0_i32, %c0_i32_0 : i32, i32, i32
  }
  func.func @transform_5(%arg0: i32) -> (i32, i32, i32) {
    %c0_i32 = arith.constant 0 : i32
    %c0_i32_0 = arith.constant 0 : i32
    %c0_i32_1 = arith.constant 0 : i32
    return %arg0, %c0_i32, %c0_i32_0 : i32, i32, i32
  }
}

module attributes {stable_mosaic.version = 11 : i64} {
  func.func @kernel(%arg0: i32, %arg1: i32, %arg2: memref<1x32x16xf32, #tpu.memory_space<vmem>>, %arg3: memref<1x1x16xf32, #tpu.memory_space<vmem>>, %arg4: memref<1x3x64x1xf32, #tpu.memory_space<vmem>>, %arg5: memref<3x64x160xbf16, #tpu.memory_space<vmem>>, %arg6: memref<3x64x32xbf16, #tpu.memory_space<vmem>>, %arg7: memref<3x64x1xf32, #tpu.memory_space<vmem>>, %arg8: memref<1x32x16xf32, #tpu.memory_space<vmem>>, %arg9: memref<32x16xf32, #tpu.memory_space<vmem>>, %arg10: memref<32x16xf32, #tpu.memory_space<vmem>>, %arg11: memref<160x16xf32, #tpu.memory_space<vmem>>) attributes {dimension_semantics = [#tpu.dimension_semantics<parallel>, #tpu.dimension_semantics<arbitrary>], iteration_bounds = array<i64: 2, 3>, scalar_prefetch = 0 : i64, scratch_operands = 3 : i64, tpu.core_type = #tpu.core_type<tc>, window_params = [{transform_indices = @transform_0, window_bounds = array<i64: 1, 32, 16>}, {transform_indices = @transform_1, window_bounds = array<i64: 1, 1, 16>}, {transform_indices = @transform_2, window_bounds = array<i64: 1, 3, 64, 1>}, {pipeline_mode = #tpu.pipeline_mode<synchronous>, transform_indices = @transform_3, window_bounds = array<i64: 3, 64, 160>}, {pipeline_mode = #tpu.pipeline_mode<synchronous>, transform_indices = @transform_4, window_bounds = array<i64: 3, 64, 32>}, {pipeline_mode = #tpu.pipeline_mode<synchronous>, transform_indices = @transform_5, window_bounds = array<i64: 3, 64, 1>}, {transform_indices = @transform_6, window_bounds = array<i64: 1, 32, 16>}]} {
    %c0 = arith.constant 0 : index
    %c0_0 = arith.constant 0 : index
    %c0_1 = arith.constant 0 : index
    %0 = vector.load %arg3[%c0, %c0_0, %c0_1] : memref<1x1x16xf32, #tpu.memory_space<vmem>>, vector<1x1x16xf32>
    %1 = vector.shape_cast %0 : vector<1x1x16xf32> to vector<1x16xf32>
    %c0_i32 = arith.constant 0 : i32
    %2 = arith.cmpi eq, %arg1, %c0_i32 : i32
    %3 = arith.extui %2 : i1 to i32
    %c0_i32_2 = arith.constant 0 : i32
    %4 = arith.cmpi ne, %3, %c0_i32_2 : i32
    scf.if %4 {
      %c0_39 = arith.constant 0 : index
      %c0_40 = arith.constant 0 : index
      %c0_41 = arith.constant 0 : index
      %65 = vector.load %arg2[%c0_39, %c0_40, %c0_41] : memref<1x32x16xf32, #tpu.memory_space<vmem>>, vector<1x32x16xf32>
      %66 = vector.shape_cast %65 : vector<1x32x16xf32> to vector<32x16xf32>
      %c0_42 = arith.constant 0 : index
      %c0_43 = arith.constant 0 : index
      %67 = vector.load %arg9[%c0_42, %c0_43] : memref<32x16xf32, #tpu.memory_space<vmem>>, vector<32x16xf32>
      tpu.vector_store %arg9[%c0_42, %c0_43], %66 {strides = array<i32>} : memref<32x16xf32, #tpu.memory_space<vmem>>, vector<32x16xf32>,
      %cst_44 = arith.constant 0.000000e+00 : f32
      %68 = vector.broadcast %cst_44 : f32 to vector<32x16xf32>
      %c0_45 = arith.constant 0 : index
      %c0_46 = arith.constant 0 : index
      %69 = vector.load %arg10[%c0_45, %c0_46] : memref<32x16xf32, #tpu.memory_space<vmem>>, vector<32x16xf32>
      tpu.vector_store %arg10[%c0_45, %c0_46], %68 {strides = array<i32>} : memref<32x16xf32, #tpu.memory_space<vmem>>, vector<32x16xf32>,
    } else {
    }
    %c0_3 = arith.constant 0 : index
    %c0_4 = arith.constant 0 : index
    %5 = vector.load %arg9[%c0_3, %c0_4] : memref<32x16xf32, #tpu.memory_space<vmem>>, vector<32x16xf32>
    %cst = arith.constant 0.000000e+00 : f32
    %6 = vector.broadcast %cst : f32 to vector<32x2xf32>
    %c0_5 = arith.constant 0 : index
    %c0_6 = arith.constant 0 : index
    %7 = vector.load %arg11[%c0_5, %c0_6] : memref<160x16xf32, #tpu.memory_space<vmem>>, vector<32x2xf32>
    tpu.vector_store %arg11[%c0_5, %c0_6], %6 {strides = array<i32>} : memref<160x16xf32, #tpu.memory_space<vmem>>, vector<32x2xf32>,
    %8 = vector.extract_strided_slice %5 {offsets = [0, 0], sizes = [32, 14], strides = [1, 1]} : vector<32x16xf32> to vector<32x14xf32>
    %c0_7 = arith.constant 0 : index
    %c2 = arith.constant 2 : index
    %9 = vector.load %arg11[%c0_7, %c2] : memref<160x16xf32, #tpu.memory_space<vmem>>, vector<32x14xf32>
    tpu.vector_store %arg11[%c0_7, %c2], %8 {strides = array<i32>} : memref<160x16xf32, #tpu.memory_space<vmem>>, vector<32x14xf32>,
    %cst_8 = arith.constant 0.000000e+00 : f32
    %10 = vector.broadcast %cst_8 : f32 to vector<32x1xf32>
    %c32 = arith.constant 32 : index
    %c0_9 = arith.constant 0 : index
    %11 = vector.load %arg11[%c32, %c0_9] : memref<160x16xf32, #tpu.memory_space<vmem>>, vector<32x1xf32>
    tpu.vector_store %arg11[%c32, %c0_9], %10 {strides = array<i32>} : memref<160x16xf32, #tpu.memory_space<vmem>>, vector<32x1xf32>,
    %12 = vector.extract_strided_slice %5 {offsets = [0, 0], sizes = [32, 15], strides = [1, 1]} : vector<32x16xf32> to vector<32x15xf32>
    %c32_10 = arith.constant 32 : index
    %c1 = arith.constant 1 : index
    %13 = vector.load %arg11[%c32_10, %c1] : memref<160x16xf32, #tpu.memory_space<vmem>>, vector<32x15xf32>
    tpu.vector_store %arg11[%c32_10, %c1], %12 {strides = array<i32>} : memref<160x16xf32, #tpu.memory_space<vmem>>, vector<32x15xf32>,
    %c64 = arith.constant 64 : index
    %c0_11 = arith.constant 0 : index
    %14 = vector.load %arg11[%c64, %c0_11] : memref<160x16xf32, #tpu.memory_space<vmem>>, vector<32x16xf32>
    tpu.vector_store %arg11[%c64, %c0_11], %5 {strides = array<i32>} : memref<160x16xf32, #tpu.memory_space<vmem>>, vector<32x16xf32>,
    %cst_12 = arith.constant 0.000000e+00 : f32
    %15 = vector.broadcast %cst_12 : f32 to vector<32x1xf32>
    %c96 = arith.constant 96 : index
    %c15 = arith.constant 15 : index
    %16 = vector.load %arg11[%c96, %c15] : memref<160x16xf32, #tpu.memory_space<vmem>>, vector<32x1xf32>
    tpu.vector_store %arg11[%c96, %c15], %15 {strides = array<i32>} : memref<160x16xf32, #tpu.memory_space<vmem>>, vector<32x1xf32>,
    %17 = vector.extract_strided_slice %5 {offsets = [0, 1], sizes = [32, 15], strides = [1, 1]} : vector<32x16xf32> to vector<32x15xf32>
    %c96_13 = arith.constant 96 : index
    %c0_14 = arith.constant 0 : index
    %18 = vector.load %arg11[%c96_13, %c0_14] : memref<160x16xf32, #tpu.memory_space<vmem>>, vector<32x15xf32>
    tpu.vector_store %arg11[%c96_13, %c0_14], %17 {strides = array<i32>} : memref<160x16xf32, #tpu.memory_space<vmem>>, vector<32x15xf32>,
    %cst_15 = arith.constant 0.000000e+00 : f32
    %19 = vector.broadcast %cst_15 : f32 to vector<32x2xf32>
    %c128 = arith.constant 128 : index
    %c14 = arith.constant 14 : index
    %20 = vector.load %arg11[%c128, %c14] : memref<160x16xf32, #tpu.memory_space<vmem>>, vector<32x2xf32>
    tpu.vector_store %arg11[%c128, %c14], %19 {strides = array<i32>} : memref<160x16xf32, #tpu.memory_space<vmem>>, vector<32x2xf32>,
    %21 = vector.extract_strided_slice %5 {offsets = [0, 2], sizes = [32, 14], strides = [1, 1]} : vector<32x16xf32> to vector<32x14xf32>
    %c128_16 = arith.constant 128 : index
    %c0_17 = arith.constant 0 : index
    %22 = vector.load %arg11[%c128_16, %c0_17] : memref<160x16xf32, #tpu.memory_space<vmem>>, vector<32x14xf32>
    tpu.vector_store %arg11[%c128_16, %c0_17], %21 {strides = array<i32>} : memref<160x16xf32, #tpu.memory_space<vmem>>, vector<32x14xf32>,
    %23 = arith.index_cast %arg1 : i32 to index
    %c0_18 = arith.constant 0 : index
    %c0_19 = arith.constant 0 : index
    %24 = vector.load %arg5[%23, %c0_18, %c0_19] : memref<3x64x160xbf16, #tpu.memory_space<vmem>>, vector<1x64x160xbf16>
    %25 = vector.shape_cast %24 : vector<1x64x160xbf16> to vector<64x160xbf16>
    %c0_20 = arith.constant 0 : index
    %c0_21 = arith.constant 0 : index
    %26 = vector.load %arg11[%c0_20, %c0_21] : memref<160x16xf32, #tpu.memory_space<vmem>>, vector<160x16xf32>
    %27 = arith.truncf %26 : vector<160x16xf32> to vector<160x16xbf16>
    %cst_22 = arith.constant dense<0.000000e+00> : vector<64x16xf32>
    %28 = tpu.matmul %25, %27, %cst_22 {dimension_numbers = #tpu.dot_dimension_numbers<[1], [0], [0], [1], [0, 0, 1, 1], [], []>} : vector<64x160xbf16>, vector<160x16xbf16>, vector<64x16xf32> -> vector<64x16xf32>
    %c0_23 = arith.constant 0 : index
    %29 = arith.index_cast %arg1 : i32 to index
    %c0_24 = arith.constant 0 : index
    %c0_25 = arith.constant 0 : index
    %30 = vector.load %arg4[%c0_23, %29, %c0_24, %c0_25] : memref<1x3x64x1xf32, #tpu.memory_space<vmem>>, vector<1x1x64x1xf32>
    %31 = vector.shape_cast %30 : vector<1x1x64x1xf32> to vector<64x1xf32>
    %32 = vector.broadcast %31 : vector<64x1xf32> to vector<64x16xf32>
    %33 = arith.addf %28, %32 : vector<64x16xf32>
    %34 = vector.extract_strided_slice %33 {offsets = [0, 0], sizes = [32, 16], strides = [1, 1]} : vector<64x16xf32> to vector<32x16xf32>
    %35 = math.tanh %34 : vector<32x16xf32>
    %36 = vector.extract_strided_slice %33 {offsets = [32, 0], sizes = [32, 16], strides = [1, 1]} : vector<64x16xf32> to vector<32x16xf32>
    %37 = arith.negf %36 : vector<32x16xf32>
    %38 = math.exp %37 : vector<32x16xf32>
    %cst_26 = arith.constant 1.000000e+00 : f32
    %39 = vector.broadcast %cst_26 : f32 to vector<32x16xf32>
    %40 = arith.addf %39, %38 : vector<32x16xf32>
    %41 = arith.divf %39, %40 : vector<32x16xf32>
    %42 = arith.mulf %35, %41 : vector<32x16xf32>
    %43 = arith.index_cast %arg1 : i32 to index
    %c0_27 = arith.constant 0 : index
    %c0_28 = arith.constant 0 : index
    %44 = vector.load %arg6[%43, %c0_27, %c0_28] : memref<3x64x32xbf16, #tpu.memory_space<vmem>>, vector<1x64x32xbf16>
    %45 = vector.shape_cast %44 : vector<1x64x32xbf16> to vector<64x32xbf16>
    %46 = arith.truncf %42 : vector<32x16xf32> to vector<32x16xbf16>
    %cst_29 = arith.constant dense<0.000000e+00> : vector<64x16xf32>
    %47 = tpu.matmul %45, %46, %cst_29 {dimension_numbers = #tpu.dot_dimension_numbers<[1], [0], [0], [1], [0, 0, 1, 1], [], []>} : vector<64x32xbf16>, vector<32x16xbf16>, vector<64x16xf32> -> vector<64x16xf32>
    %48 = arith.index_cast %arg1 : i32 to index
    %c0_30 = arith.constant 0 : index
    %c0_31 = arith.constant 0 : index
    %49 = vector.load %arg7[%48, %c0_30, %c0_31] : memref<3x64x1xf32, #tpu.memory_space<vmem>>, vector<1x64x1xf32>
    %50 = vector.shape_cast %49 : vector<1x64x1xf32> to vector<64x1xf32>
    %51 = vector.broadcast %50 : vector<64x1xf32> to vector<64x16xf32>
    %52 = arith.addf %47, %51 : vector<64x16xf32>
    %53 = vector.extract_strided_slice %52 {offsets = [0, 0], sizes = [32, 16], strides = [1, 1]} : vector<64x16xf32> to vector<32x16xf32>
    %54 = arith.addf %5, %53 : vector<32x16xf32>
    %55 = vector.broadcast %1 : vector<1x16xf32> to vector<32x16xf32>
    %56 = arith.mulf %54, %55 : vector<32x16xf32>
    %c0_32 = arith.constant 0 : index
    %c0_33 = arith.constant 0 : index
    %57 = vector.load %arg9[%c0_32, %c0_33] : memref<32x16xf32, #tpu.memory_space<vmem>>, vector<32x16xf32>
    tpu.vector_store %arg9[%c0_32, %c0_33], %56 {strides = array<i32>} : memref<32x16xf32, #tpu.memory_space<vmem>>, vector<32x16xf32>,
    %c0_34 = arith.constant 0 : index
    %c0_35 = arith.constant 0 : index
    %58 = vector.load %arg10[%c0_34, %c0_35] : memref<32x16xf32, #tpu.memory_space<vmem>>, vector<32x16xf32>
    %59 = vector.extract_strided_slice %52 {offsets = [32, 0], sizes = [32, 16], strides = [1, 1]} : vector<64x16xf32> to vector<32x16xf32>
    %60 = arith.addf %58, %59 : vector<32x16xf32>
    %c0_36 = arith.constant 0 : index
    %c0_37 = arith.constant 0 : index
    %61 = vector.load %arg10[%c0_36, %c0_37] : memref<32x16xf32, #tpu.memory_space<vmem>>, vector<32x16xf32>
    tpu.vector_store %arg10[%c0_36, %c0_37], %60 {strides = array<i32>} : memref<32x16xf32, #tpu.memory_space<vmem>>, vector<32x16xf32>,
    %c2_i32 = arith.constant 2 : i32
    %62 = arith.cmpi eq, %arg1, %c2_i32 : i32
    %63 = arith.extui %62 : i1 to i32
    %c0_i32_38 = arith.constant 0 : i32
    %64 = arith.cmpi ne, %63, %c0_i32_38 : i32
    scf.if %64 {
      %c0_39 = arith.constant 0 : index
      %c0_40 = arith.constant 0 : index
      %65 = vector.load %arg10[%c0_39, %c0_40] : memref<32x16xf32, #tpu.memory_space<vmem>>, vector<32x16xf32>
      %66 = vector.broadcast %1 : vector<1x16xf32> to vector<32x16xf32>
      %67 = arith.mulf %65, %66 : vector<32x16xf32>
      %c0_41 = arith.constant 0 : index
      %c0_42 = arith.constant 0 : index
      %c0_43 = arith.constant 0 : index
      %68 = vector.load %arg8[%c0_41, %c0_42, %c0_43] : memref<1x32x16xf32, #tpu.memory_space<vmem>>, vector<1x32x16xf32>
      %69 = vector.shape_cast %68 : vector<1x32x16xf32> to vector<32x16xf32>
      %70 = vector.shape_cast %67 : vector<32x16xf32> to vector<1x32x16xf32>
      tpu.vector_store %arg8[%c0_41, %c0_42, %c0_43], %70 {strides = array<i32>} : memref<1x32x16xf32, #tpu.memory_space<vmem>>, vector<1x32x16xf32>,
    } else {
    }
    return
  }
  func.func @transform_0(%arg0: i32, %arg1: i32) -> (i32, i32, i32) {
    %c0_i32 = arith.constant 0 : i32
    %c0_i32_0 = arith.constant 0 : i32
    %c0_i32_1 = arith.constant 0 : i32
    return %arg0, %c0_i32, %c0_i32_0 : i32, i32, i32
  }
  func.func @transform_1(%arg0: i32, %arg1: i32) -> (i32, i32, i32) {
    %c0_i32 = arith.constant 0 : i32
    %c0_i32_0 = arith.constant 0 : i32
    %c0_i32_1 = arith.constant 0 : i32
    return %arg0, %c0_i32, %c0_i32_0 : i32, i32, i32
  }
  func.func @transform_2(%arg0: i32, %arg1: i32) -> (i32, i32, i32, i32) {
    %c0_i32 = arith.constant 0 : i32
    %c0_i32_0 = arith.constant 0 : i32
    %c0_i32_1 = arith.constant 0 : i32
    %c0_i32_2 = arith.constant 0 : i32
    return %arg0, %c0_i32, %c0_i32_0, %c0_i32_1 : i32, i32, i32, i32
  }
  func.func @transform_3(%arg0: i32, %arg1: i32) -> (i32, i32, i32) {
    %c0_i32 = arith.constant 0 : i32
    %c0_i32_0 = arith.constant 0 : i32
    %c0_i32_1 = arith.constant 0 : i32
    %c0_i32_2 = arith.constant 0 : i32
    return %c0_i32, %c0_i32_0, %c0_i32_1 : i32, i32, i32
  }
  func.func @transform_4(%arg0: i32, %arg1: i32) -> (i32, i32, i32) {
    %c0_i32 = arith.constant 0 : i32
    %c0_i32_0 = arith.constant 0 : i32
    %c0_i32_1 = arith.constant 0 : i32
    %c0_i32_2 = arith.constant 0 : i32
    return %c0_i32, %c0_i32_0, %c0_i32_1 : i32, i32, i32
  }
  func.func @transform_5(%arg0: i32, %arg1: i32) -> (i32, i32, i32) {
    %c0_i32 = arith.constant 0 : i32
    %c0_i32_0 = arith.constant 0 : i32
    %c0_i32_1 = arith.constant 0 : i32
    %c0_i32_2 = arith.constant 0 : i32
    return %c0_i32, %c0_i32_0, %c0_i32_1 : i32, i32, i32
  }
  func.func @transform_6(%arg0: i32, %arg1: i32) -> (i32, i32, i32) {
    %c0_i32 = arith.constant 0 : i32
    %c0_i32_0 = arith.constant 0 : i32
    %c0_i32_1 = arith.constant 0 : i32
    return %arg0, %c0_i32, %c0_i32_0 : i32, i32, i32
  }
}

module attributes {stable_mosaic.version = 11 : i64} {
  func.func @kernel(%arg0: i32, %arg1: i32, %arg2: memref<1x8x64xf32, #tpu.memory_space<vmem>>, %arg3: memref<1x1x8xf32, #tpu.memory_space<vmem>>, %arg4: memref<1x8x1xf32, #tpu.memory_space<vmem>>, %arg5: memref<32x64xbf16, #tpu.memory_space<vmem>>, %arg6: memref<32x1xf32, #tpu.memory_space<vmem>>, %arg7: memref<2x96x32xbf16, #tpu.memory_space<vmem>>, %arg8: memref<2x96x1xf32, #tpu.memory_space<vmem>>, %arg9: memref<2x32x32xbf16, #tpu.memory_space<vmem>>, %arg10: memref<2x32x1xf32, #tpu.memory_space<vmem>>, %arg11: memref<2x2x32x1xf32, #tpu.memory_space<vmem>>, %arg12: memref<2x64x96xbf16, #tpu.memory_space<vmem>>, %arg13: memref<2x64x1xf32, #tpu.memory_space<vmem>>, %arg14: memref<2x32x192xbf16, #tpu.memory_space<vmem>>, %arg15: memref<2x32x1xf32, #tpu.memory_space<vmem>>, %arg16: memref<2x2x32x1xf32, #tpu.memory_space<vmem>>, %arg17: memref<64x32xbf16, #tpu.memory_space<vmem>>, %arg18: memref<64x1xf32, #tpu.memory_space<vmem>>, %arg19: memref<1x64x8xf32, #tpu.memory_space<vmem>>, %arg20: memref<32x8xf32, #tpu.memory_space<vmem>>, %arg21: memref<96x8xf32, #tpu.memory_space<vmem>>, %arg22: memref<192x8xf32, #tpu.memory_space<vmem>>) attributes {dimension_semantics = [#tpu.dimension_semantics<parallel>, #tpu.dimension_semantics<arbitrary>], iteration_bounds = array<i64: 2, 2>, scalar_prefetch = 0 : i64, scratch_operands = 3 : i64, tpu.core_type = #tpu.core_type<tc>, window_params = [{transform_indices = @transform_0, window_bounds = array<i64: 1, 8, 64>}, {transform_indices = @transform_1, window_bounds = array<i64: 1, 1, 8>}, {transform_indices = @transform_2, window_bounds = array<i64: 1, 8, 1>}, {pipeline_mode = #tpu.pipeline_mode<synchronous>, transform_indices = @transform_3, window_bounds = array<i64: 32, 64>}, {pipeline_mode = #tpu.pipeline_mode<synchronous>, transform_indices = @transform_4, window_bounds = array<i64: 32, 1>}, {pipeline_mode = #tpu.pipeline_mode<synchronous>, transform_indices = @transform_5, window_bounds = array<i64: 2, 96, 32>}, {pipeline_mode = #tpu.pipeline_mode<synchronous>, transform_indices = @transform_6, window_bounds = array<i64: 2, 96, 1>}, {pipeline_mode = #tpu.pipeline_mode<synchronous>, transform_indices = @transform_7, window_bounds = array<i64: 2, 32, 32>}, {pipeline_mode = #tpu.pipeline_mode<synchronous>, transform_indices = @transform_8, window_bounds = array<i64: 2, 32, 1>}, {pipeline_mode = #tpu.pipeline_mode<synchronous>, transform_indices = @transform_9, window_bounds = array<i64: 2, 2, 32, 1>}, {pipeline_mode = #tpu.pipeline_mode<synchronous>, transform_indices = @transform_10, window_bounds = array<i64: 2, 64, 96>}, {pipeline_mode = #tpu.pipeline_mode<synchronous>, transform_indices = @transform_11, window_bounds = array<i64: 2, 64, 1>}, {pipeline_mode = #tpu.pipeline_mode<synchronous>, transform_indices = @transform_12, window_bounds = array<i64: 2, 32, 192>}, {pipeline_mode = #tpu.pipeline_mode<synchronous>, transform_indices = @transform_13, window_bounds = array<i64: 2, 32, 1>}, {pipeline_mode = #tpu.pipeline_mode<synchronous>, transform_indices = @transform_14, window_bounds = array<i64: 2, 2, 32, 1>}, {pipeline_mode = #tpu.pipeline_mode<synchronous>, transform_indices = @transform_15, window_bounds = array<i64: 64, 32>}, {pipeline_mode = #tpu.pipeline_mode<synchronous>, transform_indices = @transform_16, window_bounds = array<i64: 64, 1>}, {transform_indices = @transform_17, window_bounds = array<i64: 1, 64, 8>}]} {
    %c0 = arith.constant 0 : index
    %c0_0 = arith.constant 0 : index
    %c0_1 = arith.constant 0 : index
    %0 = vector.load %arg3[%c0, %c0_0, %c0_1] : memref<1x1x8xf32, #tpu.memory_space<vmem>>, vector<1x1x8xf32>
    %1 = vector.shape_cast %0 : vector<1x1x8xf32> to vector<1x8xf32>
    %c0_2 = arith.constant 0 : index
    %c0_3 = arith.constant 0 : index
    %c0_4 = arith.constant 0 : index
    %2 = vector.load %arg4[%c0_2, %c0_3, %c0_4] : memref<1x8x1xf32, #tpu.memory_space<vmem>>, vector<1x8x1xf32>
    %3 = vector.shape_cast %2 : vector<1x8x1xf32> to vector<8x1xf32>
    %c0_i32 = arith.constant 0 : i32
    %4 = arith.cmpi eq, %arg1, %c0_i32 : i32
    %5 = arith.extui %4 : i1 to i32
    %c0_i32_5 = arith.constant 0 : i32
    %6 = arith.cmpi ne, %5, %c0_i32_5 : i32
    scf.if %6 {
      %c0_91 = arith.constant 0 : index
      %c0_92 = arith.constant 0 : index
      %c0_93 = arith.constant 0 : index
      %192 = vector.load %arg2[%c0_91, %c0_92, %c0_93] : memref<1x8x64xf32, #tpu.memory_space<vmem>>, vector<1x8x64xf32>
      %193 = vector.shape_cast %192 : vector<1x8x64xf32> to vector<8x64xf32>
      %194 = arith.truncf %193 : vector<8x64xf32> to vector<8x64xbf16>
      %c0_94 = arith.constant 0 : index
      %c0_95 = arith.constant 0 : index
      %195 = vector.load %arg5[%c0_94, %c0_95] : memref<32x64xbf16, #tpu.memory_space<vmem>>, vector<32x64xbf16>
      "tpu.trace_start"() <{level = 10 : i32, message = "hd,td->ht"}> : () -> ()
      %cst_96 = arith.constant dense<0.000000e+00> : vector<32x8xf32>
      %196 = tpu.matmul %195, %194, %cst_96 {dimension_numbers = #tpu.dot_dimension_numbers<[1], [1], [0], [0], [0, 0, 1, 0], [], []>} : vector<32x64xbf16>, vector<8x64xbf16>, vector<32x8xf32> -> vector<32x8xf32>
      "tpu.trace_stop"() : () -> ()
      %c0_97 = arith.constant 0 : index
      %c0_98 = arith.constant 0 : index
      %197 = vector.load %arg6[%c0_97, %c0_98] : memref<32x1xf32, #tpu.memory_space<vmem>>, vector<32x1xf32>
      %198 = vector.broadcast %197 : vector<32x1xf32> to vector<32x8xf32>
      %199 = arith.addf %196, %198 : vector<32x8xf32>
      %cst_99 = arith.constant 5.65685415 : f32
      %200 = vector.broadcast %cst_99 : f32 to vector<32x8xf32>
      %201 = arith.mulf %199, %200 : vector<32x8xf32>
      %cst_100 = arith.constant 0.000000e+00 : f32
      %202 = vector.broadcast %cst_100 : f32 to vector<32x8xf32>
      %203 = arith.cmpf oge, %201, %202 : vector<32x8xf32>
      %cst_101 = arith.constant 1.000000e-01 : f32
      %204 = vector.broadcast %cst_101 : f32 to vector<32x8xf32>
      %205 = arith.mulf %204, %201 : vector<32x8xf32>
      %206 = arith.select %203, %201, %205 : vector<32x8xi1>, vector<32x8xf32>
      %207 = vector.broadcast %1 : vector<1x8xf32> to vector<32x8xf32>
      %208 = arith.mulf %206, %207 : vector<32x8xf32>
      %c0_102 = arith.constant 0 : index
      %c0_103 = arith.constant 0 : index
      %209 = vector.load %arg20[%c0_102, %c0_103] : memref<32x8xf32, #tpu.memory_space<vmem>>, vector<32x8xf32>
      tpu.vector_store %arg20[%c0_102, %c0_103], %208 {strides = array<i32>} : memref<32x8xf32, #tpu.memory_space<vmem>>, vector<32x8xf32>,
    } else {
    }
    %c0_6 = arith.constant 0 : index
    %c0_7 = arith.constant 0 : index
    %7 = vector.load %arg20[%c0_6, %c0_7] : memref<32x8xf32, #tpu.memory_space<vmem>>, vector<32x8xf32>
    %8 = arith.truncf %7 : vector<32x8xf32> to vector<32x8xbf16>
    %9 = arith.index_cast %arg1 : i32 to index
    %c0_8 = arith.constant 0 : index
    %c0_9 = arith.constant 0 : index
    %10 = vector.load %arg7[%9, %c0_8, %c0_9] : memref<2x96x32xbf16, #tpu.memory_space<vmem>>, vector<1x96x32xbf16>
    %11 = vector.shape_cast %10 : vector<1x96x32xbf16> to vector<96x32xbf16>
    %cst = arith.constant dense<0.000000e+00> : vector<96x8xf32>
    %12 = tpu.matmul %11, %8, %cst {dimension_numbers = #tpu.dot_dimension_numbers<[1], [0], [0], [1], [0, 0, 1, 1], [], []>} : vector<96x32xbf16>, vector<32x8xbf16>, vector<96x8xf32> -> vector<96x8xf32>
    %13 = arith.index_cast %arg1 : i32 to index
    %c0_10 = arith.constant 0 : index
    %c0_11 = arith.constant 0 : index
    %14 = vector.load %arg8[%13, %c0_10, %c0_11] : memref<2x96x1xf32, #tpu.memory_space<vmem>>, vector<1x96x1xf32>
    %15 = vector.shape_cast %14 : vector<1x96x1xf32> to vector<96x1xf32>
    %16 = vector.broadcast %15 : vector<96x1xf32> to vector<96x8xf32>
    %17 = arith.addf %12, %16 : vector<96x8xf32>
    %18 = vector.broadcast %3 : vector<8x1xf32> to vector<8x8xf32>
    %19 = vector.broadcast %1 : vector<1x8xf32> to vector<8x8xf32>
    %20 = arith.mulf %18, %19 : vector<8x8xf32>
    %cst_12 = arith.constant 0.000000e+00 : f32
    %21 = vector.broadcast %cst_12 : f32 to vector<8x8xf32>
    %22 = arith.cmpf ogt, %20, %21 : vector<8x8xf32>
    %23 = vector.extract_strided_slice %17 {offsets = [0, 0], sizes = [16, 8], strides = [1, 1]} : vector<96x8xf32> to vector<16x8xf32>
    %24 = vector.extract_strided_slice %17 {offsets = [32, 0], sizes = [16, 8], strides = [1, 1]} : vector<96x8xf32> to vector<16x8xf32>
    %25 = vector.extract_strided_slice %17 {offsets = [64, 0], sizes = [16, 8], strides = [1, 1]} : vector<96x8xf32> to vector<16x8xf32>
    %26 = arith.truncf %23 : vector<16x8xf32> to vector<16x8xbf16>
    %27 = arith.truncf %24 : vector<16x8xf32> to vector<16x8xbf16>
    "tpu.trace_start"() <{level = 10 : i32, message = "dt,ds->ts"}> : () -> ()
    %cst_13 = arith.constant dense<0.000000e+00> : vector<8x8xf32>
    %28 = tpu.matmul %26, %27, %cst_13 {dimension_numbers = #tpu.dot_dimension_numbers<[0], [0], [1], [1], [0, 1, 1, 1], [], []>} : vector<16x8xbf16>, vector<16x8xbf16>, vector<8x8xf32> -> vector<8x8xf32>
    "tpu.trace_stop"() : () -> ()
    %cst_14 = arith.constant 2.500000e-01 : f32
    %29 = vector.broadcast %cst_14 : f32 to vector<8x8xf32>
    %30 = arith.mulf %28, %29 : vector<8x8xf32>
    %cst_15 = arith.constant -1.000000e+04 : f32
    %31 = vector.broadcast %cst_15 : f32 to vector<8x8xf32>
    %32 = arith.select %22, %30, %31 : vector<8x8xi1>, vector<8x8xf32>
    %cst_16 = arith.constant dense<0xFF800000> : vector<8xf32>
    %33 = vector.multi_reduction <maximumf>, %32, %cst_16 [1] : vector<8x8xf32> to vector<8xf32>
    %cst_17 = arith.constant 0xFF800000 : f32
    %34 = vector.broadcast %cst_17 : f32 to vector<8xf32>
    %35 = arith.maximumf %34, %33 : vector<8xf32>
    %36 = vector.shape_cast %35 : vector<8xf32> to vector<8x1xf32>
    %37 = vector.broadcast %36 : vector<8x1xf32> to vector<8x8xf32>
    %38 = arith.subf %32, %37 : vector<8x8xf32>
    %39 = math.exp %38 : vector<8x8xf32>
    %cst_18 = arith.constant dense<0.000000e+00> : vector<8xf32>
    %40 = vector.multi_reduction <add>, %39, %cst_18 [1] : vector<8x8xf32> to vector<8xf32>
    %41 = vector.shape_cast %40 : vector<8xf32> to vector<8x1xf32>
    %42 = vector.broadcast %41 : vector<8x1xf32> to vector<8x8xf32>
    %43 = arith.divf %39, %42 : vector<8x8xf32>
    %44 = arith.truncf %25 : vector<16x8xf32> to vector<16x8xbf16>
    %45 = arith.truncf %43 : vector<8x8xf32> to vector<8x8xbf16>
    "tpu.trace_start"() <{level = 10 : i32, message = "ds,ts->dt"}> : () -> ()
    %cst_19 = arith.constant dense<0.000000e+00> : vector<16x8xf32>
    %46 = tpu.matmul %44, %45, %cst_19 {dimension_numbers = #tpu.dot_dimension_numbers<[1], [1], [0], [0], [0, 0, 1, 0], [], []>} : vector<16x8xbf16>, vector<8x8xbf16>, vector<16x8xf32> -> vector<16x8xf32>
    "tpu.trace_stop"() : () -> ()
    %47 = vector.extract_strided_slice %17 {offsets = [16, 0], sizes = [16, 8], strides = [1, 1]} : vector<96x8xf32> to vector<16x8xf32>
    %48 = vector.extract_strided_slice %17 {offsets = [48, 0], sizes = [16, 8], strides = [1, 1]} : vector<96x8xf32> to vector<16x8xf32>
    %49 = vector.extract_strided_slice %17 {offsets = [80, 0], sizes = [16, 8], strides = [1, 1]} : vector<96x8xf32> to vector<16x8xf32>
    %50 = arith.truncf %47 : vector<16x8xf32> to vector<16x8xbf16>
    %51 = arith.truncf %48 : vector<16x8xf32> to vector<16x8xbf16>
    "tpu.trace_start"() <{level = 10 : i32, message = "dt,ds->ts"}> : () -> ()
    %cst_20 = arith.constant dense<0.000000e+00> : vector<8x8xf32>
    %52 = tpu.matmul %50, %51, %cst_20 {dimension_numbers = #tpu.dot_dimension_numbers<[0], [0], [1], [1], [0, 1, 1, 1], [], []>} : vector<16x8xbf16>, vector<16x8xbf16>, vector<8x8xf32> -> vector<8x8xf32>
    "tpu.trace_stop"() : () -> ()
    %cst_21 = arith.constant 2.500000e-01 : f32
    %53 = vector.broadcast %cst_21 : f32 to vector<8x8xf32>
    %54 = arith.mulf %52, %53 : vector<8x8xf32>
    %cst_22 = arith.constant -1.000000e+04 : f32
    %55 = vector.broadcast %cst_22 : f32 to vector<8x8xf32>
    %56 = arith.select %22, %54, %55 : vector<8x8xi1>, vector<8x8xf32>
    %cst_23 = arith.constant dense<0xFF800000> : vector<8xf32>
    %57 = vector.multi_reduction <maximumf>, %56, %cst_23 [1] : vector<8x8xf32> to vector<8xf32>
    %cst_24 = arith.constant 0xFF800000 : f32
    %58 = vector.broadcast %cst_24 : f32 to vector<8xf32>
    %59 = arith.maximumf %58, %57 : vector<8xf32>
    %60 = vector.shape_cast %59 : vector<8xf32> to vector<8x1xf32>
    %61 = vector.broadcast %60 : vector<8x1xf32> to vector<8x8xf32>
    %62 = arith.subf %56, %61 : vector<8x8xf32>
    %63 = math.exp %62 : vector<8x8xf32>
    %cst_25 = arith.constant dense<0.000000e+00> : vector<8xf32>
    %64 = vector.multi_reduction <add>, %63, %cst_25 [1] : vector<8x8xf32> to vector<8xf32>
    %65 = vector.shape_cast %64 : vector<8xf32> to vector<8x1xf32>
    %66 = vector.broadcast %65 : vector<8x1xf32> to vector<8x8xf32>
    %67 = arith.divf %63, %66 : vector<8x8xf32>
    %68 = arith.truncf %49 : vector<16x8xf32> to vector<16x8xbf16>
    %69 = arith.truncf %67 : vector<8x8xf32> to vector<8x8xbf16>
    "tpu.trace_start"() <{level = 10 : i32, message = "ds,ts->dt"}> : () -> ()
    %cst_26 = arith.constant dense<0.000000e+00> : vector<16x8xf32>
    %70 = tpu.matmul %68, %69, %cst_26 {dimension_numbers = #tpu.dot_dimension_numbers<[1], [1], [0], [0], [0, 0, 1, 0], [], []>} : vector<16x8xbf16>, vector<8x8xbf16>, vector<16x8xf32> -> vector<16x8xf32>
    "tpu.trace_stop"() : () -> ()
    %71 = tpu.concatenate %46, %70 in 0 : vector<16x8xf32>, vector<16x8xf32> -> vector<32x8xf32>
    %72 = arith.index_cast %arg1 : i32 to index
    %c0_27 = arith.constant 0 : index
    %c0_28 = arith.constant 0 : index
    %73 = vector.load %arg9[%72, %c0_27, %c0_28] : memref<2x32x32xbf16, #tpu.memory_space<vmem>>, vector<1x32x32xbf16>
    %74 = vector.shape_cast %73 : vector<1x32x32xbf16> to vector<32x32xbf16>
    %75 = arith.truncf %71 : vector<32x8xf32> to vector<32x8xbf16>
    %cst_29 = arith.constant dense<0.000000e+00> : vector<32x8xf32>
    %76 = tpu.matmul %74, %75, %cst_29 {dimension_numbers = #tpu.dot_dimension_numbers<[1], [0], [0], [1], [0, 0, 1, 1], [], []>} : vector<32x32xbf16>, vector<32x8xbf16>, vector<32x8xf32> -> vector<32x8xf32>
    %77 = arith.index_cast %arg1 : i32 to index
    %c0_30 = arith.constant 0 : index
    %c0_31 = arith.constant 0 : index
    %78 = vector.load %arg10[%77, %c0_30, %c0_31] : memref<2x32x1xf32, #tpu.memory_space<vmem>>, vector<1x32x1xf32>
    %79 = vector.shape_cast %78 : vector<1x32x1xf32> to vector<32x1xf32>
    %80 = vector.broadcast %79 : vector<32x1xf32> to vector<32x8xf32>
    %81 = arith.addf %76, %80 : vector<32x8xf32>
    %82 = arith.addf %7, %81 : vector<32x8xf32>
    %83 = arith.index_cast %arg1 : i32 to index
    %c0_32 = arith.constant 0 : index
    %c0_33 = arith.constant 0 : index
    %c0_34 = arith.constant 0 : index
    %84 = vector.load %arg11[%83, %c0_32, %c0_33, %c0_34] : memref<2x2x32x1xf32, #tpu.memory_space<vmem>>, vector<1x1x32x1xf32>
    %85 = vector.shape_cast %84 : vector<1x1x32x1xf32> to vector<32x1xf32>
    %86 = arith.index_cast %arg1 : i32 to index
    %c1 = arith.constant 1 : index
    %c0_35 = arith.constant 0 : index
    %c0_36 = arith.constant 0 : index
    %87 = vector.load %arg11[%86, %c1, %c0_35, %c0_36] : memref<2x2x32x1xf32, #tpu.memory_space<vmem>>, vector<1x1x32x1xf32>
    %88 = vector.shape_cast %87 : vector<1x1x32x1xf32> to vector<32x1xf32>
    %cst_37 = arith.constant dense<0.000000e+00> : vector<8xf32>
    %89 = vector.multi_reduction <add>, %82, %cst_37 [0] : vector<32x8xf32> to vector<8xf32>
    %90 = vector.shape_cast %89 : vector<8xf32> to vector<1x8xf32>
    %cst_38 = arith.constant 3.200000e+01 : f32
    %91 = vector.broadcast %cst_38 : f32 to vector<1x8xf32>
    %92 = arith.divf %90, %91 : vector<1x8xf32>
    %93 = vector.broadcast %92 : vector<1x8xf32> to vector<32x8xf32>
    %94 = arith.subf %82, %93 : vector<32x8xf32>
    %95 = arith.mulf %94, %94 : vector<32x8xf32>
    %cst_39 = arith.constant dense<0.000000e+00> : vector<8xf32>
    %96 = vector.multi_reduction <add>, %95, %cst_39 [0] : vector<32x8xf32> to vector<8xf32>
    %97 = vector.shape_cast %96 : vector<8xf32> to vector<1x8xf32>
    %cst_40 = arith.constant 3.200000e+01 : f32
    %98 = vector.broadcast %cst_40 : f32 to vector<1x8xf32>
    %99 = arith.divf %97, %98 : vector<1x8xf32>
    %100 = vector.broadcast %92 : vector<1x8xf32> to vector<32x8xf32>
    %101 = arith.subf %82, %100 : vector<32x8xf32>
    %cst_41 = arith.constant 9.99999974E-6 : f32
    %102 = vector.broadcast %cst_41 : f32 to vector<1x8xf32>
    %103 = arith.addf %99, %102 : vector<1x8xf32>
    %104 = math.rsqrt %103 : vector<1x8xf32>
    %105 = vector.broadcast %104 : vector<1x8xf32> to vector<32x8xf32>
    %106 = arith.mulf %101, %105 : vector<32x8xf32>
    %107 = vector.broadcast %85 : vector<32x1xf32> to vector<32x8xf32>
    %108 = arith.mulf %106, %107 : vector<32x8xf32>
    %109 = vector.broadcast %88 : vector<32x1xf32> to vector<32x8xf32>
    %110 = arith.addf %108, %109 : vector<32x8xf32>
    %111 = vector.broadcast %1 : vector<1x8xf32> to vector<32x8xf32>
    %112 = arith.mulf %110, %111 : vector<32x8xf32>
    %cst_42 = arith.constant 0.000000e+00 : f32
    %113 = vector.broadcast %cst_42 : f32 to vector<32x1xf32>
    %c0_43 = arith.constant 0 : index
    %c0_44 = arith.constant 0 : index
    %114 = vector.load %arg21[%c0_43, %c0_44] : memref<96x8xf32, #tpu.memory_space<vmem>>, vector<32x1xf32>
    tpu.vector_store %arg21[%c0_43, %c0_44], %113 {strides = array<i32>} : memref<96x8xf32, #tpu.memory_space<vmem>>, vector<32x1xf32>,
    %115 = vector.extract_strided_slice %112 {offsets = [0, 0], sizes = [32, 7], strides = [1, 1]} : vector<32x8xf32> to vector<32x7xf32>
    %c0_45 = arith.constant 0 : index
    %c1_46 = arith.constant 1 : index
    %116 = vector.load %arg21[%c0_45, %c1_46] : memref<96x8xf32, #tpu.memory_space<vmem>>, vector<32x7xf32>
    tpu.vector_store %arg21[%c0_45, %c1_46], %115 {strides = array<i32>} : memref<96x8xf32, #tpu.memory_space<vmem>>, vector<32x7xf32>,
    %c32 = arith.constant 32 : index
    %c0_47 = arith.constant 0 : index
    %117 = vector.load %arg21[%c32, %c0_47] : memref<96x8xf32, #tpu.memory_space<vmem>>, vector<32x8xf32>
    tpu.vector_store %arg21[%c32, %c0_47], %112 {strides = array<i32>} : memref<96x8xf32, #tpu.memory_space<vmem>>, vector<32x8xf32>,
    %cst_48 = arith.constant 0.000000e+00 : f32
    %118 = vector.broadcast %cst_48 : f32 to vector<32x1xf32>
    %c64 = arith.constant 64 : index
    %c7 = arith.constant 7 : index
    %119 = vector.load %arg21[%c64, %c7] : memref<96x8xf32, #tpu.memory_space<vmem>>, vector<32x1xf32>
    tpu.vector_store %arg21[%c64, %c7], %118 {strides = array<i32>} : memref<96x8xf32, #tpu.memory_space<vmem>>, vector<32x1xf32>,
    %120 = vector.extract_strided_slice %112 {offsets = [0, 1], sizes = [32, 7], strides = [1, 1]} : vector<32x8xf32> to vector<32x7xf32>
    %c64_49 = arith.constant 64 : index
    %c0_50 = arith.constant 0 : index
    %121 = vector.load %arg21[%c64_49, %c0_50] : memref<96x8xf32, #tpu.memory_space<vmem>>, vector<32x7xf32>
    tpu.vector_store %arg21[%c64_49, %c0_50], %120 {strides = array<i32>} : memref<96x8xf32, #tpu.memory_space<vmem>>, vector<32x7xf32>,
    %122 = arith.index_cast %arg1 : i32 to index
    %c0_51 = arith.constant 0 : index
    %c0_52 = arith.constant 0 : index
    %123 = vector.load %arg12[%122, %c0_51, %c0_52] : memref<2x64x96xbf16, #tpu.memory_space<vmem>>, vector<1x64x96xbf16>
    %124 = vector.shape_cast %123 : vector<1x64x96xbf16> to vector<64x96xbf16>
    %c0_53 = arith.constant 0 : index
    %c0_54 = arith.constant 0 : index
    %125 = vector.load %arg21[%c0_53, %c0_54] : memref<96x8xf32, #tpu.memory_space<vmem>>, vector<96x8xf32>
    %126 = arith.truncf %125 : vector<96x8xf32> to vector<96x8xbf16>
    %cst_55 = arith.constant dense<0.000000e+00> : vector<64x8xf32>
    %127 = tpu.matmul %124, %126, %cst_55 {dimension_numbers = #tpu.dot_dimension_numbers<[1], [0], [0], [1], [0, 0, 1, 1], [], []>} : vector<64x96xbf16>, vector<96x8xbf16>, vector<64x8xf32> -> vector<64x8xf32>
    %128 = arith.index_cast %arg1 : i32 to index
    %c0_56 = arith.constant 0 : index
    %c0_57 = arith.constant 0 : index
    %129 = vector.load %arg13[%128, %c0_56, %c0_57] : memref<2x64x1xf32, #tpu.memory_space<vmem>>, vector<1x64x1xf32>
    %130 = vector.shape_cast %129 : vector<1x64x1xf32> to vector<64x1xf32>
    %131 = vector.broadcast %130 : vector<64x1xf32> to vector<64x8xf32>
    %132 = arith.addf %127, %131 : vector<64x8xf32>
    %cst_58 = arith.constant 0.000000e+00 : f32
    %133 = vector.broadcast %cst_58 : f32 to vector<64x8xf32>
    %134 = arith.maximumf %132, %133 : vector<64x8xf32>
    %135 = vector.broadcast %1 : vector<1x8xf32> to vector<64x8xf32>
    %136 = arith.mulf %134, %135 : vector<64x8xf32>
    %cst_59 = arith.constant 0.000000e+00 : f32
    %137 = vector.broadcast %cst_59 : f32 to vector<64x1xf32>
    %c0_60 = arith.constant 0 : index
    %c0_61 = arith.constant 0 : index
    %138 = vector.load %arg22[%c0_60, %c0_61] : memref<192x8xf32, #tpu.memory_space<vmem>>, vector<64x1xf32>
    tpu.vector_store %arg22[%c0_60, %c0_61], %137 {strides = array<i32>} : memref<192x8xf32, #tpu.memory_space<vmem>>, vector<64x1xf32>,
    %139 = vector.extract_strided_slice %136 {offsets = [0, 0], sizes = [64, 7], strides = [1, 1]} : vector<64x8xf32> to vector<64x7xf32>
    %c0_62 = arith.constant 0 : index
    %c1_63 = arith.constant 1 : index
    %140 = vector.load %arg22[%c0_62, %c1_63] : memref<192x8xf32, #tpu.memory_space<vmem>>, vector<64x7xf32>
    tpu.vector_store %arg22[%c0_62, %c1_63], %139 {strides = array<i32>} : memref<192x8xf32, #tpu.memory_space<vmem>>, vector<64x7xf32>,
    %c64_64 = arith.constant 64 : index
    %c0_65 = arith.constant 0 : index
    %141 = vector.load %arg22[%c64_64, %c0_65] : memref<192x8xf32, #tpu.memory_space<vmem>>, vector<64x8xf32>
    tpu.vector_store %arg22[%c64_64, %c0_65], %136 {strides = array<i32>} : memref<192x8xf32, #tpu.memory_space<vmem>>, vector<64x8xf32>,
    %cst_66 = arith.constant 0.000000e+00 : f32
    %142 = vector.broadcast %cst_66 : f32 to vector<64x1xf32>
    %c128 = arith.constant 128 : index
    %c7_67 = arith.constant 7 : index
    %143 = vector.load %arg22[%c128, %c7_67] : memref<192x8xf32, #tpu.memory_space<vmem>>, vector<64x1xf32>
    tpu.vector_store %arg22[%c128, %c7_67], %142 {strides = array<i32>} : memref<192x8xf32, #tpu.memory_space<vmem>>, vector<64x1xf32>,
    %144 = vector.extract_strided_slice %136 {offsets = [0, 1], sizes = [64, 7], strides = [1, 1]} : vector<64x8xf32> to vector<64x7xf32>
    %c128_68 = arith.constant 128 : index
    %c0_69 = arith.constant 0 : index
    %145 = vector.load %arg22[%c128_68, %c0_69] : memref<192x8xf32, #tpu.memory_space<vmem>>, vector<64x7xf32>
    tpu.vector_store %arg22[%c128_68, %c0_69], %144 {strides = array<i32>} : memref<192x8xf32, #tpu.memory_space<vmem>>, vector<64x7xf32>,
    %146 = arith.index_cast %arg1 : i32 to index
    %c0_70 = arith.constant 0 : index
    %c0_71 = arith.constant 0 : index
    %147 = vector.load %arg14[%146, %c0_70, %c0_71] : memref<2x32x192xbf16, #tpu.memory_space<vmem>>, vector<1x32x192xbf16>
    %148 = vector.shape_cast %147 : vector<1x32x192xbf16> to vector<32x192xbf16>
    %c0_72 = arith.constant 0 : index
    %c0_73 = arith.constant 0 : index
    %149 = vector.load %arg22[%c0_72, %c0_73] : memref<192x8xf32, #tpu.memory_space<vmem>>, vector<192x8xf32>
    %150 = arith.truncf %149 : vector<192x8xf32> to vector<192x8xbf16>
    %cst_74 = arith.constant dense<0.000000e+00> : vector<32x8xf32>
    %151 = tpu.matmul %148, %150, %cst_74 {dimension_numbers = #tpu.dot_dimension_numbers<[1], [0], [0], [1], [0, 0, 1, 1], [], []>} : vector<32x192xbf16>, vector<192x8xbf16>, vector<32x8xf32> -> vector<32x8xf32>
    %152 = arith.index_cast %arg1 : i32 to index
    %c0_75 = arith.constant 0 : index
    %c0_76 = arith.constant 0 : index
    %153 = vector.load %arg15[%152, %c0_75, %c0_76] : memref<2x32x1xf32, #tpu.memory_space<vmem>>, vector<1x32x1xf32>
    %154 = vector.shape_cast %153 : vector<1x32x1xf32> to vector<32x1xf32>
    %155 = vector.broadcast %154 : vector<32x1xf32> to vector<32x8xf32>
    %156 = arith.addf %151, %155 : vector<32x8xf32>
    %157 = vector.broadcast %1 : vector<1x8xf32> to vector<32x8xf32>
    %158 = arith.mulf %156, %157 : vector<32x8xf32>
    %159 = arith.addf %110, %158 : vector<32x8xf32>
    %160 = arith.index_cast %arg1 : i32 to index
    %c0_77 = arith.constant 0 : index
    %c0_78 = arith.constant 0 : index
    %c0_79 = arith.constant 0 : index
    %161 = vector.load %arg16[%160, %c0_77, %c0_78, %c0_79] : memref<2x2x32x1xf32, #tpu.memory_space<vmem>>, vector<1x1x32x1xf32>
    %162 = vector.shape_cast %161 : vector<1x1x32x1xf32> to vector<32x1xf32>
    %163 = arith.index_cast %arg1 : i32 to index
    %c1_80 = arith.constant 1 : index
    %c0_81 = arith.constant 0 : index
    %c0_82 = arith.constant 0 : index
    %164 = vector.load %arg16[%163, %c1_80, %c0_81, %c0_82] : memref<2x2x32x1xf32, #tpu.memory_space<vmem>>, vector<1x1x32x1xf32>
    %165 = vector.shape_cast %164 : vector<1x1x32x1xf32> to vector<32x1xf32>
    %cst_83 = arith.constant dense<0.000000e+00> : vector<8xf32>
    %166 = vector.multi_reduction <add>, %159, %cst_83 [0] : vector<32x8xf32> to vector<8xf32>
    %167 = vector.shape_cast %166 : vector<8xf32> to vector<1x8xf32>
    %cst_84 = arith.constant 3.200000e+01 : f32
    %168 = vector.broadcast %cst_84 : f32 to vector<1x8xf32>
    %169 = arith.divf %167, %168 : vector<1x8xf32>
    %170 = vector.broadcast %169 : vector<1x8xf32> to vector<32x8xf32>
    %171 = arith.subf %159, %170 : vector<32x8xf32>
    %172 = arith.mulf %171, %171 : vector<32x8xf32>
    %cst_85 = arith.constant dense<0.000000e+00> : vector<8xf32>
    %173 = vector.multi_reduction <add>, %172, %cst_85 [0] : vector<32x8xf32> to vector<8xf32>
    %174 = vector.shape_cast %173 : vector<8xf32> to vector<1x8xf32>
    %cst_86 = arith.constant 3.200000e+01 : f32
    %175 = vector.broadcast %cst_86 : f32 to vector<1x8xf32>
    %176 = arith.divf %174, %175 : vector<1x8xf32>
    %177 = vector.broadcast %169 : vector<1x8xf32> to vector<32x8xf32>
    %178 = arith.subf %159, %177 : vector<32x8xf32>
    %cst_87 = arith.constant 9.99999974E-6 : f32
    %179 = vector.broadcast %cst_87 : f32 to vector<1x8xf32>
    %180 = arith.addf %176, %179 : vector<1x8xf32>
    %181 = math.rsqrt %180 : vector<1x8xf32>
    %182 = vector.broadcast %181 : vector<1x8xf32> to vector<32x8xf32>
    %183 = arith.mulf %178, %182 : vector<32x8xf32>
    %184 = vector.broadcast %162 : vector<32x1xf32> to vector<32x8xf32>
    %185 = arith.mulf %183, %184 : vector<32x8xf32>
    %186 = vector.broadcast %165 : vector<32x1xf32> to vector<32x8xf32>
    %187 = arith.addf %185, %186 : vector<32x8xf32>
    %c0_88 = arith.constant 0 : index
    %c0_89 = arith.constant 0 : index
    %188 = vector.load %arg20[%c0_88, %c0_89] : memref<32x8xf32, #tpu.memory_space<vmem>>, vector<32x8xf32>
    tpu.vector_store %arg20[%c0_88, %c0_89], %187 {strides = array<i32>} : memref<32x8xf32, #tpu.memory_space<vmem>>, vector<32x8xf32>,
    %c1_i32 = arith.constant 1 : i32
    %189 = arith.cmpi eq, %arg1, %c1_i32 : i32
    %190 = arith.extui %189 : i1 to i32
    %c0_i32_90 = arith.constant 0 : i32
    %191 = arith.cmpi ne, %190, %c0_i32_90 : i32
    scf.if %191 {
      %192 = vector.broadcast %1 : vector<1x8xf32> to vector<32x8xf32>
      %193 = arith.mulf %187, %192 : vector<32x8xf32>
      %194 = arith.truncf %193 : vector<32x8xf32> to vector<32x8xbf16>
      %c0_91 = arith.constant 0 : index
      %c0_92 = arith.constant 0 : index
      %195 = vector.load %arg17[%c0_91, %c0_92] : memref<64x32xbf16, #tpu.memory_space<vmem>>, vector<64x32xbf16>
      %cst_93 = arith.constant dense<0.000000e+00> : vector<64x8xf32>
      %196 = tpu.matmul %195, %194, %cst_93 {dimension_numbers = #tpu.dot_dimension_numbers<[1], [0], [0], [1], [0, 0, 1, 1], [], []>} : vector<64x32xbf16>, vector<32x8xbf16>, vector<64x8xf32> -> vector<64x8xf32>
      %c0_94 = arith.constant 0 : index
      %c0_95 = arith.constant 0 : index
      %197 = vector.load %arg18[%c0_94, %c0_95] : memref<64x1xf32, #tpu.memory_space<vmem>>, vector<64x1xf32>
      %198 = vector.broadcast %197 : vector<64x1xf32> to vector<64x8xf32>
      %199 = arith.addf %196, %198 : vector<64x8xf32>
      %200 = vector.broadcast %1 : vector<1x8xf32> to vector<64x8xf32>
      %201 = arith.mulf %199, %200 : vector<64x8xf32>
      %c0_96 = arith.constant 0 : index
      %c0_97 = arith.constant 0 : index
      %c0_98 = arith.constant 0 : index
      %202 = vector.load %arg19[%c0_96, %c0_97, %c0_98] : memref<1x64x8xf32, #tpu.memory_space<vmem>>, vector<1x64x8xf32>
      %203 = vector.shape_cast %202 : vector<1x64x8xf32> to vector<64x8xf32>
      %204 = vector.shape_cast %201 : vector<64x8xf32> to vector<1x64x8xf32>
      tpu.vector_store %arg19[%c0_96, %c0_97, %c0_98], %204 {strides = array<i32>} : memref<1x64x8xf32, #tpu.memory_space<vmem>>, vector<1x64x8xf32>,
    } else {
    }
    return
  }
  func.func @transform_0(%arg0: i32, %arg1: i32) -> (i32, i32, i32) {
    %c0_i32 = arith.constant 0 : i32
    %c0_i32_0 = arith.constant 0 : i32
    %c0_i32_1 = arith.constant 0 : i32
    return %arg0, %c0_i32, %c0_i32_0 : i32, i32, i32
  }
  func.func @transform_1(%arg0: i32, %arg1: i32) -> (i32, i32, i32) {
    %c0_i32 = arith.constant 0 : i32
    %c0_i32_0 = arith.constant 0 : i32
    %c0_i32_1 = arith.constant 0 : i32
    return %arg0, %c0_i32, %c0_i32_0 : i32, i32, i32
  }
  func.func @transform_2(%arg0: i32, %arg1: i32) -> (i32, i32, i32) {
    %c0_i32 = arith.constant 0 : i32
    %c0_i32_0 = arith.constant 0 : i32
    %c0_i32_1 = arith.constant 0 : i32
    return %arg0, %c0_i32, %c0_i32_0 : i32, i32, i32
  }
  func.func @transform_3(%arg0: i32, %arg1: i32) -> (i32, i32) {
    %c0_i32 = arith.constant 0 : i32
    %c0_i32_0 = arith.constant 0 : i32
    %c0_i32_1 = arith.constant 0 : i32
    return %c0_i32, %c0_i32_0 : i32, i32
  }
  func.func @transform_4(%arg0: i32, %arg1: i32) -> (i32, i32) {
    %c0_i32 = arith.constant 0 : i32
    %c0_i32_0 = arith.constant 0 : i32
    %c0_i32_1 = arith.constant 0 : i32
    return %c0_i32, %c0_i32_0 : i32, i32
  }
  func.func @transform_5(%arg0: i32, %arg1: i32) -> (i32, i32, i32) {
    %c0_i32 = arith.constant 0 : i32
    %c0_i32_0 = arith.constant 0 : i32
    %c0_i32_1 = arith.constant 0 : i32
    %c0_i32_2 = arith.constant 0 : i32
    return %c0_i32, %c0_i32_0, %c0_i32_1 : i32, i32, i32
  }
  func.func @transform_6(%arg0: i32, %arg1: i32) -> (i32, i32, i32) {
    %c0_i32 = arith.constant 0 : i32
    %c0_i32_0 = arith.constant 0 : i32
    %c0_i32_1 = arith.constant 0 : i32
    %c0_i32_2 = arith.constant 0 : i32
    return %c0_i32, %c0_i32_0, %c0_i32_1 : i32, i32, i32
  }
  func.func @transform_7(%arg0: i32, %arg1: i32) -> (i32, i32, i32) {
    %c0_i32 = arith.constant 0 : i32
    %c0_i32_0 = arith.constant 0 : i32
    %c0_i32_1 = arith.constant 0 : i32
    %c0_i32_2 = arith.constant 0 : i32
    return %c0_i32, %c0_i32_0, %c0_i32_1 : i32, i32, i32
  }
  func.func @transform_8(%arg0: i32, %arg1: i32) -> (i32, i32, i32) {
    %c0_i32 = arith.constant 0 : i32
    %c0_i32_0 = arith.constant 0 : i32
    %c0_i32_1 = arith.constant 0 : i32
    %c0_i32_2 = arith.constant 0 : i32
    return %c0_i32, %c0_i32_0, %c0_i32_1 : i32, i32, i32
  }
  func.func @transform_9(%arg0: i32, %arg1: i32) -> (i32, i32, i32, i32) {
    %c0_i32 = arith.constant 0 : i32
    %c0_i32_0 = arith.constant 0 : i32
    %c0_i32_1 = arith.constant 0 : i32
    %c0_i32_2 = arith.constant 0 : i32
    %c0_i32_3 = arith.constant 0 : i32
    return %c0_i32, %c0_i32_0, %c0_i32_1, %c0_i32_2 : i32, i32, i32, i32
  }
  func.func @transform_10(%arg0: i32, %arg1: i32) -> (i32, i32, i32) {
    %c0_i32 = arith.constant 0 : i32
    %c0_i32_0 = arith.constant 0 : i32
    %c0_i32_1 = arith.constant 0 : i32
    %c0_i32_2 = arith.constant 0 : i32
    return %c0_i32, %c0_i32_0, %c0_i32_1 : i32, i32, i32
  }
  func.func @transform_11(%arg0: i32, %arg1: i32) -> (i32, i32, i32) {
    %c0_i32 = arith.constant 0 : i32
    %c0_i32_0 = arith.constant 0 : i32
    %c0_i32_1 = arith.constant 0 : i32
    %c0_i32_2 = arith.constant 0 : i32
    return %c0_i32, %c0_i32_0, %c0_i32_1 : i32, i32, i32
  }
  func.func @transform_12(%arg0: i32, %arg1: i32) -> (i32, i32, i32) {
    %c0_i32 = arith.constant 0 : i32
    %c0_i32_0 = arith.constant 0 : i32
    %c0_i32_1 = arith.constant 0 : i32
    %c0_i32_2 = arith.constant 0 : i32
    return %c0_i32, %c0_i32_0, %c0_i32_1 : i32, i32, i32
  }
  func.func @transform_13(%arg0: i32, %arg1: i32) -> (i32, i32, i32) {
    %c0_i32 = arith.constant 0 : i32
    %c0_i32_0 = arith.constant 0 : i32
    %c0_i32_1 = arith.constant 0 : i32
    %c0_i32_2 = arith.constant 0 : i32
    return %c0_i32, %c0_i32_0, %c0_i32_1 : i32, i32, i32
  }
  func.func @transform_14(%arg0: i32, %arg1: i32) -> (i32, i32, i32, i32) {
    %c0_i32 = arith.constant 0 : i32
    %c0_i32_0 = arith.constant 0 : i32
    %c0_i32_1 = arith.constant 0 : i32
    %c0_i32_2 = arith.constant 0 : i32
    %c0_i32_3 = arith.constant 0 : i32
    return %c0_i32, %c0_i32_0, %c0_i32_1, %c0_i32_2 : i32, i32, i32, i32
  }
  func.func @transform_15(%arg0: i32, %arg1: i32) -> (i32, i32) {
    %c0_i32 = arith.constant 0 : i32
    %c0_i32_0 = arith.constant 0 : i32
    %c0_i32_1 = arith.constant 0 : i32
    return %c0_i32, %c0_i32_0 : i32, i32
  }
  func.func @transform_16(%arg0: i32, %arg1: i32) -> (i32, i32) {
    %c0_i32 = arith.constant 0 : i32
    %c0_i32_0 = arith.constant 0 : i32
    %c0_i32_1 = arith.constant 0 : i32
    return %c0_i32, %c0_i32_0 : i32, i32
  }
  func.func @transform_17(%arg0: i32, %arg1: i32) -> (i32, i32, i32) {
    %c0_i32 = arith.constant 0 : i32
    %c0_i32_0 = arith.constant 0 : i32
    %c0_i32_1 = arith.constant 0 : i32
    return %arg0, %c0_i32, %c0_i32_0 : i32, i32, i32
  }
}

</mosaic_0001>

<bundles_post_ra>
// kernel: synthesizer_forward.32
= control target key start
LH: loop header
LB: loop body
LE: loop exit
PB: predicated region body
PF: predicated region fallthrough
CT: control target
= control target key end

     0   :  { %s441_s15 = smov 0   ;;  %s489_s0 = inlined_call_operand.vmem [shape: f32[2,64,16], index: 0, kind: input, shape index: {}]   ;;  %s490_s1 = inlined_call_operand.vmem [shape: bf16[32,64], index: 1, kind: input, shape index: {}]   ;;  %s491_s2 = inlined_call_operand.vmem [shape: f32[32,1], index: 2, kind: input, shape index: {}]   ;;  %s492_s3 = inlined_call_operand.vmem [shape: f32[2,1,16], index: 3, kind: input, shape index: {}]   ;;  %s493_s4 = inlined_call_operand.vmem [shape: f32[2,32,16], index: 4, kind: output, shape index: {}]  }
   0x1 LB: > { %s366_s16 = sadd.s32 4294967295, %s413_s15   ;;  %p370_p0 = scmp.ge.s32.totalorder %s413_s15, 1  ;;  %s413_s15 = sphi %s441_s15, %s14_s15  }
   0x2   : > { %p170_p1 = scmp.lt.s32.totalorder %s413_s15, 3 }
   0x4   : > { %p171_p2 = pnand %p370_p0, %p170_p1 }
   0x5   : > { %p199_p3 = scmp.lt.s32.totalorder (!%p171_p2), %s366_s16, 1 }
   0x6   : > { %174 = sbr.rel (%p171_p2) target bundleno = 173 (0xad), region = 36 }
   0xb   : > { %v231_v0 = vld [vmem:[%s491_s2 + $0x10] sm:$0xff]  ;;  %v415_v1 = vmov 0   ;;  %v229_v2 = vld [vmem:[%s491_s2] sm:$0xff]  ;;  %s495_s16 = smov (!%p199_p3, %s366_s16), 1  ;;  %v232_v8 = vld [vmem:[%s491_s2 + $0x18] sm:$0xff]  ;;  %vm263_vm0 = vcmask 523264  }
   0xc   : > { %405 = vset.pattern.permute.xlu1 %v415_v1  ;;  %404 = vset.pattern.permute.xlu0 %v415_v1  ;;  %s387_s21 = sshll.u32 %s495_s16, 6  ;;  %s206_s24 = scalar_lea.vmem %s492_s3, %s495_s16  ;;  %v230_v9 = vld [vmem:[%s491_s2 + $0x8] sm:$0xff]  ;;  %v389_v17 = vld [vmem:[%s490_s1] sm:$0xff]  ;;  %vm297_vm1 = vcmask 130048  }
   0xd   : > { %245 = vperm.xlu1 %405, %v231_v0   ;;  %235 = vperm.xlu0 %404, %v229_v2   ;;  %s203_s27 = scalar_lea.vmem %s489_s0, %s387_s21  ;;  %v390_v18 = vld [vmem:[%s490_s1 + $0x8] sm:$0xff]  ;;  %s388_s10 = sshll.u32 %s495_s16, 5  ;;  %v406_v21 = vld [vmem:[%s206_s24] ss:$0 sm:$0xff] }
   0xe   : > { %v219_v3 = vld [vmem:[%s203_s27 + $0x30] sm:$0xff]  ;;  %v220_v4 = vld [vmem:[%s203_s27 + $0x38] sm:$0xff]  ;;  %v217_v5 = vld [vmem:[%s203_s27 + $0x20] sm:$0xff]  ;;  %s211_s17 = scalar_lea.vmem %s493_s4, %s388_s10 }
   0xf   : > { %v224_v6 = vpack.c.bf16 %v220_v4, %v219_v3  ;;  %v218_v7 = vld [vmem:[%s203_s27 + $0x28] sm:$0xff]  ;;  %v215_v11 = vld [vmem:[%s203_s27 + $0x10] sm:$0xff]  ;;  %v216_v12 = vld [vmem:[%s203_s27 + $0x18] sm:$0xff] }
  0x10   : > { %v223_v10 = vpack.c.bf16 %v218_v7, %v217_v5  ;;  %v222_v13 = vpack.c.bf16 %v216_v12, %v215_v11  ;;  %v213_v14 = vld [vmem:[%s203_s27] sm:$0xff]  ;;  %v214_v15 = vld [vmem:[%s203_s27 + $0x8] sm:$0xff] }
  0x11   : > { %274 = vmatpush.bf16.msra.mxu0 %v224_v6  ;;  %391 = vmatpush.bf16.msra.mxu1 %v224_v6  ;;  %v221_v16 = vpack.c.bf16 %v214_v15, %v213_v14 }
  0x15   : > { %250 = vperm.xlu1 %405, %v232_v8   ;;  %240 = vperm.xlu0 %404, %v230_v9  }
  0x16   : > { %275 = vmatpush.bf16.msra.mxu0 %v223_v10  ;;  %392 = vmatpush.bf16.msra.mxu1 %v223_v10 }
  0x1a   : > { %276 = vmatpush.bf16.msra.mxu0 %v222_v13  ;;  %393 = vmatpush.bf16.msra.mxu1 %v222_v13 }
  0x1e   : > { %277 = vmatpush.bf16.msra.mxu0 %v221_v16  ;;  %394 = vmatpush.bf16.msra.mxu1 %v221_v16 }
  0x21   : > { %383 = vmatmul.msk.bf16.vlgmr.msra.gmra.mxu0 %vm263_vm0, %v389_v17  ;;  %384 = vmatmul.msk.bf16.vlgmr.msra.gmra.mxu1 %vm263_vm0, %v390_v18 }
  0x7f   : > { %v246_v19 = vpop.permute.xlu1 %245  ;;  %v236_v20 = vpop.permute.xlu0 %235 }
  0x87   : > { %v251_v28 = vpop.permute.xlu1 %250  ;;  %v241_v29 = vpop.permute.xlu0 %240 }
  0x9e   : > { %v279_v22 = vpop.f32.mrf.mxu0  ;;  %v284_v23 = vpop.f32.mrf.mxu1 }
  0x9f   : > { %v280_v24 = vadd.f32 %v279_v22, %v236_v20  ;;  %v285_v25 = vadd.f32 %v284_v23, %v246_v19 }
  0xa1   : > { %v293_v26 = vmul.f32 %v406_v21, %v280_v24  ;;  %v295_v27 = vmul.f32 %v406_v21, %v285_v25 }
  0xa3   : > { %298 = vst.msk [vmem:[%s211_s17] sm:$0xff] %vm297_vm1, %v293_v26 }
  0xa4   : > { %300 = vst.msk [vmem:[%s211_s17 + $0x10] sm:$0xff] %vm297_vm1, %v295_v27 }
  0xa6   : > { %v281_v30 = vpop.f32.mrf.mxu0  ;;  %v286_v31 = vpop.f32.mrf.mxu1 }
  0xa7   : > { %v282_v32 = vadd.f32 %v281_v30, %v241_v29  ;;  %v287_v33 = vadd.f32 %v286_v31, %v251_v28 }
  0xa9   : > { %v294_v34 = vmul.f32 %v406_v21, %v282_v32  ;;  %v296_v35 = vmul.f32 %v406_v21, %v287_v33 }
  0xab   : > { %299 = vst.msk [vmem:[%s211_s17 + $0x8] sm:$0xff] %vm297_vm1, %v294_v34 }
  0xac   : > { %301 = vst.msk [vmem:[%s211_s17 + $0x18] sm:$0xff] %vm297_vm1, %v296_v35 }
  0xad PF: > { %s14_s15 = sadd.s32 1, %s413_s15  }
  0xae   : > { %p11_p4 = scmp.ge.s32.totalorder %s14_s15, 4  }
  0xb0   :  { %13 = sbr.rel (!%p11_p4) target bundleno = 1 (0x1), region = 69 }

// kernel: synthesizer_forward.34
= control target key start
LH: loop header
LB: loop body
LE: loop exit
PB: predicated region body
PF: predicated region fallthrough
CT: control target
= control target key end

     0   :  { %s512_s15 = smov 0   ;;  %s596_s0 = inlined_call_operand.vmem [shape: f32[2,32,16], index: 0, kind: input, shape index: {}]   ;;  %s597_s1 = inlined_call_operand.vmem [shape: bf16[64,32], index: 1, kind: input, shape index: {}]   ;;  %s598_s2 = inlined_call_operand.vmem [shape: f32[64,1], index: 2, kind: input, shape index: {}]   ;;  %s599_s3 = inlined_call_operand.vmem [shape: f32[2,1,16], index: 3, kind: input, shape index: {}]   ;;  %s600_s4 = inlined_call_operand.vmem [shape: f32[2,64,16], index: 4, kind: output, shape index: {}]  }
   0x1 LB: > { %s422_s16 = sadd.s32 4294967295, %s484_s15   ;;  %p426_p0 = scmp.ge.s32.totalorder %s484_s15, 1  ;;  %s484_s15 = sphi %s512_s15, %s14_s15  }
   0x2   : > { %p170_p1 = scmp.lt.s32.totalorder %s484_s15, 3 }
   0x4   : > { %p171_p2 = pnand %p426_p0, %p170_p1 }
   0x5   : > { %p199_p3 = scmp.lt.s32.totalorder (!%p171_p2), %s422_s16, 1 }
   0x6   : > { %174 = sbr.rel (%p171_p2) target bundleno = 172 (0xac), region = 36 }
   0xb   : > { %v229_v0 = vld [vmem:[%s598_s2 + $0x10] sm:$0xff]  ;;  %v227_v1 = vld [vmem:[%s598_s2] sm:$0xff]  ;;  %v486_v2 = vmov 0   ;;  %s602_s16 = smov (!%p199_p3, %s422_s16), 1  ;;  %v230_v9 = vld [vmem:[%s598_s2 + $0x18] sm:$0xff]  ;;  %vm295_vm0 = vcmask 261120  }
   0xc   : > { %475 = vset.pattern.permute.xlu1 %v486_v2  ;;  %474 = vset.pattern.permute.xlu0 %v486_v2  ;;  %v231_v3 = vld [vmem:[%s598_s2 + $0x20] sm:$0xff]  ;;  %s453_s23 = sshll.u32 %s602_s16, 5  ;;  %s206_s26 = scalar_lea.vmem %s599_s3, %s602_s16  ;;  %v228_v10 = vld [vmem:[%s598_s2 + $0x8] sm:$0xff]  ;;  %v457_v15 = vld [vmem:[%s597_s1 + $0x10] sm:$0xff]  ;;  %vm349_vm1 = vcmask 130048  }
   0xd   : > { %247 = vperm.xlu1 %475, %v229_v0   ;;  %237 = vperm.xlu0 %474, %v227_v1   ;;  %s203_s29 = scalar_lea.vmem %s596_s0, %s453_s23  ;;  %v232_v12 = vld [vmem:[%s598_s2 + $0x28] sm:$0xff]  ;;  %v455_v13 = vld [vmem:[%s597_s1] sm:$0xff]  ;;  %v458_v16 = vld [vmem:[%s597_s1 + $0x18] sm:$0xff]  ;;  %s454_s24 = sshll.u32 %s602_s16, 6 }
   0xe   : > { %476 = vset.pattern.permute.xlu2 %v486_v2  ;;  %v215_v4 = vld [vmem:[%s203_s29 + $0x10] sm:$0xff]  ;;  %v216_v5 = vld [vmem:[%s203_s29 + $0x18] sm:$0xff]  ;;  %v213_v6 = vld [vmem:[%s203_s29] sm:$0xff]  ;;  %s575_s30 = scalar_lea.vmem %s600_s4, %s454_s24 }
   0xf   : > { %257 = vperm.xlu2 %476, %v231_v3   ;;  %v218_v7 = vpack.c.bf16 %v216_v5, %v215_v4  ;;  %v214_v8 = vld [vmem:[%s203_s29 + $0x8] sm:$0xff]  ;;  %v234_v17 = vld [vmem:[%s598_s2 + $0x38] sm:$0xff]  ;;  %v233_v18 = vld [vmem:[%s598_s2 + $0x30] sm:$0xff] }
  0x10   : > { %v217_v11 = vpack.c.bf16 %v214_v8, %v213_v6  ;;  %v456_v14 = vld [vmem:[%s597_s1 + $0x8] sm:$0xff]  ;;  %v477_v22 = vld [vmem:[%s206_s26] ss:$0 sm:$0xff] }
  0x11   : > { %314 = vmatpush.bf16.msra.mxu0 %v218_v7  ;;  %459 = vmatpush.bf16.msra.mxu1 %v218_v7 }
  0x12   : > { %460 = vmatpush.bf16.msra.mxu2 %v218_v7  ;;  %461 = vmatpush.bf16.msra.mxu3 %v218_v7 }
  0x15   : > { %252 = vperm.xlu1 %475, %v230_v9   ;;  %242 = vperm.xlu0 %474, %v228_v10  }
  0x16   : > { %315 = vmatpush.bf16.msra.mxu0 %v217_v11  ;;  %462 = vmatpush.bf16.msra.mxu1 %v217_v11 }
  0x17   : > { %262 = vperm.xlu2 %476, %v232_v12   ;;  %463 = vmatpush.bf16.msra.mxu2 %v217_v11 }
  0x18   : > { %464 = vmatpush.bf16.msra.mxu3 %v217_v11 }
  0x19   : > { %447 = vmatmul.msk.bf16.vlgmr.msra.gmra.mxu0 %vm295_vm0, %v455_v13  ;;  %448 = vmatmul.msk.bf16.vlgmr.msra.gmra.mxu1 %vm295_vm0, %v456_v14 }
  0x1a   : > { %449 = vmatmul.msk.bf16.vlgmr.msra.gmra.mxu2 %vm295_vm0, %v457_v15 }
  0x1b   : > { %450 = vmatmul.msk.bf16.vlgmr.msra.gmra.mxu3 %vm295_vm0, %v458_v16 }
  0x1d   : > { %272 = vperm.xlu1 %475, %v234_v17   ;;  %267 = vperm.xlu0 %474, %v233_v18  }
  0x69   : > { %v258_v30 = vpop.permute.xlu2 %257 }
  0x71   : > { %v263_v45 = vpop.permute.xlu2 %262 }
  0x7f   : > { %v238_v19 = vpop.permute.xlu0 %237  ;;  %v248_v20 = vpop.permute.xlu1 %247 }
  0x87   : > { %v243_v21 = vpop.permute.xlu0 %242  ;;  %v253_v29 = vpop.permute.xlu1 %252 }
  0x8f   : > { %v268_v31 = vpop.permute.xlu0 %267  ;;  %v273_v44 = vpop.permute.xlu1 %272 }
  0x96   : > { %v317_v23 = vpop.f32.mrf.mxu0  ;;  %v322_v24 = vpop.f32.mrf.mxu1 }
  0x97   : > { %v318_v25 = vadd.f32 %v317_v23, %v238_v19  ;;  %v323_v26 = vadd.f32 %v322_v24, %v248_v20 }
  0x99   : > { %v341_v27 = vmul.f32 %v477_v22, %v318_v25  ;;  %v343_v28 = vmul.f32 %v477_v22, %v323_v26 }
  0x9b   : > { %350 = vst.msk [vmem:[%s575_s30] sm:$0xff] %vm349_vm1, %v341_v27 }
  0x9c   : > { %352 = vst.msk [vmem:[%s575_s30 + $0x10] sm:$0xff] %vm349_vm1, %v343_v28 }
  0x9d   : > { %v327_v32 = vpop.f32.mrf.mxu2 }
  0x9e   : > { %v332_v33 = vpop.f32.mrf.mxu3  ;;  %v328_v34 = vadd.f32 %v327_v32, %v258_v30  ;;  %v319_v36 = vpop.f32.mrf.mxu0 }
  0x9f   : > { %v333_v35 = vadd.f32 %v332_v33, %v268_v31  ;;  %v324_v37 = vpop.f32.mrf.mxu1  ;;  %v320_v38 = vadd.f32 %v319_v36, %v243_v21 }
  0xa0   : > { %v325_v39 = vadd.f32 %v324_v37, %v253_v29  ;;  %v345_v40 = vmul.f32 %v477_v22, %v328_v34 }
  0xa1   : > { %v347_v41 = vmul.f32 %v477_v22, %v333_v35  ;;  %v342_v42 = vmul.f32 %v477_v22, %v320_v38 }
  0xa2   : > { %v344_v43 = vmul.f32 %v477_v22, %v325_v39  ;;  %354 = vst.msk [vmem:[%s575_s30 + $0x20] sm:$0xff] %vm349_vm1, %v345_v40 }
  0xa3   : > { %356 = vst.msk [vmem:[%s575_s30 + $0x30] sm:$0xff] %vm349_vm1, %v347_v41 }
  0xa4   : > { %351 = vst.msk [vmem:[%s575_s30 + $0x8] sm:$0xff] %vm349_vm1, %v342_v42 }
  0xa5   : > { %353 = vst.msk [vmem:[%s575_s30 + $0x18] sm:$0xff] %vm349_vm1, %v344_v43  ;;  %v329_v46 = vpop.f32.mrf.mxu2 }
  0xa6   : > { %v334_v47 = vpop.f32.mrf.mxu3  ;;  %v330_v48 = vadd.f32 %v329_v46, %v263_v45 }
  0xa7   : > { %v335_v49 = vadd.f32 %v334_v47, %v273_v44 }
  0xa8   : > { %v346_v50 = vmul.f32 %v477_v22, %v330_v48 }
  0xa9   : > { %v348_v51 = vmul.f32 %v477_v22, %v335_v49 }
  0xaa   : > { %355 = vst.msk [vmem:[%s575_s30 + $0x28] sm:$0xff] %vm349_vm1, %v346_v50 }
  0xab   : > { %357 = vst.msk [vmem:[%s575_s30 + $0x38] sm:$0xff] %vm349_vm1, %v348_v51 }
  0xac PF: > { %s14_s15 = sadd.s32 1, %s484_s15  }
  0xad   : > { %p11_p4 = scmp.ge.s32.totalorder %s14_s15, 4  }
  0xaf   :  { %13 = sbr.rel (!%p11_p4) target bundleno = 1 (0x1), region = 69 }

// kernel: synthesizer_forward.33
= control target key start
LH: loop header
LB: loop body
LE: loop exit
PB: predicated region body
PF: predicated region fallthrough
CT: control target
= control target key end

     0   :  { %s1222_s21 = smov 0   ;;  %s1224_s22 = smov 0   ;;  %s1439_s0 = inlined_call_operand.vmem [shape: f32[2,32,16], index: 0, kind: input, shape index: {}]   ;;  %s1440_s1 = inlined_call_operand.vmem [shape: f32[2,1,16], index: 1, kind: input, shape index: {}]   ;;  %s1441_s2 = inlined_call_operand.vmem [shape: f32[2,16,64,1], index: 2, kind: input, shape index: {}]   ;;  %s1442_s3 = inlined_call_operand.vmem [shape: bf16[16,64,160], index: 3, kind: input, shape index: {}]   ;;  %s1443_s4 = inlined_call_operand.vmem [shape: bf16[16,64,32], index: 4, kind: input, shape index: {}]   ;;  %s1444_s5 = inlined_call_operand.vmem [shape: f32[16,64,1], index: 5, kind: input, shape index: {}]   ;;  %s1445_s6 = inlined_call_operand.vmem [shape: f32[2,32,16], index: 6, kind: output, shape index: {}]  }
   0x1   :  { %s1226_s23 = smov 0   ;;  %s1228_s24 = smov 0  }
   0x2   :  { %s1230_s25 = smov 0  }
   0x3 LB: > { %s25_s26 = sadd.s32 1, %s1170_s23  ;;  %s28_s27 = sadd.s32 1, %s1174_s24  ;;  %s1178_s25 = sphi %s1230_s25, %s16_s25   ;;  %s1174_s24 = sphi %s1228_s24, %s1451_s24   ;;  %s1170_s23 = sphi %s1226_s23, %s1450_s23   ;;  %s1166_s22 = sphi %s1224_s22, %s1449_s22   ;;  %s1162_s21 = sphi %s1222_s21, %s1448_s21  }
   0x4   : > { %p26_p0 = scmp.ge.s32.totalorder %s25_s26, 16  ;;  %p965_p1 = scmp.ge.s32.totalorder %s1178_s25, 1 }
   0x5   : > { %p242_p2 = scmp.lt.s32.totalorder %s1178_s25, 33 }
   0x6   : > { %s1453_s26 = smov (%p26_p0, %s25_s26), 0  ;;  %s1455_s27 = smov (!%p26_p0, %s28_s27), %s1174_s24 }
   0x7   : > { %p243_p3 = pnand %p965_p1, %p242_p2  ;;  %p30_p4 = scmp.ge.s32.totalorder %s1455_s27, 2 }
   0x8   : > { %p280_p5 = scmp.lt.s32.totalorder (!%p243_p3), %s1166_s22, 1  ;;  %p972_p6 = scmp.ne.s32.totalorder (!%p243_p3), %s1162_s21, 0 }
   0x9   : > { %s1457_s27 = smov (%p30_p4, %s1455_s27), 0  ;;  %246 = sbr.rel (%p243_p3) target bundleno = 616 (0x268), region = 44 }
   0xe   : > { %s1459_s22 = smov (!%p280_p5, %s1166_s22), 1  ;;  %303 = sbr.rel (%p972_p6) target bundleno = 28 (0x1c), region = 48 }
   0xf   : > { %s1041_s28 = sshll.u32 %s1459_s22, 5  ;;  %s287_s7 = scalar_lea.vmem %s1440_s1, %s1459_s22 }
  0x10   : > { %s284_s10 = scalar_lea.vmem %s1439_s0, %s1041_s28  ;;  %s1042_s11 = sshll.u32 %s1459_s22, 10  ;;  %v1260_v0 = vld [vmem:[%s287_s7] sm:$0x1] }
  0x11   : > { %s1265_s14 = scalar_lea.vmem %s1441_s2, %s1042_s11  ;;  %s1270_s17 = scalar_lea.vmem %s1445_s6, %s1041_s28 }
  0x13   : > { %v304_v1 = vld [vmem:[%s284_s10] sm:$0xff]  ;;  %vm308_vm0 = vcmask 130048   ;;  %v305_v2 = vld [vmem:[%s284_s10 + $0x8] sm:$0xff]  ;;  %v306_v3 = vld [vmem:[%s284_s10 + $0x10] sm:$0xff]  ;;  %v1180_v5 = vmov 0.0  }
  0x14   : > { %309 = vst.msk [vmem:[#allocation2] sm:$0xff] %vm308_vm0, %v304_v1  ;;  %v307_v4 = vld [vmem:[%s284_s10 + $0x18] sm:$0xff] }
  0x15   : > { %310 = vst.msk [vmem:[#allocation2 + $0x8] sm:$0xff] %vm308_vm0, %v305_v2 }
  0x16   : > { %311 = vst.msk [vmem:[#allocation2 + $0x10] sm:$0xff] %vm308_vm0, %v306_v3 }
  0x17   : > { %312 = vst.msk [vmem:[#allocation2 + $0x18] sm:$0xff] %vm308_vm0, %v307_v4 }
  0x18   : > { %313 = vst.msk [vmem:[#allocation3] sm:$0xff] %vm308_vm0, %v1180_v5 }
  0x19   : > { %314 = vst.msk [vmem:[#allocation3 + $0x8] sm:$0xff] %vm308_vm0, %v1180_v5 }
  0x1a   : > { %315 = vst.msk [vmem:[#allocation3 + $0x10] sm:$0xff] %vm308_vm0, %v1180_v5 }
  0x1b   : > { %316 = vst.msk [vmem:[#allocation3 + $0x18] sm:$0xff] %vm308_vm0, %v1180_v5 }
  0x1c PF: > { %vm369_vm1 = vcmask 130048   ;;  %v1275_v7 = vld [vmem:[#allocation2] sm:$0xff]  ;;  %s1181_s18 = smov 127   ;;  %s1182_s19 = smov 1   ;;  %v1288_v9 = vld [vmem:[#allocation2 + $0x8] sm:$0xff]  ;;  %vm347_vm2 = vcmask 7168  }
  0x1d   : > { %v1273_v6 = vld [vmem:[#allocation2 + $0x10] sm:$0xff]  ;;  %379 = vrot.lane.b32.xlu1 %v1275_v7, %s1181_s18  ;;  %370 = vst.msk [vmem:[#allocation4 + $0x40] sm:$0xff] %vm369_vm1, %v1275_v7  ;;  %v1183_v10 = vmov 0.0   ;;  %s1184_s20 = smov 126   ;;  %s1185_s22 = smov 2   ;;  %vm374_vm3 = vcmask 130168  }
  0x1e   : > { %383 = vrot.lane.b32.xlu0 %v1273_v6, %s1181_s18  ;;  %372 = vst.msk [vmem:[#allocation4 + $0x50] sm:$0xff] %vm369_vm1, %v1273_v6  ;;  %v1283_v8 = vld [vmem:[#allocation2 + $0x18] sm:$0xff]  ;;  %356 = vrot.lane.b32.xlu2 %v1273_v6, %s1182_s19  ;;  %vm364_vm4 = vcmask 130056   ;;  %vm396_vm5 = vcmask 130160   ;;  %vm391_vm6 = vcmask 121856   ;;  %vm321_vm7 = vcmask 15360  }
  0x1f   : > { %373 = vst.msk [vmem:[#allocation4 + $0x58] sm:$0xff] %vm369_vm1, %v1283_v8  ;;  %vm413_vm8 = vcmask 113664   ;;  %vm342_vm9 = vcmask 130064   ;;  %s1317_s28 = sshll.u32 %s1162_s21, 6  ;;  %v1186_v38 = vmov 0   ;;  %vm545_vm10 = vcmask 261120  }
  0x20   : > { %371 = vst.msk [vmem:[#allocation4 + $0x48] sm:$0xff] %vm369_vm1, %v1288_v9  ;;  %s1321_s29 = scalar_lea.vmem %s1265_s14, %s1317_s28  ;;  %1113 = vset.pattern.permute.xlu1 %v1186_v38  ;;  %1115 = vset.pattern.permute.xlu0 %v1186_v38  ;;  %s1331_s8 = scalar_lea.vmem %s1442_s3, %s1317_s28 }
  0x21   : > { %350 = vst.msk [vmem:[#allocation4 + $0x30] sm:$0xff] %vm347_vm2, %v1183_v10  ;;  %v467_v31 = vld [vmem:[%s1321_s29 + $0x30] sm:$0xff]  ;;  %v465_v32 = vld [vmem:[%s1321_s29 + $0x20] sm:$0xff]  ;;  %1114 = vset.pattern.permute.xlu2 %v1186_v38  ;;  %v980_v48 = vld [vmem:[%s1331_s8 + $0x8] sm:$0xf0]  ;;  %s713_s11 = scalar_lea.vmem %s1444_s5, %s1317_s28  ;;  %s1053_s12 = sshll.u32 %s1162_s21, 5 }
  0x22   : > { %348 = vst.msk [vmem:[#allocation4 + $0x20] sm:$0xff] %vm347_vm2, %v1183_v10  ;;  %v1045_v47 = vld [vmem:[%s1331_s8 + $0x4] sm:$0xf]  ;;  %v466_v56 = vld [vmem:[%s1321_s29 + $0x28] sm:$0xff]  ;;  %v468_v58 = vld [vmem:[%s1321_s29 + $0x38] sm:$0xff]  ;;  %s702_s15 = scalar_lea.vmem %s1443_s4, %s1053_s12  ;;  %p1038_p7 = scmp.ne.s32.totalorder %s1162_s21, 15 }
  0x23   : > { %349 = vst.msk [vmem:[#allocation4 + $0x28] sm:$0xff] %vm347_vm2, %v1183_v10  ;;  %v983_v54 = vor.u32 %v1045_v47, %v980_v48  ;;  %v462_v57 = vld [vmem:[%s1321_s29 + $0x8] sm:$0xff]  ;;  %v464_v63 = vld [vmem:[%s1321_s29 + $0x18] sm:$0xff]  ;;  %v978_v2 = vld [vmem:[%s1331_s8] sm:$0xf] }
  0x24   : > { %351 = vst.msk [vmem:[#allocation4 + $0x38] sm:$0xff] %vm347_vm2, %v1183_v10  ;;  %v437_v36 = vld [vmem:[#allocation4 + $0x40] sm:$0xff]  ;;  %v463_v3 = vld [vmem:[%s1321_s29 + $0x10] sm:$0xff]  ;;  %v1046_v4 = vld [vmem:[%s1331_s8 + $0x4] sm:$0xf0] }
  0x25   : > { %381 = vrot.lane.b32.xlu1 %v1288_v9, %s1181_s18  ;;  %377 = vst.msk [vmem:[#allocation4 + $0x70] sm:$0xff] %vm374_vm3, %v1183_v10  ;;  %v439_v27 = vld [vmem:[#allocation4 + $0x50] sm:$0xff] }
  0x26   : > { %385 = vrot.lane.b32.xlu0 %v1283_v8, %s1181_s18  ;;  %358 = vrot.lane.b32.xlu2 %v1283_v8, %s1182_s19  ;;  %375 = vst.msk [vmem:[#allocation4 + $0x60] sm:$0xff] %vm374_vm3, %v1183_v10  ;;  %v440_v28 = vld [vmem:[#allocation4 + $0x58] sm:$0xff]  ;;  %v986_v5 = vld [vmem:[%s1331_s8 + $0x10] sm:$0xf] }
  0x27   : > { %376 = vst.msk [vmem:[#allocation4 + $0x68] sm:$0xff] %vm374_vm3, %v1183_v10  ;;  %v454_v30 = vpack.c.bf16 %v440_v28, %v439_v27  ;;  %v438_v37 = vld [vmem:[#allocation4 + $0x48] sm:$0xff] }
  0x28   : > { %378 = vst.msk [vmem:[#allocation4 + $0x78] sm:$0xff] %vm374_vm3, %v1183_v10  ;;  %v453_v41 = vpack.c.bf16 %v438_v37, %v437_v36  ;;  %v996_v27 = vld [vmem:[%s1331_s8 + $0x28] sm:$0xf0]  ;;  %v1004_v36 = vld [vmem:[%s1331_s8 + $0x38] sm:$0xf0] }
  0x29   : > { %399 = vst.msk [vmem:[#allocation4 + $0x90] sm:$0xff] %vm396_vm5, %v1183_v10 }
  0x2a   : > { %397 = vst.msk [vmem:[#allocation4 + $0x80] sm:$0xff] %vm396_vm5, %v1183_v10 }
  0x2b   : > { %398 = vst.msk [vmem:[#allocation4 + $0x88] sm:$0xff] %vm396_vm5, %v1183_v10 }
  0x2c   : > { %400 = vst.msk [vmem:[#allocation4 + $0x98] sm:$0xff] %vm396_vm5, %v1183_v10 }
  0x2d   : > { %407 = vrot.lane.b32.xlu1 %v1283_v8, %s1184_s20  ;;  %324 = vst.msk [vmem:[#allocation4 + $0x10] sm:$0xff] %vm321_vm7, %v1183_v10 }
  0x2e   : > { %405 = vrot.lane.b32.xlu0 %v1273_v6, %s1184_s20  ;;  %352 = vrot.lane.b32.xlu2 %v1275_v7, %s1182_s19  ;;  %322 = vst.msk [vmem:[#allocation4] sm:$0xff] %vm321_vm7, %v1183_v10 }
  0x2f   : > { %323 = vst.msk [vmem:[#allocation4 + $0x8] sm:$0xff] %vm321_vm7, %v1183_v10 }
  0x30   : > { %325 = vst.msk [vmem:[#allocation4 + $0x18] sm:$0xff] %vm321_vm7, %v1183_v10  ;;  %v1048_v10 = vld [vmem:[%s1331_s8 + $0x14] sm:$0xf0] }
  0x35   : > { %401 = vrot.lane.b32.xlu1 %v1275_v7, %s1184_s20 }
  0x36   : > { %354 = vrot.lane.b32.xlu0 %v1288_v9, %s1182_s19  ;;  %403 = vrot.lane.b32.xlu2 %v1288_v9, %s1184_s20 }
  0x3d   : > { %336 = vrot.lane.b32.xlu1 %v1283_v8, %s1185_s22 }
  0x3e   : > { %334 = vrot.lane.b32.xlu0 %v1273_v6, %s1185_s22  ;;  %330 = vrot.lane.b32.xlu2 %v1275_v7, %s1185_s22 }
  0x45   : > { %501 = vperm.xlu1 %1113, %v467_v31   ;;  %v718_v31 = vld [vmem:[%s713_s11 + $0x20] sm:$0xff] }
  0x46   : > { %332 = vrot.lane.b32.xlu0 %v1288_v9, %s1185_s22  ;;  %506 = vperm.xlu2 %1114, %v468_v58  }
  0x4d   : > { %496 = vperm.xlu1 %1113, %v466_v56  }
  0x4e   : > { %491 = vperm.xlu0 %1115, %v465_v32   ;;  %481 = vperm.xlu2 %1114, %v463_v3   ;;  %v721_v32 = vld [vmem:[%s713_s11 + $0x38] sm:$0xff] }
  0x55   : > { %486 = vperm.xlu1 %1113, %v464_v63  }
  0x56   : > { %476 = vperm.xlu0 %1115, %v462_v57  }
  0x78   : > { %v357_v11 = vpop.permute.xlu2 %356 }
  0x79   : > { %367 = vst.msk [vmem:[#allocation4 + $0x30] sm:$0xff] %vm364_vm4, %v357_v11 }
  0x80   : > { %v359_v12 = vpop.permute.xlu2 %358  ;;  %v435_v42 = vld [vmem:[#allocation4 + $0x30] sm:$0xff] }
  0x81   : > { %368 = vst.msk [vmem:[#allocation4 + $0x38] sm:$0xff] %vm364_vm4, %v359_v12  ;;  %v1047_v12 = vld [vmem:[%s1331_s8 + $0x14] sm:$0xf] }
  0x88   : > { %v353_v13 = vpop.permute.xlu2 %352  ;;  %v436_v43 = vld [vmem:[#allocation4 + $0x38] sm:$0xff] }
  0x89   : > { %365 = vst.msk [vmem:[#allocation4 + $0x20] sm:$0xff] %vm364_vm4, %v353_v13  ;;  %v452_v49 = vpack.c.bf16 %v436_v43, %v435_v42  ;;  %v988_v13 = vld [vmem:[%s1331_s8 + $0x18] sm:$0xf0] }
  0x8f   : > { %v380_v15 = vpop.permute.xlu1 %379 }
  0x90   : > { %v384_v14 = vpop.permute.xlu0 %383  ;;  %v404_v16 = vpop.permute.xlu2 %403  ;;  %392 = vst.msk [vmem:[#allocation4 + $0x60] sm:$0xff] %vm391_vm6, %v380_v15  ;;  %v433_v52 = vld [vmem:[#allocation4 + $0x20] sm:$0xff]  ;;  %v979_v15 = vor.u32 %v1046_v4, %v978_v2 }
  0x91   : > { %394 = vst.msk [vmem:[#allocation4 + $0x70] sm:$0xff] %vm391_vm6, %v384_v14 }
  0x92   : > { %415 = vst.msk [vmem:[#allocation4 + $0x88] sm:$0xff] %vm413_vm8, %v404_v16  ;;  %v987_v16 = vor.u32 %v1048_v10, %v986_v5 }
  0x97   : > { %v382_v18 = vpop.permute.xlu1 %381  ;;  %v441_v26 = vld [vmem:[#allocation4 + $0x60] sm:$0xff] }
  0x98   : > { %v386_v17 = vpop.permute.xlu0 %385  ;;  %v331_v19 = vpop.permute.xlu2 %330  ;;  %393 = vst.msk [vmem:[#allocation4 + $0x68] sm:$0xff] %vm391_vm6, %v382_v18  ;;  %v443_v22 = vld [vmem:[#allocation4 + $0x70] sm:$0xff]  ;;  %v461_v18 = vld [vmem:[%s1321_s29] sm:$0xff] }
  0x99   : > { %395 = vst.msk [vmem:[#allocation4 + $0x78] sm:$0xff] %vm391_vm6, %v386_v17  ;;  %v446_v44 = vld [vmem:[#allocation4 + $0x88] sm:$0xff]  ;;  %v991_v17 = vor.u32 %v1047_v12, %v988_v13  ;;  %471 = vperm.xlu2 %1114, %v461_v18  }
  0x9a   : > { %343 = vst.msk [vmem:[#allocation4] sm:$0xff] %vm342_vm9, %v331_v19  ;;  %v714_v19 = vld [vmem:[%s713_s11] sm:$0xff] }
  0x9b   : > { %724 = vperm.xlu1 %1113, %v714_v19  }
  0x9f   : > { %v408_v21 = vpop.permute.xlu1 %407  ;;  %v442_v25 = vld [vmem:[#allocation4 + $0x68] sm:$0xff] }
  0xa0   : > { %v406_v20 = vpop.permute.xlu0 %405  ;;  %v444_v23 = vld [vmem:[#allocation4 + $0x78] sm:$0xff]  ;;  %417 = vst.msk [vmem:[#allocation4 + $0x98] sm:$0xff] %vm413_vm8, %v408_v21  ;;  %v455_v29 = vpack.c.bf16 %v442_v25, %v441_v26  ;;  %v1050_v25 = vld [vmem:[%s1331_s8 + $0x24] sm:$0xf0]  ;;  %v1049_v26 = vld [vmem:[%s1331_s8 + $0x24] sm:$0xf] }
  0xa1   : > { %416 = vst.msk [vmem:[#allocation4 + $0x90] sm:$0xff] %vm413_vm8, %v406_v20  ;;  %v456_v24 = vpack.c.bf16 %v444_v23, %v443_v22  ;;  %v429_v1 = vld [vmem:[#allocation4] sm:$0xff]  ;;  %v716_v20 = vld [vmem:[%s713_s11 + $0x10] sm:$0xff]  ;;  %v717_v21 = vld [vmem:[%s713_s11 + $0x18] sm:$0xff] }
  0xa2   : > { %734 = vperm.xlu0 %1115, %v716_v20   ;;  %v719_v22 = vld [vmem:[%s713_s11 + $0x28] sm:$0xff] }
  0xa3   : > { %558 = vmatpush.bf16.msra.mxu0 %v456_v24  ;;  %1058 = vmatpush.bf16.msra.mxu3 %v456_v24  ;;  %v715_v23 = vld [vmem:[%s713_s11 + $0x8] sm:$0xff]  ;;  %v994_v24 = vld [vmem:[%s1331_s8 + $0x20] sm:$0xf] }
  0xa4   : > { %739 = vperm.xlu1 %1113, %v717_v21   ;;  %729 = vperm.xlu2 %1114, %v715_v23   ;;  %v995_v28 = vor.u32 %v1050_v25, %v994_v24 }
  0xa7   : > { %559 = vmatpush.bf16.msra.mxu0 %v455_v29  ;;  %1059 = vmatpush.bf16.msra.mxu3 %v455_v29  ;;  %v402_v34 = vpop.permute.xlu1 %401  ;;  %v448_v39 = vld [vmem:[#allocation4 + $0x98] sm:$0xff]  ;;  %v999_v29 = vor.u32 %v1049_v26, %v996_v27 }
  0xa8   : > { %v355_v33 = vpop.permute.xlu0 %354  ;;  %v447_v35 = vld [vmem:[#allocation4 + $0x90] sm:$0xff]  ;;  %414 = vst.msk [vmem:[#allocation4 + $0x80] sm:$0xff] %vm413_vm8, %v402_v34  ;;  %v1052_v34 = vld [vmem:[%s1331_s8 + $0x34] sm:$0xf0] }
  0xa9   : > { %366 = vst.msk [vmem:[#allocation4 + $0x28] sm:$0xff] %vm364_vm4, %v355_v33  ;;  %v458_v40 = vpack.c.bf16 %v448_v39, %v447_v35  ;;  %v1002_v33 = vld [vmem:[%s1331_s8 + $0x30] sm:$0xf]  ;;  %v1051_v35 = vld [vmem:[%s1331_s8 + $0x34] sm:$0xf] }
  0xaa   : > { %749 = vperm.xlu0 %1115, %v719_v22   ;;  %v1003_v37 = vor.u32 %v1052_v34, %v1002_v33  ;;  %v1007_v38 = vor.u32 %v1051_v35, %v1004_v36 }
  0xab   : > { %560 = vmatpush.bf16.msra.mxu0 %v454_v30  ;;  %1060 = vmatpush.bf16.msra.mxu3 %v454_v30  ;;  %v720_v30 = vld [vmem:[%s713_s11 + $0x30] sm:$0xff] }
  0xac   : > { %593 = vmatpush.bf16.msra.mxu1 %v458_v40  ;;  %754 = vperm.xlu1 %1113, %v720_v30  }
  0xad   : > { %744 = vperm.xlu2 %1114, %v718_v31  }
  0xaf   : > { %561 = vmatpush.bf16.msra.mxu0 %v453_v41  ;;  %1061 = vmatpush.bf16.msra.mxu3 %v453_v41  ;;  %v337_v46 = vpop.permute.xlu1 %336  ;;  %v445_v50 = vld [vmem:[#allocation4 + $0x80] sm:$0xff] }
  0xb0   : > { %v335_v45 = vpop.permute.xlu0 %334  ;;  %346 = vst.msk [vmem:[#allocation4 + $0x18] sm:$0xff] %vm342_vm9, %v337_v46  ;;  %v457_v51 = vpack.c.bf16 %v446_v44, %v445_v50  ;;  %v434_v53 = vld [vmem:[#allocation4 + $0x28] sm:$0xff]  ;;  %v507_v50 = vpop.permute.xlu2 %506 }
  0xb1   : > { %345 = vst.msk [vmem:[#allocation4 + $0x10] sm:$0xff] %vm342_vm9, %v335_v45  ;;  %v451_v55 = vpack.c.bf16 %v434_v53, %v433_v52 }
  0xb2   : > { %594 = vmatpush.bf16.msra.mxu1 %v457_v51 }
  0xb3   : > { %562 = vmatpush.bf16.msra.mxu0 %v452_v49  ;;  %1062 = vmatpush.bf16.msra.mxu3 %v452_v49 }
  0xb5   : > { %1008 = vmatmul.msk.bf16.vlgmr.msra.gmra.mxu1 %vm545_vm10, %v983_v54  ;;  %759 = vperm.xlu2 %1114, %v721_v32  }
  0xb7   : > { %563 = vmatpush.bf16.msra.mxu0 %v451_v55  ;;  %1063 = vmatpush.bf16.msra.mxu3 %v451_v55  ;;  %v432_v61 = vld [vmem:[#allocation4 + $0x18] sm:$0xff]  ;;  %v502_v46 = vpop.permute.xlu1 %501 }
  0xb8   : > { %v333_v59 = vpop.permute.xlu0 %332  ;;  %v431_v60 = vld [vmem:[#allocation4 + $0x10] sm:$0xff] }
  0xb9   : > { %344 = vst.msk [vmem:[#allocation4 + $0x8] sm:$0xff] %vm342_vm9, %v333_v59  ;;  %v450_v62 = vpack.c.bf16 %v432_v61, %v431_v60  ;;  %v1374_v59 = vpop.permute.xlu2 %481 }
  0xbb   : > { %564 = vmatpush.bf16.msra.mxu0 %v450_v62  ;;  %1064 = vmatpush.bf16.msra.mxu3 %v450_v62 }
  0xbf   : > { %v497_v54 = vpop.permute.xlu1 %496 }
  0xc0   : > { %v430_v11 = vld [vmem:[#allocation4 + $0x8] sm:$0xff]  ;;  %v492_v47 = vpop.permute.xlu0 %491 }
  0xc1   : > { %v449_v14 = vpack.c.bf16 %v430_v11, %v429_v1 }
  0xc3   : > { %565 = vmatpush.bf16.msra.mxu0 %v449_v14  ;;  %1065 = vmatpush.bf16.msra.mxu3 %v449_v14 }
  0xc5   : > { %1009 = vmatmul.msk.bf16.gmra.mxu1 %vm545_vm10, %v991_v17 }
  0xc6   : > { %566 = vmatmul.bf16.vlgmr.msra.gmra.mxu0 %v979_v15  ;;  %571 = vmatmul.bf16.vlgmr.msra.gmra.mxu3 %v987_v16 }
  0xc8   : > { %v477_v13 = vpop.permute.xlu0 %476 }
  0xd5   : > { %1010 = vmatmul.msk.bf16.gmra.mxu1 %vm545_vm10, %v999_v29 }
  0xd6   : > { %576 = vmatmul.bf16.gmra.mxu3 %v995_v28 }
  0xe5   : > { %1011 = vmatmul.msk.bf16.gmra.mxu1 %vm545_vm10, %v1007_v38 }
  0xe6   : > { %581 = vmatmul.bf16.gmra.mxu3 %v1003_v37 }
  0xf3   : > { %v472_v12 = vpop.permute.xlu2 %471 }
 0x132   : > { %v596_v39 = vpop.f32.mrf.mxu1 }
 0x13a   : > { %v598_v40 = vpop.f32.mrf.mxu1 }
 0x142   : > { %v1366_v41 = vpop.f32.mrf.mxu1 }
 0x143   : > { %v567_v61 = vpop.f32.mrf.mxu0 }
 0x144   : > { %v568_v19 = vadd.f32 %v567_v61, %v472_v12 }
 0x146   : > { %v597_v27 = vadd.f32 %v596_v39, %v568_v19 }
 0x149   : > { %v1368_v42 = vpop.f32.mrf.mxu3 }
 0x14a   : > { %v1370_v43 = vpop.f32.mrf.mxu1 }
 0x14b   : > { %v569_v15 = vpop.f32.mrf.mxu0 }
 0x14c   : > { %v570_v21 = vadd.f32 %v569_v15, %v477_v13 }
 0x14e   : > { %v599_v29 = vadd.f32 %v598_v40, %v570_v21 }
 0x151   : > { %v1372_v44 = vpop.f32.mrf.mxu3 }
 0x152   : > { %v606_v45 = vpop.f32.mrf.mxu1 }
 0x159   : > { %v577_v48 = vpop.f32.mrf.mxu3 }
 0x15a   : > { %v578_v49 = vadd.f32 %v577_v48, %v492_v47  ;;  %v608_v53 = vpop.f32.mrf.mxu1 }
 0x15c   : > { %v607_v51 = vadd.f32 %v606_v45, %v578_v49  ;;  %v487_v49 = vpop.permute.xlu1 %486 }
 0x15e   : > { %v1012_v52 = vmul.f32 -1.442695, %v607_v51 }
 0x160   : > { %1116 = vpow2.f32 %v1012_v52 }
 0x161   : > { %v579_v55 = vpop.f32.mrf.mxu3 }
 0x162   : > { %v580_v56 = vadd.f32 %v579_v55, %v497_v54  ;;  %v611_v63 = vpop.f32.mrf.mxu1 }
 0x164   : > { %v609_v57 = vadd.f32 %v608_v53, %v580_v56  ;;  %v573_v56 = vadd.f32 %v1368_v42, %v1374_v59 }
 0x166   : > { %v1117_v58 = vpop.eup %1116  ;;  %v1013_v60 = vmul.f32 -1.442695, %v609_v57 }
 0x167   : > { %v632_v62 = vadd.f32 1.0, %v1117_v58 }
 0x168   : > { %1118 = vpow2.f32 %v1013_v60  ;;  %v575_v60 = vadd.f32 %v1372_v44, %v487_v49 }
 0x169   : > { %1120 = vrcp.f32 %v632_v62  ;;  %v582_v1 = vpop.f32.mrf.mxu3  ;;  %v647_v32 = vand.u32 2147483648, %v632_v62  ;;  %vm641_vm12 = vweird.f32 %v632_v62  ;;  %v645_v34 = vand.u32 2147483647, %v632_v62 }
 0x16a   : > { %v583_v2 = vadd.f32 %v582_v1, %v502_v46  ;;  %v613_v20 = vpop.f32.mrf.mxu1 }
 0x16b   : > { %v648_v45 = vor.u32 1.1754944e-38, %v647_v32  ;;  %vm646_vm0 = vcmp.eq.f32.partialorder %v645_v34, 8.507059e+37  ;;  %v730_v34 = vpop.permute.xlu2 %729 }
 0x16c   : > { %v612_v3 = vadd.f32 %v611_v63, %v583_v2  ;;  %v602_v2 = vadd.f32 %v1366_v41, %v573_v56  ;;  %v839_v56 = vld [vmem:[#allocation3 + $0x8] sm:$0xff] }
 0x16e   : > { %v1119_v4 = vpop.eup %1118  ;;  %v1014_v5 = vmul.f32 -1.442695, %v612_v3 }
 0x16f   : > { %v1121_v10 = vpop.eup %1120  ;;  %v633_v11 = vadd.f32 1.0, %v1119_v4  ;;  %v604_v4 = vadd.f32 %v1370_v43, %v575_v60 }
 0x170   : > { %1122 = vpow2.f32 %v1014_v5  ;;  %v637_v14 = vmul.f32 %v1121_v10, %v632_v62  ;;  %vm642_vm11 = vweird.f32 %v1121_v10 }
 0x171   : > { %1124 = vrcp.f32 %v633_v11  ;;  %v584_v16 = vpop.f32.mrf.mxu3  ;;  %vm1379_vm13 = vmor %vm641_vm12, %vm642_vm11  ;;  %v662_v37 = vand.u32 2147483648, %v633_v11  ;;  %v660_v39 = vand.u32 2147483647, %v633_v11  ;;  %vm656_vm15 = vweird.f32 %v633_v11 }
 0x172   : > { %v585_v17 = vadd.f32 %v584_v16, %v507_v50  ;;  %v638_v18 = vsub.f32 1.0, %v637_v14 }
 0x173   : > { %v663_v53 = vor.u32 1.1754944e-38, %v662_v37  ;;  %vm661_vm3 = vcmp.eq.f32.partialorder %v660_v39, 8.507059e+37  ;;  %v735_v39 = vpop.permute.xlu0 %734 }
 0x174   : > { %v614_v22 = vadd.f32 %v613_v20, %v585_v17  ;;  %v639_v23 = vmul.f32 %v1121_v10, %v638_v18 }
 0x176   : > { %v1123_v24 = vpop.eup %1122  ;;  %v1015_v25 = vmul.f32 -1.442695, %v614_v22  ;;  %v640_v31 = vadd.f32 %v1121_v10, %v639_v23 }
 0x177   : > { %v1125_v26 = vpop.eup %1124  ;;  %v1376_v28 = vadd.f32 1.0, %v1123_v24  ;;  %v1054_v24 = vld [vmem:[%s702_s15] sm:$0xff] }
 0x178   : > { %1126 = vpow2.f32 %v1015_v25  ;;  %v652_v30 = vmul.f32 %v1125_v26, %v633_v11  ;;  %vm657_vm14 = vweird.f32 %v1125_v26  ;;  %v644_v38 = vsel %vm1379_vm13, %v1121_v10, %v640_v31  ;;  %v1055_v25 = vld [vmem:[%s702_s15 + $0x8] sm:$0xff] }
 0x179   : > { %1128 = vrcp.f32 %v1376_v28  ;;  %vm658_vm2 = vmor %vm656_vm15, %vm657_vm14  ;;  %v649_v51 = vsel %vm646_vm0, %v648_v45, %v644_v38  ;;  %v677_v11 = vand.u32 2147483648, %v1376_v28  ;;  %vm671_vm5 = vweird.f32 %v1376_v28 }
 0x17a   : > { %v653_v33 = vsub.f32 1.0, %v652_v30  ;;  %1130 = vtanh.f32 %v597_v27  ;;  %v675_v42 = vand.u32 2147483647, %v1376_v28  ;;  %v1057_v27 = vld [vmem:[%s702_s15 + $0x18] sm:$0xff]  ;;  %v828_v31 = vperm.slane %v1260_v0, 0 }
 0x17b   : > { %1132 = vtanh.f32 %v599_v29  ;;  %v678_v43 = vor.u32 1.1754944e-38, %v677_v11 }
 0x17c   : > { %v654_v36 = vmul.f32 %v1125_v26, %v653_v33  ;;  %vm676_vm8 = vcmp.eq.f32.partialorder %v675_v42, 8.507059e+37 }
 0x17e   : > { %v1127_v40 = vpop.eup %1126  ;;  %v655_v46 = vadd.f32 %v1125_v26, %v654_v36 }
 0x17f   : > { %v1129_v47 = vpop.eup %1128  ;;  %v635_v48 = vadd.f32 1.0, %v1127_v40 }
 0x180   : > { %v667_v50 = vmul.f32 %v1129_v47, %v1376_v28  ;;  %v659_v52 = vsel %vm658_vm2, %v1125_v26, %v655_v46  ;;  %v1131_v54 = vpop.eup %1130  ;;  %vm672_vm4 = vweird.f32 %v1129_v47  ;;  %v1056_v26 = vld [vmem:[%s702_s15 + $0x10] sm:$0xff]  ;;  %v725_v28 = vpop.permute.xlu1 %724 }
 0x181   : > { %1134 = vrcp.f32 %v635_v48  ;;  %v1133_v55 = vpop.eup %1132  ;;  %v664_v58 = vsel %vm661_vm3, %v663_v53, %v659_v52  ;;  %v696_v61 = vmul.f32 %v1131_v54, %v649_v51  ;;  %vm673_vm6 = vmor %vm671_vm5, %vm672_vm4  ;;  %v692_v59 = vand.u32 2147483648, %v635_v48  ;;  %v838_v52 = vld [vmem:[#allocation3] sm:$0xff] }
 0x182   : > { %v668_v57 = vsub.f32 1.0, %v667_v50  ;;  %v697_v62 = vmul.f32 %v1133_v55, %v664_v58  ;;  %1136 = vtanh.f32 %v602_v2  ;;  %v690_v41 = vand.u32 2147483647, %v635_v48  ;;  %v750_v55 = vpop.permute.xlu0 %749 }
 0x183   : > { %1138 = vtanh.f32 %v604_v4  ;;  %vm686_vm9 = vweird.f32 %v635_v48  ;;  %v693_v16 = vor.u32 1.1754944e-38, %v692_v59 }
 0x184   : > { %v669_v63 = vmul.f32 %v1129_v47, %v668_v57  ;;  %v711_v1 = vpack.c.bf16 %v697_v62, %v696_v61  ;;  %vm691_vm12 = vcmp.eq.f32.partialorder %v690_v41, 8.507059e+37 }
 0x186   : > { %v670_v5 = vadd.f32 %v1129_v47, %v669_v63 }
 0x187   : > { %v1135_v3 = vpop.eup %1134 }
 0x188   : > { %v682_v10 = vmul.f32 %v1135_v3, %v635_v48  ;;  %v674_v12 = vsel %vm673_vm6, %v1129_v47, %v670_v5  ;;  %vm687_vm7 = vweird.f32 %v1135_v3  ;;  %v1137_v17 = vpop.eup %1136  ;;  %v740_v0 = vpop.permute.xlu1 %739 }
 0x189   : > { %v679_v15 = vsel %vm676_vm8, %v678_v43, %v674_v12  ;;  %vm688_vm11 = vmor %vm686_vm9, %vm687_vm7  ;;  %v1139_v19 = vpop.eup %1138 }
 0x18a   : > { %v683_v44 = vsub.f32 1.0, %v682_v10  ;;  %v698_v21 = vmul.f32 %v1137_v17, %v679_v15 }
 0x18c   : > { %v684_v13 = vmul.f32 %v1135_v3, %v683_v44 }
 0x18e   : > { %v685_v14 = vadd.f32 %v1135_v3, %v684_v13 }
 0x190   : > { %v689_v18 = vsel %vm688_vm11, %v1135_v3, %v685_v14  ;;  %v755_v60 = vpop.permute.xlu1 %754  ;;  %v841_v3 = vld [vmem:[#allocation3 + $0x18] sm:$0xff] }
 0x191   : > { %v694_v20 = vsel %vm691_vm12, %v693_v16, %v689_v18 }
 0x192   : > { %v699_v22 = vmul.f32 %v1139_v19, %v694_v20 }
 0x194   : > { %v712_v23 = vpack.c.bf16 %v699_v22, %v698_v21 }
 0x196   : > { %800 = vmatpush.bf16.msra.mxu2 %v712_v23 }
 0x19a   : > { %801 = vmatpush.bf16.msra.mxu2 %v711_v1 }
 0x19d   : > { %1034 = vmatmul.msk.bf16.vlgmr.msra.gmra.mxu2 %vm545_vm10, %v1054_v24 }
 0x1ad   : > { %1035 = vmatmul.msk.bf16.gmra.mxu2 %vm545_vm10, %v1055_v25 }
 0x1bd   : > { %1036 = vmatmul.msk.bf16.gmra.mxu2 %vm545_vm10, %v1056_v26 }
 0x1cd   : > { %1037 = vmatmul.msk.bf16.gmra.mxu2 %vm545_vm10, %v1057_v27 }
 0x220   : > { %v803_v29 = vpop.f32.mrf.mxu2 }
 0x221   : > { %v804_v30 = vadd.f32 %v803_v29, %v725_v28 }
 0x223   : > { %v823_v32 = vadd.f32 %v804_v30, %v1275_v7 }
 0x225   : > { %v830_v33 = vmul.f32 %v828_v31, %v823_v32 }
 0x227   : > { %834 = vst.msk [vmem:[#allocation2] sm:$0xff] %vm369_vm1, %v830_v33 }
 0x228   : > { %v805_v35 = vpop.f32.mrf.mxu2 }
 0x229   : > { %v806_v36 = vadd.f32 %v805_v35, %v730_v34 }
 0x22b   : > { %v824_v37 = vadd.f32 %v806_v36, %v1288_v9  ;;  %v745_v9 = vpop.permute.xlu2 %744 }
 0x22d   : > { %v831_v38 = vmul.f32 %v828_v31, %v824_v37 }
 0x22f   : > { %835 = vst.msk [vmem:[#allocation2 + $0x8] sm:$0xff] %vm369_vm1, %v831_v38 }
 0x230   : > { %v808_v40 = vpop.f32.mrf.mxu2 }
 0x231   : > { %v809_v45 = vadd.f32 %v808_v40, %v735_v39 }
 0x233   : > { %v825_v46 = vadd.f32 %v809_v45, %v1273_v6  ;;  %v760_v1 = vpop.permute.xlu2 %759 }
 0x235   : > { %v832_v47 = vmul.f32 %v828_v31, %v825_v46 }
 0x237   : > { %836 = vst.msk [vmem:[#allocation2 + $0x10] sm:$0xff] %vm369_vm1, %v832_v47 }
 0x238   : > { %v810_v7 = vpop.f32.mrf.mxu2 }
 0x239   : > { %v811_v48 = vadd.f32 %v810_v7, %v740_v0 }
 0x23b   : > { %v826_v49 = vadd.f32 %v811_v48, %v1283_v8  ;;  %v840_v8 = vld [vmem:[#allocation3 + $0x10] sm:$0xff] }
 0x23d   : > { %v833_v50 = vmul.f32 %v828_v31, %v826_v49 }
 0x23f   : > { %837 = vst.msk [vmem:[#allocation2 + $0x18] sm:$0xff] %vm369_vm1, %v833_v50 }
 0x240   : > { %v813_v51 = vpop.f32.mrf.mxu2 }
 0x241   : > { %v814_v53 = vadd.f32 %v813_v51, %v745_v9 }
 0x243   : > { %v842_v54 = vadd.f32 %v838_v52, %v814_v53 }
 0x245   : > { %846 = vst.msk [vmem:[#allocation3] sm:$0xff] %vm369_vm1, %v842_v54 }
 0x248   : > { %v815_v6 = vpop.f32.mrf.mxu2 }
 0x249   : > { %v816_v57 = vadd.f32 %v815_v6, %v750_v55 }
 0x24b   : > { %v843_v58 = vadd.f32 %v839_v56, %v816_v57 }
 0x24d   : > { %847 = vst.msk [vmem:[#allocation3 + $0x8] sm:$0xff] %vm369_vm1, %v843_v58 }
 0x250   : > { %v818_v61 = vpop.f32.mrf.mxu2 }
 0x251   : > { %v819_v62 = vadd.f32 %v818_v61, %v755_v60 }
 0x253   : > { %v844_v63 = vadd.f32 %v840_v8, %v819_v62 }
 0x255   : > { %848 = vst.msk [vmem:[#allocation3 + $0x10] sm:$0xff] %vm369_vm1, %v844_v63 }
 0x258   : > { %v820_v2 = vpop.f32.mrf.mxu2 }
 0x259   : > { %v821_v4 = vadd.f32 %v820_v2, %v760_v1  ;;  %853 = sbr.rel (%p1038_p7) target bundleno = 616 (0x268), region = 52 }
 0x25b   : > { %v845_v5 = vadd.f32 %v841_v3, %v821_v4 }
 0x25d   : > { %849 = vst.msk [vmem:[#allocation3 + $0x18] sm:$0xff] %vm369_vm1, %v845_v5 }
 0x25e   : > { %v854_v10 = vld [vmem:[#allocation3] sm:$0xff]  ;;  %v855_v11 = vld [vmem:[#allocation3 + $0x8] sm:$0xff]  ;;  %v856_v42 = vld [vmem:[#allocation3 + $0x10] sm:$0xff] }
 0x25f   : > { %v858_v44 = vmul.f32 %v854_v10, %v828_v31  ;;  %v859_v59 = vmul.f32 %v855_v11, %v828_v31  ;;  %v860_v12 = vmul.f32 %v856_v42, %v828_v31 }
 0x261   : > { %862 = vst.msk [vmem:[%s1270_s17] sm:$0xff] %vm369_vm1, %v858_v44 }
 0x262   : > { %863 = vst.msk [vmem:[%s1270_s17 + $0x8] sm:$0xff] %vm369_vm1, %v859_v59 }
 0x263   : > { %864 = vst.msk [vmem:[%s1270_s17 + $0x10] sm:$0xff] %vm369_vm1, %v860_v12 }
 0x264   : > { %v857_v13 = vld [vmem:[#allocation3 + $0x18] sm:$0xff] }
 0x265   : > { %v861_v41 = vmul.f32 %v857_v13, %v828_v31 }
 0x267   : > { %865 = vst.msk [vmem:[%s1270_s17 + $0x18] sm:$0xff] %vm369_vm1, %v861_v41 }
 0x268 PF: > { %s16_s25 = sadd.s32 1, %s1178_s25   ;;  %s1448_s21 = smov %s1170_s23 }
 0x269   : > { %p13_p8 = scmp.ge.s32.totalorder %s16_s25, 34   ;;  %s1449_s22 = smov %s1174_s24 }
 0x26a   : > { %s1450_s23 = smov %s1453_s26  ;;  %s1451_s24 = smov %s1457_s27 }
 0x26b   :  { %15 = sbr.rel (!%p13_p8) target bundleno = 3 (0x3), region = 92 }

// kernel: synthesizer_forward.35
= control target key start
LH: loop header
LB: loop body
LE: loop exit
PB: predicated region body
PF: predicated region fallthrough
CT: control target
= control target key end

     0   :  { %s607_s12 = smov 0   ;;  %s747_s0 = inlined_call_operand.vmem [shape: f32[2,32,4], index: 0, kind: input, shape index: {}]   ;;  %s748_s1 = inlined_call_operand.vmem [shape: bf16[32,224], index: 1, kind: input, shape index: {}]   ;;  %s749_s2 = inlined_call_operand.vmem [shape: f32[32,1], index: 2, kind: input, shape index: {}]   ;;  %s750_s3 = inlined_call_operand.vmem [shape: f32[2,32,4], index: 3, kind: output, shape index: {}]  }
   0x1 LB: > { %s503_s13 = sadd.s32 4294967295, %s577_s12   ;;  %p507_p0 = scmp.ge.s32.totalorder %s577_s12, 1  ;;  %s577_s12 = sphi %s607_s12, %s13_s12  }
   0x2   : > { %p137_p1 = scmp.lt.s32.totalorder %s577_s12, 3 }
   0x4   : > { %p138_p2 = pnand %p507_p0, %p137_p1 }
   0x5   : > { %p161_p3 = scmp.lt.s32.totalorder (!%p138_p2), %s503_s13, 1  ;;  %s579_s18 = smov (!%p138_p2), 125  }
   0x6   : > { %141 = sbr.rel (%p138_p2) target bundleno = 345 (0x159), region = 32  ;;  %s580_s19 = smov (!%p138_p2), 1  }
   0x7   : > { %s581_s20 = smov (!%p138_p2), 2   ;;  %s582_s21 = smov (!%p138_p2), 126  }
   0x8   : > { %s584_s22 = smov (!%p138_p2), 3   ;;  %s585_s23 = smov (!%p138_p2), 127  }
   0xb   : > { %s752_s13 = smov (!%p161_p3, %s503_s13), 1  ;;  %vm246_vm0 = vcmask 31744   ;;  %vm224_vm1 = vcmask 7168   ;;  %v583_v4 = vmov 0.0   ;;  %vm241_vm2 = vcmask 31752   ;;  %v358_v47 = vld [vmem:[%s749_s2 + $0x8] sm:$0xff] }
   0xc   : > { %s532_s14 = sshll.u32 %s752_s13, 5  ;;  %225 = vst.msk [vmem:[#allocation2 + $0x40] sm:$0xff] %vm224_vm1, %v583_v4  ;;  %vm202_vm3 = vcmask 15360   ;;  %vm219_vm4 = vcmask 31760   ;;  %vm176_vm5 = vcmask 23552   ;;  %vm197_vm6 = vcmask 31768  }
   0xd   : > { %s165_s17 = scalar_lea.vmem %s747_s0, %s532_s14  ;;  %226 = vst.msk [vmem:[#allocation2 + $0x48] sm:$0xff] %vm224_vm1, %v583_v4  ;;  %v357_v48 = vld [vmem:[%s749_s2] sm:$0xff]  ;;  %v586_v52 = vmov 0   ;;  %v359_v53 = vld [vmem:[%s749_s2 + $0x10] sm:$0xff]  ;;  %v360_v57 = vld [vmem:[%s749_s2 + $0x18] sm:$0xff]  ;;  %vm399_vm7 = vcmask 785408   ;;  %s170_s26 = scalar_lea.vmem %s750_s3, %s532_s14 }
   0xe   : > { %v174_v0 = vld [vmem:[%s165_s17 + $0x10] sm:$0xff]  ;;  %v175_v1 = vld [vmem:[%s165_s17 + $0x18] sm:$0xff]  ;;  %v172_v2 = vld [vmem:[%s165_s17] sm:$0xff]  ;;  %227 = vst.msk [vmem:[#allocation2 + $0x50] sm:$0xff] %vm224_vm1, %v583_v4  ;;  %569 = vset.pattern.permute.xlu1 %v586_v52  ;;  %568 = vset.pattern.permute.xlu0 %v586_v52 }
   0xf   : > { %299 = vrot.lane.b32.xlu1 %v174_v0, %s579_s18  ;;  %249 = vst.msk [vmem:[#allocation2 + $0x70] sm:$0xff] %vm246_vm0, %v174_v0  ;;  %233 = vrot.lane.b32.xlu0 %v174_v0, %s580_s19  ;;  %v173_v3 = vld [vmem:[%s165_s17 + $0x8] sm:$0xff] }
  0x10   : > { %250 = vst.msk [vmem:[#allocation2 + $0x78] sm:$0xff] %vm246_vm0, %v175_v1  ;;  %229 = vrot.lane.b32.xlu2 %v172_v2, %s580_s19 }
  0x11   : > { %248 = vst.msk [vmem:[#allocation2 + $0x68] sm:$0xff] %vm246_vm0, %v173_v3  ;;  %570 = vset.pattern.permute.xlu2 %v586_v52 }
  0x12   : > { %247 = vst.msk [vmem:[#allocation2 + $0x60] sm:$0xff] %vm246_vm0, %v172_v2 }
  0x13   : > { %228 = vst.msk [vmem:[#allocation2 + $0x58] sm:$0xff] %vm224_vm1, %v583_v4 }
  0x14   : > { %291 = vst.msk [vmem:[#allocation2 + $0xc0] sm:$0xff] %vm241_vm2, %v583_v4 }
  0x15   : > { %292 = vst.msk [vmem:[#allocation2 + $0xc8] sm:$0xff] %vm241_vm2, %v583_v4 }
  0x16   : > { %293 = vst.msk [vmem:[#allocation2 + $0xd0] sm:$0xff] %vm241_vm2, %v583_v4  ;;  %v325_v6 = vld [vmem:[#allocation2 + $0x70] sm:$0xff] }
  0x17   : > { %301 = vrot.lane.b32.xlu1 %v175_v1, %s579_s18  ;;  %235 = vrot.lane.b32.xlu0 %v175_v1, %s580_s19  ;;  %294 = vst.msk [vmem:[#allocation2 + $0xd8] sm:$0xff] %vm241_vm2, %v583_v4  ;;  %v326_v7 = vld [vmem:[#allocation2 + $0x78] sm:$0xff] }
  0x18   : > { %231 = vrot.lane.b32.xlu2 %v173_v3, %s580_s19  ;;  %v346_v8 = vpack.c.bf16 %v326_v7, %v325_v6  ;;  %v324_v10 = vld [vmem:[#allocation2 + $0x68] sm:$0xff]  ;;  %205 = vst.msk [vmem:[#allocation2 + $0x30] sm:$0xff] %vm202_vm3, %v583_v4  ;;  %v514_v7 = vld [vmem:[%s748_s1] sm:$0xf] }
  0x19   : > { %v323_v9 = vld [vmem:[#allocation2 + $0x60] sm:$0xff]  ;;  %203 = vst.msk [vmem:[#allocation2 + $0x20] sm:$0xff] %vm202_vm3, %v583_v4 }
  0x1a   : > { %406 = vmatpush.bf16.msra.mxu0 %v346_v8  ;;  %538 = vmatpush.bf16.msra.mxu2 %v346_v8  ;;  %v345_v11 = vpack.c.bf16 %v324_v10, %v323_v9  ;;  %204 = vst.msk [vmem:[#allocation2 + $0x28] sm:$0xff] %vm202_vm3, %v583_v4  ;;  %v535_v8 = vld [vmem:[%s748_s1 + $0x4] sm:$0xf0]  ;;  %v534_v9 = vld [vmem:[%s748_s1 + $0x4] sm:$0xf] }
  0x1b   : > { %206 = vst.msk [vmem:[#allocation2 + $0x38] sm:$0xff] %vm202_vm3, %v583_v4  ;;  %v516_v10 = vld [vmem:[%s748_s1 + $0x8] sm:$0xf0] }
  0x1c   : > { %271 = vst.msk [vmem:[#allocation2 + $0xa0] sm:$0xff] %vm219_vm4, %v583_v4 }
  0x1d   : > { %272 = vst.msk [vmem:[#allocation2 + $0xa8] sm:$0xff] %vm219_vm4, %v583_v4 }
  0x1e   : > { %407 = vmatpush.bf16.msra.mxu0 %v345_v11  ;;  %539 = vmatpush.bf16.msra.mxu2 %v345_v11  ;;  %273 = vst.msk [vmem:[#allocation2 + $0xb0] sm:$0xff] %vm219_vm4, %v583_v4  ;;  %v536_v11 = vld [vmem:[%s748_s1 + $0x14] sm:$0xf] }
  0x1f   : > { %297 = vrot.lane.b32.xlu1 %v173_v3, %s579_s18  ;;  %295 = vrot.lane.b32.xlu0 %v172_v2, %s579_s18  ;;  %274 = vst.msk [vmem:[#allocation2 + $0xb8] sm:$0xff] %vm219_vm4, %v583_v4 }
  0x20   : > { %211 = vrot.lane.b32.xlu2 %v174_v0, %s581_s20  ;;  %179 = vst.msk [vmem:[#allocation2 + $0x10] sm:$0xff] %vm176_vm5, %v583_v4 }
  0x21   : > { %177 = vst.msk [vmem:[#allocation2] sm:$0xff] %vm176_vm5, %v583_v4 }
  0x22   : > { %178 = vst.msk [vmem:[#allocation2 + $0x8] sm:$0xff] %vm176_vm5, %v583_v4 }
  0x23   : > { %180 = vst.msk [vmem:[#allocation2 + $0x18] sm:$0xff] %vm176_vm5, %v583_v4 }
  0x24   : > { %251 = vst.msk [vmem:[#allocation2 + $0x80] sm:$0xff] %vm197_vm6, %v583_v4 }
  0x25   : > { %252 = vst.msk [vmem:[#allocation2 + $0x88] sm:$0xff] %vm197_vm6, %v583_v4 }
  0x26   : > { %253 = vst.msk [vmem:[#allocation2 + $0x90] sm:$0xff] %vm197_vm6, %v583_v4 }
  0x27   : > { %279 = vrot.lane.b32.xlu1 %v174_v0, %s582_s21  ;;  %213 = vrot.lane.b32.xlu0 %v175_v1, %s581_s20  ;;  %254 = vst.msk [vmem:[#allocation2 + $0x98] sm:$0xff] %vm197_vm6, %v583_v4 }
  0x28   : > { %281 = vrot.lane.b32.xlu2 %v175_v1, %s582_s21 }
  0x2f   : > { %209 = vrot.lane.b32.xlu1 %v173_v3, %s581_s20  ;;  %207 = vrot.lane.b32.xlu0 %v172_v2, %s581_s20 }
  0x30   : > { %275 = vrot.lane.b32.xlu2 %v172_v2, %s582_s21 }
  0x37   : > { %189 = vrot.lane.b32.xlu1 %v174_v0, %s584_s22  ;;  %277 = vrot.lane.b32.xlu0 %v173_v3, %s582_s21 }
  0x38   : > { %191 = vrot.lane.b32.xlu2 %v175_v1, %s584_s22 }
  0x3f   : > { %261 = vrot.lane.b32.xlu1 %v175_v1, %s585_s23  ;;  %259 = vrot.lane.b32.xlu0 %v174_v0, %s585_s23 }
  0x40   : > { %185 = vrot.lane.b32.xlu2 %v172_v2, %s584_s22 }
  0x47   : > { %255 = vrot.lane.b32.xlu1 %v172_v2, %s585_s23  ;;  %187 = vrot.lane.b32.xlu0 %v173_v3, %s584_s22 }
  0x48   : > { %257 = vrot.lane.b32.xlu2 %v173_v3, %s585_s23 }
  0x4f   : > { %368 = vperm.xlu1 %569, %v358_v47   ;;  %363 = vperm.xlu0 %568, %v357_v48  }
  0x50   : > { %373 = vperm.xlu2 %570, %v359_v53  }
  0x57   : > { %378 = vperm.xlu1 %569, %v360_v57  }
  0x6a   : > { %v230_v5 = vpop.permute.xlu2 %229 }
  0x6b   : > { %242 = vst.msk [vmem:[#allocation2 + $0x40] sm:$0xff] %vm241_vm2, %v230_v5 }
  0x72   : > { %v232_v12 = vpop.permute.xlu2 %231  ;;  %v319_v29 = vld [vmem:[#allocation2 + $0x40] sm:$0xff] }
  0x73   : > { %243 = vst.msk [vmem:[#allocation2 + $0x48] sm:$0xff] %vm241_vm2, %v232_v12  ;;  %v524_v12 = vld [vmem:[%s748_s1 + $0x18] sm:$0xf0] }
  0x7a   : > { %v212_v13 = vpop.permute.xlu2 %211  ;;  %v320_v30 = vld [vmem:[#allocation2 + $0x48] sm:$0xff] }
  0x7b   : > { %222 = vst.msk [vmem:[#allocation2 + $0x30] sm:$0xff] %vm219_vm4, %v212_v13  ;;  %v343_v31 = vpack.c.bf16 %v320_v30, %v319_v29 }
  0x81   : > { %v300_v14 = vpop.permute.xlu1 %299  ;;  %v234_v15 = vpop.permute.xlu0 %233 }
  0x82   : > { %309 = vst.msk [vmem:[#allocation2 + $0xd0] sm:$0xff] %vm224_vm1, %v300_v14  ;;  %v282_v16 = vpop.permute.xlu2 %281  ;;  %v317_v42 = vld [vmem:[#allocation2 + $0x30] sm:$0xff] }
  0x83   : > { %244 = vst.msk [vmem:[#allocation2 + $0x50] sm:$0xff] %vm241_vm2, %v234_v15  ;;  %v522_v14 = vld [vmem:[%s748_s1 + $0x10] sm:$0xf]  ;;  %v537_v15 = vld [vmem:[%s748_s1 + $0x14] sm:$0xf0] }
  0x84   : > { %290 = vst.msk [vmem:[#allocation2 + $0xb8] sm:$0xff] %vm202_vm3, %v282_v16 }
  0x89   : > { %v302_v17 = vpop.permute.xlu1 %301  ;;  %v236_v18 = vpop.permute.xlu0 %235  ;;  %v337_v22 = vld [vmem:[#allocation2 + $0xd0] sm:$0xff] }
  0x8a   : > { %310 = vst.msk [vmem:[#allocation2 + $0xd8] sm:$0xff] %vm224_vm1, %v302_v17  ;;  %v276_v19 = vpop.permute.xlu2 %275  ;;  %v321_v24 = vld [vmem:[#allocation2 + $0x50] sm:$0xff] }
  0x8b   : > { %245 = vst.msk [vmem:[#allocation2 + $0x58] sm:$0xff] %vm241_vm2, %v236_v18  ;;  %v334_v38 = vld [vmem:[#allocation2 + $0xb8] sm:$0xff] }
  0x8c   : > { %287 = vst.msk [vmem:[#allocation2 + $0xa0] sm:$0xff] %vm202_vm3, %v276_v19 }
  0x91   : > { %v298_v20 = vpop.permute.xlu1 %297  ;;  %v296_v21 = vpop.permute.xlu0 %295  ;;  %v338_v23 = vld [vmem:[#allocation2 + $0xd8] sm:$0xff] }
  0x92   : > { %308 = vst.msk [vmem:[#allocation2 + $0xc8] sm:$0xff] %vm224_vm1, %v298_v20  ;;  %v322_v25 = vld [vmem:[#allocation2 + $0x58] sm:$0xff]  ;;  %v352_v26 = vpack.c.bf16 %v338_v23, %v337_v22  ;;  %v192_v27 = vpop.permute.xlu2 %191  ;;  %v519_v20 = vor.u32 %v534_v9, %v516_v10  ;;  %v515_v22 = vor.u32 %v535_v8, %v514_v7  ;;  %v523_v23 = vor.u32 %v537_v15, %v522_v14 }
  0x93   : > { %307 = vst.msk [vmem:[#allocation2 + $0xc0] sm:$0xff] %vm224_vm1, %v296_v21  ;;  %v344_v28 = vpack.c.bf16 %v322_v25, %v321_v24  ;;  %v331_v61 = vld [vmem:[#allocation2 + $0xa0] sm:$0xff]  ;;  %v527_v21 = vor.u32 %v536_v11, %v524_v12 }
  0x94   : > { %427 = vmatpush.bf16.msra.mxu1 %v352_v26  ;;  %546 = vmatpush.bf16.msra.mxu3 %v352_v26  ;;  %201 = vst.msk [vmem:[#allocation2 + $0x18] sm:$0xff] %vm197_vm6, %v192_v27 }
  0x95   : > { %408 = vmatpush.bf16.msra.mxu0 %v344_v28  ;;  %540 = vmatpush.bf16.msra.mxu2 %v344_v28 }
  0x99   : > { %409 = vmatpush.bf16.msra.mxu0 %v343_v31  ;;  %541 = vmatpush.bf16.msra.mxu2 %v343_v31  ;;  %v280_v32 = vpop.permute.xlu1 %279  ;;  %v214_v33 = vpop.permute.xlu0 %213  ;;  %v336_v34 = vld [vmem:[#allocation2 + $0xc8] sm:$0xff] }
  0x9a   : > { %289 = vst.msk [vmem:[#allocation2 + $0xb0] sm:$0xff] %vm202_vm3, %v280_v32  ;;  %v335_v35 = vld [vmem:[#allocation2 + $0xc0] sm:$0xff]  ;;  %v186_v36 = vpop.permute.xlu2 %185 }
  0x9b   : > { %223 = vst.msk [vmem:[#allocation2 + $0x38] sm:$0xff] %vm219_vm4, %v214_v33  ;;  %v351_v37 = vpack.c.bf16 %v336_v34, %v335_v35  ;;  %v314_v56 = vld [vmem:[#allocation2 + $0x18] sm:$0xff] }
  0x9c   : > { %198 = vst.msk [vmem:[#allocation2] sm:$0xff] %vm197_vm6, %v186_v36 }
  0x9d   : > { %428 = vmatpush.bf16.msra.mxu1 %v351_v37  ;;  %547 = vmatpush.bf16.msra.mxu3 %v351_v37 }
  0xa1   : > { %v210_v39 = vpop.permute.xlu1 %209  ;;  %v208_v40 = vpop.permute.xlu0 %207  ;;  %v333_v41 = vld [vmem:[#allocation2 + $0xb0] sm:$0xff] }
  0xa2   : > { %221 = vst.msk [vmem:[#allocation2 + $0x28] sm:$0xff] %vm219_vm4, %v210_v39  ;;  %v318_v43 = vld [vmem:[#allocation2 + $0x38] sm:$0xff]  ;;  %v350_v44 = vpack.c.bf16 %v334_v38, %v333_v41  ;;  %v258_v45 = vpop.permute.xlu2 %257 }
  0xa3   : > { %220 = vst.msk [vmem:[#allocation2 + $0x20] sm:$0xff] %vm219_vm4, %v208_v40  ;;  %v342_v46 = vpack.c.bf16 %v318_v43, %v317_v42  ;;  %v311_v16 = vld [vmem:[#allocation2] sm:$0xff] }
  0xa4   : > { %429 = vmatpush.bf16.msra.mxu1 %v350_v44  ;;  %548 = vmatpush.bf16.msra.mxu3 %v350_v44  ;;  %268 = vst.msk [vmem:[#allocation2 + $0x88] sm:$0xff] %vm176_vm5, %v258_v45 }
  0xa5   : > { %410 = vmatpush.bf16.msra.mxu0 %v342_v46  ;;  %542 = vmatpush.bf16.msra.mxu2 %v342_v46 }
  0xa9   : > { %v190_v49 = vpop.permute.xlu1 %189  ;;  %v278_v50 = vpop.permute.xlu0 %277  ;;  %v316_v51 = vld [vmem:[#allocation2 + $0x28] sm:$0xff] }
  0xaa   : > { %200 = vst.msk [vmem:[#allocation2 + $0x10] sm:$0xff] %vm197_vm6, %v190_v49  ;;  %v315_v54 = vld [vmem:[#allocation2 + $0x20] sm:$0xff]  ;;  %v374_v30 = vpop.permute.xlu2 %373 }
  0xab   : > { %288 = vst.msk [vmem:[#allocation2 + $0xa8] sm:$0xff] %vm202_vm3, %v278_v50  ;;  %v341_v55 = vpack.c.bf16 %v316_v51, %v315_v54  ;;  %v328_v6 = vld [vmem:[#allocation2 + $0x88] sm:$0xff] }
  0xad   : > { %411 = vmatpush.bf16.msra.mxu0 %v341_v55  ;;  %543 = vmatpush.bf16.msra.mxu2 %v341_v55 }
  0xb1   : > { %v262_v58 = vpop.permute.xlu1 %261  ;;  %v260_v59 = vpop.permute.xlu0 %259  ;;  %v313_v60 = vld [vmem:[#allocation2 + $0x10] sm:$0xff] }
  0xb2   : > { %270 = vst.msk [vmem:[#allocation2 + $0x98] sm:$0xff] %vm176_vm5, %v262_v58  ;;  %v332_v62 = vld [vmem:[#allocation2 + $0xa8] sm:$0xff]  ;;  %v340_v63 = vpack.c.bf16 %v314_v56, %v313_v60 }
  0xb3   : > { %269 = vst.msk [vmem:[#allocation2 + $0x90] sm:$0xff] %vm176_vm5, %v260_v59  ;;  %v349_v0 = vpack.c.bf16 %v332_v62, %v331_v61 }
  0xb4   : > { %412 = vmatpush.bf16.msra.mxu0 %v340_v63  ;;  %544 = vmatpush.bf16.msra.mxu2 %v340_v63 }
  0xb5   : > { %430 = vmatpush.bf16.msra.mxu1 %v349_v0  ;;  %549 = vmatpush.bf16.msra.mxu3 %v349_v0 }
  0xb9   : > { %v256_v1 = vpop.permute.xlu1 %255  ;;  %v188_v2 = vpop.permute.xlu0 %187  ;;  %v330_v3 = vld [vmem:[#allocation2 + $0x98] sm:$0xff] }
  0xba   : > { %267 = vst.msk [vmem:[#allocation2 + $0x80] sm:$0xff] %vm176_vm5, %v256_v1  ;;  %v329_v4 = vld [vmem:[#allocation2 + $0x90] sm:$0xff] }
  0xbb   : > { %199 = vst.msk [vmem:[#allocation2 + $0x8] sm:$0xff] %vm197_vm6, %v188_v2  ;;  %v348_v5 = vpack.c.bf16 %v330_v3, %v329_v4 }
  0xbd   : > { %431 = vmatpush.bf16.msra.mxu1 %v348_v5  ;;  %550 = vmatpush.bf16.msra.mxu3 %v348_v5 }
  0xc1   : > { %v327_v13 = vld [vmem:[#allocation2 + $0x80] sm:$0xff]  ;;  %v364_v24 = vpop.permute.xlu0 %363  ;;  %v369_v29 = vpop.permute.xlu1 %368 }
  0xc2   : > { %v312_v17 = vld [vmem:[#allocation2 + $0x8] sm:$0xff]  ;;  %v347_v18 = vpack.c.bf16 %v328_v6, %v327_v13 }
  0xc3   : > { %v339_v19 = vpack.c.bf16 %v312_v17, %v311_v16 }
  0xc4   : > { %432 = vmatpush.bf16.msra.mxu1 %v347_v18  ;;  %551 = vmatpush.bf16.msra.mxu3 %v347_v18 }
  0xc5   : > { %413 = vmatpush.bf16.msra.mxu0 %v339_v19  ;;  %545 = vmatpush.bf16.msra.mxu2 %v339_v19 }
  0xc7   : > { %528 = vmatmul.msk.bf16.vlgmr.msra.gmra.mxu1 %vm399_vm7, %v519_v20  ;;  %529 = vmatmul.msk.bf16.vlgmr.msra.gmra.mxu3 %vm399_vm7, %v527_v21 }
  0xc8   : > { %414 = vmatmul.bf16.vlgmr.msra.gmra.mxu0 %v515_v22  ;;  %419 = vmatmul.bf16.vlgmr.msra.gmra.mxu2 %v523_v23 }
  0xc9   : > { %v379_v39 = vpop.permute.xlu1 %378 }
 0x144   : > { %v434_v26 = vpop.f32.mrf.mxu1 }
 0x145   : > { %v415_v25 = vpop.f32.mrf.mxu0 }
 0x146   : > { %v416_v27 = vadd.f32 %v415_v25, %v364_v24 }
 0x148   : > { %v435_v28 = vadd.f32 %v434_v26, %v416_v27 }
 0x14a   : > { %444 = vst.msk [vmem:[%s170_s26] sm:$0xff] %vm246_vm0, %v435_v28  ;;  %v439_v31 = vpop.f32.mrf.mxu3 }
 0x14b   : > { %v420_v32 = vpop.f32.mrf.mxu2 }
 0x14c   : > { %v421_v33 = vadd.f32 %v420_v32, %v374_v30  ;;  %v436_v37 = vpop.f32.mrf.mxu1 }
 0x14d   : > { %v417_v34 = vpop.f32.mrf.mxu0 }
 0x14e   : > { %v440_v35 = vadd.f32 %v439_v31, %v421_v33  ;;  %v418_v36 = vadd.f32 %v417_v34, %v369_v29 }
 0x150   : > { %446 = vst.msk [vmem:[%s170_s26 + $0x10] sm:$0xff] %vm246_vm0, %v440_v35  ;;  %v437_v38 = vadd.f32 %v436_v37, %v418_v36 }
 0x152   : > { %445 = vst.msk [vmem:[%s170_s26 + $0x8] sm:$0xff] %vm246_vm0, %v437_v38  ;;  %v441_v42 = vpop.f32.mrf.mxu3 }
 0x153   : > { %v422_v40 = vpop.f32.mrf.mxu2 }
 0x154   : > { %v423_v41 = vadd.f32 %v422_v40, %v379_v39 }
 0x156   : > { %v442_v43 = vadd.f32 %v441_v42, %v423_v41 }
 0x158   : > { %447 = vst.msk [vmem:[%s170_s26 + $0x18] sm:$0xff] %vm246_vm0, %v442_v43 }
 0x159 PF: > { %s13_s12 = sadd.s32 1, %s577_s12  }
 0x15a   : > { %p10_p4 = scmp.ge.s32.totalorder %s13_s12, 4  }
 0x15c   :  { %12 = sbr.rel (!%p10_p4) target bundleno = 1 (0x1), region = 62 }

// kernel: tile.13
= control target key start
LH: loop header
LB: loop body
LE: loop exit
PB: predicated region body
PF: predicated region fallthrough
CT: control target
= control target key end

     0   :  { %s22_s0 = inlined_call_operand.vmem [shape: f32[16], index: 0, kind: input, shape index: {}]   ;;  %s23_s1 = inlined_call_operand.vmem [shape: f32[2,16], index: 1, kind: output, shape index: {}]  }
   0x1   :  { %v4_v0 = vld [vmem:[%s22_s0] ss:$0 sm:$0xff] }
   0x2   :  { %5 = vst [vmem:[%s23_s1] sm:$0x3] %v4_v0 }

// kernel: tile.0
= control target key start
LH: loop header
LB: loop body
LE: loop exit
PB: predicated region body
PF: predicated region fallthrough
CT: control target
= control target key end

     0   :  { %s130_s8 = smov 127   ;;  %s131_s9 = smov 123   ;;  %vm7_vm0 = vcmask 7168   ;;  %s221_s0 = inlined_call_operand.vmem [shape: f32[2,16], index: 0, kind: input, shape index: {}]   ;;  %s222_s1 = inlined_call_operand.vmem [shape: f32[32,1], index: 1, kind: output, shape index: {}]  }
   0x1   :  { %v4_v0 = vld [vmem:[%s221_s0] sm:$0x3]  ;;  %s129_s0 = smov 125   ;;  %s132_s10 = smov 124  }
   0x2   :  { %5 = vst [vmem:[#allocation0] sm:$0x3] %v4_v0  ;;  %s133_s11 = smov 126   ;;  %s134_s12 = smov 122  }
   0x3   :  { %s135_s13 = smov 120   ;;  %s136_s14 = smov 121  }
   0x4   :  { %s137_s15 = smov 119   ;;  %s138_s16 = smov 117  }
   0x5   :  { %s139_s17 = smov 118   ;;  %s140_s18 = smov 116  }
   0x6   :  { %s141_s19 = smov 114   ;;  %s142_s20 = smov 115  }
   0x7   :  { %s143_s21 = smov 113  }
   0x9   :  { %v21_v1 = vld [vmem:[#allocation0] sm:$0x3]  }
   0xa   :  { %v9_v2 = vld [vmem:[#allocation0] sm:$0x3]   ;;  %22 = vrot.lane.b32.xlu1 %v21_v1, %s129_s0 }
   0xb   :  { %10 = vrot.lane.b32.xlu0 %v9_v2, %s130_s8  ;;  %v33_v3 = vld [vmem:[#allocation0] sm:$0x3]  }
   0xc   :  { %34 = vrot.lane.b32.xlu2 %v33_v3, %s131_s9  ;;  %v27_v4 = vld [vmem:[#allocation0] sm:$0x3]  }
   0xd   :  { %v15_v5 = vld [vmem:[#allocation0] sm:$0x3]  }
   0xe   :  { %v39_v6 = vld [vmem:[#allocation0] sm:$0x3]  }
   0xf   :  { %v51_v7 = vld [vmem:[#allocation0] sm:$0x3]  }
  0x10   :  { %v45_v8 = vld [vmem:[#allocation0] sm:$0x3]  }
  0x11   :  { %v57_v9 = vld [vmem:[#allocation0] sm:$0x3]  }
  0x12   :  { %28 = vrot.lane.b32.xlu1 %v27_v4, %s132_s10  ;;  %v69_v10 = vld [vmem:[#allocation0] sm:$0x3]  }
  0x13   :  { %16 = vrot.lane.b32.xlu0 %v15_v5, %s133_s11  ;;  %v63_v11 = vld [vmem:[#allocation0] sm:$0x3]  }
  0x14   :  { %40 = vrot.lane.b32.xlu2 %v39_v6, %s134_s12  ;;  %v75_v12 = vld [vmem:[#allocation0] sm:$0x3]  }
  0x15   :  { %v87_v13 = vld [vmem:[#allocation0] sm:$0x3]  }
  0x16   :  { %v81_v14 = vld [vmem:[#allocation0] sm:$0x3]  }
  0x17   :  { %v93_v15 = vld [vmem:[#allocation0] sm:$0x3]  }
  0x18   :  { %v6_v21 = vld [vmem:[#allocation0] sm:$0x3]  }
  0x19   :  { %8 = vst.msk [vmem:[%s222_s1] ss:$16 sm:$0x3] %vm7_vm0, %v6_v21  }
  0x1a   :  { %52 = vrot.lane.b32.xlu1 %v51_v7, %s135_s13 }
  0x1b   :  { %46 = vrot.lane.b32.xlu0 %v45_v8, %s136_s14 }
  0x1c   :  { %58 = vrot.lane.b32.xlu2 %v57_v9, %s137_s15 }
  0x22   :  { %70 = vrot.lane.b32.xlu1 %v69_v10, %s138_s16 }
  0x23   :  { %64 = vrot.lane.b32.xlu0 %v63_v11, %s139_s17 }
  0x24   :  { %76 = vrot.lane.b32.xlu2 %v75_v12, %s140_s18 }
  0x2a   :  { %88 = vrot.lane.b32.xlu1 %v87_v13, %s141_s19 }
  0x2b   :  { %82 = vrot.lane.b32.xlu0 %v81_v14, %s142_s20 }
  0x2c   :  { %94 = vrot.lane.b32.xlu2 %v93_v15, %s143_s21 }
  0x66   :  { %v35_v16 = vpop.permute.xlu2 %34  }
  0x67   :  { %103 = vst.msk [vmem:[%s222_s1 + $0x5] ss:$16 sm:$0x3] %vm7_vm0, %v35_v16  }
  0x6e   :  { %v41_v17 = vpop.permute.xlu2 %40  }
  0x6f   :  { %104 = vst.msk [vmem:[%s222_s1 + $0x6] ss:$16 sm:$0x3] %vm7_vm0, %v41_v17  }
  0x76   :  { %v59_v18 = vpop.permute.xlu2 %58  }
  0x77   :  { %107 = vst.msk [vmem:[%s222_s1 + $0x9] ss:$16 sm:$0x3] %vm7_vm0, %v59_v18  }
  0x7c   :  { %v23_v19 = vpop.permute.xlu1 %22  }
  0x7d   :  { %v11_v20 = vpop.permute.xlu0 %10   ;;  %101 = vst.msk [vmem:[%s222_s1 + $0x3] ss:$16 sm:$0x3] %vm7_vm0, %v23_v19  }
  0x7e   :  { %99 = vst.msk [vmem:[%s222_s1 + $0x1] ss:$16 sm:$0x3] %vm7_vm0, %v11_v20   ;;  %v77_v22 = vpop.permute.xlu2 %76  }
  0x7f   :  { %110 = vst.msk [vmem:[%s222_s1 + $0xc] ss:$16 sm:$0x3] %vm7_vm0, %v77_v22  }
  0x84   :  { %v29_v23 = vpop.permute.xlu1 %28  }
  0x85   :  { %v17_v24 = vpop.permute.xlu0 %16   ;;  %102 = vst.msk [vmem:[%s222_s1 + $0x4] ss:$16 sm:$0x3] %vm7_vm0, %v29_v23  }
  0x86   :  { %100 = vst.msk [vmem:[%s222_s1 + $0x2] ss:$16 sm:$0x3] %vm7_vm0, %v17_v24   ;;  %v95_v25 = vpop.permute.xlu2 %94  }
  0x87   :  { %113 = vst.msk [vmem:[%s222_s1 + $0xf] ss:$16 sm:$0x3] %vm7_vm0, %v95_v25  }
  0x8c   :  { %v53_v26 = vpop.permute.xlu1 %52  }
  0x8d   :  { %v47_v27 = vpop.permute.xlu0 %46   ;;  %106 = vst.msk [vmem:[%s222_s1 + $0x8] ss:$16 sm:$0x3] %vm7_vm0, %v53_v26  }
  0x8e   :  { %105 = vst.msk [vmem:[%s222_s1 + $0x7] ss:$16 sm:$0x3] %vm7_vm0, %v47_v27  }
  0x94   :  { %v71_v28 = vpop.permute.xlu1 %70  }
  0x95   :  { %v65_v29 = vpop.permute.xlu0 %64   ;;  %109 = vst.msk [vmem:[%s222_s1 + $0xb] ss:$16 sm:$0x3] %vm7_vm0, %v71_v28  }
  0x96   :  { %108 = vst.msk [vmem:[%s222_s1 + $0xa] ss:$16 sm:$0x3] %vm7_vm0, %v65_v29  }
  0x9c   :  { %v89_v30 = vpop.permute.xlu1 %88  }
  0x9d   :  { %v83_v31 = vpop.permute.xlu0 %82   ;;  %112 = vst.msk [vmem:[%s222_s1 + $0xe] ss:$16 sm:$0x3] %vm7_vm0, %v89_v30  }
  0x9e   :  { %111 = vst.msk [vmem:[%s222_s1 + $0xd] ss:$16 sm:$0x3] %vm7_vm0, %v83_v31  }

// kernel: synthesizer_forward.36
= control target key start
LH: loop header
LB: loop body
LE: loop exit
PB: predicated region body
PF: predicated region fallthrough
CT: control target
= control target key end

     0   :  { %s460_s12 = smov 0   ;;  %s514_s0 = inlined_call_operand.vmem [shape: f32[2,32,4], index: 0, kind: input, shape index: {}]   ;;  %s515_s1 = inlined_call_operand.vmem [shape: bf16[32,96], index: 1, kind: input, shape index: {}]   ;;  %s516_s2 = inlined_call_operand.vmem [shape: f32[32,1], index: 2, kind: input, shape index: {}]   ;;  %s517_s3 = inlined_call_operand.vmem [shape: f32[2,32,4], index: 3, kind: output, shape index: {}]  }
   0x1 LB: > { %s382_s13 = sadd.s32 4294967295, %s434_s12   ;;  %p386_p0 = scmp.ge.s32.totalorder %s434_s12, 1  ;;  %s434_s12 = sphi %s460_s12, %s13_s12  }
   0x2   : > { %p137_p1 = scmp.lt.s32.totalorder %s434_s12, 3 }
   0x4   : > { %p138_p2 = pnand %p386_p0, %p137_p1 }
   0x5   : > { %p161_p3 = scmp.lt.s32.totalorder (!%p138_p2), %s382_s13, 1  ;;  %s437_s18 = smov (!%p138_p2), 127  }
   0x6   : > { %141 = sbr.rel (%p138_p2) target bundleno = 312 (0x138), region = 32  ;;  %s438_s19 = smov (!%p138_p2), 1  }
   0xb   : > { %vm219_vm0 = vcmask 31768   ;;  %v436_v0 = vmov 0.0   ;;  %s519_s13 = smov (!%p161_p3, %s382_s13), 1  ;;  %vm214_vm1 = vcmask 31744   ;;  %vm188_vm6 = vcmask 7168   ;;  %v265_v19 = vld [vmem:[%s516_s2 + $0x10] sm:$0xff] }
   0xc   : > { %222 = vst.msk [vmem:[#allocation2 + $0x50] sm:$0xff] %vm219_vm0, %v436_v0  ;;  %s403_s14 = sshll.u32 %s519_s13, 5  ;;  %vm209_vm7 = vcmask 31752   ;;  %vm236_vm8 = vcmask 23552   ;;  %v264_v20 = vld [vmem:[%s516_s2 + $0x8] sm:$0xff]  ;;  %v439_v21 = vmov 0  }
   0xd   : > { %220 = vst.msk [vmem:[#allocation2 + $0x40] sm:$0xff] %vm219_vm0, %v436_v0  ;;  %s165_s17 = scalar_lea.vmem %s514_s0, %s403_s14  ;;  %427 = vset.pattern.permute.xlu1 %v439_v21  ;;  %426 = vset.pattern.permute.xlu0 %v439_v21  ;;  %v263_v22 = vld [vmem:[%s516_s2] sm:$0xff]  ;;  %v266_v29 = vld [vmem:[%s516_s2 + $0x18] sm:$0xff]  ;;  %v406_v45 = vld [vmem:[%s515_s1 + $0x8] sm:$0xff]  ;;  %vm297_vm9 = vcmask 785408   ;;  %s170_s7 = scalar_lea.vmem %s517_s3, %s403_s14 }
   0xe   : > { %221 = vst.msk [vmem:[#allocation2 + $0x48] sm:$0xff] %vm219_vm0, %v436_v0  ;;  %v174_v1 = vld [vmem:[%s165_s17 + $0x10] sm:$0xff]  ;;  %v172_v2 = vld [vmem:[%s165_s17] sm:$0xff]  ;;  %v175_v3 = vld [vmem:[%s165_s17 + $0x18] sm:$0xff]  ;;  %425 = vset.pattern.permute.xlu2 %v439_v21 }
   0xf   : > { %223 = vst.msk [vmem:[#allocation2 + $0x58] sm:$0xff] %vm219_vm0, %v436_v0  ;;  %vm178_vm2 = vcmp.ge.f32.partialorder %v174_v1, 0.0  ;;  %v182_v4 = vmul.f32 0.1, %v174_v1  ;;  %vm176_vm3 = vcmp.ge.f32.partialorder %v172_v2, 0.0  ;;  %vm179_vm4 = vcmp.ge.f32.partialorder %v175_v3, 0.0 }
  0x10   : > { %v180_v5 = vmul.f32 0.1, %v172_v2  ;;  %v183_v6 = vmul.f32 0.1, %v175_v3  ;;  %v173_v7 = vld [vmem:[%s165_s17 + $0x8] sm:$0xff]  ;;  %191 = vst.msk [vmem:[#allocation2 + $0x10] sm:$0xff] %vm188_vm6, %v436_v0 }
  0x11   : > { %v186_v8 = vsel %vm178_vm2, %v174_v1, %v182_v4  ;;  %vm177_vm5 = vcmp.ge.f32.partialorder %v173_v7, 0.0  ;;  %v181_v10 = vmul.f32 0.1, %v173_v7  ;;  %189 = vst.msk [vmem:[#allocation2] sm:$0xff] %vm188_vm6, %v436_v0  ;;  %v405_v44 = vld [vmem:[%s515_s1] sm:$0xff] }
  0x12   : > { %v184_v9 = vsel %vm176_vm3, %v172_v2, %v180_v5  ;;  %228 = vrot.lane.b32.xlu0 %v186_v8, %s437_s18  ;;  %217 = vst.msk [vmem:[#allocation2 + $0x30] sm:$0xff] %vm214_vm1, %v186_v8  ;;  %v187_v11 = vsel %vm179_vm4, %v175_v3, %v183_v6  ;;  %201 = vrot.lane.b32.xlu2 %v186_v8, %s438_s19 }
  0x13   : > { %224 = vrot.lane.b32.xlu1 %v184_v9, %s437_s18  ;;  %215 = vst.msk [vmem:[#allocation2 + $0x20] sm:$0xff] %vm214_vm1, %v184_v9  ;;  %v185_v12 = vsel %vm177_vm5, %v173_v7, %v181_v10 }
  0x14   : > { %218 = vst.msk [vmem:[#allocation2 + $0x38] sm:$0xff] %vm214_vm1, %v187_v11 }
  0x15   : > { %216 = vst.msk [vmem:[#allocation2 + $0x28] sm:$0xff] %vm214_vm1, %v185_v12 }
  0x16   : > { %190 = vst.msk [vmem:[#allocation2 + $0x8] sm:$0xff] %vm188_vm6, %v436_v0 }
  0x17   : > { %192 = vst.msk [vmem:[#allocation2 + $0x18] sm:$0xff] %vm188_vm6, %v436_v0 }
  0x19   : > { %v247_v31 = vld [vmem:[#allocation2 + $0x30] sm:$0xff] }
  0x1a   : > { %230 = vrot.lane.b32.xlu0 %v187_v11, %s437_s18  ;;  %203 = vrot.lane.b32.xlu2 %v187_v11, %s438_s19  ;;  %v245_v35 = vld [vmem:[#allocation2 + $0x20] sm:$0xff] }
  0x1b   : > { %226 = vrot.lane.b32.xlu1 %v185_v12, %s437_s18  ;;  %v248_v32 = vld [vmem:[#allocation2 + $0x38] sm:$0xff] }
  0x1c   : > { %v256_v34 = vpack.c.bf16 %v248_v32, %v247_v31  ;;  %v246_v36 = vld [vmem:[#allocation2 + $0x28] sm:$0xff] }
  0x1d   : > { %v255_v37 = vpack.c.bf16 %v246_v36, %v245_v35 }
  0x22   : > { %197 = vrot.lane.b32.xlu0 %v184_v9, %s438_s19  ;;  %269 = vperm.xlu2 %425, %v263_v22  }
  0x23   : > { %199 = vrot.lane.b32.xlu1 %v185_v12, %s438_s19 }
  0x2a   : > { %274 = vperm.xlu0 %426, %v264_v20   ;;  %284 = vperm.xlu2 %425, %v266_v29  }
  0x2b   : > { %279 = vperm.xlu1 %427, %v265_v19  }
  0x6c   : > { %v202_v13 = vpop.permute.xlu2 %201 }
  0x6d   : > { %212 = vst.msk [vmem:[#allocation2 + $0x10] sm:$0xff] %vm209_vm7, %v202_v13 }
  0x74   : > { %v204_v14 = vpop.permute.xlu2 %203  ;;  %v243_v38 = vld [vmem:[#allocation2 + $0x10] sm:$0xff] }
  0x75   : > { %213 = vst.msk [vmem:[#allocation2 + $0x18] sm:$0xff] %vm209_vm7, %v204_v14 }
  0x7c   : > { %v244_v39 = vld [vmem:[#allocation2 + $0x18] sm:$0xff]  ;;  %v270_v46 = vpop.permute.xlu2 %269 }
  0x7d   : > { %v254_v42 = vpack.c.bf16 %v244_v39, %v243_v38 }
  0x84   : > { %v229_v15 = vpop.permute.xlu0 %228  ;;  %v285_v53 = vpop.permute.xlu2 %284 }
  0x85   : > { %v225_v16 = vpop.permute.xlu1 %224  ;;  %239 = vst.msk [vmem:[#allocation2 + $0x50] sm:$0xff] %vm236_vm8, %v229_v15 }
  0x86   : > { %237 = vst.msk [vmem:[#allocation2 + $0x40] sm:$0xff] %vm236_vm8, %v225_v16 }
  0x8c   : > { %v231_v17 = vpop.permute.xlu0 %230  ;;  %v251_v23 = vld [vmem:[#allocation2 + $0x50] sm:$0xff] }
  0x8d   : > { %v227_v18 = vpop.permute.xlu1 %226  ;;  %240 = vst.msk [vmem:[#allocation2 + $0x58] sm:$0xff] %vm236_vm8, %v231_v17  ;;  %v249_v30 = vld [vmem:[#allocation2 + $0x40] sm:$0xff] }
  0x8e   : > { %238 = vst.msk [vmem:[#allocation2 + $0x48] sm:$0xff] %vm236_vm8, %v227_v18 }
  0x94   : > { %v252_v24 = vld [vmem:[#allocation2 + $0x58] sm:$0xff]  ;;  %v198_v25 = vpop.permute.xlu0 %197 }
  0x95   : > { %v200_v26 = vpop.permute.xlu1 %199  ;;  %v258_v27 = vpack.c.bf16 %v252_v24, %v251_v23  ;;  %210 = vst.msk [vmem:[#allocation2] sm:$0xff] %vm209_vm7, %v198_v25  ;;  %v250_v28 = vld [vmem:[#allocation2 + $0x48] sm:$0xff] }
  0x96   : > { %211 = vst.msk [vmem:[#allocation2 + $0x8] sm:$0xff] %vm209_vm7, %v200_v26  ;;  %v257_v33 = vpack.c.bf16 %v250_v28, %v249_v30 }
  0x97   : > { %306 = vmatpush.bf16.msra.mxu0 %v258_v27  ;;  %407 = vmatpush.bf16.msra.mxu1 %v258_v27 }
  0x9b   : > { %307 = vmatpush.bf16.msra.mxu0 %v257_v33  ;;  %408 = vmatpush.bf16.msra.mxu1 %v257_v33 }
  0x9c   : > { %v241_v40 = vld [vmem:[#allocation2] sm:$0xff]  ;;  %v275_v52 = vpop.permute.xlu0 %274 }
  0x9d   : > { %v242_v41 = vld [vmem:[#allocation2 + $0x8] sm:$0xff]  ;;  %v280_v47 = vpop.permute.xlu1 %279 }
  0x9e   : > { %v253_v43 = vpack.c.bf16 %v242_v41, %v241_v40 }
  0x9f   : > { %308 = vmatpush.bf16.msra.mxu0 %v256_v34  ;;  %409 = vmatpush.bf16.msra.mxu1 %v256_v34 }
  0xa3   : > { %309 = vmatpush.bf16.msra.mxu0 %v255_v37  ;;  %410 = vmatpush.bf16.msra.mxu1 %v255_v37 }
  0xa7   : > { %310 = vmatpush.bf16.msra.mxu0 %v254_v42  ;;  %411 = vmatpush.bf16.msra.mxu1 %v254_v42 }
  0xab   : > { %311 = vmatpush.bf16.msra.mxu0 %v253_v43  ;;  %412 = vmatpush.bf16.msra.mxu1 %v253_v43 }
  0xae   : > { %399 = vmatmul.msk.bf16.vlgmr.msra.gmra.mxu0 %vm297_vm9, %v405_v44  ;;  %400 = vmatmul.msk.bf16.vlgmr.msra.gmra.mxu1 %vm297_vm9, %v406_v45 }
 0x12b   : > { %v313_v48 = vpop.f32.mrf.mxu0  ;;  %v318_v49 = vpop.f32.mrf.mxu1 }
 0x12c   : > { %v314_v50 = vadd.f32 %v313_v48, %v270_v46  ;;  %v319_v51 = vadd.f32 %v318_v49, %v280_v47 }
 0x12e   : > { %323 = vst.msk [vmem:[%s170_s7] sm:$0xff] %vm214_vm1, %v314_v50 }
 0x12f   : > { %325 = vst.msk [vmem:[%s170_s7 + $0x10] sm:$0xff] %vm214_vm1, %v319_v51 }
 0x133   : > { %v315_v54 = vpop.f32.mrf.mxu0  ;;  %v320_v55 = vpop.f32.mrf.mxu1 }
 0x134   : > { %v316_v56 = vadd.f32 %v315_v54, %v275_v52  ;;  %v321_v57 = vadd.f32 %v320_v55, %v285_v53 }
 0x136   : > { %324 = vst.msk [vmem:[%s170_s7 + $0x8] sm:$0xff] %vm214_vm1, %v316_v56 }
 0x137   : > { %326 = vst.msk [vmem:[%s170_s7 + $0x18] sm:$0xff] %vm214_vm1, %v321_v57 }
 0x138 PF: > { %s13_s12 = sadd.s32 1, %s434_s12  }
 0x139   : > { %p10_p4 = scmp.ge.s32.totalorder %s13_s12, 4  }
 0x13b   :  { %12 = sbr.rel (!%p10_p4) target bundleno = 1 (0x1), region = 62 }

// kernel: tile.18
= control target key start
LH: loop header
LB: loop body
LE: loop exit
PB: predicated region body
PF: predicated region fallthrough
CT: control target
= control target key end

     0   :  { %s22_s0 = inlined_call_operand.vmem [shape: f32[8], index: 0, kind: input, shape index: {}]   ;;  %s23_s1 = inlined_call_operand.vmem [shape: f32[2,8], index: 1, kind: output, shape index: {}]  }
   0x1   :  { %v4_v0 = vld [vmem:[%s22_s0] ss:$0 sm:$0xff] }
   0x2   :  { %5 = vst [vmem:[%s23_s1] sm:$0x3] %v4_v0 }

// kernel: tile.1
= control target key start
LH: loop header
LB: loop body
LE: loop exit
PB: predicated region body
PF: predicated region fallthrough
CT: control target
= control target key end

     0   :  { %s66_s8 = smov 125   ;;  %s67_s9 = smov 123   ;;  %vm7_vm0 = vcmask 7168   ;;  %s117_s0 = inlined_call_operand.vmem [shape: f32[2,8], index: 0, kind: input, shape index: {}]   ;;  %s118_s1 = inlined_call_operand.vmem [shape: f32[16,1], index: 1, kind: output, shape index: {}]  }
   0x1   :  { %v4_v0 = vld [vmem:[%s117_s0] sm:$0x3]  ;;  %s65_s0 = smov 127   ;;  %s68_s10 = smov 126  }
   0x2   :  { %5 = vst [vmem:[#allocation0] sm:$0x3] %v4_v0  ;;  %s69_s11 = smov 124   ;;  %s70_s12 = smov 122  }
   0x3   :  { %s71_s13 = smov 121  }
   0x9   :  { %v9_v1 = vld [vmem:[#allocation0] sm:$0x3]  }
   0xa   :  { %v21_v2 = vld [vmem:[#allocation0] sm:$0x3]   ;;  %10 = vrot.lane.b32.xlu0 %v9_v1, %s65_s0 }
   0xb   :  { %22 = vrot.lane.b32.xlu1 %v21_v2, %s66_s8  ;;  %v33_v3 = vld [vmem:[#allocation0] sm:$0x3]  }
   0xc   :  { %34 = vrot.lane.b32.xlu2 %v33_v3, %s67_s9  ;;  %v15_v4 = vld [vmem:[#allocation0] sm:$0x3]  }
   0xd   :  { %v27_v5 = vld [vmem:[#allocation0] sm:$0x3]  }
   0xe   :  { %v39_v6 = vld [vmem:[#allocation0] sm:$0x3]  }
   0xf   :  { %v45_v7 = vld [vmem:[#allocation0] sm:$0x3]  }
  0x10   :  { %v6_v8 = vld [vmem:[#allocation0] sm:$0x3]  }
  0x11   :  { %8 = vst.msk [vmem:[%s118_s1] ss:$8 sm:$0x3] %vm7_vm0, %v6_v8  }
  0x12   :  { %16 = vrot.lane.b32.xlu0 %v15_v4, %s68_s10 }
  0x13   :  { %28 = vrot.lane.b32.xlu1 %v27_v5, %s69_s11 }
  0x14   :  { %40 = vrot.lane.b32.xlu2 %v39_v6, %s70_s12 }
  0x1a   :  { %46 = vrot.lane.b32.xlu0 %v45_v7, %s71_s13 }
  0x66   :  { %v35_v9 = vpop.permute.xlu2 %34  }
  0x67   :  { %55 = vst.msk [vmem:[%s118_s1 + $0x5] ss:$8 sm:$0x3] %vm7_vm0, %v35_v9  }
  0x6e   :  { %v41_v10 = vpop.permute.xlu2 %40  }
  0x6f   :  { %56 = vst.msk [vmem:[%s118_s1 + $0x6] ss:$8 sm:$0x3] %vm7_vm0, %v41_v10  }
  0x7c   :  { %v11_v11 = vpop.permute.xlu0 %10  }
  0x7d   :  { %v23_v12 = vpop.permute.xlu1 %22   ;;  %51 = vst.msk [vmem:[%s118_s1 + $0x1] ss:$8 sm:$0x3] %vm7_vm0, %v11_v11  }
  0x7e   :  { %53 = vst.msk [vmem:[%s118_s1 + $0x3] ss:$8 sm:$0x3] %vm7_vm0, %v23_v12  }
  0x84   :  { %v17_v13 = vpop.permute.xlu0 %16  }
  0x85   :  { %v29_v14 = vpop.permute.xlu1 %28   ;;  %52 = vst.msk [vmem:[%s118_s1 + $0x2] ss:$8 sm:$0x3] %vm7_vm0, %v17_v13  }
  0x86   :  { %54 = vst.msk [vmem:[%s118_s1 + $0x4] ss:$8 sm:$0x3] %vm7_vm0, %v29_v14  }
  0x8c   :  { %v47_v15 = vpop.permute.xlu0 %46  }
  0x8d   :  { %57 = vst.msk [vmem:[%s118_s1 + $0x7] ss:$8 sm:$0x3] %vm7_vm0, %v47_v15  }

// kernel: synthesizer_forward.37
= control target key start
LH: loop header
LB: loop body
LE: loop exit
PB: predicated region body
PF: predicated region fallthrough
CT: control target
= control target key end

     0   :  { %s709_s18 = smov 0   ;;  %s859_s0 = inlined_call_operand.vmem [shape: f32[2,16,8], index: 0, kind: input, shape index: {}]   ;;  %s860_s1 = inlined_call_operand.vmem [shape: bf16[2,16,48], index: 1, kind: input, shape index: {}]   ;;  %s861_s2 = inlined_call_operand.vmem [shape: f32[2,16,1], index: 2, kind: input, shape index: {}]   ;;  %s862_s3 = inlined_call_operand.vmem [shape: bf16[2,16,48], index: 3, kind: input, shape index: {}]   ;;  %s863_s4 = inlined_call_operand.vmem [shape: f32[2,16,1], index: 4, kind: input, shape index: {}]   ;;  %s864_s5 = inlined_call_operand.vmem [shape: f32[2,16,8], index: 5, kind: output, shape index: {}]  }
   0x1 LB: > { %s603_s19 = sadd.s32 4294967295, %s671_s18   ;;  %p607_p0 = scmp.ge.s32.totalorder %s671_s18, 1  ;;  %s671_s18 = sphi %s709_s18, %s15_s18  }
   0x2   : > { %p187_p1 = scmp.lt.s32.totalorder %s671_s18, 3 }
   0x4   : > { %p188_p2 = pnand %p607_p0, %p187_p1 }
   0x5   : > { %p215_p3 = scmp.lt.s32.totalorder (!%p188_p2), %s603_s19, 1  ;;  %s674_s24 = smov (!%p188_p2), 1  }
   0x6   : > { %191 = sbr.rel (%p188_p2) target bundleno = 1141 (0x475), region = 40  ;;  %s675_s25 = smov (!%p188_p2), 127  }
   0x7   : > { %s677_s13 = smov (!%p188_p2), 3   ;;  %s678_s14 = smov (!%p188_p2), 125  }
   0xb   : > { %vm234_vm0 = vcmask 7168   ;;  %v673_v0 = vmov 0.0   ;;  %s866_s19 = smov (!%p215_p3, %s603_s19), 1  ;;  %vm248_vm1 = vcmask 64512   ;;  %vm251_vm4 = vcmask 64568   ;;  %v274_v7 = vld [vmem:[%s861_s2] sm:$0xff] }
   0xc   : > { %235 = vst.msk [vmem:[#allocation2] sm:$0xff] %vm234_vm0, %v673_v0  ;;  %s642_s20 = sshll.u32 %s866_s19, 4  ;;  %vm245_vm5 = vcmask 64520   ;;  %vm260_vm6 = vcmask 56320   ;;  %v676_v10 = vmov 0   ;;  %v275_v11 = vld [vmem:[%s861_s2 + $0x8] sm:$0xff] }
   0xd   : > { %236 = vst.msk [vmem:[#allocation2 + $0x8] sm:$0xff] %vm234_vm0, %v673_v0  ;;  %s219_s23 = scalar_lea.vmem %s859_s0, %s642_s20  ;;  %662 = vset.pattern.permute.xlu2 %v676_v10  ;;  %663 = vset.pattern.permute.xlu1 %v676_v10  ;;  %v644_v23 = vld [vmem:[%s860_s1] sm:$0xff]  ;;  %vm291_vm7 = vcmask 392192   ;;  %v351_v33 = vld [vmem:[%s863_s4 + $0x8] sm:$0xff]  ;;  %vm392_vm10 = vcmask 23552   ;;  %v625_v61 = vld [vmem:[%s861_s2 + $0x18] sm:$0xff]  ;;  %s224_s7 = scalar_lea.vmem %s864_s5, %s642_s20 }
   0xe   : > { %v729_v1 = vld [vmem:[%s219_s23] sm:$0xff]  ;;  %v731_v2 = vld [vmem:[%s219_s23 + $0x8] sm:$0xff]  ;;  %252 = vst.msk [vmem:[#allocation2 + $0x20] sm:$0xff] %vm251_vm4, %v673_v0  ;;  %278 = vperm.xlu2 %662, %v274_v7   ;;  %664 = vset.pattern.permute.xlu0 %v676_v10  ;;  %v624_v63 = vld [vmem:[%s861_s2 + $0x10] sm:$0xff]  ;;  %vm408_vm13 = vcmask 64552   ;;  %vm403_vm14 = vcmask 64536  }
   0xf   : > { %vm228_vm2 = vcmp.ge.f32.partialorder %v729_v1, 0.0  ;;  %v230_v3 = vmul.f32 0.1, %v729_v1  ;;  %vm229_vm3 = vcmp.ge.f32.partialorder %v731_v2, 0.0  ;;  %v231_v4 = vmul.f32 0.1, %v731_v2 }
  0x10   : > { %253 = vst.msk [vmem:[#allocation2 + $0x28] sm:$0xff] %vm251_vm4, %v673_v0  ;;  %v350_v36 = vld [vmem:[%s863_s4] sm:$0xff]  ;;  %vm417_vm15 = vcmask 39936  }
  0x11   : > { %v232_v5 = vsel %vm228_vm2, %v729_v1, %v230_v3  ;;  %v233_v6 = vsel %vm229_vm3, %v731_v2, %v231_v4  ;;  %v645_v49 = vld [vmem:[%s862_s3] sm:$0xff] }
  0x12   : > { %239 = vrot.lane.b32.xlu1 %v232_v5, %s674_s24  ;;  %249 = vst.msk [vmem:[#allocation2 + $0x10] sm:$0xff] %vm248_vm1, %v232_v5  ;;  %254 = vrot.lane.b32.xlu0 %v232_v5, %s675_s25 }
  0x13   : > { %250 = vst.msk [vmem:[#allocation2 + $0x18] sm:$0xff] %vm248_vm1, %v233_v6 }
  0x16   : > { %283 = vperm.xlu2 %662, %v275_v11  }
  0x19   : > { %v267_v18 = vld [vmem:[#allocation2 + $0x10] sm:$0xff] }
  0x1a   : > { %241 = vrot.lane.b32.xlu1 %v233_v6, %s674_s24  ;;  %256 = vrot.lane.b32.xlu0 %v233_v6, %s675_s25  ;;  %v268_v19 = vld [vmem:[#allocation2 + $0x18] sm:$0xff] }
  0x1b   : > { %v272_v21 = vpack.c.bf16 %v268_v19, %v267_v18 }
  0x68   : > { %v279_v24 = vpop.permute.xlu2 %278 }
  0x70   : > { %v284_v29 = vpop.permute.xlu2 %283 }
  0x84   : > { %v240_v8 = vpop.permute.xlu1 %239  ;;  %v255_v9 = vpop.permute.xlu0 %254 }
  0x85   : > { %246 = vst.msk [vmem:[#allocation2] sm:$0xff] %vm245_vm5, %v240_v8 }
  0x86   : > { %261 = vst.msk [vmem:[#allocation2 + $0x20] sm:$0xff] %vm260_vm6, %v255_v9 }
  0x8c   : > { %v242_v12 = vpop.permute.xlu1 %241  ;;  %v257_v13 = vpop.permute.xlu0 %256  ;;  %v265_v15 = vld [vmem:[#allocation2] sm:$0xff] }
  0x8d   : > { %247 = vst.msk [vmem:[#allocation2 + $0x8] sm:$0xff] %vm245_vm5, %v242_v12  ;;  %v269_v14 = vld [vmem:[#allocation2 + $0x20] sm:$0xff] }
  0x8e   : > { %262 = vst.msk [vmem:[#allocation2 + $0x28] sm:$0xff] %vm260_vm6, %v257_v13 }
  0x8f   : > { %329 = vst.msk [vmem:[#allocation2 + $0x20] sm:$0xff] %vm251_vm4, %v673_v0 }
  0x90   : > { %315 = vst.msk [vmem:[#allocation2] sm:$0xff] %vm234_vm0, %v673_v0 }
  0x94   : > { %v266_v16 = vld [vmem:[#allocation2 + $0x8] sm:$0xff] }
  0x95   : > { %v270_v17 = vld [vmem:[#allocation2 + $0x28] sm:$0xff]  ;;  %316 = vst.msk [vmem:[#allocation2 + $0x8] sm:$0xff] %vm234_vm0, %v673_v0  ;;  %v271_v22 = vpack.c.bf16 %v266_v16, %v265_v15 }
  0x96   : > { %v273_v20 = vpack.c.bf16 %v270_v17, %v269_v14  ;;  %330 = vst.msk [vmem:[#allocation2 + $0x28] sm:$0xff] %vm251_vm4, %v673_v0  ;;  %v646_v14 = vld [vmem:[%s860_s1 + $0x8] sm:$0xff] }
  0x98   : > { %300 = vmatpush.bf16.msra.mxu0 %v273_v20 }
  0x9c   : > { %301 = vmatpush.bf16.msra.mxu0 %v272_v21 }
  0xa0   : > { %302 = vmatpush.bf16.msra.mxu0 %v271_v22 }
  0xa3   : > { %616 = vmatmul.msk.bf16.vlgmr.msra.gmra.mxu0 %vm291_vm7, %v644_v23  ;;  %v634_v23 = vld [vmem:[%s863_s4 + $0x18] sm:$0xff] }
 0x120   : > { %v304_v25 = vpop.f32.mrf.mxu0 }
 0x121   : > { %v305_v26 = vadd.f32 %v304_v25, %v279_v24  ;;  %v633_v25 = vld [vmem:[%s863_s4 + $0x10] sm:$0xff] }
 0x123   : > { %v311_v27 = vmul.f32 0.1, %v305_v26  ;;  %vm309_vm8 = vcmp.ge.f32.partialorder %v305_v26, 0.0 }
 0x125   : > { %v313_v28 = vsel %vm309_vm8, %v305_v26, %v311_v27 }
 0x126   : > { %319 = vrot.lane.b32.xlu2 %v313_v28, %s674_s24  ;;  %327 = vst.msk [vmem:[#allocation2 + $0x10] sm:$0xff] %vm248_vm1, %v313_v28  ;;  %331 = vrot.lane.b32.xlu0 %v313_v28, %s675_s25 }
 0x128   : > { %v306_v30 = vpop.f32.mrf.mxu0 }
 0x129   : > { %v307_v31 = vadd.f32 %v306_v30, %v284_v29 }
 0x12b   : > { %v312_v32 = vmul.f32 0.1, %v307_v31  ;;  %vm310_vm9 = vcmp.ge.f32.partialorder %v307_v31, 0.0 }
 0x12d   : > { %v314_v34 = vsel %vm310_vm9, %v307_v31, %v312_v32  ;;  %v343_v44 = vld [vmem:[#allocation2 + $0x10] sm:$0xff] }
 0x12e   : > { %333 = vrot.lane.b32.xlu1 %v314_v34, %s675_s25  ;;  %328 = vst.msk [vmem:[#allocation2 + $0x18] sm:$0xff] %vm248_vm1, %v314_v34  ;;  %359 = vperm.xlu2 %662, %v351_v33  }
 0x12f   : > { %321 = vrot.lane.b32.xlu0 %v314_v34, %s674_s24 }
 0x135   : > { %v344_v43 = vld [vmem:[#allocation2 + $0x18] sm:$0xff] }
 0x136   : > { %354 = vperm.xlu1 %663, %v350_v36   ;;  %v348_v45 = vpack.c.bf16 %v344_v43, %v343_v44 }
 0x180   : > { %v320_v35 = vpop.permute.xlu2 %319 }
 0x181   : > { %325 = vst.msk [vmem:[#allocation2] sm:$0xff] %vm245_vm5, %v320_v35 }
 0x188   : > { %v341_v47 = vld [vmem:[#allocation2] sm:$0xff]  ;;  %v360_v56 = vpop.permute.xlu2 %359 }
 0x189   : > { %393 = vst.msk [vmem:[#allocation2] sm:$0xff] %vm392_vm10, %v673_v0 }
 0x198   : > { %v332_v37 = vpop.permute.xlu0 %331 }
 0x199   : > { %337 = vst.msk [vmem:[#allocation2 + $0x20] sm:$0xff] %vm260_vm6, %v332_v37 }
 0x1a0   : > { %v334_v38 = vpop.permute.xlu1 %333  ;;  %v345_v40 = vld [vmem:[#allocation2 + $0x20] sm:$0xff] }
 0x1a1   : > { %338 = vst.msk [vmem:[#allocation2 + $0x28] sm:$0xff] %vm260_vm6, %v334_v38  ;;  %v322_v39 = vpop.permute.xlu0 %321 }
 0x1a2   : > { %326 = vst.msk [vmem:[#allocation2 + $0x8] sm:$0xff] %vm245_vm5, %v322_v39  ;;  %v647_v39 = vld [vmem:[%s862_s3 + $0x8] sm:$0xff] }
 0x1a3   : > { %409 = vst.msk [vmem:[#allocation2 + $0x20] sm:$0xff] %vm408_vm13, %v673_v0 }
 0x1a8   : > { %v346_v41 = vld [vmem:[#allocation2 + $0x28] sm:$0xff]  ;;  %v355_v50 = vpop.permute.xlu1 %354 }
 0x1a9   : > { %v349_v42 = vpack.c.bf16 %v346_v41, %v345_v40  ;;  %v342_v46 = vld [vmem:[#allocation2 + $0x8] sm:$0xff]  ;;  %410 = vst.msk [vmem:[#allocation2 + $0x28] sm:$0xff] %vm408_vm13, %v673_v0 }
 0x1aa   : > { %v347_v48 = vpack.c.bf16 %v342_v46, %v341_v47  ;;  %394 = vst.msk [vmem:[#allocation2 + $0x8] sm:$0xff] %vm392_vm10, %v673_v0 }
 0x1ab   : > { %375 = vmatpush.bf16.msra.mxu1 %v349_v42 }
 0x1af   : > { %376 = vmatpush.bf16.msra.mxu1 %v348_v45 }
 0x1b3   : > { %377 = vmatpush.bf16.msra.mxu1 %v347_v48 }
 0x1b6   : > { %621 = vmatmul.msk.bf16.vlgmr.msra.gmra.mxu1 %vm291_vm7, %v645_v49 }
 0x233   : > { %v379_v51 = vpop.f32.mrf.mxu1 }
 0x234   : > { %v380_v52 = vadd.f32 %v379_v51, %v355_v50 }
 0x236   : > { %v794_v53 = vadd.f32 %v380_v52, %v729_v1 }
 0x238   : > { %vm386_vm11 = vcmp.ge.f32.partialorder %v794_v53, 0.0  ;;  %v388_v54 = vmul.f32 0.1, %v794_v53 }
 0x23a   : > { %v390_v55 = vsel %vm386_vm11, %v794_v53, %v388_v54 }
 0x23b   : > { %v381_v57 = vpop.f32.mrf.mxu1  ;;  %397 = vrot.lane.b32.xlu2 %v390_v55, %s677_s13  ;;  %406 = vst.msk [vmem:[#allocation2 + $0x10] sm:$0xff] %vm248_vm1, %v390_v55  ;;  %411 = vrot.lane.b32.xlu0 %v390_v55, %s678_s14 }
 0x23c   : > { %v382_v58 = vadd.f32 %v381_v57, %v360_v56 }
 0x23e   : > { %v801_v59 = vadd.f32 %v382_v58, %v731_v2 }
 0x240   : > { %vm387_vm12 = vcmp.ge.f32.partialorder %v801_v59, 0.0  ;;  %v389_v60 = vmul.f32 0.1, %v801_v59 }
 0x242   : > { %v391_v62 = vsel %vm387_vm12, %v801_v59, %v389_v60  ;;  %v425_v11 = vld [vmem:[#allocation2 + $0x10] sm:$0xff] }
 0x243   : > { %413 = vrot.lane.b32.xlu1 %v391_v62, %s678_s14  ;;  %407 = vst.msk [vmem:[#allocation2 + $0x18] sm:$0xff] %vm248_vm1, %v391_v62  ;;  %442 = vperm.xlu2 %662, %v625_v61  }
 0x244   : > { %399 = vrot.lane.b32.xlu0 %v391_v62, %s677_s13 }
 0x24a   : > { %v426_v10 = vld [vmem:[#allocation2 + $0x18] sm:$0xff] }
 0x24b   : > { %437 = vperm.xlu1 %663, %v624_v63   ;;  %v430_v12 = vpack.c.bf16 %v426_v10, %v425_v11 }
 0x295   : > { %v398_v1 = vpop.permute.xlu2 %397 }
 0x296   : > { %404 = vst.msk [vmem:[#allocation2] sm:$0xff] %vm403_vm14, %v398_v1 }
 0x29d   : > { %v423_v2 = vld [vmem:[#allocation2] sm:$0xff] }
 0x29e   : > { %473 = vst.msk [vmem:[#allocation2] sm:$0xff] %vm234_vm0, %v673_v0 }
 0x2ad   : > { %v412_v3 = vpop.permute.xlu0 %411 }
 0x2ae   : > { %418 = vst.msk [vmem:[#allocation2 + $0x20] sm:$0xff] %vm417_vm15, %v412_v3 }
 0x2b5   : > { %v414_v4 = vpop.permute.xlu1 %413  ;;  %v427_v6 = vld [vmem:[#allocation2 + $0x20] sm:$0xff] }
 0x2b6   : > { %419 = vst.msk [vmem:[#allocation2 + $0x28] sm:$0xff] %vm417_vm15, %v414_v4  ;;  %v400_v5 = vpop.permute.xlu0 %399 }
 0x2b7   : > { %405 = vst.msk [vmem:[#allocation2 + $0x8] sm:$0xff] %vm403_vm14, %v400_v5 }
 0x2b8   : > { %487 = vst.msk [vmem:[#allocation2 + $0x20] sm:$0xff] %vm251_vm4, %v673_v0 }
 0x2bd   : > { %v428_v7 = vld [vmem:[#allocation2 + $0x28] sm:$0xff]  ;;  %v438_v15 = vpop.permute.xlu1 %437 }
 0x2be   : > { %v431_v8 = vpack.c.bf16 %v428_v7, %v427_v6  ;;  %488 = vst.msk [vmem:[#allocation2 + $0x28] sm:$0xff] %vm251_vm4, %v673_v0  ;;  %v424_v9 = vld [vmem:[#allocation2 + $0x8] sm:$0xff] }
 0x2bf   : > { %474 = vst.msk [vmem:[#allocation2 + $0x8] sm:$0xff] %vm234_vm0, %v673_v0  ;;  %v429_v13 = vpack.c.bf16 %v424_v9, %v423_v2  ;;  %v443_v0 = vpop.permute.xlu2 %442 }
 0x2c0   : > { %458 = vmatpush.bf16.msra.mxu2 %v431_v8 }
 0x2c4   : > { %459 = vmatpush.bf16.msra.mxu2 %v430_v12 }
 0x2c8   : > { %460 = vmatpush.bf16.msra.mxu2 %v429_v13 }
 0x2cb   : > { %630 = vmatmul.msk.bf16.vlgmr.msra.gmra.mxu2 %vm291_vm7, %v646_v14 }
 0x34e   : > { %v462_v16 = vpop.f32.mrf.mxu2 }
 0x34f   : > { %v463_v17 = vadd.f32 %v462_v16, %v438_v15 }
 0x351   : > { %v469_v18 = vmul.f32 0.1, %v463_v17  ;;  %vm467_vm2 = vcmp.ge.f32.partialorder %v463_v17, 0.0 }
 0x353   : > { %v471_v19 = vsel %vm467_vm2, %v463_v17, %v469_v18 }
 0x354   : > { %477 = vrot.lane.b32.xlu2 %v471_v19, %s674_s24  ;;  %485 = vst.msk [vmem:[#allocation2 + $0x10] sm:$0xff] %vm248_vm1, %v471_v19  ;;  %489 = vrot.lane.b32.xlu0 %v471_v19, %s675_s25 }
 0x356   : > { %v464_v20 = vpop.f32.mrf.mxu2 }
 0x357   : > { %v465_v21 = vadd.f32 %v464_v20, %v443_v0 }
 0x359   : > { %v470_v22 = vmul.f32 0.1, %v465_v21  ;;  %vm468_vm0 = vcmp.ge.f32.partialorder %v465_v21, 0.0 }
 0x35b   : > { %v472_v24 = vsel %vm468_vm0, %v465_v21, %v470_v22  ;;  %v502_v34 = vld [vmem:[#allocation2 + $0x10] sm:$0xff] }
 0x35c   : > { %491 = vrot.lane.b32.xlu1 %v472_v24, %s675_s25  ;;  %486 = vst.msk [vmem:[#allocation2 + $0x18] sm:$0xff] %vm248_vm1, %v472_v24  ;;  %519 = vperm.xlu2 %662, %v634_v23  }
 0x35d   : > { %479 = vrot.lane.b32.xlu0 %v472_v24, %s674_s24 }
 0x363   : > { %v503_v33 = vld [vmem:[#allocation2 + $0x18] sm:$0xff] }
 0x364   : > { %514 = vperm.xlu1 %663, %v633_v25   ;;  %v507_v35 = vpack.c.bf16 %v503_v33, %v502_v34 }
 0x3ae   : > { %v478_v26 = vpop.permute.xlu2 %477 }
 0x3af   : > { %483 = vst.msk [vmem:[#allocation2] sm:$0xff] %vm245_vm5, %v478_v26 }
 0x3b6   : > { %v500_v37 = vld [vmem:[#allocation2] sm:$0xff]  ;;  %v520_v44 = vpop.permute.xlu2 %519 }
 0x3c6   : > { %v490_v27 = vpop.permute.xlu0 %489 }
 0x3c7   : > { %495 = vst.msk [vmem:[#allocation2 + $0x20] sm:$0xff] %vm260_vm6, %v490_v27 }
 0x3ce   : > { %v492_v28 = vpop.permute.xlu1 %491  ;;  %v504_v30 = vld [vmem:[#allocation2 + $0x20] sm:$0xff] }
 0x3cf   : > { %496 = vst.msk [vmem:[#allocation2 + $0x28] sm:$0xff] %vm260_vm6, %v492_v28  ;;  %v480_v29 = vpop.permute.xlu0 %479 }
 0x3d0   : > { %484 = vst.msk [vmem:[#allocation2 + $0x8] sm:$0xff] %vm245_vm5, %v480_v29 }
 0x3d6   : > { %v505_v31 = vld [vmem:[#allocation2 + $0x28] sm:$0xff]  ;;  %v515_v40 = vpop.permute.xlu1 %514 }
 0x3d7   : > { %v508_v32 = vpack.c.bf16 %v505_v31, %v504_v30  ;;  %v501_v36 = vld [vmem:[#allocation2 + $0x8] sm:$0xff] }
 0x3d8   : > { %v506_v38 = vpack.c.bf16 %v501_v36, %v500_v37 }
 0x3d9   : > { %535 = vmatpush.bf16.msra.mxu3 %v508_v32 }
 0x3dd   : > { %536 = vmatpush.bf16.msra.mxu3 %v507_v35 }
 0x3e1   : > { %537 = vmatpush.bf16.msra.mxu3 %v506_v38 }
 0x3e4   : > { %639 = vmatmul.msk.bf16.vlgmr.msra.gmra.mxu3 %vm291_vm7, %v647_v39 }
 0x467   : > { %v539_v41 = vpop.f32.mrf.mxu3 }
 0x468   : > { %v540_v42 = vadd.f32 %v539_v41, %v515_v40 }
 0x46a   : > { %v544_v43 = vadd.f32 %v540_v42, %v794_v53 }
 0x46c   : > { %546 = vst.msk [vmem:[%s224_s7] sm:$0xff] %vm248_vm1, %v544_v43 }
 0x46f   : > { %v541_v45 = vpop.f32.mrf.mxu3 }
 0x470   : > { %v542_v46 = vadd.f32 %v541_v45, %v520_v44 }
 0x472   : > { %v545_v47 = vadd.f32 %v542_v46, %v801_v59 }
 0x474   : > { %547 = vst.msk [vmem:[%s224_s7 + $0x8] sm:$0xff] %vm248_vm1, %v545_v47 }
 0x475 PF: > { %s15_s18 = sadd.s32 1, %s671_s18  }
 0x476   : > { %p12_p4 = scmp.ge.s32.totalorder %s15_s18, 4  }
 0x478   :  { %14 = sbr.rel (!%p12_p4) target bundleno = 1 (0x1), region = 74 }

// kernel: synthesizer_forward.38
= control target key start
LH: loop header
LB: loop body
LE: loop exit
PB: predicated region body
PF: predicated region fallthrough
CT: control target
= control target key end

     0   :  { %s377_s12 = smov 0   ;;  %s414_s0 = inlined_call_operand.vmem [shape: f32[2,16,8], index: 0, kind: input, shape index: {}]   ;;  %s415_s1 = inlined_call_operand.vmem [shape: bf16[16,48], index: 1, kind: input, shape index: {}]   ;;  %s416_s2 = inlined_call_operand.vmem [shape: f32[16,1], index: 2, kind: input, shape index: {}]   ;;  %s417_s3 = inlined_call_operand.vmem [shape: f32[2,16,8], index: 3, kind: output, shape index: {}]  }
   0x1 LB: > { %s312_s13 = sadd.s32 4294967295, %s351_s12   ;;  %p316_p0 = scmp.ge.s32.totalorder %s351_s12, 1  ;;  %s351_s12 = sphi %s377_s12, %s13_s12  }
   0x2   : > { %p137_p1 = scmp.lt.s32.totalorder %s351_s12, 3 }
   0x4   : > { %p138_p2 = pnand %p316_p0, %p137_p1 }
   0x5   : > { %p161_p3 = scmp.lt.s32.totalorder (!%p138_p2), %s312_s13, 1  ;;  %s354_s18 = smov (!%p138_p2), 1  }
   0x6   : > { %141 = sbr.rel (%p138_p2) target bundleno = 300 (0x12c), region = 32  ;;  %s355_s19 = smov (!%p138_p2), 127  }
   0xb   : > { %vm180_vm0 = vcmask 7168   ;;  %v353_v0 = vmov 0.0   ;;  %s419_s13 = smov (!%p161_p3, %s312_s13), 1  ;;  %vm194_vm1 = vcmask 64512   ;;  %vm197_vm4 = vcmask 64568   ;;  %v220_v7 = vld [vmem:[%s416_s2] sm:$0xff] }
   0xc   : > { %181 = vst.msk [vmem:[#allocation2] sm:$0xff] %vm180_vm0, %v353_v0  ;;  %s328_s14 = sshll.u32 %s419_s13, 4  ;;  %vm191_vm5 = vcmask 64520   ;;  %vm206_vm6 = vcmask 56320   ;;  %v356_v10 = vmov 0   ;;  %v221_v11 = vld [vmem:[%s416_s2 + $0x8] sm:$0xff] }
   0xd   : > { %182 = vst.msk [vmem:[#allocation2 + $0x8] sm:$0xff] %vm180_vm0, %v353_v0  ;;  %s165_s17 = scalar_lea.vmem %s414_s0, %s328_s14  ;;  %343 = vset.pattern.permute.xlu2 %v356_v10  ;;  %344 = vset.pattern.permute.xlu0 %v356_v10  ;;  %v330_v23 = vld [vmem:[%s415_s1] sm:$0xff]  ;;  %vm237_vm7 = vcmask 392192   ;;  %s170_s28 = scalar_lea.vmem %s417_s3, %s328_s14 }
   0xe   : > { %v172_v1 = vld [vmem:[%s165_s17] sm:$0xff]  ;;  %v173_v2 = vld [vmem:[%s165_s17 + $0x8] sm:$0xff]  ;;  %198 = vst.msk [vmem:[#allocation2 + $0x20] sm:$0xff] %vm197_vm4, %v353_v0  ;;  %224 = vperm.xlu2 %343, %v220_v7  }
   0xf   : > { %vm174_vm2 = vcmp.ge.f32.partialorder %v172_v1, 0.0  ;;  %v176_v3 = vmul.f32 0.1, %v172_v1  ;;  %vm175_vm3 = vcmp.ge.f32.partialorder %v173_v2, 0.0  ;;  %v177_v4 = vmul.f32 0.1, %v173_v2 }
  0x10   : > { %199 = vst.msk [vmem:[#allocation2 + $0x28] sm:$0xff] %vm197_vm4, %v353_v0 }
  0x11   : > { %v178_v5 = vsel %vm174_vm2, %v172_v1, %v176_v3  ;;  %v179_v6 = vsel %vm175_vm3, %v173_v2, %v177_v4 }
  0x12   : > { %185 = vrot.lane.b32.xlu1 %v178_v5, %s354_s18  ;;  %195 = vst.msk [vmem:[#allocation2 + $0x10] sm:$0xff] %vm194_vm1, %v178_v5  ;;  %200 = vrot.lane.b32.xlu0 %v178_v5, %s355_s19 }
  0x13   : > { %196 = vst.msk [vmem:[#allocation2 + $0x18] sm:$0xff] %vm194_vm1, %v179_v6 }
  0x16   : > { %229 = vperm.xlu2 %343, %v221_v11  }
  0x19   : > { %v211_v14 = vld [vmem:[#allocation2 + $0x10] sm:$0xff] }
  0x1a   : > { %187 = vrot.lane.b32.xlu1 %v179_v6, %s354_s18  ;;  %202 = vrot.lane.b32.xlu0 %v179_v6, %s355_s19  ;;  %v212_v17 = vld [vmem:[#allocation2 + $0x18] sm:$0xff] }
  0x1b   : > { %v216_v19 = vpack.c.bf16 %v212_v17, %v211_v14 }
  0x68   : > { %v225_v24 = vpop.permute.xlu2 %224 }
  0x70   : > { %v230_v27 = vpop.permute.xlu2 %229 }
  0x84   : > { %v186_v8 = vpop.permute.xlu1 %185  ;;  %v201_v9 = vpop.permute.xlu0 %200 }
  0x85   : > { %192 = vst.msk [vmem:[#allocation2] sm:$0xff] %vm191_vm5, %v186_v8 }
  0x86   : > { %207 = vst.msk [vmem:[#allocation2 + $0x20] sm:$0xff] %vm206_vm6, %v201_v9 }
  0x8c   : > { %v188_v12 = vpop.permute.xlu1 %187  ;;  %v203_v13 = vpop.permute.xlu0 %202  ;;  %v209_v20 = vld [vmem:[#allocation2] sm:$0xff] }
  0x8d   : > { %193 = vst.msk [vmem:[#allocation2 + $0x8] sm:$0xff] %vm191_vm5, %v188_v12  ;;  %v213_v15 = vld [vmem:[#allocation2 + $0x20] sm:$0xff] }
  0x8e   : > { %208 = vst.msk [vmem:[#allocation2 + $0x28] sm:$0xff] %vm206_vm6, %v203_v13 }
  0x94   : > { %v210_v21 = vld [vmem:[#allocation2 + $0x8] sm:$0xff] }
  0x95   : > { %v214_v16 = vld [vmem:[#allocation2 + $0x28] sm:$0xff]  ;;  %v215_v22 = vpack.c.bf16 %v210_v21, %v209_v20 }
  0x96   : > { %v217_v18 = vpack.c.bf16 %v214_v16, %v213_v15 }
  0x98   : > { %246 = vmatpush.bf16.msra.mxu0 %v217_v18 }
  0x9c   : > { %247 = vmatpush.bf16.msra.mxu0 %v216_v19 }
  0xa0   : > { %248 = vmatpush.bf16.msra.mxu0 %v215_v22 }
  0xa3   : > { %325 = vmatmul.msk.bf16.vlgmr.msra.gmra.mxu0 %vm237_vm7, %v330_v23 }
 0x120   : > { %v250_v25 = vpop.f32.mrf.mxu0 }
 0x121   : > { %v251_v26 = vadd.f32 %v250_v25, %v225_v24 }
 0x123   : > { %255 = vst.msk [vmem:[%s170_s28] sm:$0xff] %vm194_vm1, %v251_v26 }
 0x128   : > { %v252_v28 = vpop.f32.mrf.mxu0 }
 0x129   : > { %v253_v29 = vadd.f32 %v252_v28, %v230_v27 }
 0x12b   : > { %256 = vst.msk [vmem:[%s170_s28 + $0x8] sm:$0xff] %vm194_vm1, %v253_v29 }
 0x12c PF: > { %s13_s12 = sadd.s32 1, %s351_s12  }
 0x12d   : > { %p10_p4 = scmp.ge.s32.totalorder %s13_s12, 4  }
 0x12f   :  { %12 = sbr.rel (!%p10_p4) target bundleno = 1 (0x1), region = 62 }

// kernel: synthesizer_forward.39
= control target key start
LH: loop header
LB: loop body
LE: loop exit
PB: predicated region body
PF: predicated region fallthrough
CT: control target
= control target key end

     0   :  { %s555_s18 = smov 0   ;;  %s648_s0 = inlined_call_operand.vmem [shape: f32[2,8,16], index: 0, kind: input, shape index: {}]   ;;  %s649_s1 = inlined_call_operand.vmem [shape: bf16[2,8,24], index: 1, kind: input, shape index: {}]   ;;  %s650_s2 = inlined_call_operand.vmem [shape: f32[2,8,1], index: 2, kind: input, shape index: {}]   ;;  %s651_s3 = inlined_call_operand.vmem [shape: bf16[2,8,24], index: 3, kind: input, shape index: {}]   ;;  %s652_s4 = inlined_call_operand.vmem [shape: f32[2,8,1], index: 4, kind: input, shape index: {}]   ;;  %s653_s5 = inlined_call_operand.vmem [shape: f32[2,8,16], index: 5, kind: output, shape index: {}]  }
   0x1 LB: > { %s477_s19 = sadd.s32 4294967295, %s517_s18   ;;  %p481_p0 = scmp.ge.s32.totalorder %s517_s18, 1  ;;  %s517_s18 = sphi %s555_s18, %s15_s18  }
   0x2   : > { %p186_p1 = scmp.lt.s32.totalorder %s517_s18, 3 }
   0x4   : > { %p187_p2 = pnand %p481_p0, %p186_p1 }
   0x5   : > { %p212_p3 = scmp.lt.s32.totalorder (!%p187_p2), %s477_s19, 1  ;;  %s520_s24 = smov (!%p187_p2), 127  }
   0x6   : > { %190 = sbr.rel (%p187_p2) target bundleno = 1096 (0x448), region = 40  ;;  %s521_s25 = smov (!%p187_p2), 1  }
   0x7   : > { %s523_s13 = smov (!%p187_p2), 3   ;;  %s524_s14 = smov (!%p187_p2), 125  }
   0xb   : > { %vm235_vm0 = vcmask 130168   ;;  %v519_v0 = vmov 0.0   ;;  %s655_s19 = smov (!%p212_p3, %s477_s19), 1  ;;  %vm233_vm2 = vcmask 130048   ;;  %vm225_vm3 = vcmask 7168   ;;  %v248_v4 = vld [vmem:[%s650_s2] sm:$0xff] }
   0xc   : > { %236 = vst.msk [vmem:[#allocation2 + $0x10] sm:$0xff] %vm235_vm0, %v519_v0  ;;  %s482_s20 = sshll.u32 %s655_s19, 3  ;;  %v522_v5 = vmov 0   ;;  %vm240_vm4 = vcmask 121856   ;;  %vm231_vm5 = vcmask 130056   ;;  %vm258_vm6 = vcmask 1043456  }
   0xd   : > { %s215_s23 = scalar_lea.vmem %s648_s0, %s482_s20  ;;  %226 = vst.msk [vmem:[#allocation2] sm:$0xff] %vm225_vm3, %v519_v0  ;;  %508 = vset.pattern.permute.xlu1 %v522_v5  ;;  %509 = vset.pattern.permute.xlu2 %v522_v5  ;;  %v242_v14 = vld [vmem:[%s649_s1] sm:$0xf]  ;;  %vm254_vm7 = vcmask 195584   ;;  %v487_v23 = vld [vmem:[%s650_s2 + $0x8] sm:$0xff]  ;;  %vm325_vm9 = vcmask 23552  }
   0xe   : > { %v573_v1 = vld [vmem:[%s215_s23] sm:$0xff]  ;;  %251 = vperm.xlu1 %508, %v248_v4   ;;  %510 = vset.pattern.permute.xlu0 %v522_v5  ;;  %v490_v25 = vld [vmem:[%s652_s4 + $0x8] sm:$0xff]  ;;  %vm334_vm11 = vcmask 130152   ;;  %vm331_vm12 = vcmask 130072   ;;  %vm339_vm13 = vcmask 105472  }
   0xf   : > { %vm222_vm1 = vcmp.ge.f32.partialorder %v573_v1, 0.0  ;;  %v223_v2 = vmul.f32 0.1, %v573_v1  ;;  %v296_v22 = vld [vmem:[%s652_s4] sm:$0xff] }
  0x10   : > { %v290_v32 = vld [vmem:[%s651_s3] sm:$0xf]  ;;  %v486_v48 = vld [vmem:[%s649_s1 + $0x4] sm:$0xf] }
  0x11   : > { %v224_v3 = vsel %vm222_vm1, %v573_v1, %v223_v2  ;;  %v489_v63 = vld [vmem:[%s651_s3 + $0x4] sm:$0xf] }
  0x12   : > { %237 = vrot.lane.b32.xlu0 %v224_v3, %s520_s24  ;;  %234 = vst.msk [vmem:[#allocation2 + $0x8] sm:$0xff] %vm233_vm2, %v224_v3 }
  0x19   : > { %v244_v11 = vld [vmem:[#allocation2 + $0x8] sm:$0xff] }
  0x1a   : > { %228 = vrot.lane.b32.xlu0 %v224_v3, %s521_s25 }
  0x80   : > { %v252_v15 = vpop.permute.xlu1 %251 }
  0x84   : > { %v238_v6 = vpop.permute.xlu0 %237 }
  0x85   : > { %241 = vst.msk [vmem:[#allocation2 + $0x10] sm:$0xff] %vm240_vm4, %v238_v6 }
  0x8c   : > { %v229_v7 = vpop.permute.xlu0 %228  ;;  %v245_v8 = vld [vmem:[#allocation2 + $0x10] sm:$0xff] }
  0x8d   : > { %232 = vst.msk [vmem:[#allocation2] sm:$0xff] %vm231_vm5, %v229_v7  ;;  %v247_v9 = vpack.c.bf16 %v245_v8, %v245_v8 }
  0x8e   : > { %285 = vst.msk [vmem:[#allocation2 + $0x10] sm:$0xff] %vm235_vm0, %v519_v0 }
  0x8f   : > { %v260_v10 = vsel %vm258_vm6, %v247_v9, 0 }
  0x90   : > { %268 = vmatpush.bf16.msra.mxu0 %v260_v10 }
  0x94   : > { %v243_v12 = vld [vmem:[#allocation2] sm:$0xff] }
  0x95   : > { %v246_v13 = vpack.c.bf16 %v244_v11, %v243_v12  ;;  %278 = vst.msk [vmem:[#allocation2] sm:$0xff] %vm225_vm3, %v519_v0 }
  0x97   : > { %269 = vmatpush.bf16.msra.mxu0 %v246_v13 }
  0x9a   : > { %484 = vmatmul.msk.bf16.vlgmr.msra.gmra.mxu0 %vm254_vm7, %v242_v14 }
 0x117   : > { %v271_v16 = vpop.f32.mrf.mxu0 }
 0x118   : > { %v272_v17 = vadd.f32 %v271_v16, %v252_v15 }
 0x11a   : > { %v276_v18 = vmul.f32 0.1, %v272_v17  ;;  %vm275_vm8 = vcmp.ge.f32.partialorder %v272_v17, 0.0 }
 0x11c   : > { %v277_v19 = vsel %vm275_vm8, %v272_v17, %v276_v18 }
 0x11d   : > { %280 = vrot.lane.b32.xlu2 %v277_v19, %s521_s25  ;;  %284 = vst.msk [vmem:[#allocation2 + $0x8] sm:$0xff] %vm233_vm2, %v277_v19  ;;  %286 = vrot.lane.b32.xlu1 %v277_v19, %s520_s24 }
 0x11f   : > { %v273_v20 = vpop.f32.mrf.mxu0 }
 0x124   : > { %v292_v30 = vld [vmem:[#allocation2 + $0x8] sm:$0xff] }
 0x125   : > { %299 = vperm.xlu2 %509, %v296_v22  }
 0x12d   : > { %352 = vperm.xlu2 %509, %v487_v23  }
 0x135   : > { %400 = vperm.xlu2 %509, %v490_v25  }
 0x177   : > { %v281_v21 = vpop.permute.xlu2 %280 }
 0x178   : > { %283 = vst.msk [vmem:[#allocation2] sm:$0xff] %vm231_vm5, %v281_v21 }
 0x17f   : > { %v291_v29 = vld [vmem:[#allocation2] sm:$0xff]  ;;  %v300_v33 = vpop.permute.xlu2 %299 }
 0x180   : > { %v294_v31 = vpack.c.bf16 %v292_v30, %v291_v29  ;;  %326 = vst.msk [vmem:[#allocation2] sm:$0xff] %vm325_vm9, %v519_v0 }
 0x187   : > { %v353_v49 = vpop.permute.xlu2 %352 }
 0x18f   : > { %v287_v24 = vpop.permute.xlu1 %286 }
 0x190   : > { %289 = vst.msk [vmem:[#allocation2 + $0x10] sm:$0xff] %vm240_vm4, %v287_v24 }
 0x197   : > { %v293_v26 = vld [vmem:[#allocation2 + $0x10] sm:$0xff] }
 0x198   : > { %v295_v27 = vpack.c.bf16 %v293_v26, %v293_v26  ;;  %335 = vst.msk [vmem:[#allocation2 + $0x10] sm:$0xff] %vm334_vm11, %v519_v0 }
 0x19a   : > { %v306_v28 = vsel %vm258_vm6, %v295_v27, 0 }
 0x19b   : > { %314 = vmatpush.bf16.msra.mxu1 %v306_v28 }
 0x19f   : > { %315 = vmatpush.bf16.msra.mxu1 %v294_v31 }
 0x1a2   : > { %485 = vmatmul.msk.bf16.vlgmr.msra.gmra.mxu1 %vm254_vm7, %v290_v32 }
 0x21f   : > { %v317_v34 = vpop.f32.mrf.mxu1 }
 0x220   : > { %v318_v35 = vadd.f32 %v317_v34, %v300_v33 }
 0x222   : > { %v321_v36 = vadd.f32 %v318_v35, %v573_v1 }
 0x224   : > { %vm322_vm10 = vcmp.ge.f32.partialorder %v321_v36, 0.0  ;;  %v323_v37 = vmul.f32 0.1, %v321_v36 }
 0x226   : > { %v324_v38 = vsel %vm322_vm10, %v321_v36, %v323_v37 }
 0x227   : > { %v319_v39 = vpop.f32.mrf.mxu1  ;;  %328 = vrot.lane.b32.xlu1 %v324_v38, %s523_s13  ;;  %333 = vst.msk [vmem:[#allocation2 + $0x8] sm:$0xff] %vm233_vm2, %v324_v38  ;;  %336 = vrot.lane.b32.xlu0 %v324_v38, %s524_s14 }
 0x22e   : > { %v344_v46 = vld [vmem:[#allocation2 + $0x8] sm:$0xff] }
 0x299   : > { %v329_v40 = vpop.permute.xlu1 %328  ;;  %v337_v41 = vpop.permute.xlu0 %336 }
 0x29a   : > { %332 = vst.msk [vmem:[#allocation2] sm:$0xff] %vm331_vm12, %v329_v40 }
 0x29b   : > { %340 = vst.msk [vmem:[#allocation2 + $0x10] sm:$0xff] %vm339_vm13, %v337_v41 }
 0x2a1   : > { %v343_v42 = vld [vmem:[#allocation2] sm:$0xff] }
 0x2a2   : > { %v345_v43 = vld [vmem:[#allocation2 + $0x10] sm:$0xff]  ;;  %377 = vst.msk [vmem:[#allocation2] sm:$0xff] %vm225_vm3, %v519_v0  ;;  %v346_v47 = vpack.c.bf16 %v344_v46, %v343_v42 }
 0x2a3   : > { %v347_v44 = vpack.c.bf16 %v345_v43, %v345_v43  ;;  %384 = vst.msk [vmem:[#allocation2 + $0x10] sm:$0xff] %vm235_vm0, %v519_v0  ;;  %v401_v0 = vpop.permute.xlu2 %400 }
 0x2a5   : > { %v359_v45 = vsel %vm258_vm6, %v347_v44, 0 }
 0x2a6   : > { %367 = vmatpush.bf16.msra.mxu2 %v359_v45 }
 0x2aa   : > { %368 = vmatpush.bf16.msra.mxu2 %v346_v47 }
 0x2ad   : > { %488 = vmatmul.msk.bf16.vlgmr.msra.gmra.mxu2 %vm254_vm7, %v486_v48 }
 0x330   : > { %v370_v50 = vpop.f32.mrf.mxu2 }
 0x331   : > { %v371_v51 = vadd.f32 %v370_v50, %v353_v49 }
 0x333   : > { %v375_v52 = vmul.f32 0.1, %v371_v51  ;;  %vm374_vm14 = vcmp.ge.f32.partialorder %v371_v51, 0.0 }
 0x335   : > { %v376_v53 = vsel %vm374_vm14, %v371_v51, %v375_v52 }
 0x336   : > { %379 = vrot.lane.b32.xlu1 %v376_v53, %s521_s25  ;;  %383 = vst.msk [vmem:[#allocation2 + $0x8] sm:$0xff] %vm233_vm2, %v376_v53  ;;  %385 = vrot.lane.b32.xlu0 %v376_v53, %s520_s24  ;;  %s219_s24 = scalar_lea.vmem %s653_s5, %s482_s20 }
 0x338   : > { %v372_v54 = vpop.f32.mrf.mxu2 }
 0x33d   : > { %v392_v61 = vld [vmem:[#allocation2 + $0x8] sm:$0xff] }
 0x3a8   : > { %v380_v55 = vpop.permute.xlu1 %379  ;;  %v386_v56 = vpop.permute.xlu0 %385 }
 0x3a9   : > { %382 = vst.msk [vmem:[#allocation2] sm:$0xff] %vm231_vm5, %v380_v55 }
 0x3aa   : > { %388 = vst.msk [vmem:[#allocation2 + $0x10] sm:$0xff] %vm240_vm4, %v386_v56 }
 0x3b0   : > { %v391_v60 = vld [vmem:[#allocation2] sm:$0xff] }
 0x3b1   : > { %v393_v57 = vld [vmem:[#allocation2 + $0x10] sm:$0xff]  ;;  %v394_v62 = vpack.c.bf16 %v392_v61, %v391_v60 }
 0x3b2   : > { %v395_v58 = vpack.c.bf16 %v393_v57, %v393_v57 }
 0x3b4   : > { %v407_v59 = vsel %vm258_vm6, %v395_v58, 0 }
 0x3b5   : > { %415 = vmatpush.bf16.msra.mxu3 %v407_v59 }
 0x3b9   : > { %416 = vmatpush.bf16.msra.mxu3 %v394_v62 }
 0x3bc   : > { %491 = vmatmul.msk.bf16.vlgmr.msra.gmra.mxu3 %vm254_vm7, %v489_v63 }
 0x43f   : > { %v418_v1 = vpop.f32.mrf.mxu3 }
 0x440   : > { %v419_v2 = vadd.f32 %v418_v1, %v401_v0 }
 0x442   : > { %v422_v3 = vadd.f32 %v419_v2, %v321_v36 }
 0x444   : > { %423 = vst.msk [vmem:[%s219_s24] sm:$0xff] %vm233_vm2, %v422_v3 }
 0x447   : > { %v420_v4 = vpop.f32.mrf.mxu3 }
 0x448 PF: > { %s15_s18 = sadd.s32 1, %s517_s18  }
 0x449   : > { %p12_p4 = scmp.ge.s32.totalorder %s15_s18, 4  }
 0x44b   :  { %14 = sbr.rel (!%p12_p4) target bundleno = 1 (0x1), region = 74 }

// kernel: synthesizer_forward.40
= control target key start
LH: loop header
LB: loop body
LE: loop exit
PB: predicated region body
PF: predicated region fallthrough
CT: control target
= control target key end

     0   :  { %7 = vsyncpa [#allocation4], 0  ;;  %s522_s0 = inlined_call_operand.vmem [shape: f32[2,8,16], index: 0, kind: input, shape index: {}]   ;;  %s523_s1 = inlined_call_operand.vmem [shape: bf16[1,56], index: 1, kind: input, shape index: {}]   ;;  %s524_s2 = inlined_call_operand.hbm [shape: f32[2,1,16], index: 2, kind: output, shape index: {}]  }
   0x1   :  { %9 = vsyncpa [#allocation4 + $0x1], 0  ;;  %s434_s9 = smov 0   ;;  %s436_s10 = smov 0  }
   0x2   :  { %s438_s11 = smov 0   ;;  %s440_s12 = smov 0  }
   0x3 LB: > { %s455_s13 = sadd.s32 4294967295, %s410_s12   ;;  %s292_s14 = sadd.s32 4294967294, %s410_s12   ;;  %s410_s12 = sphi %s440_s12, %s530_s12   ;;  %s406_s11 = sphi %s438_s11, %s529_s11   ;;  %s402_s10 = sphi %s436_s10, %s528_s10   ;;  %s398_s9 = sphi %s434_s9, %s527_s9  }
   0x4   : > { %s459_s15 = sadd.s32 1, %s410_s12   ;;  %s69_s16 = sadd.s32 1, %s406_s11 }
   0x5   : > { %s66_s17 = ssub.s32 %s410_s12, %s459_s15  ;;  %p79_p0 = scmp.ne.s32.totalorder %s406_s11, %s402_s10 }
   0x6   : > { %p67_p1 = scmp.eq.s32.totalorder %s66_s17, 0  ;;  %p80_p2 = scmp.eq.s32.totalorder %s455_s13, 1 }
   0x7   : > { %p85_p3 = scmp.ne.s32.totalorder %s402_s10, %s398_s9  ;;  %p86_p4 = scmp.eq.s32.totalorder %s292_s14, 1 }
   0x8   : > { %s470_s18 = scalar_select %p67_p1, %s406_s11, %s69_s16  }
   0x9   : > { %p472_p5 = por %p80_p2, %p79_p0  ;;  %p476_p6 = por %p86_p4, %p85_p3 }
   0xa   : > { %p295_p7 = scmp.ge.s32.totalorder %s410_s12, 1  ;;  %p114_p8 = scmp.lt.s32.totalorder %s410_s12, 3 }
   0xc   : > { %p115_p9 = pnand %p295_p7, %p114_p8 }
   0xd   : > { %p134_p10 = scmp.lt.s32.totalorder (!%p115_p9), %s455_s13, 1  ;;  %s413_s26 = smov (!%p115_p9), 125  }
   0xe   : > { %118 = sbr.rel (%p115_p9) target bundleno = 307 (0x133), region = 28  ;;  %s414_s27 = smov (!%p115_p9), 126  }
   0xf   : > { %s415_s28 = smov (!%p115_p9), 3   ;;  %s416_s29 = smov (!%p115_p9), 127  }
  0x10   : > { %s417_s30 = smov (!%p115_p9), 1   ;;  %s418_s3 = smov (!%p115_p9), 2  }
  0x11   : > { %s132_s6 = sand.u32 (!%p115_p9), 1, %s402_s10   ;;  %s233_s14 = scalar_lea.hbm (!%p115_p9), %s524_s2, %s455_s13 }
  0x12   : > { %s133_s16 = scalar_lea.vmem (!%p115_p9), [#allocation3], %s132_s6 }
  0x13   : > { %vm143_vm0 = vcmask 23552   ;;  %v412_v0 = vmov 0.0   ;;  %s135_s21 = scalar_select %p134_p10, %s455_s13, 1  ;;  %vm165_vm2 = vcmask 130048   ;;  %vm181_vm3 = vcmask 130152  }
  0x14   : > { %144 = vst.msk [vmem:[#allocation2] sm:$0xff] %vm143_vm0, %v412_v0  ;;  %vm174_vm4 = vcmask 130160   ;;  %vm151_vm5 = vcmask 15360   ;;  %vm167_vm6 = vcmask 130168   ;;  %vm149_vm7 = vcmask 130072   ;;  %s235_s17 = sshll.u32 %s133_s16, 4  ;;  %s236_s17 = int_to_ptr.vmem [resolvable:$true] %s235_s17 }
  0x15   : > { %s296_s22 = sshll.u32 %s135_s21, 3  ;;  %182 = vst.msk [vmem:[#allocation2 + $0x30] sm:$0xff] %vm181_vm3, %v412_v0  ;;  %vm158_vm8 = vcmask 7168   ;;  %vm156_vm9 = vcmask 130064   ;;  %vm186_vm10 = vcmask 105472   ;;  %vm179_vm11 = vcmask 113664  }
  0x16   : > { %s137_s25 = scalar_lea.vmem %s522_s0, %s296_s22  ;;  %175 = vst.msk [vmem:[#allocation2 + $0x28] sm:$0xff] %vm174_vm4, %v412_v0  ;;  %vm172_vm12 = vcmask 121856   ;;  %vm163_vm13 = vcmask 130056   ;;  %vm204_vm14 = vcmask 1043456   ;;  %v199_v22 = vld [vmem:[%s523_s1] sm:$0x1] }
  0x17   : > { %v139_v1 = vld [vmem:[%s137_s25] sm:$0xff]  ;;  %152 = vst.msk [vmem:[#allocation2 + $0x8] sm:$0xff] %vm151_vm5, %v412_v0  ;;  %vm200_vm15 = vcmask 457728   ;;  %s237_s21 = sshll.u32 %s233_s14, 4  ;;  %vm222_vm0 = vcmask 122880   ;;  %s225_s22 = scalar_lea.sflag [#allocation4], %s132_s6  ;;  %s238_s21 = int_to_ptr.hbm [resolvable:$true] %s237_s21 }
  0x18   : > { %vm140_vm1 = vcmp.ge.f32.partialorder %v139_v1, 0.0  ;;  %v141_v2 = vmul.f32 0.01, %v139_v1  ;;  %168 = vst.msk [vmem:[#allocation2 + $0x20] sm:$0xff] %vm167_vm6, %v412_v0  ;;  %s362_s23 = sshra.s32 %s238_s21, 4  ;;  %s363_s23 = int_to_ptr.hbm [resolvable:$true] %s362_s23 }
  0x19   : > { %159 = vst.msk [vmem:[#allocation2 + $0x10] sm:$0xff] %vm158_vm8, %v412_v0  ;;  %s364_s24 = scalar_lea.hbm %s363_s23, 1  ;;  %p369_p0 = scmp.lt.s32.totalorder %s363_s23, %s524_s2 }
  0x1a   : > { %v142_v3 = vsel %vm140_vm1, %v139_v1, %v141_v2  ;;  %p365_p11 = scmp.ne.s32.totalorder %s363_s23, %s364_s24 }
  0x1b   : > { %183 = vrot.lane.b32.xlu0 %v142_v3, %s413_s26  ;;  %166 = vst.msk [vmem:[#allocation2 + $0x18] sm:$0xff] %vm165_vm2, %v142_v3  ;;  %176 = vrot.lane.b32.xlu1 %v142_v3, %s414_s27  ;;  %s368_s26 = scalar_lea.hbm %s524_s2, 2 }
  0x1c   : > { %146 = vrot.lane.b32.xlu2 %v142_v3, %s415_s28  ;;  %p366_p12 = pnand %p365_p11, %p472_p5  ;;  %p370_p1 = scmp.lt.s32.totalorder %s368_s26, %s364_s24 }
  0x1e   : > { %p367_p13 = pneg %p366_p12  ;;  %p371_p2 = por %p370_p1, %p369_p0 }
  0x20   : > { %p372_p3 = pnand %p371_p2, %p367_p13 }
  0x22   : > { %v191_v15 = vld [vmem:[#allocation2 + $0x18] sm:$0xff] }
  0x23   : > { %169 = vrot.lane.b32.xlu0 %v142_v3, %s416_s29  ;;  %160 = vrot.lane.b32.xlu1 %v142_v3, %s417_s30 }
  0x24   : > { %153 = vrot.lane.b32.xlu2 %v142_v3, %s418_s3 }
  0x76   : > { %v147_v4 = vpop.permute.xlu2 %146 }
  0x77   : > { %150 = vst.msk [vmem:[#allocation2] sm:$0xff] %vm149_vm7, %v147_v4 }
  0x7e   : > { %v154_v5 = vpop.permute.xlu2 %153  ;;  %v188_v19 = vld [vmem:[#allocation2] sm:$0xff] }
  0x7f   : > { %157 = vst.msk [vmem:[#allocation2 + $0x8] sm:$0xff] %vm156_vm9, %v154_v5 }
  0x86   : > { %v189_v20 = vld [vmem:[#allocation2 + $0x8] sm:$0xff] }
  0x87   : > { %v195_v21 = vpack.c.bf16 %v189_v20, %v188_v19 }
  0x8d   : > { %v184_v6 = vpop.permute.xlu0 %183  ;;  %v177_v7 = vpop.permute.xlu1 %176 }
  0x8e   : > { %187 = vst.msk [vmem:[#allocation2 + $0x30] sm:$0xff] %vm186_vm10, %v184_v6 }
  0x8f   : > { %180 = vst.msk [vmem:[#allocation2 + $0x28] sm:$0xff] %vm179_vm11, %v177_v7 }
  0x95   : > { %v170_v8 = vpop.permute.xlu0 %169  ;;  %v161_v9 = vpop.permute.xlu1 %160  ;;  %v194_v10 = vld [vmem:[#allocation2 + $0x30] sm:$0xff] }
  0x96   : > { %173 = vst.msk [vmem:[#allocation2 + $0x20] sm:$0xff] %vm172_vm12, %v170_v8  ;;  %v198_v11 = vpack.c.bf16 %v194_v10, %v194_v10  ;;  %v193_v14 = vld [vmem:[#allocation2 + $0x28] sm:$0xff] }
  0x97   : > { %164 = vst.msk [vmem:[#allocation2 + $0x10] sm:$0xff] %vm163_vm13, %v161_v9 }
  0x98   : > { %v206_v12 = vsel %vm204_vm14, %v198_v11, 0 }
  0x99   : > { %212 = vmatpush.bf16.msra.mxu0 %v206_v12 }
  0x9d   : > { %v192_v13 = vld [vmem:[#allocation2 + $0x20] sm:$0xff] }
  0x9e   : > { %v197_v16 = vpack.c.bf16 %v193_v14, %v192_v13  ;;  %v190_v17 = vld [vmem:[#allocation2 + $0x10] sm:$0xff] }
  0x9f   : > { %v196_v18 = vpack.c.bf16 %v191_v15, %v190_v17 }
  0xa0   : > { %213 = vmatpush.bf16.msra.mxu0 %v197_v16 }
  0xa4   : > { %214 = vmatpush.bf16.msra.mxu0 %v196_v18 }
  0xa8   : > { %215 = vmatpush.bf16.msra.mxu0 %v195_v21 }
  0xab   : > { %297 = vmatmul.msk.bf16.vlgmr.msra.gmra.mxu0 %vm200_vm15, %v199_v22 }
 0x128   : > { %v217_v23 = vpop.f32.mrf.mxu0 }
 0x129   : > { %346 = vtanh.f32 %v217_v23 }
 0x12f   : > { %v347_v24 = vpop.eup %346 }
 0x130   : > { %v219_v25 = vpop.f32.mrf.mxu0  ;;  %223 = vst.msk [vmem:[%s133_s16] sm:$0x1] %vm222_vm0, %v347_v24 }
 0x131   : > { %375 = shalt.err (!%p372_p3)
}
 0x132   : > { %300 = dma.vmem_to_hbm [thread:$0]  (%p472_p5), %s236_s17, 16, %s238_s21, %s225_s22  }
 0x133 PF: > { %p306_p4 = scmp.ge.s32.totalorder %s410_s12, 2  ;;  %s249_s29 = sand.u32 1, %s398_s9  }
 0x134   : > { %s250_s30 = scalar_lea.sflag [#allocation4], %s249_s29 }
 0x135   : > { %p303_p7 = pnand %p306_p4, %p476_p6 }
 0x137   : > { %p304_p8 = pneg %p303_p7 }
 0x139   : > { %393 = dma.done.wait (%p304_p8), %s250_s30, 16  }
 0x13a   : > { %395 = vsyncadd (%p304_p8), %s250_s30, 4294967280  ;;  %p12_p9 = scmp.ge.s32.totalorder %s459_s15, 4   ;;  %s527_s9 = smov %s402_s10 }
 0x13b   : > { %s528_s10 = smov %s406_s11  ;;  %s529_s11 = smov %s470_s18 }
 0x13c   : > { %s530_s12 = smov %s459_s15  ;;  %14 = sbr.rel (!%p12_p9) target bundleno = 3 (0x3), region = 63 }
 0x141   :  { %255 = vsyncpa [#allocation4], 1 }
 0x142   :  { %257 = vsyncpa [#allocation4 + $0x1], 1 }

// kernel: synthesizer_forward.41
= control target key start
LH: loop header
LB: loop body
LE: loop exit
PB: predicated region body
PF: predicated region fallthrough
CT: control target
= control target key end

     0   :  { %s428_s15 = smov 0   ;;  %s477_s0 = inlined_call_operand.vmem [shape: f32[2,16,16], index: 0, kind: input, shape index: {}]   ;;  %s478_s1 = inlined_call_operand.vmem [shape: bf16[32,16], index: 1, kind: input, shape index: {}]   ;;  %s479_s2 = inlined_call_operand.vmem [shape: f32[32,1], index: 2, kind: input, shape index: {}]   ;;  %s480_s3 = inlined_call_operand.vmem [shape: f32[2,1,16], index: 3, kind: input, shape index: {}]   ;;  %s481_s4 = inlined_call_operand.vmem [shape: f32[2,32,16], index: 4, kind: output, shape index: {}]  }
   0x1 LB: > { %s356_s16 = sadd.s32 4294967295, %s400_s15   ;;  %p360_p0 = scmp.ge.s32.totalorder %s400_s15, 1  ;;  %s400_s15 = sphi %s428_s15, %s14_s15  }
   0x2   : > { %p170_p1 = scmp.lt.s32.totalorder %s400_s15, 3 }
   0x4   : > { %p171_p2 = pnand %p360_p0, %p170_p1 }
   0x5   : > { %p199_p3 = scmp.lt.s32.totalorder (!%p171_p2), %s356_s16, 1 }
   0x6   : > { %174 = sbr.rel (%p171_p2) target bundleno = 160 (0xa0), region = 36 }
   0xb   : > { %v222_v0 = vld [vmem:[%s479_s2 + $0x10] sm:$0xff]  ;;  %v402_v1 = vmov 0   ;;  %v220_v2 = vld [vmem:[%s479_s2] sm:$0xff]  ;;  %s483_s16 = smov (!%p199_p3, %s356_s16), 1  ;;  %v223_v6 = vld [vmem:[%s479_s2 + $0x18] sm:$0xff]  ;;  %vm254_vm0 = vcmask 130048  }
   0xc   : > { %392 = vset.pattern.permute.xlu1 %v402_v1  ;;  %391 = vset.pattern.permute.xlu0 %v402_v1  ;;  %s377_s21 = sshll.u32 %s483_s16, 4  ;;  %s206_s24 = scalar_lea.vmem %s480_s3, %s483_s16  ;;  %v221_v7 = vld [vmem:[%s479_s2 + $0x8] sm:$0xff]  ;;  %v379_v8 = vld [vmem:[%s478_s1] sm:$0xff] }
   0xd   : > { %236 = vperm.xlu1 %392, %v222_v0   ;;  %226 = vperm.xlu0 %391, %v220_v2   ;;  %s203_s27 = scalar_lea.vmem %s477_s0, %s377_s21  ;;  %v380_v9 = vld [vmem:[%s478_s1 + $0x8] sm:$0xff]  ;;  %s378_s10 = sshll.u32 %s483_s16, 5  ;;  %v393_v12 = vld [vmem:[%s206_s24] ss:$0 sm:$0xff] }
   0xe   : > { %v213_v3 = vld [vmem:[%s203_s27] sm:$0xff]  ;;  %v214_v4 = vld [vmem:[%s203_s27 + $0x8] sm:$0xff]  ;;  %s211_s13 = scalar_lea.vmem %s481_s4, %s378_s10 }
   0xf   : > { %v215_v5 = vpack.c.bf16 %v214_v4, %v213_v3 }
  0x11   : > { %268 = vmatpush.bf16.msra.mxu0 %v215_v5  ;;  %381 = vmatpush.bf16.msra.mxu1 %v215_v5 }
  0x14   : > { %373 = vmatmul.msk.bf16.vlgmr.msra.gmra.mxu0 %vm254_vm0, %v379_v8  ;;  %374 = vmatmul.msk.bf16.vlgmr.msra.gmra.mxu1 %vm254_vm0, %v380_v9 }
  0x15   : > { %241 = vperm.xlu1 %392, %v223_v6   ;;  %231 = vperm.xlu0 %391, %v221_v7  }
  0x7f   : > { %v237_v10 = vpop.permute.xlu1 %236  ;;  %v227_v11 = vpop.permute.xlu0 %226 }
  0x87   : > { %v242_v19 = vpop.permute.xlu1 %241  ;;  %v232_v20 = vpop.permute.xlu0 %231 }
  0x91   : > { %v270_v13 = vpop.f32.mrf.mxu0  ;;  %v275_v14 = vpop.f32.mrf.mxu1 }
  0x92   : > { %v271_v15 = vadd.f32 %v270_v13, %v227_v11  ;;  %v276_v16 = vadd.f32 %v275_v14, %v237_v10 }
  0x94   : > { %v284_v17 = vmul.f32 %v393_v12, %v271_v15  ;;  %v286_v18 = vmul.f32 %v393_v12, %v276_v16 }
  0x96   : > { %288 = vst.msk [vmem:[%s211_s13] sm:$0xff] %vm254_vm0, %v284_v17 }
  0x97   : > { %290 = vst.msk [vmem:[%s211_s13 + $0x10] sm:$0xff] %vm254_vm0, %v286_v18 }
  0x99   : > { %v272_v21 = vpop.f32.mrf.mxu0  ;;  %v277_v22 = vpop.f32.mrf.mxu1 }
  0x9a   : > { %v273_v23 = vadd.f32 %v272_v21, %v232_v20  ;;  %v278_v24 = vadd.f32 %v277_v22, %v242_v19 }
  0x9c   : > { %v285_v25 = vmul.f32 %v393_v12, %v273_v23  ;;  %v287_v26 = vmul.f32 %v393_v12, %v278_v24 }
  0x9e   : > { %289 = vst.msk [vmem:[%s211_s13 + $0x8] sm:$0xff] %vm254_vm0, %v285_v25 }
  0x9f   : > { %291 = vst.msk [vmem:[%s211_s13 + $0x18] sm:$0xff] %vm254_vm0, %v287_v26 }
  0xa0 PF: > { %s14_s15 = sadd.s32 1, %s400_s15  }
  0xa1   : > { %p11_p4 = scmp.ge.s32.totalorder %s14_s15, 4  }
  0xa3   :  { %13 = sbr.rel (!%p11_p4) target bundleno = 1 (0x1), region = 69 }

// kernel: reverse
= control target key start
LH: loop header
LB: loop body
LE: loop exit
PB: predicated region body
PF: predicated region fallthrough
CT: control target
= control target key end

     0   :  { %s157_s0 = inlined_call_operand.vmem [shape: f32[2,16,16], index: 0, kind: input, shape index: {}]   ;;  %s158_s1 = inlined_call_operand.vmem [shape: f32[2,16,16], index: 1, kind: output, shape index: {}]  }
   0x1   :  { %v36_v0 = vld [vmem:[%s157_s0] sm:$0xff]  ;;  %v38_v1 = vld [vmem:[%s157_s0 + $0x8] sm:$0xff]  ;;  %v40_v2 = vld [vmem:[%s157_s0 + $0x10] sm:$0xff] }
   0x2   :  { %37 = vst [vmem:[#allocation0] sm:$0xff] %v36_v0  ;;  %v42_v3 = vld [vmem:[%s157_s0 + $0x18] sm:$0xff] }
   0x3   :  { %39 = vst [vmem:[#allocation0 + $0x8] sm:$0xff] %v38_v1 }
   0x4   :  { %41 = vst [vmem:[#allocation0 + $0x10] sm:$0xff] %v40_v2 }
   0x5   :  { %43 = vst [vmem:[#allocation0 + $0x18] sm:$0xff] %v42_v3 }
   0x9   :  { %v53_v4 = vld [vmem:[#allocation0 + $0x7] ss:$-1 sm:$0xff] }
   0xa   :  { %v49_v5 = vld [vmem:[#allocation0 + $0xf] ss:$-1 sm:$0xff]  ;;  %102 = vst [vmem:[%s158_s1 + $0x8] sm:$0xff] %v53_v4 }
   0xb   :  { %v63_v6 = vld [vmem:[#allocation0 + $0x17] ss:$-1 sm:$0xff]  ;;  %100 = vst [vmem:[%s158_s1] sm:$0xff] %v49_v5 }
   0xc   :  { %v59_v7 = vld [vmem:[#allocation0 + $0x1f] ss:$-1 sm:$0xff]  ;;  %106 = vst [vmem:[%s158_s1 + $0x18] sm:$0xff] %v63_v6 }
   0xd   :  { %104 = vst [vmem:[%s158_s1 + $0x10] sm:$0xff] %v59_v7 }

// kernel: synthesizer_forward.43
= control target key start
LH: loop header
LB: loop body
LE: loop exit
PB: predicated region body
PF: predicated region fallthrough
CT: control target
= control target key end

     0   :  { %s464_s18 = smov 0   ;;  %s496_s0 = inlined_call_operand.vmem [shape: f32[2,32,16], index: 0, kind: input, shape index: {}]   ;;  %s497_s1 = inlined_call_operand.vmem [shape: bf16[16,32], index: 1, kind: input, shape index: {}]   ;;  %s498_s2 = inlined_call_operand.vmem [shape: f32[16,1], index: 2, kind: input, shape index: {}]   ;;  %s499_s3 = inlined_call_operand.vmem [shape: f32[2,1,16], index: 3, kind: input, shape index: {}]   ;;  %s500_s4 = inlined_call_operand.vmem [shape: f32[2,16,16], index: 4, kind: input, shape index: {}]   ;;  %s501_s5 = inlined_call_operand.vmem [shape: f32[2,16,16], index: 5, kind: output, shape index: {}]  }
   0x1 LB: > { %s392_s19 = sadd.s32 4294967295, %s431_s18   ;;  %p396_p0 = scmp.ge.s32.totalorder %s431_s18, 1  ;;  %s431_s18 = sphi %s464_s18, %s15_s18  }
   0x2   : > { %p205_p1 = scmp.lt.s32.totalorder %s431_s18, 3 }
   0x4   : > { %p206_p2 = pnand %p396_p0, %p205_p1 }
   0x5   : > { %p241_p3 = scmp.lt.s32.totalorder (!%p206_p2), %s392_s19, 1 }
   0x6   : > { %209 = sbr.rel (%p206_p2) target bundleno = 165 (0xa5), region = 40 }
   0xb   : > { %v268_v0 = vld [vmem:[%s498_s2] sm:$0xff]  ;;  %v433_v1 = vmov 0   ;;  %s503_s19 = smov (!%p241_p3, %s392_s19), 1  ;;  %v269_v7 = vld [vmem:[%s498_s2 + $0x8] sm:$0xff]  ;;  %vm285_vm0 = vcmask 261120   ;;  %vm313_vm1 = vcmask 130048  }
   0xc   : > { %423 = vset.pattern.permute.xlu0 %v433_v1  ;;  %s410_s22 = sshll.u32 %s503_s19, 5  ;;  %s248_s25 = scalar_lea.vmem %s499_s3, %s503_s19  ;;  %v413_v9 = vld [vmem:[%s497_s1] sm:$0xff] }
   0xd   : > { %272 = vperm.xlu0 %423, %v268_v0   ;;  %s245_s28 = scalar_lea.vmem %s496_s0, %s410_s22  ;;  %s411_s8 = sshll.u32 %s503_s19, 4  ;;  %v424_v11 = vld [vmem:[%s248_s25] ss:$0 sm:$0xff] }
   0xe   : > { %v262_v2 = vld [vmem:[%s245_s28 + $0x10] sm:$0xff]  ;;  %v263_v3 = vld [vmem:[%s245_s28 + $0x18] sm:$0xff]  ;;  %v260_v4 = vld [vmem:[%s245_s28] sm:$0xff]  ;;  %s253_s11 = scalar_lea.vmem %s500_s4, %s411_s8  ;;  %s258_s14 = scalar_lea.vmem %s501_s5, %s411_s8 }
   0xf   : > { %v265_v5 = vpack.c.bf16 %v263_v3, %v262_v2  ;;  %v261_v6 = vld [vmem:[%s245_s28 + $0x8] sm:$0xff]  ;;  %v309_v14 = vld [vmem:[%s253_s11] sm:$0xff] }
  0x10   : > { %v264_v8 = vpack.c.bf16 %v261_v6, %v260_v4  ;;  %v310_v20 = vld [vmem:[%s253_s11 + $0x8] sm:$0xff] }
  0x11   : > { %295 = vmatpush.bf16.msra.mxu0 %v265_v5 }
  0x15   : > { %277 = vperm.xlu0 %423, %v269_v7   ;;  %296 = vmatpush.bf16.msra.mxu0 %v264_v8 }
  0x18   : > { %407 = vmatmul.msk.bf16.vlgmr.msra.gmra.mxu0 %vm285_vm0, %v413_v9 }
  0x7f   : > { %v273_v10 = vpop.permute.xlu0 %272 }
  0x87   : > { %v278_v17 = vpop.permute.xlu0 %277 }
  0x95   : > { %v298_v12 = vpop.f32.mrf.mxu0 }
  0x96   : > { %v299_v13 = vadd.f32 %v298_v12, %v273_v10 }
  0x98   : > { %v307_v15 = vmul.f32 %v424_v11, %v299_v13 }
  0x9a   : > { %v311_v16 = vadd.f32 %v309_v14, %v307_v15 }
  0x9c   : > { %314 = vst.msk [vmem:[%s258_s14] sm:$0xff] %vm313_vm1, %v311_v16 }
  0x9d   : > { %v300_v18 = vpop.f32.mrf.mxu0 }
  0x9e   : > { %v301_v19 = vadd.f32 %v300_v18, %v278_v17 }
  0xa0   : > { %v308_v21 = vmul.f32 %v424_v11, %v301_v19 }
  0xa2   : > { %v312_v22 = vadd.f32 %v310_v20, %v308_v21 }
  0xa4   : > { %315 = vst.msk [vmem:[%s258_s14 + $0x8] sm:$0xff] %vm313_vm1, %v312_v22 }
  0xa5 PF: > { %s15_s18 = sadd.s32 1, %s431_s18  }
  0xa6   : > { %p12_p4 = scmp.ge.s32.totalorder %s15_s18, 4  }
  0xa8   :  { %14 = sbr.rel (!%p12_p4) target bundleno = 1 (0x1), region = 76 }

// kernel: synthesizer_forward.42
= control target key start
LH: loop header
LB: loop body
LE: loop exit
PB: predicated region body
PF: predicated region fallthrough
CT: control target
= control target key end

     0   :  { %s1221_s21 = smov 0   ;;  %s1223_s22 = smov 0   ;;  %s1438_s0 = inlined_call_operand.vmem [shape: f32[2,32,16], index: 0, kind: input, shape index: {}]   ;;  %s1439_s1 = inlined_call_operand.vmem [shape: f32[2,1,16], index: 1, kind: input, shape index: {}]   ;;  %s1440_s2 = inlined_call_operand.vmem [shape: f32[2,3,64,1], index: 2, kind: input, shape index: {}]   ;;  %s1441_s3 = inlined_call_operand.vmem [shape: bf16[3,64,160], index: 3, kind: input, shape index: {}]   ;;  %s1442_s4 = inlined_call_operand.vmem [shape: bf16[3,64,32], index: 4, kind: input, shape index: {}]   ;;  %s1443_s5 = inlined_call_operand.vmem [shape: f32[3,64,1], index: 5, kind: input, shape index: {}]   ;;  %s1444_s6 = inlined_call_operand.vmem [shape: f32[2,32,16], index: 6, kind: output, shape index: {}]  }
   0x1   :  { %s1225_s23 = smov 0   ;;  %s1227_s24 = smov 0  }
   0x2   :  { %s1229_s25 = smov 0  }
   0x3 LB: > { %s25_s26 = sadd.s32 1, %s1169_s23  ;;  %s28_s27 = sadd.s32 1, %s1173_s24  ;;  %s1177_s25 = sphi %s1229_s25, %s16_s25   ;;  %s1173_s24 = sphi %s1227_s24, %s1450_s24   ;;  %s1169_s23 = sphi %s1225_s23, %s1449_s23   ;;  %s1165_s22 = sphi %s1223_s22, %s1448_s22   ;;  %s1161_s21 = sphi %s1221_s21, %s1447_s21  }
   0x4   : > { %p26_p0 = scmp.ge.s32.totalorder %s25_s26, 3  ;;  %p965_p1 = scmp.ge.s32.totalorder %s1177_s25, 1 }
   0x5   : > { %p242_p2 = scmp.lt.s32.totalorder %s1177_s25, 7 }
   0x6   : > { %s1452_s26 = smov (%p26_p0, %s25_s26), 0  ;;  %s1454_s27 = smov (!%p26_p0, %s28_s27), %s1173_s24 }
   0x7   : > { %p243_p3 = pnand %p965_p1, %p242_p2  ;;  %p30_p4 = scmp.ge.s32.totalorder %s1454_s27, 2 }
   0x8   : > { %p280_p5 = scmp.lt.s32.totalorder (!%p243_p3), %s1165_s22, 1  ;;  %p971_p6 = scmp.ne.s32.totalorder (!%p243_p3), %s1161_s21, 0 }
   0x9   : > { %s1456_s27 = smov (%p30_p4, %s1454_s27), 0  ;;  %246 = sbr.rel (%p243_p3) target bundleno = 616 (0x268), region = 44 }
   0xe   : > { %s1458_s22 = smov (!%p280_p5, %s1165_s22), 1  ;;  %303 = sbr.rel (%p971_p6) target bundleno = 28 (0x1c), region = 48 }
   0xf   : > { %s1040_s28 = sshll.u32 %s1458_s22, 5  ;;  %s287_s7 = scalar_lea.vmem %s1439_s1, %s1458_s22 }
  0x10   : > { %s284_s10 = scalar_lea.vmem %s1438_s0, %s1040_s28  ;;  %s1064_s11 = smul.u32 192, %s1458_s22  ;;  %v1259_v0 = vld [vmem:[%s287_s7] sm:$0x1] }
  0x11   : > { %s1264_s14 = scalar_lea.vmem %s1444_s6, %s1040_s28 }
  0x12   : > { %s1269_s17 = scalar_lea.vmem %s1440_s2, %s1064_s11 }
  0x13   : > { %v304_v1 = vld [vmem:[%s284_s10] sm:$0xff]  ;;  %vm308_vm0 = vcmask 130048   ;;  %v305_v2 = vld [vmem:[%s284_s10 + $0x8] sm:$0xff]  ;;  %v306_v3 = vld [vmem:[%s284_s10 + $0x10] sm:$0xff]  ;;  %v1179_v5 = vmov 0.0  }
  0x14   : > { %309 = vst.msk [vmem:[#allocation2] sm:$0xff] %vm308_vm0, %v304_v1  ;;  %v307_v4 = vld [vmem:[%s284_s10 + $0x18] sm:$0xff] }
  0x15   : > { %310 = vst.msk [vmem:[#allocation2 + $0x8] sm:$0xff] %vm308_vm0, %v305_v2 }
  0x16   : > { %311 = vst.msk [vmem:[#allocation2 + $0x10] sm:$0xff] %vm308_vm0, %v306_v3 }
  0x17   : > { %312 = vst.msk [vmem:[#allocation2 + $0x18] sm:$0xff] %vm308_vm0, %v307_v4 }
  0x18   : > { %313 = vst.msk [vmem:[#allocation3] sm:$0xff] %vm308_vm0, %v1179_v5 }
  0x19   : > { %314 = vst.msk [vmem:[#allocation3 + $0x8] sm:$0xff] %vm308_vm0, %v1179_v5 }
  0x1a   : > { %315 = vst.msk [vmem:[#allocation3 + $0x10] sm:$0xff] %vm308_vm0, %v1179_v5 }
  0x1b   : > { %316 = vst.msk [vmem:[#allocation3 + $0x18] sm:$0xff] %vm308_vm0, %v1179_v5 }
  0x1c PF: > { %vm369_vm1 = vcmask 130048   ;;  %v1274_v7 = vld [vmem:[#allocation2] sm:$0xff]  ;;  %s1180_s18 = smov 127   ;;  %s1181_s19 = smov 1   ;;  %v1287_v9 = vld [vmem:[#allocation2 + $0x8] sm:$0xff]  ;;  %vm347_vm2 = vcmask 7168  }
  0x1d   : > { %v1272_v6 = vld [vmem:[#allocation2 + $0x10] sm:$0xff]  ;;  %379 = vrot.lane.b32.xlu1 %v1274_v7, %s1180_s18  ;;  %370 = vst.msk [vmem:[#allocation4 + $0x40] sm:$0xff] %vm369_vm1, %v1274_v7  ;;  %v1182_v10 = vmov 0.0   ;;  %s1183_s20 = smov 126   ;;  %s1184_s22 = smov 2   ;;  %vm374_vm3 = vcmask 130168  }
  0x1e   : > { %383 = vrot.lane.b32.xlu0 %v1272_v6, %s1180_s18  ;;  %372 = vst.msk [vmem:[#allocation4 + $0x50] sm:$0xff] %vm369_vm1, %v1272_v6  ;;  %v1282_v8 = vld [vmem:[#allocation2 + $0x18] sm:$0xff]  ;;  %356 = vrot.lane.b32.xlu2 %v1272_v6, %s1181_s19  ;;  %vm364_vm4 = vcmask 130056   ;;  %vm396_vm5 = vcmask 130160   ;;  %vm391_vm6 = vcmask 121856   ;;  %vm321_vm7 = vcmask 15360  }
  0x1f   : > { %373 = vst.msk [vmem:[#allocation4 + $0x58] sm:$0xff] %vm369_vm1, %v1282_v8  ;;  %vm413_vm8 = vcmask 113664   ;;  %vm342_vm9 = vcmask 130064   ;;  %s1316_s28 = sshll.u32 %s1161_s21, 6  ;;  %v1185_v38 = vmov 0   ;;  %vm545_vm10 = vcmask 261120  }
  0x20   : > { %371 = vst.msk [vmem:[#allocation4 + $0x48] sm:$0xff] %vm369_vm1, %v1287_v9  ;;  %s1320_s29 = scalar_lea.vmem %s1269_s17, %s1316_s28  ;;  %1112 = vset.pattern.permute.xlu1 %v1185_v38  ;;  %1114 = vset.pattern.permute.xlu0 %v1185_v38  ;;  %s1330_s8 = scalar_lea.vmem %s1441_s3, %s1316_s28 }
  0x21   : > { %350 = vst.msk [vmem:[#allocation4 + $0x30] sm:$0xff] %vm347_vm2, %v1182_v10  ;;  %v467_v31 = vld [vmem:[%s1320_s29 + $0x30] sm:$0xff]  ;;  %v465_v32 = vld [vmem:[%s1320_s29 + $0x20] sm:$0xff]  ;;  %1113 = vset.pattern.permute.xlu2 %v1185_v38  ;;  %v979_v48 = vld [vmem:[%s1330_s8 + $0x8] sm:$0xf0]  ;;  %s713_s11 = scalar_lea.vmem %s1443_s5, %s1316_s28  ;;  %s1051_s12 = sshll.u32 %s1161_s21, 5 }
  0x22   : > { %348 = vst.msk [vmem:[#allocation4 + $0x20] sm:$0xff] %vm347_vm2, %v1182_v10  ;;  %v1043_v47 = vld [vmem:[%s1330_s8 + $0x4] sm:$0xf]  ;;  %v466_v56 = vld [vmem:[%s1320_s29 + $0x28] sm:$0xff]  ;;  %v468_v58 = vld [vmem:[%s1320_s29 + $0x38] sm:$0xff]  ;;  %s702_s16 = scalar_lea.vmem %s1442_s4, %s1051_s12  ;;  %p1037_p7 = scmp.ne.s32.totalorder %s1161_s21, 2 }
  0x23   : > { %349 = vst.msk [vmem:[#allocation4 + $0x28] sm:$0xff] %vm347_vm2, %v1182_v10  ;;  %v982_v54 = vor.u32 %v1043_v47, %v979_v48  ;;  %v462_v57 = vld [vmem:[%s1320_s29 + $0x8] sm:$0xff]  ;;  %v464_v63 = vld [vmem:[%s1320_s29 + $0x18] sm:$0xff]  ;;  %v977_v2 = vld [vmem:[%s1330_s8] sm:$0xf] }
  0x24   : > { %351 = vst.msk [vmem:[#allocation4 + $0x38] sm:$0xff] %vm347_vm2, %v1182_v10  ;;  %v437_v36 = vld [vmem:[#allocation4 + $0x40] sm:$0xff]  ;;  %v463_v3 = vld [vmem:[%s1320_s29 + $0x10] sm:$0xff]  ;;  %v1044_v4 = vld [vmem:[%s1330_s8 + $0x4] sm:$0xf0] }
  0x25   : > { %381 = vrot.lane.b32.xlu1 %v1287_v9, %s1180_s18  ;;  %377 = vst.msk [vmem:[#allocation4 + $0x70] sm:$0xff] %vm374_vm3, %v1182_v10  ;;  %v439_v27 = vld [vmem:[#allocation4 + $0x50] sm:$0xff] }
  0x26   : > { %385 = vrot.lane.b32.xlu0 %v1282_v8, %s1180_s18  ;;  %358 = vrot.lane.b32.xlu2 %v1282_v8, %s1181_s19  ;;  %375 = vst.msk [vmem:[#allocation4 + $0x60] sm:$0xff] %vm374_vm3, %v1182_v10  ;;  %v440_v28 = vld [vmem:[#allocation4 + $0x58] sm:$0xff]  ;;  %v985_v5 = vld [vmem:[%s1330_s8 + $0x10] sm:$0xf] }
  0x27   : > { %376 = vst.msk [vmem:[#allocation4 + $0x68] sm:$0xff] %vm374_vm3, %v1182_v10  ;;  %v454_v30 = vpack.c.bf16 %v440_v28, %v439_v27  ;;  %v438_v37 = vld [vmem:[#allocation4 + $0x48] sm:$0xff] }
  0x28   : > { %378 = vst.msk [vmem:[#allocation4 + $0x78] sm:$0xff] %vm374_vm3, %v1182_v10  ;;  %v453_v41 = vpack.c.bf16 %v438_v37, %v437_v36  ;;  %v995_v27 = vld [vmem:[%s1330_s8 + $0x28] sm:$0xf0]  ;;  %v1003_v36 = vld [vmem:[%s1330_s8 + $0x38] sm:$0xf0] }
  0x29   : > { %399 = vst.msk [vmem:[#allocation4 + $0x90] sm:$0xff] %vm396_vm5, %v1182_v10 }
  0x2a   : > { %397 = vst.msk [vmem:[#allocation4 + $0x80] sm:$0xff] %vm396_vm5, %v1182_v10 }
  0x2b   : > { %398 = vst.msk [vmem:[#allocation4 + $0x88] sm:$0xff] %vm396_vm5, %v1182_v10 }
  0x2c   : > { %400 = vst.msk [vmem:[#allocation4 + $0x98] sm:$0xff] %vm396_vm5, %v1182_v10 }
  0x2d   : > { %407 = vrot.lane.b32.xlu1 %v1282_v8, %s1183_s20  ;;  %324 = vst.msk [vmem:[#allocation4 + $0x10] sm:$0xff] %vm321_vm7, %v1182_v10 }
  0x2e   : > { %405 = vrot.lane.b32.xlu0 %v1272_v6, %s1183_s20  ;;  %352 = vrot.lane.b32.xlu2 %v1274_v7, %s1181_s19  ;;  %322 = vst.msk [vmem:[#allocation4] sm:$0xff] %vm321_vm7, %v1182_v10 }
  0x2f   : > { %323 = vst.msk [vmem:[#allocation4 + $0x8] sm:$0xff] %vm321_vm7, %v1182_v10 }
  0x30   : > { %325 = vst.msk [vmem:[#allocation4 + $0x18] sm:$0xff] %vm321_vm7, %v1182_v10  ;;  %v1046_v10 = vld [vmem:[%s1330_s8 + $0x14] sm:$0xf0] }
  0x35   : > { %401 = vrot.lane.b32.xlu1 %v1274_v7, %s1183_s20 }
  0x36   : > { %354 = vrot.lane.b32.xlu0 %v1287_v9, %s1181_s19  ;;  %403 = vrot.lane.b32.xlu2 %v1287_v9, %s1183_s20 }
  0x3d   : > { %336 = vrot.lane.b32.xlu1 %v1282_v8, %s1184_s22 }
  0x3e   : > { %334 = vrot.lane.b32.xlu0 %v1272_v6, %s1184_s22  ;;  %330 = vrot.lane.b32.xlu2 %v1274_v7, %s1184_s22 }
  0x45   : > { %501 = vperm.xlu1 %1112, %v467_v31   ;;  %v718_v31 = vld [vmem:[%s713_s11 + $0x20] sm:$0xff] }
  0x46   : > { %332 = vrot.lane.b32.xlu0 %v1287_v9, %s1184_s22  ;;  %506 = vperm.xlu2 %1113, %v468_v58  }
  0x4d   : > { %496 = vperm.xlu1 %1112, %v466_v56  }
  0x4e   : > { %491 = vperm.xlu0 %1114, %v465_v32   ;;  %481 = vperm.xlu2 %1113, %v463_v3   ;;  %v721_v32 = vld [vmem:[%s713_s11 + $0x38] sm:$0xff] }
  0x55   : > { %486 = vperm.xlu1 %1112, %v464_v63  }
  0x56   : > { %476 = vperm.xlu0 %1114, %v462_v57  }
  0x78   : > { %v357_v11 = vpop.permute.xlu2 %356 }
  0x79   : > { %367 = vst.msk [vmem:[#allocation4 + $0x30] sm:$0xff] %vm364_vm4, %v357_v11 }
  0x80   : > { %v359_v12 = vpop.permute.xlu2 %358  ;;  %v435_v42 = vld [vmem:[#allocation4 + $0x30] sm:$0xff] }
  0x81   : > { %368 = vst.msk [vmem:[#allocation4 + $0x38] sm:$0xff] %vm364_vm4, %v359_v12  ;;  %v1045_v12 = vld [vmem:[%s1330_s8 + $0x14] sm:$0xf] }
  0x88   : > { %v353_v13 = vpop.permute.xlu2 %352  ;;  %v436_v43 = vld [vmem:[#allocation4 + $0x38] sm:$0xff] }
  0x89   : > { %365 = vst.msk [vmem:[#allocation4 + $0x20] sm:$0xff] %vm364_vm4, %v353_v13  ;;  %v452_v49 = vpack.c.bf16 %v436_v43, %v435_v42  ;;  %v987_v13 = vld [vmem:[%s1330_s8 + $0x18] sm:$0xf0] }
  0x8f   : > { %v380_v15 = vpop.permute.xlu1 %379 }
  0x90   : > { %v384_v14 = vpop.permute.xlu0 %383  ;;  %v404_v16 = vpop.permute.xlu2 %403  ;;  %392 = vst.msk [vmem:[#allocation4 + $0x60] sm:$0xff] %vm391_vm6, %v380_v15  ;;  %v433_v52 = vld [vmem:[#allocation4 + $0x20] sm:$0xff]  ;;  %v978_v15 = vor.u32 %v1044_v4, %v977_v2 }
  0x91   : > { %394 = vst.msk [vmem:[#allocation4 + $0x70] sm:$0xff] %vm391_vm6, %v384_v14 }
  0x92   : > { %415 = vst.msk [vmem:[#allocation4 + $0x88] sm:$0xff] %vm413_vm8, %v404_v16  ;;  %v986_v16 = vor.u32 %v1046_v10, %v985_v5 }
  0x97   : > { %v382_v18 = vpop.permute.xlu1 %381  ;;  %v441_v26 = vld [vmem:[#allocation4 + $0x60] sm:$0xff] }
  0x98   : > { %v386_v17 = vpop.permute.xlu0 %385  ;;  %v331_v19 = vpop.permute.xlu2 %330  ;;  %393 = vst.msk [vmem:[#allocation4 + $0x68] sm:$0xff] %vm391_vm6, %v382_v18  ;;  %v443_v22 = vld [vmem:[#allocation4 + $0x70] sm:$0xff]  ;;  %v461_v18 = vld [vmem:[%s1320_s29] sm:$0xff] }
  0x99   : > { %395 = vst.msk [vmem:[#allocation4 + $0x78] sm:$0xff] %vm391_vm6, %v386_v17  ;;  %v446_v44 = vld [vmem:[#allocation4 + $0x88] sm:$0xff]  ;;  %v990_v17 = vor.u32 %v1045_v12, %v987_v13  ;;  %471 = vperm.xlu2 %1113, %v461_v18  }
  0x9a   : > { %343 = vst.msk [vmem:[#allocation4] sm:$0xff] %vm342_vm9, %v331_v19  ;;  %v714_v19 = vld [vmem:[%s713_s11] sm:$0xff] }
  0x9b   : > { %724 = vperm.xlu1 %1112, %v714_v19  }
  0x9f   : > { %v408_v21 = vpop.permute.xlu1 %407  ;;  %v442_v25 = vld [vmem:[#allocation4 + $0x68] sm:$0xff] }
  0xa0   : > { %v406_v20 = vpop.permute.xlu0 %405  ;;  %v444_v23 = vld [vmem:[#allocation4 + $0x78] sm:$0xff]  ;;  %417 = vst.msk [vmem:[#allocation4 + $0x98] sm:$0xff] %vm413_vm8, %v408_v21  ;;  %v455_v29 = vpack.c.bf16 %v442_v25, %v441_v26  ;;  %v1048_v25 = vld [vmem:[%s1330_s8 + $0x24] sm:$0xf0]  ;;  %v1047_v26 = vld [vmem:[%s1330_s8 + $0x24] sm:$0xf] }
  0xa1   : > { %416 = vst.msk [vmem:[#allocation4 + $0x90] sm:$0xff] %vm413_vm8, %v406_v20  ;;  %v456_v24 = vpack.c.bf16 %v444_v23, %v443_v22  ;;  %v429_v1 = vld [vmem:[#allocation4] sm:$0xff]  ;;  %v716_v20 = vld [vmem:[%s713_s11 + $0x10] sm:$0xff]  ;;  %v717_v21 = vld [vmem:[%s713_s11 + $0x18] sm:$0xff] }
  0xa2   : > { %734 = vperm.xlu0 %1114, %v716_v20   ;;  %v719_v22 = vld [vmem:[%s713_s11 + $0x28] sm:$0xff] }
  0xa3   : > { %558 = vmatpush.bf16.msra.mxu0 %v456_v24  ;;  %1056 = vmatpush.bf16.msra.mxu3 %v456_v24  ;;  %v715_v23 = vld [vmem:[%s713_s11 + $0x8] sm:$0xff]  ;;  %v993_v24 = vld [vmem:[%s1330_s8 + $0x20] sm:$0xf] }
  0xa4   : > { %739 = vperm.xlu1 %1112, %v717_v21   ;;  %729 = vperm.xlu2 %1113, %v715_v23   ;;  %v994_v28 = vor.u32 %v1048_v25, %v993_v24 }
  0xa7   : > { %559 = vmatpush.bf16.msra.mxu0 %v455_v29  ;;  %1057 = vmatpush.bf16.msra.mxu3 %v455_v29  ;;  %v402_v34 = vpop.permute.xlu1 %401  ;;  %v448_v39 = vld [vmem:[#allocation4 + $0x98] sm:$0xff]  ;;  %v998_v29 = vor.u32 %v1047_v26, %v995_v27 }
  0xa8   : > { %v355_v33 = vpop.permute.xlu0 %354  ;;  %v447_v35 = vld [vmem:[#allocation4 + $0x90] sm:$0xff]  ;;  %414 = vst.msk [vmem:[#allocation4 + $0x80] sm:$0xff] %vm413_vm8, %v402_v34  ;;  %v1050_v34 = vld [vmem:[%s1330_s8 + $0x34] sm:$0xf0] }
  0xa9   : > { %366 = vst.msk [vmem:[#allocation4 + $0x28] sm:$0xff] %vm364_vm4, %v355_v33  ;;  %v458_v40 = vpack.c.bf16 %v448_v39, %v447_v35  ;;  %v1001_v33 = vld [vmem:[%s1330_s8 + $0x30] sm:$0xf]  ;;  %v1049_v35 = vld [vmem:[%s1330_s8 + $0x34] sm:$0xf] }
  0xaa   : > { %749 = vperm.xlu0 %1114, %v719_v22   ;;  %v1002_v37 = vor.u32 %v1050_v34, %v1001_v33  ;;  %v1006_v38 = vor.u32 %v1049_v35, %v1003_v36 }
  0xab   : > { %560 = vmatpush.bf16.msra.mxu0 %v454_v30  ;;  %1058 = vmatpush.bf16.msra.mxu3 %v454_v30  ;;  %v720_v30 = vld [vmem:[%s713_s11 + $0x30] sm:$0xff] }
  0xac   : > { %593 = vmatpush.bf16.msra.mxu1 %v458_v40  ;;  %754 = vperm.xlu1 %1112, %v720_v30  }
  0xad   : > { %744 = vperm.xlu2 %1113, %v718_v31  }
  0xaf   : > { %561 = vmatpush.bf16.msra.mxu0 %v453_v41  ;;  %1059 = vmatpush.bf16.msra.mxu3 %v453_v41  ;;  %v337_v46 = vpop.permute.xlu1 %336  ;;  %v445_v50 = vld [vmem:[#allocation4 + $0x80] sm:$0xff] }
  0xb0   : > { %v335_v45 = vpop.permute.xlu0 %334  ;;  %346 = vst.msk [vmem:[#allocation4 + $0x18] sm:$0xff] %vm342_vm9, %v337_v46  ;;  %v457_v51 = vpack.c.bf16 %v446_v44, %v445_v50  ;;  %v434_v53 = vld [vmem:[#allocation4 + $0x28] sm:$0xff]  ;;  %v507_v50 = vpop.permute.xlu2 %506 }
  0xb1   : > { %345 = vst.msk [vmem:[#allocation4 + $0x10] sm:$0xff] %vm342_vm9, %v335_v45  ;;  %v451_v55 = vpack.c.bf16 %v434_v53, %v433_v52 }
  0xb2   : > { %594 = vmatpush.bf16.msra.mxu1 %v457_v51 }
  0xb3   : > { %562 = vmatpush.bf16.msra.mxu0 %v452_v49  ;;  %1060 = vmatpush.bf16.msra.mxu3 %v452_v49 }
  0xb5   : > { %1007 = vmatmul.msk.bf16.vlgmr.msra.gmra.mxu1 %vm545_vm10, %v982_v54  ;;  %759 = vperm.xlu2 %1113, %v721_v32  }
  0xb7   : > { %563 = vmatpush.bf16.msra.mxu0 %v451_v55  ;;  %1061 = vmatpush.bf16.msra.mxu3 %v451_v55  ;;  %v432_v61 = vld [vmem:[#allocation4 + $0x18] sm:$0xff]  ;;  %v502_v46 = vpop.permute.xlu1 %501 }
  0xb8   : > { %v333_v59 = vpop.permute.xlu0 %332  ;;  %v431_v60 = vld [vmem:[#allocation4 + $0x10] sm:$0xff] }
  0xb9   : > { %344 = vst.msk [vmem:[#allocation4 + $0x8] sm:$0xff] %vm342_vm9, %v333_v59  ;;  %v450_v62 = vpack.c.bf16 %v432_v61, %v431_v60  ;;  %v1373_v59 = vpop.permute.xlu2 %481 }
  0xbb   : > { %564 = vmatpush.bf16.msra.mxu0 %v450_v62  ;;  %1062 = vmatpush.bf16.msra.mxu3 %v450_v62 }
  0xbf   : > { %v497_v54 = vpop.permute.xlu1 %496 }
  0xc0   : > { %v430_v11 = vld [vmem:[#allocation4 + $0x8] sm:$0xff]  ;;  %v492_v47 = vpop.permute.xlu0 %491 }
  0xc1   : > { %v449_v14 = vpack.c.bf16 %v430_v11, %v429_v1 }
  0xc3   : > { %565 = vmatpush.bf16.msra.mxu0 %v449_v14  ;;  %1063 = vmatpush.bf16.msra.mxu3 %v449_v14 }
  0xc5   : > { %1008 = vmatmul.msk.bf16.gmra.mxu1 %vm545_vm10, %v990_v17 }
  0xc6   : > { %566 = vmatmul.bf16.vlgmr.msra.gmra.mxu0 %v978_v15  ;;  %571 = vmatmul.bf16.vlgmr.msra.gmra.mxu3 %v986_v16 }
  0xc8   : > { %v477_v13 = vpop.permute.xlu0 %476 }
  0xd5   : > { %1009 = vmatmul.msk.bf16.gmra.mxu1 %vm545_vm10, %v998_v29 }
  0xd6   : > { %576 = vmatmul.bf16.gmra.mxu3 %v994_v28 }
  0xe5   : > { %1010 = vmatmul.msk.bf16.gmra.mxu1 %vm545_vm10, %v1006_v38 }
  0xe6   : > { %581 = vmatmul.bf16.gmra.mxu3 %v1002_v37 }
  0xf3   : > { %v472_v12 = vpop.permute.xlu2 %471 }
 0x132   : > { %v596_v39 = vpop.f32.mrf.mxu1 }
 0x13a   : > { %v598_v40 = vpop.f32.mrf.mxu1 }
 0x142   : > { %v1365_v41 = vpop.f32.mrf.mxu1 }
 0x143   : > { %v567_v61 = vpop.f32.mrf.mxu0 }
 0x144   : > { %v568_v19 = vadd.f32 %v567_v61, %v472_v12 }
 0x146   : > { %v597_v27 = vadd.f32 %v596_v39, %v568_v19 }
 0x149   : > { %v1367_v42 = vpop.f32.mrf.mxu3 }
 0x14a   : > { %v1369_v43 = vpop.f32.mrf.mxu1 }
 0x14b   : > { %v569_v15 = vpop.f32.mrf.mxu0 }
 0x14c   : > { %v570_v21 = vadd.f32 %v569_v15, %v477_v13 }
 0x14e   : > { %v599_v29 = vadd.f32 %v598_v40, %v570_v21 }
 0x151   : > { %v1371_v44 = vpop.f32.mrf.mxu3 }
 0x152   : > { %v606_v45 = vpop.f32.mrf.mxu1 }
 0x159   : > { %v577_v48 = vpop.f32.mrf.mxu3 }
 0x15a   : > { %v578_v49 = vadd.f32 %v577_v48, %v492_v47  ;;  %v608_v53 = vpop.f32.mrf.mxu1 }
 0x15c   : > { %v607_v51 = vadd.f32 %v606_v45, %v578_v49  ;;  %v487_v49 = vpop.permute.xlu1 %486 }
 0x15e   : > { %v1011_v52 = vmul.f32 -1.442695, %v607_v51 }
 0x160   : > { %1115 = vpow2.f32 %v1011_v52 }
 0x161   : > { %v579_v55 = vpop.f32.mrf.mxu3 }
 0x162   : > { %v580_v56 = vadd.f32 %v579_v55, %v497_v54  ;;  %v611_v63 = vpop.f32.mrf.mxu1 }
 0x164   : > { %v609_v57 = vadd.f32 %v608_v53, %v580_v56  ;;  %v573_v56 = vadd.f32 %v1367_v42, %v1373_v59 }
 0x166   : > { %v1116_v58 = vpop.eup %1115  ;;  %v1012_v60 = vmul.f32 -1.442695, %v609_v57 }
 0x167   : > { %v632_v62 = vadd.f32 1.0, %v1116_v58 }
 0x168   : > { %1117 = vpow2.f32 %v1012_v60  ;;  %v575_v60 = vadd.f32 %v1371_v44, %v487_v49 }
 0x169   : > { %1119 = vrcp.f32 %v632_v62  ;;  %v582_v1 = vpop.f32.mrf.mxu3  ;;  %v647_v32 = vand.u32 2147483648, %v632_v62  ;;  %vm641_vm12 = vweird.f32 %v632_v62  ;;  %v645_v34 = vand.u32 2147483647, %v632_v62 }
 0x16a   : > { %v583_v2 = vadd.f32 %v582_v1, %v502_v46  ;;  %v613_v20 = vpop.f32.mrf.mxu1 }
 0x16b   : > { %v648_v45 = vor.u32 1.1754944e-38, %v647_v32  ;;  %vm646_vm0 = vcmp.eq.f32.partialorder %v645_v34, 8.507059e+37  ;;  %v730_v34 = vpop.permute.xlu2 %729 }
 0x16c   : > { %v612_v3 = vadd.f32 %v611_v63, %v583_v2  ;;  %v602_v2 = vadd.f32 %v1365_v41, %v573_v56  ;;  %v839_v56 = vld [vmem:[#allocation3 + $0x8] sm:$0xff] }
 0x16e   : > { %v1118_v4 = vpop.eup %1117  ;;  %v1013_v5 = vmul.f32 -1.442695, %v612_v3 }
 0x16f   : > { %v1120_v10 = vpop.eup %1119  ;;  %v633_v11 = vadd.f32 1.0, %v1118_v4  ;;  %v604_v4 = vadd.f32 %v1369_v43, %v575_v60 }
 0x170   : > { %1121 = vpow2.f32 %v1013_v5  ;;  %v637_v14 = vmul.f32 %v1120_v10, %v632_v62  ;;  %vm642_vm11 = vweird.f32 %v1120_v10 }
 0x171   : > { %1123 = vrcp.f32 %v633_v11  ;;  %v584_v16 = vpop.f32.mrf.mxu3  ;;  %vm1378_vm13 = vmor %vm641_vm12, %vm642_vm11  ;;  %v662_v37 = vand.u32 2147483648, %v633_v11  ;;  %v660_v39 = vand.u32 2147483647, %v633_v11  ;;  %vm656_vm15 = vweird.f32 %v633_v11 }
 0x172   : > { %v585_v17 = vadd.f32 %v584_v16, %v507_v50  ;;  %v638_v18 = vsub.f32 1.0, %v637_v14 }
 0x173   : > { %v663_v53 = vor.u32 1.1754944e-38, %v662_v37  ;;  %vm661_vm3 = vcmp.eq.f32.partialorder %v660_v39, 8.507059e+37  ;;  %v735_v39 = vpop.permute.xlu0 %734 }
 0x174   : > { %v614_v22 = vadd.f32 %v613_v20, %v585_v17  ;;  %v639_v23 = vmul.f32 %v1120_v10, %v638_v18 }
 0x176   : > { %v1122_v24 = vpop.eup %1121  ;;  %v1014_v25 = vmul.f32 -1.442695, %v614_v22  ;;  %v640_v31 = vadd.f32 %v1120_v10, %v639_v23 }
 0x177   : > { %v1124_v26 = vpop.eup %1123  ;;  %v1375_v28 = vadd.f32 1.0, %v1122_v24  ;;  %v1052_v24 = vld [vmem:[%s702_s16] sm:$0xff] }
 0x178   : > { %1125 = vpow2.f32 %v1014_v25  ;;  %v652_v30 = vmul.f32 %v1124_v26, %v633_v11  ;;  %vm657_vm14 = vweird.f32 %v1124_v26  ;;  %v644_v38 = vsel %vm1378_vm13, %v1120_v10, %v640_v31  ;;  %v1053_v25 = vld [vmem:[%s702_s16 + $0x8] sm:$0xff] }
 0x179   : > { %1127 = vrcp.f32 %v1375_v28  ;;  %vm658_vm2 = vmor %vm656_vm15, %vm657_vm14  ;;  %v649_v51 = vsel %vm646_vm0, %v648_v45, %v644_v38  ;;  %v677_v11 = vand.u32 2147483648, %v1375_v28  ;;  %vm671_vm5 = vweird.f32 %v1375_v28 }
 0x17a   : > { %v653_v33 = vsub.f32 1.0, %v652_v30  ;;  %1129 = vtanh.f32 %v597_v27  ;;  %v675_v42 = vand.u32 2147483647, %v1375_v28  ;;  %v1055_v27 = vld [vmem:[%s702_s16 + $0x18] sm:$0xff]  ;;  %v828_v31 = vperm.slane %v1259_v0, 0 }
 0x17b   : > { %1131 = vtanh.f32 %v599_v29  ;;  %v678_v43 = vor.u32 1.1754944e-38, %v677_v11 }
 0x17c   : > { %v654_v36 = vmul.f32 %v1124_v26, %v653_v33  ;;  %vm676_vm8 = vcmp.eq.f32.partialorder %v675_v42, 8.507059e+37 }
 0x17e   : > { %v1126_v40 = vpop.eup %1125  ;;  %v655_v46 = vadd.f32 %v1124_v26, %v654_v36 }
 0x17f   : > { %v1128_v47 = vpop.eup %1127  ;;  %v635_v48 = vadd.f32 1.0, %v1126_v40 }
 0x180   : > { %v667_v50 = vmul.f32 %v1128_v47, %v1375_v28  ;;  %v659_v52 = vsel %vm658_vm2, %v1124_v26, %v655_v46  ;;  %v1130_v54 = vpop.eup %1129  ;;  %vm672_vm4 = vweird.f32 %v1128_v47  ;;  %v1054_v26 = vld [vmem:[%s702_s16 + $0x10] sm:$0xff]  ;;  %v725_v28 = vpop.permute.xlu1 %724 }
 0x181   : > { %1133 = vrcp.f32 %v635_v48  ;;  %v1132_v55 = vpop.eup %1131  ;;  %v664_v58 = vsel %vm661_vm3, %v663_v53, %v659_v52  ;;  %v696_v61 = vmul.f32 %v1130_v54, %v649_v51  ;;  %vm673_vm6 = vmor %vm671_vm5, %vm672_vm4  ;;  %v692_v59 = vand.u32 2147483648, %v635_v48  ;;  %v838_v52 = vld [vmem:[#allocation3] sm:$0xff] }
 0x182   : > { %v668_v57 = vsub.f32 1.0, %v667_v50  ;;  %v697_v62 = vmul.f32 %v1132_v55, %v664_v58  ;;  %1135 = vtanh.f32 %v602_v2  ;;  %v690_v41 = vand.u32 2147483647, %v635_v48  ;;  %v750_v55 = vpop.permute.xlu0 %749 }
 0x183   : > { %1137 = vtanh.f32 %v604_v4  ;;  %vm686_vm9 = vweird.f32 %v635_v48  ;;  %v693_v16 = vor.u32 1.1754944e-38, %v692_v59 }
 0x184   : > { %v669_v63 = vmul.f32 %v1128_v47, %v668_v57  ;;  %v711_v1 = vpack.c.bf16 %v697_v62, %v696_v61  ;;  %vm691_vm12 = vcmp.eq.f32.partialorder %v690_v41, 8.507059e+37 }
 0x186   : > { %v670_v5 = vadd.f32 %v1128_v47, %v669_v63 }
 0x187   : > { %v1134_v3 = vpop.eup %1133 }
 0x188   : > { %v682_v10 = vmul.f32 %v1134_v3, %v635_v48  ;;  %v674_v12 = vsel %vm673_vm6, %v1128_v47, %v670_v5  ;;  %vm687_vm7 = vweird.f32 %v1134_v3  ;;  %v1136_v17 = vpop.eup %1135  ;;  %v740_v0 = vpop.permute.xlu1 %739 }
 0x189   : > { %v679_v15 = vsel %vm676_vm8, %v678_v43, %v674_v12  ;;  %vm688_vm11 = vmor %vm686_vm9, %vm687_vm7  ;;  %v1138_v19 = vpop.eup %1137 }
 0x18a   : > { %v683_v44 = vsub.f32 1.0, %v682_v10  ;;  %v698_v21 = vmul.f32 %v1136_v17, %v679_v15 }
 0x18c   : > { %v684_v13 = vmul.f32 %v1134_v3, %v683_v44 }
 0x18e   : > { %v685_v14 = vadd.f32 %v1134_v3, %v684_v13 }
 0x190   : > { %v689_v18 = vsel %vm688_vm11, %v1134_v3, %v685_v14  ;;  %v755_v60 = vpop.permute.xlu1 %754  ;;  %v841_v3 = vld [vmem:[#allocation3 + $0x18] sm:$0xff] }
 0x191   : > { %v694_v20 = vsel %vm691_vm12, %v693_v16, %v689_v18 }
 0x192   : > { %v699_v22 = vmul.f32 %v1138_v19, %v694_v20 }
 0x194   : > { %v712_v23 = vpack.c.bf16 %v699_v22, %v698_v21 }
 0x196   : > { %800 = vmatpush.bf16.msra.mxu2 %v712_v23 }
 0x19a   : > { %801 = vmatpush.bf16.msra.mxu2 %v711_v1 }
 0x19d   : > { %1033 = vmatmul.msk.bf16.vlgmr.msra.gmra.mxu2 %vm545_vm10, %v1052_v24 }
 0x1ad   : > { %1034 = vmatmul.msk.bf16.gmra.mxu2 %vm545_vm10, %v1053_v25 }
 0x1bd   : > { %1035 = vmatmul.msk.bf16.gmra.mxu2 %vm545_vm10, %v1054_v26 }
 0x1cd   : > { %1036 = vmatmul.msk.bf16.gmra.mxu2 %vm545_vm10, %v1055_v27 }
 0x220   : > { %v803_v29 = vpop.f32.mrf.mxu2 }
 0x221   : > { %v804_v30 = vadd.f32 %v803_v29, %v725_v28 }
 0x223   : > { %v823_v32 = vadd.f32 %v804_v30, %v1274_v7 }
 0x225   : > { %v830_v33 = vmul.f32 %v828_v31, %v823_v32 }
 0x227   : > { %834 = vst.msk [vmem:[#allocation2] sm:$0xff] %vm369_vm1, %v830_v33 }
 0x228   : > { %v805_v35 = vpop.f32.mrf.mxu2 }
 0x229   : > { %v806_v36 = vadd.f32 %v805_v35, %v730_v34 }
 0x22b   : > { %v824_v37 = vadd.f32 %v806_v36, %v1287_v9  ;;  %v745_v9 = vpop.permute.xlu2 %744 }
 0x22d   : > { %v831_v38 = vmul.f32 %v828_v31, %v824_v37 }
 0x22f   : > { %835 = vst.msk [vmem:[#allocation2 + $0x8] sm:$0xff] %vm369_vm1, %v831_v38 }
 0x230   : > { %v808_v40 = vpop.f32.mrf.mxu2 }
 0x231   : > { %v809_v45 = vadd.f32 %v808_v40, %v735_v39 }
 0x233   : > { %v825_v46 = vadd.f32 %v809_v45, %v1272_v6  ;;  %v760_v1 = vpop.permute.xlu2 %759 }
 0x235   : > { %v832_v47 = vmul.f32 %v828_v31, %v825_v46 }
 0x237   : > { %836 = vst.msk [vmem:[#allocation2 + $0x10] sm:$0xff] %vm369_vm1, %v832_v47 }
 0x238   : > { %v810_v7 = vpop.f32.mrf.mxu2 }
 0x239   : > { %v811_v48 = vadd.f32 %v810_v7, %v740_v0 }
 0x23b   : > { %v826_v49 = vadd.f32 %v811_v48, %v1282_v8  ;;  %v840_v8 = vld [vmem:[#allocation3 + $0x10] sm:$0xff] }
 0x23d   : > { %v833_v50 = vmul.f32 %v828_v31, %v826_v49 }
 0x23f   : > { %837 = vst.msk [vmem:[#allocation2 + $0x18] sm:$0xff] %vm369_vm1, %v833_v50 }
 0x240   : > { %v813_v51 = vpop.f32.mrf.mxu2 }
 0x241   : > { %v814_v53 = vadd.f32 %v813_v51, %v745_v9 }
 0x243   : > { %v842_v54 = vadd.f32 %v838_v52, %v814_v53 }
 0x245   : > { %846 = vst.msk [vmem:[#allocation3] sm:$0xff] %vm369_vm1, %v842_v54 }
 0x248   : > { %v815_v6 = vpop.f32.mrf.mxu2 }
 0x249   : > { %v816_v57 = vadd.f32 %v815_v6, %v750_v55 }
 0x24b   : > { %v843_v58 = vadd.f32 %v839_v56, %v816_v57 }
 0x24d   : > { %847 = vst.msk [vmem:[#allocation3 + $0x8] sm:$0xff] %vm369_vm1, %v843_v58 }
 0x250   : > { %v818_v61 = vpop.f32.mrf.mxu2 }
 0x251   : > { %v819_v62 = vadd.f32 %v818_v61, %v755_v60 }
 0x253   : > { %v844_v63 = vadd.f32 %v840_v8, %v819_v62 }
 0x255   : > { %848 = vst.msk [vmem:[#allocation3 + $0x10] sm:$0xff] %vm369_vm1, %v844_v63 }
 0x258   : > { %v820_v2 = vpop.f32.mrf.mxu2 }
 0x259   : > { %v821_v4 = vadd.f32 %v820_v2, %v760_v1  ;;  %853 = sbr.rel (%p1037_p7) target bundleno = 616 (0x268), region = 52 }
 0x25b   : > { %v845_v5 = vadd.f32 %v841_v3, %v821_v4 }
 0x25d   : > { %849 = vst.msk [vmem:[#allocation3 + $0x18] sm:$0xff] %vm369_vm1, %v845_v5 }
 0x25e   : > { %v854_v10 = vld [vmem:[#allocation3] sm:$0xff]  ;;  %v855_v11 = vld [vmem:[#allocation3 + $0x8] sm:$0xff]  ;;  %v856_v42 = vld [vmem:[#allocation3 + $0x10] sm:$0xff] }
 0x25f   : > { %v858_v44 = vmul.f32 %v854_v10, %v828_v31  ;;  %v859_v59 = vmul.f32 %v855_v11, %v828_v31  ;;  %v860_v12 = vmul.f32 %v856_v42, %v828_v31 }
 0x261   : > { %862 = vst.msk [vmem:[%s1264_s14] sm:$0xff] %vm369_vm1, %v858_v44 }
 0x262   : > { %863 = vst.msk [vmem:[%s1264_s14 + $0x8] sm:$0xff] %vm369_vm1, %v859_v59 }
 0x263   : > { %864 = vst.msk [vmem:[%s1264_s14 + $0x10] sm:$0xff] %vm369_vm1, %v860_v12 }
 0x264   : > { %v857_v13 = vld [vmem:[#allocation3 + $0x18] sm:$0xff] }
 0x265   : > { %v861_v41 = vmul.f32 %v857_v13, %v828_v31 }
 0x267   : > { %865 = vst.msk [vmem:[%s1264_s14 + $0x18] sm:$0xff] %vm369_vm1, %v861_v41 }
 0x268 PF: > { %s16_s25 = sadd.s32 1, %s1177_s25   ;;  %s1447_s21 = smov %s1169_s23 }
 0x269   : > { %p13_p8 = scmp.ge.s32.totalorder %s16_s25, 8   ;;  %s1448_s22 = smov %s1173_s24 }
 0x26a   : > { %s1449_s23 = smov %s1452_s26  ;;  %s1450_s24 = smov %s1456_s27 }
 0x26b   :  { %15 = sbr.rel (!%p13_p8) target bundleno = 3 (0x3), region = 92 }

// kernel: synthesizer_forward.53
= control target key start
LH: loop header
LB: loop body
LE: loop exit
PB: predicated region body
PF: predicated region fallthrough
CT: control target
= control target key end

     0   :  { %s2445_s24 = smov 0   ;;  %s2447_s25 = smov 0   ;;  %s2867_s0 = inlined_call_operand.vmem [shape: f32[2,8,64], index: 0, kind: input, shape index: {}]   ;;  %s2868_s1 = inlined_call_operand.vmem [shape: f32[2,1,8], index: 1, kind: input, shape index: {}]   ;;  %s2869_s2 = inlined_call_operand.vmem [shape: f32[2,8,1], index: 2, kind: input, shape index: {}]   ;;  %s2870_s3 = inlined_call_operand.vmem [shape: bf16[32,64], index: 3, kind: input, shape index: {}]   ;;  %s2871_s4 = inlined_call_operand.vmem [shape: f32[32,1], index: 4, kind: input, shape index: {}]   ;;  %s2872_s5 = inlined_call_operand.vmem [shape: bf16[2,96,32], index: 5, kind: input, shape index: {}]   ;;  %s2873_s6 = inlined_call_operand.vmem [shape: f32[2,96,1], index: 6, kind: input, shape index: {}]   ;;  %s2874_s7 = inlined_call_operand.vmem [shape: bf16[2,32,32], index: 7, kind: input, shape index: {}]   ;;  %s2875_s8 = inlined_call_operand.vmem [shape: f32[2,32,1], index: 8, kind: input, shape index: {}]   ;;  %s2876_s9 = inlined_call_operand.vmem [shape: f32[2,2,32,1], index: 9, kind: input, shape index: {}]   ;;  %s2877_s10 = inlined_call_operand.vmem [shape: bf16[2,64,96], index: 10, kind: input, shape index: {}]   ;;  %s2878_s11 = inlined_call_operand.vmem [shape: f32[2,64,1], index: 11, kind: input, shape index: {}]   ;;  %s2879_s12 = inlined_call_operand.vmem [shape: bf16[2,32,192], index: 12, kind: input, shape index: {}]   ;;  %s2880_s13 = inlined_call_operand.vmem [shape: f32[2,32,1], index: 13, kind: input, shape index: {}]   ;;  %s2881_s14 = inlined_call_operand.vmem [shape: f32[2,2,32,1], index: 14, kind: input, shape index: {}]   ;;  %s2882_s15 = inlined_call_operand.vmem [shape: bf16[64,32], index: 15, kind: input, shape index: {}]   ;;  %s2883_s16 = inlined_call_operand.vmem [shape: f32[64,1], index: 16, kind: input, shape index: {}]   ;;  %s2884_s17 = inlined_call_operand.vmem [shape: f32[2,64,8], index: 17, kind: output, shape index: {}]  }
   0x1   :  { %2890 = sst [smem:[#allocation10_spill]] %s2867_s0  ;;  %s2449_s26 = smov 0  }
   0x2   :  { %2891 = sst [smem:[#allocation11_spill]] %s2868_s1  ;;  %s2451_s27 = smov 0  }
   0x3   :  { %2892 = sst [smem:[#allocation12_spill]] %s2879_s12  ;;  %s2453_s28 = smov 0  }
   0x4   :  { %2893 = sst [smem:[#allocation13_spill]] %s2882_s15 }
   0x5   :  { %2894 = sst [smem:[#allocation14_spill]] %s2883_s16 }
   0x6 LB: > { %2895 = sst [smem:[#allocation5_spill]] %s2338_s26  ;;  %s36_s29 = sadd.s32 1, %s2338_s26  ;;  %s2346_s28 = sphi %s2453_s28, %s27_s28   ;;  %s2342_s27 = sphi %s2451_s27, %s2910_s27   ;;  %s2338_s26 = sphi %s2449_s26, %s2909_s26   ;;  %s2334_s25 = sphi %s2447_s25, %s2908_s25   ;;  %s2330_s24 = sphi %s2445_s24, %s2907_s24  }
   0x7   : > { %2896 = sst [smem:[#allocation6_spill]] %s2342_s27  ;;  %s39_s0 = sadd.s32 1, %s2342_s27 }
   0x8   : > { %2897 = sst [smem:[#allocation7_spill]] %s2346_s28  ;;  %p37_p0 = scmp.ge.s32.totalorder %s36_s29, 2 }
   0x9   : > { %p2063_p1 = scmp.ge.s32.totalorder %s2346_s28, 1  ;;  %p515_p2 = scmp.lt.s32.totalorder %s2346_s28, 5 }
   0xa   : > { %s2912_s29 = smov (%p37_p0, %s36_s29), 0  ;;  %s2914_s0 = smov (!%p37_p0, %s39_s0), %s2342_s27 }
   0xb   : > { %2898 = sst [smem:[#allocation8_spill]] %s2912_s29  ;;  %p516_p3 = pnand %p2063_p1, %p515_p2 }
   0xc   : > { %p41_p4 = scmp.ge.s32.totalorder %s2914_s0, 2  ;;  %p573_p5 = scmp.lt.s32.totalorder (!%p516_p3), %s2334_s25, 1 }
   0xd   : > { %519 = sbr.rel (%p516_p3) target bundleno = 2180 (0x884), region = 88  ;;  %s2900_s1 = sld [smem:[#allocation11_spill]] (!%p516_p3) }
   0xe   : > { %s2916_s0 = smov (%p41_p4, %s2914_s0), 0  ;;  %s2901_s23 = sld [smem:[#allocation10_spill]] (!%p516_p3) }
   0xf   : > { %2899 = sst [smem:[#allocation9_spill]] %s2916_s0  ;;  %p2068_p6 = scmp.ne.s32.totalorder (!%p516_p3), %s2330_s24, 0 }
  0x12   : > { %s2918_s25 = smov (!%p573_p5, %s2334_s25), 1  ;;  %595 = sbr.rel (%p2068_p6) target bundleno = 179 (0xb3), region = 92 }
  0x13   : > { %s2064_s30 = sshll.u32 %s2918_s25, 3  ;;  %s579_s20 = scalar_lea.vmem %s2900_s1, %s2918_s25 }
  0x14   : > { %s576_s26 = scalar_lea.vmem %s2901_s23, %s2064_s30  ;;  %s583_s29 = scalar_lea.vmem %s2869_s2, %s2064_s30  ;;  %v2486_v0 = vld [vmem:[%s579_s20] sm:$0x1] }
  0x15   : > { %s2202_s27 = sshll.u32 %s2918_s25, 6  ;;  %v2488_v1 = vld [vmem:[%s583_s29] sm:$0xff] }
  0x16   : > { %s2493_s12 = scalar_lea.vmem %s2884_s17, %s2202_s27 }
  0x17   : > { %v596_v2 = vld [vmem:[%s576_s26] sm:$0xff]  ;;  %vm636_vm0 = vcmask 523264   ;;  %v2348_v4 = vmov 0   ;;  %v604_v5 = vld [vmem:[%s2871_s4 + $0x10] sm:$0xff]  ;;  %v2204_v9 = vld [vmem:[%s2870_s3 + $0x8] sm:$0xff]  ;;  %v682_v20 = vperm.slane %v2486_v0, 0 }
  0x18   : > { %v597_v3 = vpack.c.bf16 %v596_v2, %v596_v2  ;;  %2284 = vset.pattern.permute.xlu1 %v2348_v4  ;;  %2283 = vset.pattern.permute.xlu0 %v2348_v4  ;;  %v602_v6 = vld [vmem:[%s2871_s4] sm:$0xff]  ;;  %v605_v10 = vld [vmem:[%s2871_s4 + $0x18] sm:$0xff]  ;;  %v603_v11 = vld [vmem:[%s2871_s4 + $0x8] sm:$0xff]  ;;  %vm688_vm3 = vcmask 64512  }
  0x19   : > { %618 = vperm.xlu1 %2284, %v604_v5   ;;  %608 = vperm.xlu0 %2283, %v602_v6   ;;  %v2203_v8 = vld [vmem:[%s2870_s3] sm:$0xff] }
  0x1a   : > { %v644_v7 = vsel %vm636_vm0, %v597_v3, 0 }
  0x1b   : > { %653 = vmatpush.bf16.xpose.msra.mxu0 %v644_v7  ;;  %2229 = vmatpush.bf16.xpose.msra.mxu1 %v644_v7 }
  0x21   : > { %623 = vperm.xlu1 %2284, %v605_v10   ;;  %613 = vperm.xlu0 %2283, %v603_v11  }
  0x22   : > { %2077 = vmatmul.msk.bf16.vlgmr.msra.gmra.mxu0 %vm636_vm0, %v2203_v8  ;;  %2078 = vmatmul.msk.bf16.vlgmr.msra.gmra.mxu1 %vm636_vm0, %v2204_v9 }
  0x8b   : > { %v619_v12 = vpop.permute.xlu1 %618  ;;  %v609_v13 = vpop.permute.xlu0 %608 }
  0x93   : > { %v624_v23 = vpop.permute.xlu1 %623  ;;  %v614_v24 = vpop.permute.xlu0 %613 }
  0x9f   : > { %v655_v14 = vpop.f32.mrf.mxu0  ;;  %v660_v15 = vpop.f32.mrf.mxu1 }
  0xa0   : > { %v656_v16 = vadd.f32 %v655_v14, %v609_v13  ;;  %v661_v17 = vadd.f32 %v660_v15, %v619_v12 }
  0xa2   : > { %v665_v18 = vmul.f32 5.656854, %v656_v16  ;;  %v667_v19 = vmul.f32 5.656854, %v661_v17 }
  0xa4   : > { %vm669_vm1 = vcmp.ge.f32.partialorder %v665_v18, 0.0  ;;  %v673_v21 = vmul.f32 0.1, %v665_v18  ;;  %vm671_vm2 = vcmp.ge.f32.partialorder %v667_v19, 0.0  ;;  %v675_v22 = vmul.f32 0.1, %v667_v19 }
  0xa6   : > { %v677_v25 = vsel %vm669_vm1, %v665_v18, %v673_v21  ;;  %v679_v26 = vsel %vm671_vm2, %v667_v19, %v675_v22 }
  0xa7   : > { %v684_v27 = vmul.f32 %v682_v20, %v677_v25  ;;  %v686_v28 = vmul.f32 %v682_v20, %v679_v26  ;;  %v657_v29 = vpop.f32.mrf.mxu0  ;;  %v662_v30 = vpop.f32.mrf.mxu1 }
  0xa8   : > { %v658_v31 = vadd.f32 %v657_v29, %v614_v24  ;;  %v663_v32 = vadd.f32 %v662_v30, %v624_v23 }
  0xa9   : > { %689 = vst.msk [vmem:[#allocation2] sm:$0xff] %vm688_vm3, %v684_v27 }
  0xaa   : > { %691 = vst.msk [vmem:[#allocation2 + $0x10] sm:$0xff] %vm688_vm3, %v686_v28  ;;  %v666_v33 = vmul.f32 5.656854, %v658_v31  ;;  %v668_v34 = vmul.f32 5.656854, %v663_v32 }
  0xac   : > { %vm670_vm4 = vcmp.ge.f32.partialorder %v666_v33, 0.0  ;;  %v674_v35 = vmul.f32 0.1, %v666_v33  ;;  %vm672_vm5 = vcmp.ge.f32.partialorder %v668_v34, 0.0  ;;  %v676_v36 = vmul.f32 0.1, %v668_v34 }
  0xae   : > { %v678_v37 = vsel %vm670_vm4, %v666_v33, %v674_v35  ;;  %v680_v38 = vsel %vm672_vm5, %v668_v34, %v676_v36 }
  0xaf   : > { %v685_v39 = vmul.f32 %v682_v20, %v678_v37  ;;  %v687_v40 = vmul.f32 %v682_v20, %v680_v38 }
  0xb1   : > { %690 = vst.msk [vmem:[#allocation2 + $0x8] sm:$0xff] %vm688_vm3, %v685_v39 }
  0xb2   : > { %692 = vst.msk [vmem:[#allocation2 + $0x18] sm:$0xff] %vm688_vm3, %v687_v40 }
  0xb3 PF: > { %v2522_v41 = vld [vmem:[#allocation2 + $0x10] sm:$0xff]  ;;  %v2526_v43 = vld [vmem:[#allocation2] sm:$0xff]  ;;  %s2205_s20 = smul.u32 48, %s2330_s24  ;;  %v2349_v46 = vmov 0   ;;  %vm818_vm6 = vcmask 261120   ;;  %vm904_vm7 = vcmask 130048  }
  0xb4   : > { %2285 = vset.pattern.permute.xlu0 %v2349_v46  ;;  %s714_s21 = smul.u32 96, %s2330_s24  ;;  %2286 = vset.pattern.permute.xlu1 %v2349_v46  ;;  %v2568_v29 = vperm.slane %v2486_v0, 0  ;;  %vm923_vm8 = vcmask 64512   ;;  %s2577_s16 = sshll.u32 %s2330_s24, 5 }
  0xb5   : > { %2287 = vset.pattern.permute.xlu2 %v2349_v46  ;;  %s2539_s15 = scalar_lea.vmem %s2872_s5, %s2205_s20  ;;  %s2583_s0 = scalar_lea.vmem %s2875_s8, %s2577_s16 }
  0xb6   : > { %s2544_s29 = scalar_lea.vmem %s2873_s6, %s714_s21  ;;  %v2206_v50 = vld [vmem:[%s2539_s15] sm:$0xff]  ;;  %v2207_v55 = vld [vmem:[%s2539_s15 + $0x8] sm:$0xff]  ;;  %v2208_v58 = vld [vmem:[%s2539_s15 + $0x10] sm:$0xff]  ;;  %s2588_s30 = sshll.u32 %s2330_s24, 6 }
  0xb7   : > { %v718_v48 = vld [vmem:[%s2544_s29 + $0x10] sm:$0xff]  ;;  %v716_v49 = vld [vmem:[%s2544_s29] sm:$0xff]  ;;  %v719_v51 = vld [vmem:[%s2544_s29 + $0x18] sm:$0xff]  ;;  %s2594_s1 = scalar_lea.vmem %s2876_s9, %s2588_s30  ;;  %s2212_s20 = sshll.u32 %s2330_s24, 4 }
  0xb8   : > { %v2531_v45 = vld [vmem:[#allocation2 + $0x8] sm:$0xff]  ;;  %740 = vperm.xlu0 %2285, %v718_v48   ;;  %730 = vperm.xlu1 %2286, %v716_v49   ;;  %v720_v53 = vld [vmem:[%s2544_s29 + $0x20] sm:$0xff]  ;;  %v722_v56 = vld [vmem:[%s2544_s29 + $0x30] sm:$0xff]  ;;  %s1054_s23 = scalar_lea.vmem %s2874_s7, %s2212_s20  ;;  %s2352_s28 = smov 127  }
  0xb9   : > { %v2524_v42 = vld [vmem:[#allocation2 + $0x18] sm:$0xff]  ;;  %v697_v47 = vpack.c.bf16 %v2531_v45, %v2526_v43  ;;  %v717_v52 = vld [vmem:[%s2544_s29 + $0x8] sm:$0xff]  ;;  %760 = vperm.xlu2 %2287, %v722_v56   ;;  %v2210_v27 = vld [vmem:[%s2539_s15 + $0x20] sm:$0xff]  ;;  %s2660_s26 = scalar_lea.vmem %s2878_s11, %s2588_s30  ;;  %s1302_s18 = scalar_lea.vmem %s2877_s10, %s2577_s16 }
  0xba   : > { %v698_v44 = vpack.c.bf16 %v2524_v42, %v2522_v41  ;;  %v721_v54 = vld [vmem:[%s2544_s29 + $0x28] sm:$0xff]  ;;  %v723_v57 = vld [vmem:[%s2544_s29 + $0x38] sm:$0xff]  ;;  %v1063_v48 = vld [vmem:[%s2583_s0] sm:$0xff]  ;;  %s1594_s20 = scalar_lea.vmem %s2880_s13, %s2577_s16  ;;  %p2179_p7 = scmp.ne.s32.totalorder %s2330_s24, 1 }
  0xbb   : > { %v2209_v59 = vld [vmem:[%s2539_s15 + $0x18] sm:$0xff]  ;;  %v2211_v28 = vld [vmem:[%s2539_s15 + $0x28] sm:$0xff]  ;;  %v1065_v49 = vld [vmem:[%s2583_s0 + $0x10] sm:$0xff]  ;;  %s2351_s15 = smov 1   ;;  %s2905_s21 = sld [smem:[#allocation13_spill]] (!%p2179_p7) }
  0xbc   : > { %843 = vmatpush.bf16.msra.mxu0 %v698_v44  ;;  %v724_v44 = vld [vmem:[%s2544_s29 + $0x40] sm:$0xff]  ;;  %v725_v46 = vld [vmem:[%s2544_s29 + $0x48] sm:$0xff] }
  0xc0   : > { %844 = vmatpush.bf16.msra.mxu0 %v697_v47  ;;  %745 = vperm.xlu0 %2285, %v719_v51   ;;  %v726_v47 = vld [vmem:[%s2544_s29 + $0x50] sm:$0xff] }
  0xc1   : > { %735 = vperm.xlu1 %2286, %v717_v52   ;;  %765 = vperm.xlu2 %2287, %v723_v57   ;;  %v2131_v51 = vld [vmem:[%s2594_s1 + $0x30] sm:$0xff]  ;;  %v1128_v52 = vld [vmem:[%s2594_s1] sm:$0xff] }
  0xc3   : > { %2104 = vmatmul.msk.bf16.vlgmr.msra.gmra.mxu0 %vm818_vm6, %v2206_v50  ;;  %v1130_v50 = vld [vmem:[%s2594_s1 + $0x10] sm:$0xff] }
  0xc8   : > { %750 = vperm.xlu0 %2285, %v720_v53   ;;  %v2129_v53 = vld [vmem:[%s2594_s1 + $0x20] sm:$0xff] }
  0xc9   : > { %755 = vperm.xlu1 %2286, %v721_v54  }
  0xd0   : > { %878 = vperm.xlu0 %2285, %v2488_v1  }
  0xd3   : > { %2105 = vmatmul.msk.bf16.gmra.mxu0 %vm818_vm6, %v2207_v55 }
  0xe3   : > { %2106 = vmatmul.msk.bf16.gmra.mxu0 %vm818_vm6, %v2208_v58 }
  0xf3   : > { %2107 = vmatmul.msk.bf16.gmra.mxu0 %vm818_vm6, %v2209_v59 }
 0x103   : > { %2108 = vmatmul.msk.bf16.gmra.mxu0 %vm818_vm6, %v2210_v27 }
 0x113   : > { %v761_v18 = vpop.permute.xlu2 %760  ;;  %2109 = vmatmul.msk.bf16.gmra.mxu0 %vm818_vm6, %v2211_v28 }
 0x11b   : > { %v766_v20 = vpop.permute.xlu2 %765 }
 0x12a   : > { %v731_v62 = vpop.permute.xlu1 %730  ;;  %v741_v63 = vpop.permute.xlu0 %740 }
 0x132   : > { %v746_v5 = vpop.permute.xlu0 %745 }
 0x133   : > { %v736_v3 = vpop.permute.xlu1 %735 }
 0x13a   : > { %v751_v12 = vpop.permute.xlu0 %750 }
 0x13b   : > { %v756_v13 = vpop.permute.xlu1 %755 }
 0x140   : > { %v846_v60 = vpop.f32.mrf.mxu0 }
 0x141   : > { %v847_v7 = vadd.f32 %v846_v60, %v731_v62 }
 0x142   : > { %v879_v30 = vpop.permute.xlu0 %878 }
 0x143   : > { %v884_v31 = vmul.f32 %v2568_v29, %v879_v30 }
 0x145   : > { %vm885_vm9 = vcmp.gt.f32.partialorder %v884_v31, 0.0 }
 0x148   : > { %v848_v61 = vpop.f32.mrf.mxu0 }
 0x149   : > { %v849_v4 = vadd.f32 %v848_v61, %v736_v3  ;;  %v1064_v3 = vld [vmem:[%s2583_s0 + $0x8] sm:$0xff] }
 0x14b   : > { %v886_v9 = vpack.c.bf16 %v849_v4, %v847_v7  ;;  %v1066_v4 = vld [vmem:[%s2583_s0 + $0x18] sm:$0xff]  ;;  %v1129_v7 = vld [vmem:[%s2594_s1 + $0x8] sm:$0xff] }
 0x150   : > { %v851_v2 = vpop.f32.mrf.mxu0 }
 0x151   : > { %v852_v8 = vadd.f32 %v851_v2, %v741_v63  ;;  %v727_v2 = vld [vmem:[%s2544_s29 + $0x58] sm:$0xff] }
 0x158   : > { %v853_v6 = vpop.f32.mrf.mxu0 }
 0x159   : > { %v854_v1 = vadd.f32 %v853_v6, %v746_v5  ;;  %v1131_v5 = vld [vmem:[%s2594_s1 + $0x18] sm:$0xff] }
 0x15a   : > { %v2132_v6 = vld [vmem:[%s2594_s1 + $0x38] sm:$0xff] }
 0x15b   : > { %v970_v10 = vpack.c.bf16 %v854_v1, %v852_v8  ;;  %v2130_v8 = vld [vmem:[%s2594_s1 + $0x28] sm:$0xff] }
 0x15d   : > { %2288 = vxpose.binary.xlu2.c.b16.start.end [1/2] (short) (narrow) %v886_v9, %v970_v10, 16 }
 0x160   : > { %v856_v11 = vpop.f32.mrf.mxu0 }
 0x161   : > { %v857_v15 = vadd.f32 %v856_v11, %v751_v12 }
 0x168   : > { %v858_v14 = vpop.f32.mrf.mxu0 }
 0x169   : > { %v859_v16 = vadd.f32 %v858_v14, %v756_v13 }
 0x16b   : > { %v887_v17 = vpack.c.bf16 %v859_v16, %v857_v15 }
 0x16d   : > { %915 = vmatpush.bf16.msra.mxu1 %v887_v17 }
 0x170   : > { %v861_v19 = vpop.f32.mrf.mxu0 }
 0x171   : > { %v862_v21 = vadd.f32 %v861_v19, %v761_v18 }
 0x178   : > { %v863_v22 = vpop.f32.mrf.mxu0 }
 0x179   : > { %v864_v23 = vadd.f32 %v863_v22, %v766_v20 }
 0x17b   : > { %v971_v24 = vpack.c.bf16 %v864_v23, %v862_v21 }
 0x17d   : > { %998 = vmatpush.bf16.msra.mxu3 %v971_v24 }
 0x180   : > { %v866_v9 = vpop.f32.mrf.mxu0 }
 0x188   : > { %v868_v12 = vpop.f32.mrf.mxu0 }
 0x190   : > { %v871_v28 = vpop.f32.mrf.mxu0 }
 0x1fe   : > { %v2289_v25 = vpop.trf.xlu2 }
 0x1ff   : > { %2112 = vmatmul.msk.bf16.vlgmr.msra.gmra.mxu3 %vm904_vm7, %v2289_v25 }
 0x206   : > { %v2290_v26 = vpop.trf.xlu2 }
 0x207   : > { %2110 = vmatmul.msk.bf16.vlgmr.msra.gmra.mxu1 %vm904_vm7, %v2290_v26  ;;  %vm1248_vm7 = vcmask 7168  }
 0x282   : > { %v1000_v32 = vpop.f32.mrf.mxu3 }
 0x283   : > { %v1004_v33 = vmul.f32 0.25, %v1000_v32 }
 0x284   : > { %v917_v34 = vpop.f32.mrf.mxu1 }
 0x285   : > { %v921_v35 = vmul.f32 0.25, %v917_v34  ;;  %v1005_v36 = vsel %vm885_vm9, %v1004_v33, -10000.0 }
 0x286   : > { %v1006_v37 = vsel %vm923_vm8, %v1005_v36, -inf }
 0x287   : > { %1007 = vmax.xlane.f32.xlu0 %v1006_v37  ;;  %v922_v38 = vsel %vm885_vm9, %v921_v35, -10000.0  ;;  %vm1278_vm9 = vcmask 64568  }
 0x288   : > { %v924_v0 = vsel %vm923_vm8, %v922_v38, -inf }
 0x289   : > { %925 = vmax.xlane.f32.xlu1 %v924_v0 }
 0x28a   : > { %v1002_v39 = vpop.f32.mrf.mxu3 }
 0x28c   : > { %v919_v40 = vpop.f32.mrf.mxu1 }
 0x29b   : > { %770 = vperm.xlu0 %2285, %v724_v44   ;;  %v873_v44 = vpop.f32.mrf.mxu0 }
 0x2a2   : > { %775 = vperm.xlu1 %2286, %v725_v46  }
 0x2a3   : > { %780 = vperm.xlu0 %2285, %v726_v47  }
 0x2ab   : > { %1069 = vperm.xlu0 %2285, %v1063_v48  }
 0x2b3   : > { %1079 = vperm.xlu0 %2285, %v1065_v49  }
 0x2bb   : > { %1208 = vperm.xlu0 %2285, %v1130_v50  }
 0x2c3   : > { %1232 = vperm.xlu0 %2285, %v2131_v51  }
 0x2cb   : > { %1198 = vperm.xlu0 %2285, %v1128_v52  }
 0x2d3   : > { %1222 = vperm.xlu0 %2285, %v2129_v53  }
 0x2fa   : > { %v1008_v54 = vpop.xlane.xlu0 %1007 }
 0x2fb   : > { %v1009_v55 = vsub.f32 %v1005_v36, %v1008_v54 }
 0x2fc   : > { %v926_v56 = vpop.xlane.xlu1 %925 }
 0x2fd   : > { %v1010_v57 = vmul.f32 1.442695, %v1009_v55  ;;  %v927_v58 = vsub.f32 %v922_v38, %v926_v56 }
 0x2ff   : > { %2291 = vpow2.f32 %v1010_v57  ;;  %v928_v59 = vmul.f32 1.442695, %v927_v58 }
 0x301   : > { %2293 = vpow2.f32 %v928_v59 }
 0x305   : > { %v2292_v60 = vpop.eup %2291 }
 0x306   : > { %v1012_v61 = vsel %vm923_vm8, %v2292_v60, 0.0 }
 0x307   : > { %v2294_v62 = vpop.eup %2293  ;;  %1013 = vadd.xlane.f32.xlu1 %v1012_v61  ;;  %v2214_v61 = vld [vmem:[%s1054_s23 + $0x8] sm:$0xff] }
 0x308   : > { %v930_v63 = vsel %vm923_vm8, %v2294_v62, 0.0 }
 0x309   : > { %931 = vadd.xlane.f32.xlu2 %v930_v63 }
 0x30d   : > { %v771_v19 = vpop.permute.xlu0 %770 }
 0x30e   : > { %v867_v52 = vadd.f32 %v866_v9, %v771_v19 }
 0x314   : > { %v776_v1 = vpop.permute.xlu1 %775 }
 0x315   : > { %v781_v0 = vpop.permute.xlu0 %780  ;;  %v869_v50 = vadd.f32 %v868_v12, %v776_v1 }
 0x316   : > { %v872_v48 = vadd.f32 %v871_v28, %v781_v0 }
 0x317   : > { %v948_v53 = vpack.c.bf16 %v869_v50, %v867_v52 }
 0x31d   : > { %v1070_v63 = vpop.permute.xlu0 %1069 }
 0x320   : > { %785 = vperm.xlu1 %2286, %v727_v2  }
 0x328   : > { %1074 = vperm.xlu1 %2286, %v1064_v3  }
 0x330   : > { %1084 = vperm.xlu1 %2286, %v1066_v4  }
 0x338   : > { %1213 = vperm.xlu1 %2286, %v1131_v5   ;;  %v1080_v5 = vpop.permute.xlu0 %1079 }
 0x340   : > { %1237 = vperm.xlu1 %2286, %v2132_v6  }
 0x348   : > { %1203 = vperm.xlu1 %2286, %v1129_v7   ;;  %v2350_v7 = vmov 32.0  }
 0x350   : > { %1227 = vperm.xlu1 %2286, %v2130_v8  }
 0x37a   : > { %v1014_v10 = vpop.xlane.xlu1 %1013 }
 0x37b   : > { %2295 = vrcp.f32 %v1014_v10  ;;  %v1026_v18 = vand.u32 2147483648, %v1014_v10  ;;  %v1024_v22 = vand.u32 2147483647, %v1014_v10  ;;  %vm1020_vm11 = vweird.f32 %v1014_v10 }
 0x37c   : > { %v932_v11 = vpop.xlane.xlu2 %931 }
 0x37d   : > { %2297 = vrcp.f32 %v932_v11  ;;  %v944_v23 = vand.u32 2147483648, %v932_v11  ;;  %v942_v26 = vand.u32 2147483647, %v932_v11  ;;  %v1027_v27 = vor.u32 1.1754944e-38, %v1026_v18 }
 0x37e   : > { %vm938_vm14 = vweird.f32 %v932_v11  ;;  %vm1025_vm15 = vcmp.eq.f32.partialorder %v1024_v22, 8.507059e+37  ;;  %2299 = vrcp.f32 %v2350_v7 }
 0x37f   : > { %v945_v33 = vor.u32 1.1754944e-38, %v944_v23  ;;  %vm943_vm1 = vcmp.eq.f32.partialorder %v942_v26, 8.507059e+37 }
 0x381   : > { %v2296_v13 = vpop.eup %2295 }
 0x382   : > { %v1016_v14 = vmul.f32 %v2296_v13, %v1014_v10  ;;  %vm1021_vm10 = vweird.f32 %v2296_v13 }
 0x383   : > { %v2298_v15 = vpop.eup %2297  ;;  %vm1022_vm13 = vmor %vm1020_vm11, %vm1021_vm10  ;;  %vm1269_vm10 = vcmask 64520   ;;  %vm1295_vm11 = vcmask 56320  }
 0x384   : > { %v1017_v16 = vsub.f32 1.0, %v1016_v14  ;;  %v934_v17 = vmul.f32 %v2298_v15, %v932_v11  ;;  %vm939_vm12 = vweird.f32 %v2298_v15  ;;  %v2300_v12 = vpop.eup %2299 }
 0x385   : > { %vm940_vm0 = vmor %vm938_vm14, %vm939_vm12  ;;  %v1152_v19 = vmul.f32 32.0, %v2300_v12  ;;  %vm1156_vm2 = vweird.f32 %v2300_v12  ;;  %vm1398_vm12 = vcmask 785408  }
 0x386   : > { %v1018_v20 = vmul.f32 %v2296_v13, %v1017_v16  ;;  %v935_v21 = vsub.f32 1.0, %v934_v17 }
 0x388   : > { %v936_v24 = vmul.f32 %v2298_v15, %v935_v21  ;;  %v1019_v25 = vadd.f32 %v2296_v13, %v1018_v20 }
 0x38a   : > { %v1023_v30 = vsel %vm1022_vm13, %v2296_v13, %v1019_v25  ;;  %v937_v31 = vadd.f32 %v2298_v15, %v936_v24  ;;  %vm1637_vm13 = vcmask 523264  }
 0x38b   : > { %v1028_v32 = vsel %vm1025_vm15, %v1027_v27, %v1023_v30 }
 0x38c   : > { %v1029_v34 = vmul.f32 %v2292_v60, %v1028_v32  ;;  %v941_v35 = vsel %vm940_vm0, %v2298_v15, %v937_v31  ;;  %v2213_v60 = vld [vmem:[%s1054_s23] sm:$0xff]  ;;  %s1690_s23 = scalar_lea.vmem %s2881_s14, %s2588_s30 }
 0x38d   : > { %v946_v36 = vsel %vm943_vm1, %v945_v33, %v941_v35 }
 0x38e   : > { %v1031_v37 = vpack.c.bf16 %v1029_v34, %v1029_v34  ;;  %v947_v38 = vmul.f32 %v2294_v62, %v946_v36 }
 0x390   : > { %v1036_v39 = vsel %vm923_vm8, %v1031_v37, 0  ;;  %v949_v40 = vpack.c.bf16 %v947_v38, %v947_v38 }
 0x391   : > { %1045 = vmatpush.bf16.xpose.msrb.mxu1 %v1036_v39 }
 0x392   : > { %v786_v46 = vpop.permute.xlu1 %785  ;;  %v954_v47 = vsel %vm923_vm8, %v949_v40, 0 }
 0x393   : > { %v874_v49 = vadd.f32 %v873_v44, %v786_v46  ;;  %963 = vmatpush.bf16.xpose.msra.mxu2 %v954_v47 }
 0x395   : > { %v1030_v51 = vpack.c.bf16 %v874_v49, %v872_v48 }
 0x398   : > { %2113 = vmatmul.msk.bf16.vlgmr.msrb.gmra.mxu1 %vm923_vm8, %v1030_v51 }
 0x39a   : > { %2111 = vmatmul.msk.bf16.vlgmr.msra.gmra.mxu2 %vm923_vm8, %v948_v53  ;;  %v1075_v3 = vpop.permute.xlu1 %1074 }
 0x3a2   : > { %v1085_v14 = vpop.permute.xlu1 %1084 }
 0x415   : > { %v1047_v54 = vpop.f32.mrf.mxu1 }
 0x41d   : > { %v965_v55 = vpop.f32.mrf.mxu2  ;;  %v1049_v56 = vpop.f32.mrf.mxu1 }
 0x41e   : > { %v1060_v57 = vpack.c.bf16 %v1049_v56, %v1047_v54  ;;  %v1214_v56 = vpop.permute.xlu1 %1213 }
 0x420   : > { %1109 = vmatpush.bf16.msrb.mxu3 %v1060_v57 }
 0x425   : > { %v967_v58 = vpop.f32.mrf.mxu2 }
 0x426   : > { %v1059_v59 = vpack.c.bf16 %v967_v58, %v965_v55  ;;  %v1209_v55 = vpop.permute.xlu0 %1208 }
 0x428   : > { %1110 = vmatpush.bf16.msrb.mxu3 %v1059_v59 }
 0x42b   : > { %2125 = vmatmul.msk.bf16.vlgmr.msrb.gmra.mxu3 %vm818_vm6, %v2213_v60 }
 0x43b   : > { %2126 = vmatmul.msk.bf16.gmra.mxu3 %vm818_vm6, %v2214_v61  ;;  %v1233_v61 = vpop.permute.xlu0 %1232 }
 0x4ae   : > { %v1112_v62 = vpop.f32.mrf.mxu3 }
 0x4af   : > { %v1113_v8 = vadd.f32 %v1112_v62, %v1070_v63  ;;  %v1238_v62 = vpop.permute.xlu1 %1237 }
 0x4b1   : > { %v1122_v10 = vadd.f32 %v1113_v8, %v2526_v43  ;;  %v1153_v43 = vsub.f32 1.0, %v1152_v19 }
 0x4b3   : > { %v1138_v16 = vsel %vm923_vm8, %v1122_v10, 0.0  ;;  %v1154_v24 = vmul.f32 %v2300_v12, %v1153_v43 }
 0x4b5   : > { %v1155_v27 = vadd.f32 %v2300_v12, %v1154_v24  ;;  %v1332_v24 = vld [vmem:[%s2660_s26 + $0x10] sm:$0xff] }
 0x4b6   : > { %v1114_v2 = vpop.f32.mrf.mxu3 }
 0x4b7   : > { %v1115_v4 = vadd.f32 %v1114_v2, %v1075_v3  ;;  %v2627_v31 = vsel %vm1156_vm2, %v2300_v12, %v1155_v27  ;;  %v1336_v27 = vld [vmem:[%s2660_s26 + $0x30] sm:$0xff] }
 0x4b9   : > { %v1123_v9 = vadd.f32 %v1115_v4, %v2531_v45  ;;  %v1199_v4 = vpop.permute.xlu0 %1198 }
 0x4bb   : > { %v1139_v13 = vsel %vm923_vm8, %v1123_v9, 0.0 }
 0x4bc   : > { %v1140_v20 = vadd.f32 %v1139_v13, %v1138_v16 }
 0x4be   : > { %v1117_v6 = vpop.f32.mrf.mxu3 }
 0x4bf   : > { %v1118_v1 = vadd.f32 %v1117_v6, %v1080_v5  ;;  %v1204_v5 = vpop.permute.xlu1 %1203 }
 0x4c1   : > { %v1124_v11 = vadd.f32 %v1118_v1, %v2522_v41 }
 0x4c3   : > { %v1141_v17 = vsel %vm923_vm8, %v1124_v11, 0.0 }
 0x4c4   : > { %v1142_v22 = vadd.f32 %v1141_v17, %v1140_v20  ;;  %v1223_v17 = vpop.permute.xlu0 %1222 }
 0x4c6   : > { %v1119_v15 = vpop.f32.mrf.mxu3 }
 0x4c7   : > { %v1120_v18 = vadd.f32 %v1119_v15, %v1085_v14 }
 0x4c9   : > { %v1125_v21 = vadd.f32 %v1120_v18, %v2524_v42  ;;  %v1228_v18 = vpop.permute.xlu1 %1227 }
 0x4cb   : > { %v1143_v45 = vsel %vm923_vm8, %v1125_v21, 0.0 }
 0x4cc   : > { %v1144_v23 = vadd.f32 %v1143_v45, %v1142_v22 }
 0x4ce   : > { %v1145_v41 = vrot.slane %v1144_v23, 4 }
 0x4d0   : > { %v1146_v25 = vadd.f32 %v1145_v41, %v1144_v23 }
 0x4d2   : > { %v1147_v26 = vrot.slane %v1146_v25, 2 }
 0x4d4   : > { %v1148_v28 = vadd.f32 %v1147_v26, %v1146_v25  ;;  %v1331_v25 = vld [vmem:[%s2660_s26 + $0x8] sm:$0xff]  ;;  %v2353_v26 = vmov 0.0  }
 0x4d5   : > { %1252 = vst.msk [vmem:[#allocation3 + $0x18] sm:$0xff] %vm1248_vm7, %v2353_v26 }
 0x4d6   : > { %v1149_v30 = vrot.slane %v1148_v28, 1  ;;  %1249 = vst.msk [vmem:[#allocation3] sm:$0xff] %vm1248_vm7, %v2353_v26 }
 0x4d7   : > { %1250 = vst.msk [vmem:[#allocation3 + $0x8] sm:$0xff] %vm1248_vm7, %v2353_v26 }
 0x4d8   : > { %v1150_v32 = vadd.f32 %v1149_v30, %v1148_v28  ;;  %1251 = vst.msk [vmem:[#allocation3 + $0x10] sm:$0xff] %vm1248_vm7, %v2353_v26  ;;  %v1334_v28 = vld [vmem:[%s2660_s26 + $0x20] sm:$0xff]  ;;  %v1337_v30 = vld [vmem:[%s2660_s26 + $0x38] sm:$0xff] }
 0x4d9   : > { %1456 = vst.msk [vmem:[#allocation4] sm:$0xff] %vm1248_vm7, %v2353_v26 }
 0x4da   : > { %v1158_v33 = vmul.f32 %v2627_v31, %v1150_v32  ;;  %1457 = vst.msk [vmem:[#allocation4 + $0x8] sm:$0xff] %vm1248_vm7, %v2353_v26  ;;  %v1333_v32 = vld [vmem:[%s2660_s26 + $0x18] sm:$0xff] }
 0x4db   : > { %1458 = vst.msk [vmem:[#allocation4 + $0x10] sm:$0xff] %vm1248_vm7, %v2353_v26 }
 0x4dc   : > { %v1159_v34 = vsub.f32 %v1122_v10, %v1158_v33  ;;  %v1160_v42 = vsub.f32 %v1123_v9, %v1158_v33  ;;  %v1161_v35 = vsub.f32 %v1124_v11, %v1158_v33  ;;  %v1162_v36 = vsub.f32 %v1125_v21, %v1158_v33  ;;  %1459 = vst.msk [vmem:[#allocation4 + $0x18] sm:$0xff] %vm1248_vm7, %v2353_v26  ;;  %v1335_v33 = vld [vmem:[%s2660_s26 + $0x28] sm:$0xff] }
 0x4dd   : > { %1460 = vst.msk [vmem:[#allocation4 + $0x20] sm:$0xff] %vm1248_vm7, %v2353_v26 }
 0x4de   : > { %v1163_v37 = vmul.f32 %v1159_v34, %v1159_v34  ;;  %v1164_v38 = vmul.f32 %v1160_v42, %v1160_v42  ;;  %v1165_v0 = vmul.f32 %v1161_v35, %v1161_v35  ;;  %v1166_v39 = vmul.f32 %v1162_v36, %v1162_v36  ;;  %1461 = vst.msk [vmem:[#allocation4 + $0x28] sm:$0xff] %vm1248_vm7, %v2353_v26 }
 0x4df   : > { %1462 = vst.msk [vmem:[#allocation4 + $0x30] sm:$0xff] %vm1248_vm7, %v2353_v26 }
 0x4e0   : > { %v1167_v40 = vsel %vm923_vm8, %v1163_v37, 0.0  ;;  %v1168_v44 = vsel %vm923_vm8, %v1164_v38, 0.0  ;;  %v1170_v47 = vsel %vm923_vm8, %v1165_v0, 0.0  ;;  %v1172_v49 = vsel %vm923_vm8, %v1166_v39, 0.0  ;;  %1463 = vst.msk [vmem:[#allocation4 + $0x38] sm:$0xff] %vm1248_vm7, %v2353_v26 }
 0x4e1   : > { %v1169_v46 = vadd.f32 %v1168_v44, %v1167_v40  ;;  %1282 = vst.msk [vmem:[#allocation3 + $0x58] sm:$0xff] %vm1278_vm9, %v2353_v26 }
 0x4e2   : > { %1279 = vst.msk [vmem:[#allocation3 + $0x40] sm:$0xff] %vm1278_vm9, %v2353_v26 }
 0x4e3   : > { %v1171_v48 = vadd.f32 %v1170_v47, %v1169_v46  ;;  %1280 = vst.msk [vmem:[#allocation3 + $0x48] sm:$0xff] %vm1278_vm9, %v2353_v26 }
 0x4e4   : > { %1281 = vst.msk [vmem:[#allocation3 + $0x50] sm:$0xff] %vm1278_vm9, %v2353_v26 }
 0x4e5   : > { %v1173_v50 = vadd.f32 %v1172_v49, %v1171_v48  ;;  %1512 = vst.msk [vmem:[#allocation4 + $0x80] sm:$0xff] %vm1278_vm9, %v2353_v26 }
 0x4e6   : > { %1513 = vst.msk [vmem:[#allocation4 + $0x88] sm:$0xff] %vm1278_vm9, %v2353_v26 }
 0x4e7   : > { %v1174_v51 = vrot.slane %v1173_v50, 4  ;;  %1514 = vst.msk [vmem:[#allocation4 + $0x90] sm:$0xff] %vm1278_vm9, %v2353_v26 }
 0x4e8   : > { %1515 = vst.msk [vmem:[#allocation4 + $0x98] sm:$0xff] %vm1278_vm9, %v2353_v26 }
 0x4e9   : > { %v1175_v52 = vadd.f32 %v1174_v51, %v1173_v50  ;;  %1516 = vst.msk [vmem:[#allocation4 + $0xa0] sm:$0xff] %vm1278_vm9, %v2353_v26 }
 0x4ea   : > { %1517 = vst.msk [vmem:[#allocation4 + $0xa8] sm:$0xff] %vm1278_vm9, %v2353_v26 }
 0x4eb   : > { %v1176_v53 = vrot.slane %v1175_v52, 2  ;;  %1518 = vst.msk [vmem:[#allocation4 + $0xb0] sm:$0xff] %vm1278_vm9, %v2353_v26 }
 0x4ec   : > { %1519 = vst.msk [vmem:[#allocation4 + $0xb8] sm:$0xff] %vm1278_vm9, %v2353_v26 }
 0x4ed   : > { %v1177_v54 = vadd.f32 %v1176_v53, %v1175_v52 }
 0x4ef   : > { %v1178_v57 = vrot.slane %v1177_v54, 1 }
 0x4f1   : > { %v1179_v58 = vadd.f32 %v1178_v57, %v1177_v54 }
 0x4f3   : > { %v1180_v59 = vmul.f32 %v1179_v58, %v2627_v31 }
 0x4f5   : > { %v1181_v60 = vadd.f32 1e-05, %v1180_v59 }
 0x4f7   : > { %2301 = vrsqrt.f32 %v1181_v60  ;;  %vm1188_vm4 = vweird.f32 %v1181_v60 }
 0x4fd   : > { %v2302_v63 = vpop.eup %2301 }
 0x4fe   : > { %v1183_v2 = vmul.f32 %v2302_v63, %v1181_v60  ;;  %vm1189_vm3 = vweird.f32 %v2302_v63 }
 0x4ff   : > { %vm1190_vm5 = vmor %vm1188_vm4, %vm1189_vm3 }
 0x500   : > { %v1184_v3 = vmul.f32 %v2302_v63, %v1183_v2  ;;  %v2217_v2 = vld [vmem:[%s1302_s18 + $0x8] sm:$0xff] }
 0x502   : > { %v1185_v6 = vmul.f32 0.5, %v1184_v3  ;;  %v2218_v3 = vld [vmem:[%s1302_s18 + $0x10] sm:$0xff] }
 0x504   : > { %v1186_v7 = vsub.f32 1.5, %v1185_v6 }
 0x506   : > { %v1187_v8 = vmul.f32 %v2302_v63, %v1186_v7 }
 0x508   : > { %v1191_v1 = vsel %vm1190_vm5, %v2302_v63, %v1187_v8  ;;  %v2216_v63 = vld [vmem:[%s1302_s18] sm:$0xff] }
 0x509   : > { %v1195_v9 = vmul.f32 %v1191_v1, %v1162_v36  ;;  %v1194_v10 = vmul.f32 %v1191_v1, %v1161_v35  ;;  %v1193_v11 = vmul.f32 %v1191_v1, %v1160_v42  ;;  %v1192_v12 = vmul.f32 %v1191_v1, %v1159_v34  ;;  %v1330_v34 = vld [vmem:[%s2660_s26] sm:$0xff]  ;;  %s2903_s26 = sld [smem:[#allocation14_spill]] (!%p2179_p7) }
 0x50b   : > { %v1219_v13 = vmul.f32 %v1214_v56, %v1195_v9  ;;  %v1218_v14 = vmul.f32 %v1209_v55, %v1194_v10  ;;  %v1217_v15 = vmul.f32 %v1204_v5, %v1193_v11  ;;  %v1216_v16 = vmul.f32 %v1199_v4, %v1192_v12  ;;  %v2219_v4 = vld [vmem:[%s1302_s18 + $0x18] sm:$0xff] }
 0x50d   : > { %v2635_v19 = vadd.f32 %v1238_v62, %v1219_v13  ;;  %v2637_v20 = vadd.f32 %v1233_v61, %v1218_v14  ;;  %v2639_v21 = vadd.f32 %v1228_v18, %v1217_v15  ;;  %v2641_v22 = vadd.f32 %v1223_v17, %v1216_v16 }
 0x50f   : > { %v1247_v45 = vmul.f32 %v2635_v19, %v2568_v29  ;;  %v1246_v43 = vmul.f32 %v2637_v20, %v2568_v29  ;;  %v1245_v23 = vmul.f32 %v2639_v21, %v2568_v29  ;;  %v1244_v41 = vmul.f32 %v2641_v22, %v2568_v29  ;;  %s2904_s0 = smov (!%p2179_p7), %s2903_s26 }
 0x511   : > { %1263 = vrot.lane.b32.xlu2 %v1247_v45, %s2351_s15  ;;  %1277 = vst.msk [vmem:[#allocation3 + $0x38] sm:$0xff] %vm923_vm8, %v1247_v45  ;;  %1289 = vrot.lane.b32.xlu1 %v1247_v45, %s2352_s28 }
 0x512   : > { %1287 = vrot.lane.b32.xlu0 %v1246_v43, %s2352_s28  ;;  %1276 = vst.msk [vmem:[#allocation3 + $0x30] sm:$0xff] %vm923_vm8, %v1246_v43 }
 0x513   : > { %1275 = vst.msk [vmem:[#allocation3 + $0x28] sm:$0xff] %vm923_vm8, %v1245_v23 }
 0x514   : > { %1274 = vst.msk [vmem:[#allocation3 + $0x20] sm:$0xff] %vm923_vm8, %v1244_v41 }
 0x518   : > { %v1318_v51 = vld [vmem:[#allocation3 + $0x38] sm:$0xff] }
 0x519   : > { %1350 = vperm.xlu2 %2287, %v1332_v24   ;;  %1285 = vrot.lane.b32.xlu1 %v1245_v23, %s2352_s28  ;;  %v1317_v50 = vld [vmem:[#allocation3 + $0x30] sm:$0xff] }
 0x51a   : > { %1283 = vrot.lane.b32.xlu0 %v1244_v41, %s2352_s28  ;;  %v1326_v52 = vpack.c.bf16 %v1318_v51, %v1317_v50  ;;  %v1316_v54 = vld [vmem:[#allocation3 + $0x28] sm:$0xff] }
 0x51b   : > { %v1315_v53 = vld [vmem:[#allocation3 + $0x20] sm:$0xff] }
 0x51c   : > { %v1325_v56 = vpack.c.bf16 %v1316_v54, %v1315_v53 }
 0x521   : > { %1345 = vperm.xlu2 %2287, %v1331_v25   ;;  %1257 = vrot.lane.b32.xlu1 %v1244_v41, %s2351_s15 }
 0x522   : > { %1261 = vrot.lane.b32.xlu0 %v1246_v43, %s2351_s15 }
 0x529   : > { %1370 = vperm.xlu1 %2286, %v1336_v27  }
 0x52a   : > { %1259 = vrot.lane.b32.xlu0 %v1245_v23, %s2351_s15 }
 0x531   : > { %1360 = vperm.xlu1 %2286, %v1334_v28  }
 0x532   : > { %1375 = vperm.xlu0 %2285, %v1337_v30  }
 0x539   : > { %1355 = vperm.xlu1 %2286, %v1333_v32  }
 0x53a   : > { %1365 = vperm.xlu0 %2285, %v1335_v33  }
 0x542   : > { %1340 = vperm.xlu0 %2285, %v1330_v34  }
 0x56b   : > { %v1264_v42 = vpop.permute.xlu2 %1263 }
 0x56c   : > { %1273 = vst.msk [vmem:[#allocation3 + $0x18] sm:$0xff] %vm1269_vm10, %v1264_v42 }
 0x573   : > { %v1314_v58 = vld [vmem:[#allocation3 + $0x18] sm:$0xff]  ;;  %v1351_v7 = vpop.permute.xlu2 %1350 }
 0x57b   : > { %v1346_v13 = vpop.permute.xlu2 %1345 }
 0x583   : > { %v1290_v35 = vpop.permute.xlu1 %1289 }
 0x584   : > { %1299 = vst.msk [vmem:[#allocation3 + $0x58] sm:$0xff] %vm1295_vm11, %v1290_v35  ;;  %v1288_v36 = vpop.permute.xlu0 %1287 }
 0x585   : > { %1298 = vst.msk [vmem:[#allocation3 + $0x50] sm:$0xff] %vm1295_vm11, %v1288_v36 }
 0x58b   : > { %v1286_v37 = vpop.permute.xlu1 %1285  ;;  %v1322_v38 = vld [vmem:[#allocation3 + $0x58] sm:$0xff] }
 0x58c   : > { %1297 = vst.msk [vmem:[#allocation3 + $0x48] sm:$0xff] %vm1295_vm11, %v1286_v37  ;;  %v1284_v0 = vpop.permute.xlu0 %1283  ;;  %v1321_v39 = vld [vmem:[#allocation3 + $0x50] sm:$0xff] }
 0x58d   : > { %1296 = vst.msk [vmem:[#allocation3 + $0x40] sm:$0xff] %vm1295_vm11, %v1284_v0  ;;  %v1328_v40 = vpack.c.bf16 %v1322_v38, %v1321_v39 }
 0x58f   : > { %1413 = vmatpush.bf16.msrb.mxu2 %v1328_v40 }
 0x593   : > { %v1258_v44 = vpop.permute.xlu1 %1257  ;;  %v1320_v46 = vld [vmem:[#allocation3 + $0x48] sm:$0xff] }
 0x594   : > { %1270 = vst.msk [vmem:[#allocation3] sm:$0xff] %vm1269_vm10, %v1258_v44  ;;  %v1262_v47 = vpop.permute.xlu0 %1261  ;;  %v1319_v48 = vld [vmem:[#allocation3 + $0x40] sm:$0xff] }
 0x595   : > { %1272 = vst.msk [vmem:[#allocation3 + $0x10] sm:$0xff] %vm1269_vm10, %v1262_v47  ;;  %v1327_v49 = vpack.c.bf16 %v1320_v46, %v1319_v48 }
 0x597   : > { %1414 = vmatpush.bf16.msrb.mxu2 %v1327_v49 }
 0x59b   : > { %1415 = vmatpush.bf16.msrb.mxu2 %v1326_v52  ;;  %v1311_v60 = vld [vmem:[#allocation3] sm:$0xff]  ;;  %v1371_v11 = vpop.permute.xlu1 %1370 }
 0x59c   : > { %v1260_v55 = vpop.permute.xlu0 %1259  ;;  %v1313_v57 = vld [vmem:[#allocation3 + $0x10] sm:$0xff] }
 0x59d   : > { %1271 = vst.msk [vmem:[#allocation3 + $0x8] sm:$0xff] %vm1269_vm10, %v1260_v55  ;;  %v1324_v59 = vpack.c.bf16 %v1314_v58, %v1313_v57 }
 0x59f   : > { %1416 = vmatpush.bf16.msrb.mxu2 %v1325_v56  ;;  %v1596_v56 = vld [vmem:[%s1594_s20 + $0x8] sm:$0xff] }
 0x5a3   : > { %1417 = vmatpush.bf16.msrb.mxu2 %v1324_v59  ;;  %v1361_v18 = vpop.permute.xlu1 %1360 }
 0x5a4   : > { %v1312_v61 = vld [vmem:[#allocation3 + $0x8] sm:$0xff]  ;;  %v1376_v5 = vpop.permute.xlu0 %1375 }
 0x5a5   : > { %v1323_v62 = vpack.c.bf16 %v1312_v61, %v1311_v60 }
 0x5a7   : > { %1418 = vmatpush.bf16.msrb.mxu2 %v1323_v62  ;;  %v1595_v62 = vld [vmem:[%s1594_s20] sm:$0xff] }
 0x5aa   : > { %2151 = vmatmul.msk.bf16.vlgmr.msrb.gmra.mxu2 %vm1398_vm12, %v2216_v63  ;;  %v1597_v63 = vld [vmem:[%s1594_s20 + $0x10] sm:$0xff] }
 0x5ab   : > { %v1356_v24 = vpop.permute.xlu1 %1355 }
 0x5ac   : > { %v1366_v6 = vpop.permute.xlu0 %1365 }
 0x5b4   : > { %v1341_v8 = vpop.permute.xlu0 %1340 }
 0x5ba   : > { %2152 = vmatmul.msk.bf16.gmra.mxu2 %vm1398_vm12, %v2217_v2  ;;  %v1691_v2 = vld [vmem:[%s1690_s23] sm:$0xff] }
 0x5ca   : > { %2153 = vmatmul.msk.bf16.gmra.mxu2 %vm1398_vm12, %v2218_v3  ;;  %v1598_v3 = vld [vmem:[%s1594_s20 + $0x18] sm:$0xff] }
 0x5da   : > { %2154 = vmatmul.msk.bf16.gmra.mxu2 %vm1398_vm12, %v2219_v4  ;;  %v1692_v4 = vld [vmem:[%s1690_s23 + $0x8] sm:$0xff] }
 0x62d   : > { %v1420_v1 = vpop.f32.mrf.mxu2 }
 0x62e   : > { %v1421_v9 = vadd.f32 %v1420_v1, %v1341_v8  ;;  %v2177_v8 = vld [vmem:[%s1690_s23 + $0x30] sm:$0xff]  ;;  %v2176_v1 = vld [vmem:[%s1690_s23 + $0x28] sm:$0xff] }
 0x630   : > { %v1440_v10 = vmax.f32 %v1421_v9, 0.0  ;;  %v2178_v9 = vld [vmem:[%s1690_s23 + $0x38] sm:$0xff] }
 0x632   : > { %v1448_v12 = vmul.f32 %v1440_v10, %v2568_v29 }
 0x634   : > { %1504 = vst.msk [vmem:[#allocation4 + $0x40] sm:$0xff] %vm923_vm8, %v1448_v12 }
 0x635   : > { %v1422_v14 = vpop.f32.mrf.mxu2 }
 0x636   : > { %v1423_v15 = vadd.f32 %v1422_v14, %v1346_v13 }
 0x638   : > { %v1441_v16 = vmax.f32 %v1423_v15, 0.0 }
 0x63a   : > { %v1449_v17 = vmul.f32 %v1441_v16, %v2568_v29 }
 0x63b   : > { %v1566_v60 = vld [vmem:[#allocation4 + $0x40] sm:$0xff] }
 0x63c   : > { %1505 = vst.msk [vmem:[#allocation4 + $0x48] sm:$0xff] %vm923_vm8, %v1449_v17 }
 0x63d   : > { %v1425_v45 = vpop.f32.mrf.mxu2 }
 0x63e   : > { %v1426_v43 = vadd.f32 %v1425_v45, %v1351_v7  ;;  %v2175_v7 = vld [vmem:[%s1690_s23 + $0x20] sm:$0xff] }
 0x640   : > { %v1442_v23 = vmax.f32 %v1426_v43, 0.0 }
 0x642   : > { %v1450_v41 = vmul.f32 %v1442_v23, %v2568_v29 }
 0x643   : > { %v1567_v59 = vld [vmem:[#allocation4 + $0x48] sm:$0xff] }
 0x644   : > { %1506 = vst.msk [vmem:[#allocation4 + $0x50] sm:$0xff] %vm923_vm8, %v1450_v41  ;;  %1524 = vrot.lane.b32.xlu2 %v1450_v41, %s2352_s28  ;;  %v1586_v61 = vpack.c.bf16 %v1567_v59, %v1566_v60 }
 0x645   : > { %v1427_v25 = vpop.f32.mrf.mxu2 }
 0x646   : > { %v1428_v26 = vadd.f32 %v1427_v25, %v1356_v24 }
 0x648   : > { %v1443_v27 = vmax.f32 %v1428_v26, 0.0 }
 0x64a   : > { %v1451_v28 = vmul.f32 %v1443_v27, %v2568_v29 }
 0x64b   : > { %v1568_v57 = vld [vmem:[#allocation4 + $0x50] sm:$0xff] }
 0x64c   : > { %1507 = vst.msk [vmem:[#allocation4 + $0x58] sm:$0xff] %vm923_vm8, %v1451_v28  ;;  %1526 = vrot.lane.b32.xlu1 %v1451_v28, %s2352_s28 }
 0x64d   : > { %v1430_v30 = vpop.f32.mrf.mxu2 }
 0x64e   : > { %v1431_v32 = vadd.f32 %v1430_v30, %v1361_v18 }
 0x650   : > { %v1444_v33 = vmax.f32 %v1431_v32, 0.0 }
 0x652   : > { %v1452_v34 = vmul.f32 %v1444_v33, %v2568_v29 }
 0x653   : > { %v1569_v55 = vld [vmem:[#allocation4 + $0x58] sm:$0xff] }
 0x654   : > { %1508 = vst.msk [vmem:[#allocation4 + $0x60] sm:$0xff] %vm923_vm8, %v1452_v34  ;;  %1528 = vrot.lane.b32.xlu0 %v1452_v34, %s2352_s28  ;;  %1480 = vrot.lane.b32.xlu1 %v1452_v34, %s2351_s15  ;;  %v1587_v58 = vpack.c.bf16 %v1569_v55, %v1568_v57 }
 0x655   : > { %v1432_v42 = vpop.f32.mrf.mxu2 }
 0x656   : > { %v1433_v35 = vadd.f32 %v1432_v42, %v1366_v6  ;;  %v1693_v6 = vld [vmem:[%s1690_s23 + $0x10] sm:$0xff] }
 0x658   : > { %v1445_v36 = vmax.f32 %v1433_v35, 0.0 }
 0x65a   : > { %v1453_v37 = vmul.f32 %v1445_v36, %v2568_v29 }
 0x65b   : > { %v1570_v53 = vld [vmem:[#allocation4 + $0x60] sm:$0xff] }
 0x65c   : > { %1509 = vst.msk [vmem:[#allocation4 + $0x68] sm:$0xff] %vm923_vm8, %v1453_v37  ;;  %1482 = vrot.lane.b32.xlu0 %v1453_v37, %s2351_s15  ;;  %1530 = vrot.lane.b32.xlu2 %v1453_v37, %s2352_s28 }
 0x65d   : > { %v1435_v38 = vpop.f32.mrf.mxu2 }
 0x65e   : > { %v1436_v0 = vadd.f32 %v1435_v38, %v1371_v11 }
 0x660   : > { %v1446_v39 = vmax.f32 %v1436_v0, 0.0 }
 0x662   : > { %v1454_v40 = vmul.f32 %v1446_v39, %v2568_v29 }
 0x663   : > { %v1571_v52 = vld [vmem:[#allocation4 + $0x68] sm:$0xff] }
 0x664   : > { %1510 = vst.msk [vmem:[#allocation4 + $0x70] sm:$0xff] %vm923_vm8, %v1454_v40  ;;  %1532 = vrot.lane.b32.xlu1 %v1454_v40, %s2352_s28  ;;  %1484 = vrot.lane.b32.xlu2 %v1454_v40, %s2351_s15  ;;  %v1588_v54 = vpack.c.bf16 %v1571_v52, %v1570_v53 }
 0x665   : > { %v1437_v44 = vpop.f32.mrf.mxu2 }
 0x666   : > { %v1438_v46 = vadd.f32 %v1437_v44, %v1376_v5  ;;  %v1694_v5 = vld [vmem:[%s1690_s23 + $0x18] sm:$0xff] }
 0x668   : > { %v1447_v47 = vmax.f32 %v1438_v46, 0.0 }
 0x66a   : > { %v1455_v48 = vmul.f32 %v1447_v47, %v2568_v29 }
 0x66b   : > { %v1572_v49 = vld [vmem:[#allocation4 + $0x70] sm:$0xff] }
 0x66c   : > { %1511 = vst.msk [vmem:[#allocation4 + $0x78] sm:$0xff] %vm923_vm8, %v1455_v48  ;;  %1534 = vrot.lane.b32.xlu0 %v1455_v48, %s2352_s28  ;;  %1486 = vrot.lane.b32.xlu1 %v1455_v48, %s2351_s15 }
 0x66d   : > { %1478 = vrot.lane.b32.xlu2 %v1451_v28, %s2351_s15 }
 0x673   : > { %v1573_v50 = vld [vmem:[#allocation4 + $0x78] sm:$0xff] }
 0x674   : > { %1476 = vrot.lane.b32.xlu0 %v1450_v41, %s2351_s15  ;;  %1520 = vrot.lane.b32.xlu1 %v1448_v12, %s2352_s28  ;;  %v1589_v51 = vpack.c.bf16 %v1573_v50, %v1572_v49 }
 0x675   : > { %1472 = vrot.lane.b32.xlu2 %v1448_v12, %s2351_s15 }
 0x676   : > { %1644 = vmatpush.bf16.msra.mxu1 %v1589_v51 }
 0x67a   : > { %1645 = vmatpush.bf16.msra.mxu1 %v1588_v54 }
 0x67c   : > { %1522 = vrot.lane.b32.xlu0 %v1449_v17, %s2352_s28  ;;  %1474 = vrot.lane.b32.xlu1 %v1449_v17, %s2351_s15  ;;  %s2902_s28 = sld [smem:[#allocation12_spill]] }
 0x67d   : > { %1606 = vperm.xlu2 %2287, %v1596_v56  }
 0x67e   : > { %1646 = vmatpush.bf16.msra.mxu1 %v1587_v58 }
 0x682   : > { %1647 = vmatpush.bf16.msra.mxu1 %v1586_v61  ;;  %s1553_s25 = scalar_lea.vmem %s2902_s28, %s2577_s16 }
 0x683   : > { %v2158_v49 = vld [vmem:[%s1553_s25] sm:$0xf]  ;;  %v2221_v50 = vld [vmem:[%s1553_s25 + $0x4] sm:$0xf]  ;;  %v2160_v51 = vld [vmem:[%s1553_s25 + $0x8] sm:$0xf0] }
 0x684   : > { %1601 = vperm.xlu0 %2285, %v1595_v62   ;;  %1611 = vperm.xlu1 %2286, %v1597_v63   ;;  %v2222_v54 = vld [vmem:[%s1553_s25 + $0x4] sm:$0xf0]  ;;  %v2163_v59 = vor.u32 %v2221_v50, %v2160_v51  ;;  %v2223_v61 = vld [vmem:[%s1553_s25 + $0x14] sm:$0xf]  ;;  %v2168_v62 = vld [vmem:[%s1553_s25 + $0x18] sm:$0xf0] }
 0x685   : > { %1753 = vperm.xlu2 %2287, %v1691_v2   ;;  %v2159_v60 = vor.u32 %v2222_v54, %v2158_v49  ;;  %v2166_v63 = vld [vmem:[%s1553_s25 + $0x10] sm:$0xf]  ;;  %v2224_v2 = vld [vmem:[%s1553_s25 + $0x14] sm:$0xf0] }
 0x68c   : > { %1616 = vperm.xlu0 %2285, %v1598_v3   ;;  %1758 = vperm.xlu1 %2286, %v1692_v4   ;;  %v2171_v3 = vor.u32 %v2223_v61, %v2168_v62  ;;  %v2167_v4 = vor.u32 %v2224_v2, %v2166_v63 }
 0x68d   : > { %1768 = vperm.xlu2 %2287, %v1694_v5  }
 0x694   : > { %1763 = vperm.xlu0 %2285, %v1693_v6   ;;  %1777 = vperm.xlu1 %2286, %v2175_v7  }
 0x695   : > { %1787 = vperm.xlu2 %2287, %v2177_v8  }
 0x69c   : > { %1782 = vperm.xlu0 %2285, %v2176_v1   ;;  %1792 = vperm.xlu1 %2286, %v2178_v9  }
 0x69e   : > { %v1525_v10 = vpop.permute.xlu2 %1524 }
 0x69f   : > { %1546 = vst.msk [vmem:[#allocation4 + $0x90] sm:$0xff] %vm1295_vm11, %v1525_v10 }
 0x6a6   : > { %v1576_v46 = vld [vmem:[#allocation4 + $0x90] sm:$0xff] }
 0x6b6   : > { %v1531_v11 = vpop.permute.xlu2 %1530 }
 0x6b7   : > { %1549 = vst.msk [vmem:[#allocation4 + $0xa8] sm:$0xff] %vm1295_vm11, %v1531_v11 }
 0x6be   : > { %v1527_v12 = vpop.permute.xlu1 %1526  ;;  %v1485_v13 = vpop.permute.xlu2 %1484  ;;  %v1579_v42 = vld [vmem:[#allocation4 + $0xa8] sm:$0xff] }
 0x6bf   : > { %1547 = vst.msk [vmem:[#allocation4 + $0x98] sm:$0xff] %vm1295_vm11, %v1527_v12 }
 0x6c0   : > { %1502 = vst.msk [vmem:[#allocation4 + $0x30] sm:$0xff] %vm1269_vm10, %v1485_v13 }
 0x6c6   : > { %v1529_v14 = vpop.permute.xlu0 %1528  ;;  %v1481_v15 = vpop.permute.xlu1 %1480  ;;  %v1577_v38 = vld [vmem:[#allocation4 + $0x98] sm:$0xff] }
 0x6c7   : > { %1548 = vst.msk [vmem:[#allocation4 + $0xa0] sm:$0xff] %vm1295_vm11, %v1529_v14  ;;  %v1479_v16 = vpop.permute.xlu2 %1478  ;;  %v1564_v27 = vld [vmem:[#allocation4 + $0x30] sm:$0xff]  ;;  %v1591_v48 = vpack.c.bf16 %v1577_v38, %v1576_v46 }
 0x6c8   : > { %1500 = vst.msk [vmem:[#allocation4 + $0x20] sm:$0xff] %vm1269_vm10, %v1481_v15 }
 0x6c9   : > { %1499 = vst.msk [vmem:[#allocation4 + $0x18] sm:$0xff] %vm1269_vm10, %v1479_v16 }
 0x6ce   : > { %v1483_v17 = vpop.permute.xlu0 %1482  ;;  %v1578_v33 = vld [vmem:[#allocation4 + $0xa0] sm:$0xff] }
 0x6cf   : > { %1501 = vst.msk [vmem:[#allocation4 + $0x28] sm:$0xff] %vm1269_vm10, %v1483_v17  ;;  %v1473_v18 = vpop.permute.xlu2 %1472  ;;  %v1562_v35 = vld [vmem:[#allocation4 + $0x20] sm:$0xff]  ;;  %v1592_v36 = vpack.c.bf16 %v1579_v42, %v1578_v33 }
 0x6d0   : > { %1496 = vst.msk [vmem:[#allocation4] sm:$0xff] %vm1269_vm10, %v1473_v18  ;;  %v1561_v44 = vld [vmem:[#allocation4 + $0x18] sm:$0xff] }
 0x6d6   : > { %v1533_v45 = vpop.permute.xlu1 %1532  ;;  %v1563_v34 = vld [vmem:[#allocation4 + $0x28] sm:$0xff] }
 0x6d7   : > { %1550 = vst.msk [vmem:[#allocation4 + $0xb0] sm:$0xff] %vm1295_vm11, %v1533_v45  ;;  %v1584_v37 = vpack.c.bf16 %v1563_v34, %v1562_v35  ;;  %v1558_v55 = vld [vmem:[#allocation4] sm:$0xff]  ;;  %v1607_v1 = vpop.permute.xlu2 %1606 }
 0x6de   : > { %v1535_v43 = vpop.permute.xlu0 %1534  ;;  %v1487_v23 = vpop.permute.xlu1 %1486  ;;  %v1580_v25 = vld [vmem:[#allocation4 + $0xb0] sm:$0xff] }
 0x6df   : > { %1551 = vst.msk [vmem:[#allocation4 + $0xb8] sm:$0xff] %vm1295_vm11, %v1535_v43 }
 0x6e0   : > { %1503 = vst.msk [vmem:[#allocation4 + $0x38] sm:$0xff] %vm1269_vm10, %v1487_v23 }
 0x6e6   : > { %v1477_v41 = vpop.permute.xlu0 %1476  ;;  %v1521_v24 = vpop.permute.xlu1 %1520  ;;  %v1581_v26 = vld [vmem:[#allocation4 + $0xb8] sm:$0xff] }
 0x6e7   : > { %1498 = vst.msk [vmem:[#allocation4 + $0x10] sm:$0xff] %vm1269_vm10, %v1477_v41  ;;  %v1565_v28 = vld [vmem:[#allocation4 + $0x38] sm:$0xff]  ;;  %v1593_v30 = vpack.c.bf16 %v1581_v26, %v1580_v25 }
 0x6e8   : > { %1544 = vst.msk [vmem:[#allocation4 + $0x80] sm:$0xff] %vm1295_vm11, %v1521_v24  ;;  %v1585_v32 = vpack.c.bf16 %v1565_v28, %v1564_v27 }
 0x6e9   : > { %1667 = vmatpush.bf16.msra.mxu3 %v1593_v30 }
 0x6ea   : > { %1648 = vmatpush.bf16.msra.mxu1 %v1585_v32 }
 0x6ed   : > { %1668 = vmatpush.bf16.msra.mxu3 %v1592_v36 }
 0x6ee   : > { %1649 = vmatpush.bf16.msra.mxu1 %v1584_v37  ;;  %v1523_v0 = vpop.permute.xlu0 %1522  ;;  %v1475_v39 = vpop.permute.xlu1 %1474  ;;  %v1560_v40 = vld [vmem:[#allocation4 + $0x10] sm:$0xff] }
 0x6ef   : > { %1545 = vst.msk [vmem:[#allocation4 + $0x88] sm:$0xff] %vm1295_vm11, %v1523_v0  ;;  %v1583_v47 = vpack.c.bf16 %v1561_v44, %v1560_v40  ;;  %v1574_v52 = vld [vmem:[#allocation4 + $0x80] sm:$0xff] }
 0x6f0   : > { %1497 = vst.msk [vmem:[#allocation4 + $0x8] sm:$0xff] %vm1269_vm10, %v1475_v39 }
 0x6f1   : > { %1669 = vmatpush.bf16.msra.mxu3 %v1591_v48 }
 0x6f2   : > { %1650 = vmatpush.bf16.msra.mxu1 %v1583_v47 }
 0x6f6   : > { %v1575_v53 = vld [vmem:[#allocation4 + $0x88] sm:$0xff]  ;;  %v1602_v11 = vpop.permute.xlu0 %1601  ;;  %v1612_v14 = vpop.permute.xlu1 %1611 }
 0x6f7   : > { %v1559_v56 = vld [vmem:[#allocation4 + $0x8] sm:$0xff]  ;;  %v1590_v57 = vpack.c.bf16 %v1575_v53, %v1574_v52 }
 0x6f8   : > { %v1582_v58 = vpack.c.bf16 %v1559_v56, %v1558_v55 }
 0x6f9   : > { %1670 = vmatpush.bf16.msra.mxu3 %v1590_v57 }
 0x6fa   : > { %1651 = vmatpush.bf16.msra.mxu1 %v1582_v58 }
 0x6fc   : > { %2172 = vmatmul.msk.bf16.vlgmr.msra.gmra.mxu3 %vm1637_vm13, %v2163_v59 }
 0x6fd   : > { %1652 = vmatmul.bf16.vlgmr.msra.gmra.mxu1 %v2159_v60 }
 0x6fe   : > { %v1617_v25 = vpop.permute.xlu0 %1616 }
 0x70c   : > { %2173 = vmatmul.msk.bf16.gmra.mxu3 %vm1637_vm13, %v2171_v3 }
 0x70d   : > { %1657 = vmatmul.bf16.gmra.mxu1 %v2167_v4 }
 0x77a   : > { %v1653_v5 = vpop.f32.mrf.mxu1 }
 0x77b   : > { %v1654_v12 = vadd.f32 %v1653_v5, %v1602_v11 }
 0x77f   : > { %v1672_v6 = vpop.f32.mrf.mxu3 }
 0x780   : > { %v1673_v15 = vadd.f32 %v1672_v6, %v1654_v12 }
 0x782   : > { %v1655_v7 = vpop.f32.mrf.mxu1  ;;  %v1682_v43 = vmul.f32 %v1673_v15, %v2568_v29 }
 0x783   : > { %v1656_v9 = vadd.f32 %v1655_v7, %v1607_v1  ;;  %v1759_v1 = vpop.permute.xlu1 %1758 }
 0x784   : > { %v1686_v26 = vadd.f32 %v1682_v43, %v2641_v22 }
 0x786   : > { %v1700_v34 = vsel %vm923_vm8, %v1686_v26, 0.0 }
 0x787   : > { %v1674_v8 = vpop.f32.mrf.mxu3 }
 0x788   : > { %v1675_v13 = vadd.f32 %v1674_v8, %v1656_v9  ;;  %v1754_v8 = vpop.permute.xlu2 %1753 }
 0x78a   : > { %v1658_v10 = vpop.f32.mrf.mxu1  ;;  %v1683_v18 = vmul.f32 %v1675_v13, %v2568_v29  ;;  %v1764_v13 = vpop.permute.xlu0 %1763 }
 0x78b   : > { %v1659_v16 = vadd.f32 %v1658_v10, %v1612_v14  ;;  %v1778_v15 = vpop.permute.xlu1 %1777 }
 0x78c   : > { %v1687_v24 = vadd.f32 %v1683_v18, %v2639_v21 }
 0x78e   : > { %v1701_v32 = vsel %vm923_vm8, %v1687_v24, 0.0 }
 0x78f   : > { %v1677_v17 = vpop.f32.mrf.mxu3  ;;  %v1702_v36 = vadd.f32 %v1701_v32, %v1700_v34 }
 0x790   : > { %v1678_v45 = vadd.f32 %v1677_v17, %v1659_v16  ;;  %v1769_v12 = vpop.permute.xlu2 %1768 }
 0x792   : > { %v1684_v23 = vmul.f32 %v1678_v45, %v2568_v29  ;;  %v1660_v41 = vpop.f32.mrf.mxu1 }
 0x793   : > { %v1661_v28 = vadd.f32 %v1660_v41, %v1617_v25 }
 0x794   : > { %v1688_v27 = vadd.f32 %v1684_v23, %v2637_v20 }
 0x796   : > { %v1703_v42 = vsel %vm923_vm8, %v1688_v27, 0.0 }
 0x797   : > { %v1679_v30 = vpop.f32.mrf.mxu3  ;;  %v1704_v21 = vadd.f32 %v1703_v42, %v1702_v36 }
 0x798   : > { %v1680_v33 = vadd.f32 %v1679_v30, %v1661_v28  ;;  %v1783_v28 = vpop.permute.xlu0 %1782  ;;  %v1793_v30 = vpop.permute.xlu1 %1792 }
 0x79a   : > { %v1685_v35 = vmul.f32 %v1680_v33, %v2568_v29 }
 0x79c   : > { %v1689_v37 = vadd.f32 %v1685_v35, %v2635_v19 }
 0x79e   : > { %v1705_v38 = vsel %vm923_vm8, %v1689_v37, 0.0 }
 0x79f   : > { %v1706_v22 = vadd.f32 %v1705_v38, %v1704_v21 }
 0x7a1   : > { %v1707_v0 = vrot.slane %v1706_v22, 4 }
 0x7a3   : > { %v1708_v20 = vadd.f32 %v1707_v0, %v1706_v22 }
 0x7a5   : > { %v1709_v39 = vrot.slane %v1708_v20, 2 }
 0x7a7   : > { %v1710_v40 = vadd.f32 %v1709_v39, %v1708_v20 }
 0x7a9   : > { %v1711_v44 = vrot.slane %v1710_v40, 1 }
 0x7ab   : > { %v1712_v46 = vadd.f32 %v1711_v44, %v1710_v40 }
 0x7ad   : > { %v1713_v47 = vmul.f32 %v1712_v46, %v2627_v31 }
 0x7af   : > { %v1714_v48 = vsub.f32 %v1686_v26, %v1713_v47  ;;  %v1715_v49 = vsub.f32 %v1687_v24, %v1713_v47  ;;  %v1716_v50 = vsub.f32 %v1688_v27, %v1713_v47  ;;  %v1717_v51 = vsub.f32 %v1689_v37, %v1713_v47  ;;  %v1788_v27 = vpop.permute.xlu2 %1787 }
 0x7b1   : > { %v1718_v52 = vmul.f32 %v1714_v48, %v1714_v48  ;;  %v1719_v53 = vmul.f32 %v1715_v49, %v1715_v49  ;;  %v1720_v54 = vmul.f32 %v1716_v50, %v1716_v50  ;;  %v1721_v19 = vmul.f32 %v1717_v51, %v1717_v51 }
 0x7b3   : > { %v1722_v55 = vsel %vm923_vm8, %v1718_v52, 0.0  ;;  %v1723_v56 = vsel %vm923_vm8, %v1719_v53, 0.0  ;;  %v1725_v58 = vsel %vm923_vm8, %v1720_v54, 0.0  ;;  %v1727_v60 = vsel %vm923_vm8, %v1721_v19, 0.0 }
 0x7b4   : > { %v1724_v57 = vadd.f32 %v1723_v56, %v1722_v55 }
 0x7b6   : > { %v1726_v59 = vadd.f32 %v1725_v58, %v1724_v57 }
 0x7b8   : > { %v1728_v61 = vadd.f32 %v1727_v60, %v1726_v59 }
 0x7ba   : > { %v1729_v62 = vrot.slane %v1728_v61, 4 }
 0x7bc   : > { %v1730_v63 = vadd.f32 %v1729_v62, %v1728_v61 }
 0x7be   : > { %v1731_v2 = vrot.slane %v1730_v63, 2 }
 0x7c0   : > { %v1732_v3 = vadd.f32 %v1731_v2, %v1730_v63 }
 0x7c2   : > { %v1733_v4 = vrot.slane %v1732_v3, 1 }
 0x7c4   : > { %v1734_v5 = vadd.f32 %v1733_v4, %v1732_v3 }
 0x7c6   : > { %v1735_v6 = vmul.f32 %v1734_v5, %v2627_v31 }
 0x7c8   : > { %v1736_v7 = vadd.f32 1e-05, %v1735_v6 }
 0x7ca   : > { %2303 = vrsqrt.f32 %v1736_v7  ;;  %vm1743_vm15 = vweird.f32 %v1736_v7 }
 0x7d0   : > { %v2304_v9 = vpop.eup %2303 }
 0x7d1   : > { %v1738_v10 = vmul.f32 %v2304_v9, %v1736_v7  ;;  %vm1744_vm14 = vweird.f32 %v2304_v9 }
 0x7d2   : > { %vm1745_vm0 = vmor %vm1743_vm15, %vm1744_vm14 }
 0x7d3   : > { %v1739_v11 = vmul.f32 %v2304_v9, %v1738_v10 }
 0x7d5   : > { %v1740_v14 = vmul.f32 0.5, %v1739_v11 }
 0x7d7   : > { %v1741_v16 = vsub.f32 1.5, %v1740_v14 }
 0x7d9   : > { %v1742_v17 = vmul.f32 %v2304_v9, %v1741_v16 }
 0x7db   : > { %v1746_v18 = vsel %vm1745_vm0, %v2304_v9, %v1742_v17 }
 0x7dc   : > { %v1747_v45 = vmul.f32 %v1746_v18, %v1714_v48  ;;  %v1748_v43 = vmul.f32 %v1746_v18, %v1715_v49  ;;  %v1749_v31 = vmul.f32 %v1746_v18, %v1716_v50  ;;  %v1750_v23 = vmul.f32 %v1746_v18, %v1717_v51 }
 0x7de   : > { %v1771_v41 = vmul.f32 %v1754_v8, %v1747_v45  ;;  %v1772_v24 = vmul.f32 %v1759_v1, %v1748_v43  ;;  %v1773_v25 = vmul.f32 %v1764_v13, %v1749_v31  ;;  %v1774_v26 = vmul.f32 %v1769_v12, %v1750_v23 }
 0x7e0   : > { %v1795_v32 = vadd.f32 %v1778_v15, %v1771_v41  ;;  %v1796_v33 = vadd.f32 %v1783_v28, %v1772_v24  ;;  %v1797_v34 = vadd.f32 %v1788_v27, %v1773_v25  ;;  %v1798_v42 = vadd.f32 %v1793_v30, %v1774_v26 }
 0x7e1   : > { %1806 = sbr.rel (%p2179_p7) target bundleno = 2180 (0x884), region = 96 }
 0x7e2   : > { %1799 = vst.msk [vmem:[#allocation2] sm:$0xff] %vm923_vm8, %v1795_v32 }
 0x7e3   : > { %1800 = vst.msk [vmem:[#allocation2 + $0x8] sm:$0xff] %vm923_vm8, %v1796_v33 }
 0x7e4   : > { %1801 = vst.msk [vmem:[#allocation2 + $0x10] sm:$0xff] %vm923_vm8, %v1797_v34 }
 0x7e5   : > { %1802 = vst.msk [vmem:[#allocation2 + $0x18] sm:$0xff] %vm923_vm8, %v1798_v42 }
 0x7e6   : > { %v1823_v35 = vld [vmem:[%s2903_s26 + $0x10] sm:$0xff]  ;;  %v1821_v36 = vld [vmem:[%s2904_s0] sm:$0xff]  ;;  %v1809_v37 = vmul.f32 %v1797_v34, %v2568_v29  ;;  %v1810_v21 = vmul.f32 %v1798_v42, %v2568_v29  ;;  %v1807_v38 = vmul.f32 %v1795_v32, %v2568_v29  ;;  %v2354_v22 = vmov 0   ;;  %v2226_v46 = vld [vmem:[%s2905_s21 + $0x8] sm:$0xff] }
 0x7e7   : > { %2306 = vset.pattern.permute.xlu1 %v2354_v22  ;;  %2305 = vset.pattern.permute.xlu0 %v2354_v22  ;;  %v1808_v0 = vmul.f32 %v1796_v33, %v2568_v29  ;;  %v1825_v39 = vld [vmem:[%s2904_s0 + $0x20] sm:$0xff]  ;;  %v1824_v47 = vld [vmem:[%s2904_s0 + $0x18] sm:$0xff]  ;;  %v1822_v48 = vld [vmem:[%s2904_s0 + $0x8] sm:$0xff] }
 0x7e8   : > { %1841 = vperm.xlu1 %2306, %v1823_v35   ;;  %1831 = vperm.xlu0 %2305, %v1821_v36   ;;  %v1812_v20 = vpack.c.bf16 %v1810_v21, %v1809_v37  ;;  %v2225_v44 = vld [vmem:[%s2905_s21] sm:$0xff]  ;;  %v2227_v49 = vld [vmem:[%s2905_s21 + $0x10] sm:$0xff]  ;;  %v2228_v50 = vld [vmem:[%s2905_s21 + $0x18] sm:$0xff] }
 0x7e9   : > { %2307 = vset.pattern.permute.xlu2 %v2354_v22  ;;  %v1811_v40 = vpack.c.bf16 %v1808_v0, %v1807_v38  ;;  %v1826_v51 = vld [vmem:[%s2904_s0 + $0x28] sm:$0xff]  ;;  %v1828_v52 = vld [vmem:[%s2904_s0 + $0x38] sm:$0xff]  ;;  %v1827_v53 = vld [vmem:[%s2904_s0 + $0x30] sm:$0xff] }
 0x7ea   : > { %1907 = vmatpush.bf16.msra.mxu0 %v1812_v20  ;;  %2230 = vmatpush.bf16.msra.mxu1 %v1812_v20 }
 0x7eb   : > { %2231 = vmatpush.bf16.msra.mxu2 %v1812_v20  ;;  %2232 = vmatpush.bf16.msra.mxu3 %v1812_v20 }
 0x7ec   : > { %1851 = vperm.xlu2 %2307, %v1825_v39  }
 0x7ee   : > { %1908 = vmatpush.bf16.msra.mxu0 %v1811_v40  ;;  %2233 = vmatpush.bf16.msra.mxu1 %v1811_v40 }
 0x7ef   : > { %2234 = vmatpush.bf16.msra.mxu2 %v1811_v40  ;;  %2235 = vmatpush.bf16.msra.mxu3 %v1811_v40 }
 0x7f0   : > { %1846 = vperm.xlu1 %2306, %v1824_v47   ;;  %1836 = vperm.xlu0 %2305, %v1822_v48  }
 0x7f1   : > { %2196 = vmatmul.msk.bf16.vlgmr.msra.gmra.mxu0 %vm818_vm6, %v2225_v44  ;;  %2197 = vmatmul.msk.bf16.vlgmr.msra.gmra.mxu1 %vm818_vm6, %v2226_v46 }
 0x7f2   : > { %2198 = vmatmul.msk.bf16.vlgmr.msra.gmra.mxu2 %vm818_vm6, %v2227_v49  ;;  %2199 = vmatmul.msk.bf16.vlgmr.msra.gmra.mxu3 %vm818_vm6, %v2228_v50 }
 0x7f4   : > { %1856 = vperm.xlu2 %2307, %v1826_v51  }
 0x7f8   : > { %1866 = vperm.xlu1 %2306, %v1828_v52   ;;  %1861 = vperm.xlu0 %2305, %v1827_v53  }
 0x846   : > { %v1852_v63 = vpop.permute.xlu2 %1851 }
 0x84e   : > { %v1857_v15 = vpop.permute.xlu2 %1856 }
 0x85a   : > { %v1832_v54 = vpop.permute.xlu0 %1831  ;;  %v1842_v19 = vpop.permute.xlu1 %1841 }
 0x862   : > { %v1837_v55 = vpop.permute.xlu0 %1836  ;;  %v1847_v62 = vpop.permute.xlu1 %1846 }
 0x86a   : > { %v1862_v2 = vpop.permute.xlu0 %1861  ;;  %v1867_v14 = vpop.permute.xlu1 %1866 }
 0x86e   : > { %v1910_v56 = vpop.f32.mrf.mxu0  ;;  %v1915_v57 = vpop.f32.mrf.mxu1 }
 0x86f   : > { %v1911_v58 = vadd.f32 %v1910_v56, %v1832_v54  ;;  %v1916_v59 = vadd.f32 %v1915_v57, %v1842_v19 }
 0x871   : > { %v1930_v60 = vmul.f32 %v1911_v58, %v2568_v29  ;;  %v1932_v61 = vmul.f32 %v1916_v59, %v2568_v29 }
 0x873   : > { %1938 = vst.msk [vmem:[%s2493_s12] sm:$0xff] %vm923_vm8, %v1930_v60 }
 0x874   : > { %1940 = vst.msk [vmem:[%s2493_s12 + $0x10] sm:$0xff] %vm923_vm8, %v1932_v61 }
 0x875   : > { %v1920_v3 = vpop.f32.mrf.mxu2  ;;  %v1925_v4 = vpop.f32.mrf.mxu3 }
 0x876   : > { %v1921_v5 = vadd.f32 %v1920_v3, %v1852_v63  ;;  %v1926_v6 = vadd.f32 %v1925_v4, %v1862_v2  ;;  %v1912_v7 = vpop.f32.mrf.mxu0  ;;  %v1917_v8 = vpop.f32.mrf.mxu1 }
 0x877   : > { %v1913_v1 = vadd.f32 %v1912_v7, %v1837_v55  ;;  %v1918_v9 = vadd.f32 %v1917_v8, %v1847_v62 }
 0x878   : > { %v1934_v10 = vmul.f32 %v1921_v5, %v2568_v29  ;;  %v1936_v11 = vmul.f32 %v1926_v6, %v2568_v29 }
 0x879   : > { %v1931_v12 = vmul.f32 %v1913_v1, %v2568_v29  ;;  %v1933_v13 = vmul.f32 %v1918_v9, %v2568_v29 }
 0x87a   : > { %1942 = vst.msk [vmem:[%s2493_s12 + $0x20] sm:$0xff] %vm923_vm8, %v1934_v10 }
 0x87b   : > { %1944 = vst.msk [vmem:[%s2493_s12 + $0x30] sm:$0xff] %vm923_vm8, %v1936_v11 }
 0x87c   : > { %1939 = vst.msk [vmem:[%s2493_s12 + $0x8] sm:$0xff] %vm923_vm8, %v1931_v12 }
 0x87d   : > { %1941 = vst.msk [vmem:[%s2493_s12 + $0x18] sm:$0xff] %vm923_vm8, %v1933_v13  ;;  %v1922_v16 = vpop.f32.mrf.mxu2  ;;  %v1927_v17 = vpop.f32.mrf.mxu3 }
 0x87e   : > { %v1923_v18 = vadd.f32 %v1922_v16, %v1857_v15  ;;  %v1928_v45 = vadd.f32 %v1927_v17, %v1867_v14 }
 0x880   : > { %v1935_v43 = vmul.f32 %v1923_v18, %v2568_v29  ;;  %v1937_v31 = vmul.f32 %v1928_v45, %v2568_v29 }
 0x882   : > { %1943 = vst.msk [vmem:[%s2493_s12 + $0x28] sm:$0xff] %vm923_vm8, %v1935_v43 }
 0x883   : > { %1945 = vst.msk [vmem:[%s2493_s12 + $0x38] sm:$0xff] %vm923_vm8, %v1937_v31 }
 0x884 PF: > { %s2906_s23 = sld [smem:[#allocation7_spill]] }
 0x885   : > { %s2907_s24 = sld [smem:[#allocation5_spill]] }
 0x886   : > { %s2908_s25 = sld [smem:[#allocation6_spill]] }
 0x887   : > { %s2909_s26 = sld [smem:[#allocation8_spill]] }
 0x888   : > { %s2910_s27 = sld [smem:[#allocation9_spill]] }
 0x88a   : > { %s27_s28 = sadd.s32 1, %s2906_s23  }
 0x88b   : > { %p24_p8 = scmp.ge.s32.totalorder %s27_s28, 6  }
 0x88d   :  { %26 = sbr.rel (!%p24_p8) target bundleno = 6 (0x6), region = 144 }

</bundles_post_ra>
